<compile_context>
chip_gen: v7x
topology: tpu7x:2x2x1
jax: 0.10.0
libtpu: 0.0.40
codegen_flags: <defaults>
</compile_context>

<pallas_src>
import math
import functools

import jax
import jax.numpy as jnp
from jax.experimental import pallas as pl
from jax.experimental.pallas import tpu as pltpu


# ---------------------------------------------------------------------------
# Fused block kernel
# ---------------------------------------------------------------------------

def _block_kernel(x_ref, wqkv_ref, wo_ref, w1_ref, w2_ref, w3_ref,
                  ga_ref, gf_ref, cos_ref, sin_ref,
                  o_ref, y_scr,
                  *, n_head, head_size, eps, compute_dtype):
    cdt = compute_dtype
    x = x_ref[0].astype(jnp.float32)                      # (T, C)
    T, C = x.shape

    # -------------------- attention half --------------------
    # RMSNorm (f32)
    xn = x * jax.lax.rsqrt(jnp.mean(x * x, axis=-1, keepdims=True) + eps)
    xn = xn * ga_ref[...]

    # fused QKV projection (1/sqrt(head_size) is already folded into Q cols)
    qkv = jnp.dot(xn.astype(cdt), wqkv_ref[...],
                  preferred_element_type=jnp.float32)      # (T, 3C) f32 acc

    cos = cos_ref[...]     # (T, head_size)  = [cos | cos]
    sin = sin_ref[...]     # (T, head_size)  = [-sin | sin]  (sign folded in)

    ri = jax.lax.broadcasted_iota(jnp.int32, (T, T), 0)
    ci = jax.lax.broadcasted_iota(jnp.int32, (T, T), 1)
    causal = ri >= ci

    half = head_size // 2
    for h in range(n_head):
        lo = h * head_size
        hi = lo + head_size
        qh = qkv[:, lo:hi]
        kh = qkv[:, C + lo:C + hi]
        vh = qkv[:, 2 * C + lo:2 * C + hi]

        # rotate-half RoPE via XLU roll (columns are host-de-interleaved so
        # the original (even, odd) pairs sit in the (first, second) halves).
        qh = qh * cos + pltpu.roll(qh, half, 1) * sin
        kh = kh * cos + pltpu.roll(kh, half, 1) * sin

        # causal softmax attention for this head
        s = jax.lax.dot_general(qh.astype(cdt), kh.astype(cdt),
                                (((1,), (1,)), ((), ())),
                                preferred_element_type=jnp.float32)  # (T, T)
        s = jnp.where(causal, s, -1e30)
        m = jnp.max(s, axis=-1, keepdims=True)
        p = jnp.exp(s - m)
        l = jnp.sum(p, axis=-1, keepdims=True)
        p = p * pl.reciprocal(l, approx=True)               # EUP reciprocal
        y_scr[:, lo:hi] = jnp.dot(p.astype(cdt), vh.astype(cdt),
                                  preferred_element_type=jnp.float32)

    # single full-contraction output projection + residual
    attn = x + jnp.dot(y_scr[...].astype(cdt), wo_ref[...],
                       preferred_element_type=jnp.float32)

    # -------------------- FFN half --------------------
    an = attn * jax.lax.rsqrt(jnp.mean(attn * attn, axis=-1, keepdims=True) + eps)
    an = an * gf_ref[...]
    anc = an.astype(cdt)
    h1 = jnp.dot(anc, w1_ref[...], preferred_element_type=jnp.float32)
    h3 = jnp.dot(anc, w3_ref[...], preferred_element_type=jnp.float32)
    g = (h1 * jax.nn.sigmoid(h1)) * h3                      # SiLU gate (f32)
    out = attn + jnp.dot(g.astype(cdt), w2_ref[...],
                         preferred_element_type=jnp.float32)
    o_ref[0] = out.astype(o_ref.dtype)


# ---------------------------------------------------------------------------
# Host-side weight preparation (one-time, outside the kernel)
# ---------------------------------------------------------------------------

def _prepare_weights(params, n_head, compute_dtype):
    C = params["wo"].shape[0]
    hs = C // n_head
    half = hs // 2

    # per-head de-interleave permutation: [0,2,4,...,1,3,5,...] within a head.
    # Applying the same permutation to Q and K leaves q.k^T unchanged, and
    # turns interleaved-pair RoPE into rotate-half RoPE (a plain lane roll).
    j = jnp.arange(hs)
    within = jnp.where(j < half, 2 * j, 2 * (j - half) + 1)
    perm = (jnp.arange(n_head)[:, None] * hs + within[None, :]).reshape(-1)

    wqkv = params["wqkv"]
    wq = wqkv[:, perm] * (1.0 / math.sqrt(hs))   # fold attention scale into Q
    wk = wqkv[:, C + perm]
    wv = wqkv[:, 2 * C:]
    wqkv_k = jnp.concatenate([wq, wk, wv], axis=1).astype(compute_dtype)

    cos, sin = params["cos"], params["sin"]      # (T, hs // 2)
    cos_h = jnp.concatenate([cos, cos], axis=1).astype(jnp.float32)
    sin_h = jnp.concatenate([-sin, sin], axis=1).astype(jnp.float32)

    return dict(
        wqkv=wqkv_k,
        wo=params["wo"].astype(compute_dtype),
        w1=params["w1"].astype(compute_dtype),
        w2=params["w2"].astype(compute_dtype),
        w3=params["w3"].astype(compute_dtype),
        g_attn=params["g_attn"].astype(jnp.float32),
        g_ffn=params["g_ffn"].astype(jnp.float32),
        cos=cos_h, sin=sin_h)


def block_forward(x, params, n_head, *, compute_dtype=jnp.float32, eps=1e-5):
    B, T, C = x.shape
    hs = C // n_head
    hd = params["w1"].shape[1]
    kp = _prepare_weights(params, n_head, compute_dtype)

    kernel = functools.partial(_block_kernel, n_head=n_head, head_size=hs,
                               eps=eps, compute_dtype=compute_dtype)

    return pl.pallas_call(
        kernel,
        out_shape=jax.ShapeDtypeStruct((B, T, C), x.dtype),
        grid=(B,),
        in_specs=[
            pl.BlockSpec((1, T, C), lambda b: (b, 0, 0)),    # x
            pl.BlockSpec((C, 3 * C), lambda b: (0, 0)),      # wqkv (perm+scaled)
            pl.BlockSpec((C, C), lambda b: (0, 0)),          # wo
            pl.BlockSpec((C, hd), lambda b: (0, 0)),         # w1
            pl.BlockSpec((hd, C), lambda b: (0, 0)),         # w2
            pl.BlockSpec((C, hd), lambda b: (0, 0)),         # w3
            pl.BlockSpec((1, C), lambda b: (0, 0)),          # attention_norm w
            pl.BlockSpec((1, C), lambda b: (0, 0)),          # ffn_norm w
            pl.BlockSpec((T, hs), lambda b: (0, 0)),         # cos  [c|c]
            pl.BlockSpec((T, hs), lambda b: (0, 0)),         # sin  [-s|s]
        ],
        out_specs=pl.BlockSpec((1, T, C), lambda b: (b, 0, 0)),
        scratch_shapes=[pltpu.VMEM((T, C), jnp.float32)],    # per-head y buffer
        compiler_params=pltpu.CompilerParams(
            dimension_semantics=("parallel",),
            vmem_limit_bytes=32 * 1024 * 1024),
    )(x, kp["wqkv"], kp["wo"], kp["w1"], kp["w2"], kp["w3"],
      kp["g_attn"], kp["g_ffn"], kp["cos"], kp["sin"])


# ---------------------------------------------------------------------------
# Pure-JAX reference (mirrors the PyTorch module exactly)
# ---------------------------------------------------------------------------

def _ref_block(x, params, n_head, eps=1e-5):
    B, T, C = x.shape
    hs = C // n_head
    cos = params["cos"][:T]
    sin = params["sin"][:T]

    def rmsnorm(v, w):
        return v * jax.lax.rsqrt(jnp.mean(v * v, axis=-1, keepdims=True) + eps) * w

    def apply_rope(t):                              # t: (B, H, T, hs)
        tt = jnp.swapaxes(t, 1, 2)                  # (B, T, H, hs)
        tp = tt.reshape(B, T, n_head, hs // 2, 2)
        te, to = tp[..., 0], tp[..., 1]
        c = cos[None, :, None, :]
        s = sin[None, :, None, :]
        re = te * c - to * s
        ro = te * s + to * c
        out = jnp.stack([re, ro], axis=-1).reshape(B, T, n_head, hs)
        return jnp.swapaxes(out, 1, 2)

    xn = rmsnorm(x, params["g_attn"][0])
    qkv = xn @ params["wqkv"]
    q, k, v = jnp.split(qkv, 3, axis=-1)
    q = jnp.swapaxes(q.reshape(B, T, n_head, hs), 1, 2)
    k = jnp.swapaxes(k.reshape(B, T, n_head, hs), 1, 2)
    v = jnp.swapaxes(v.reshape(B, T, n_head, hs), 1, 2)
    q = apply_rope(q)
    k = apply_rope(k)

    scores = jnp.einsum('bhqd,bhkd->bhqk', q, k) / math.sqrt(hs)
    mask = jnp.tril(jnp.ones((T, T), dtype=bool))
    scores = jnp.where(mask, scores, -jnp.inf)
    p = jax.nn.softmax(scores, axis=-1)
    y = jnp.einsum('bhqk,bhkd->bhqd', p, v)
    y = jnp.swapaxes(y, 1, 2).reshape(B, T, C)
    x = x + y @ params["wo"]

    xn = rmsnorm(x, params["g_ffn"][0])
    x = x + (jax.nn.silu(xn @ params["w1"]) * (xn @ params["w3"])) @ params["w2"]
    return x


# ---------------------------------------------------------------------------
# Main
# ---------------------------------------------------------------------------

if __name__ == "__main__":
    # Lane-dense small config: n_embd=256, n_head=2 (head_size=128), seq=128.
    B, T, C, n_head = 2, 128, 256, 2
    hs = C // n_head
    hidden_dim = int(2 / 3 * 4 * C)
    hidden_dim = 256 * ((hidden_dim + 256 - 1) // 256)   # -> 768

    key = jax.random.PRNGKey(0)
    ks = jax.random.split(key, 8)
    x = jax.random.normal(ks[0], (B, T, C), dtype=jnp.float32)

    wqkv = 0.05 * jax.random.normal(ks[1], (C, 3 * C), dtype=jnp.float32)
    wo = 0.05 * jax.random.normal(ks[2], (C, C), dtype=jnp.float32)
    w1 = 0.05 * jax.random.normal(ks[3], (C, hidden_dim), dtype=jnp.float32)
    w2 = 0.05 * jax.random.normal(ks[4], (hidden_dim, C), dtype=jnp.float32)
    w3 = 0.05 * jax.random.normal(ks[5], (C, hidden_dim), dtype=jnp.float32)
    g_attn = jnp.ones((1, C), dtype=jnp.float32)
    g_ffn = jnp.ones((1, C), dtype=jnp.float32)

    # RoPE cache: cos/sin of shape (T, hs//2) (the complex rope_cache buffer).
    inv_freq = 1.0 / (10000.0 ** (jnp.arange(0, hs, 2, dtype=jnp.float32) / hs))
    angles = jnp.arange(T, dtype=jnp.float32)[:, None] * inv_freq[None, :]
    cos = jnp.cos(angles)
    sin = jnp.sin(angles)

    params = dict(wqkv=wqkv, wo=wo, w1=w1, w2=w2, w3=w3,
                  g_attn=g_attn, g_ffn=g_ffn, cos=cos, sin=sin)

    out = block_forward(x, params, n_head)            # f32 matmuls (exact check)
    out = jax.block_until_ready(out)

    ref = _ref_block(x, params, n_head)
    assert out.shape == (B, T, C)
    err = jnp.max(jnp.abs(out - ref))
    assert jnp.allclose(out, ref, rtol=5e-3, atol=5e-3), f"max abs diff = {err}"

    print("KERNEL_OK")
</pallas_src>

<mosaic_0001>
module attributes {stable_mosaic.version = 11 : i64} {
  func.func @_block_kernel(%arg0: i32, %arg1: memref<1x128x256xf32, #tpu.memory_space<vmem>>, %arg2: memref<256x768xf32, #tpu.memory_space<vmem>>, %arg3: memref<256x256xf32, #tpu.memory_space<vmem>>, %arg4: memref<256x768xf32, #tpu.memory_space<vmem>>, %arg5: memref<768x256xf32, #tpu.memory_space<vmem>>, %arg6: memref<256x768xf32, #tpu.memory_space<vmem>>, %arg7: memref<1x256xf32, #tpu.memory_space<vmem>>, %arg8: memref<1x256xf32, #tpu.memory_space<vmem>>, %arg9: memref<128x128xf32, #tpu.memory_space<vmem>>, %arg10: memref<128x128xf32, #tpu.memory_space<vmem>>, %arg11: memref<1x128x256xf32, #tpu.memory_space<vmem>>, %arg12: memref<128x256xf32, #tpu.memory_space<vmem>>) attributes {dimension_semantics = [#tpu.dimension_semantics<parallel>], iteration_bounds = array<i64: 2>, scalar_prefetch = 0 : i64, scratch_operands = 1 : i64, tpu.core_type = #tpu.core_type<tc>, window_params = [{transform_indices = @transform_0, window_bounds = array<i64: 1, 128, 256>}, {pipeline_mode = #tpu.pipeline_mode<synchronous>, transform_indices = @transform_1, window_bounds = array<i64: 256, 768>}, {pipeline_mode = #tpu.pipeline_mode<synchronous>, transform_indices = @transform_2, window_bounds = array<i64: 256, 256>}, {pipeline_mode = #tpu.pipeline_mode<synchronous>, transform_indices = @transform_3, window_bounds = array<i64: 256, 768>}, {pipeline_mode = #tpu.pipeline_mode<synchronous>, transform_indices = @transform_4, window_bounds = array<i64: 768, 256>}, {pipeline_mode = #tpu.pipeline_mode<synchronous>, transform_indices = @transform_5, window_bounds = array<i64: 256, 768>}, {pipeline_mode = #tpu.pipeline_mode<synchronous>, transform_indices = @transform_6, window_bounds = array<i64: 1, 256>}, {pipeline_mode = #tpu.pipeline_mode<synchronous>, transform_indices = @transform_7, window_bounds = array<i64: 1, 256>}, {pipeline_mode = #tpu.pipeline_mode<synchronous>, transform_indices = @transform_8, window_bounds = array<i64: 128, 128>}, {pipeline_mode = #tpu.pipeline_mode<synchronous>, transform_indices = @transform_9, window_bounds = array<i64: 128, 128>}, {transform_indices = @transform_10, window_bounds = array<i64: 1, 128, 256>}]} {
    %c0 = arith.constant 0 : index
    %c0_0 = arith.constant 0 : index
    %c0_1 = arith.constant 0 : index
    %0 = vector.load %arg1[%c0, %c0_0, %c0_1] : memref<1x128x256xf32, #tpu.memory_space<vmem>>, vector<1x128x256xf32>
    %1 = vector.shape_cast %0 : vector<1x128x256xf32> to vector<128x256xf32>
    %2 = arith.mulf %1, %1 : vector<128x256xf32>
    %cst = arith.constant dense<0.000000e+00> : vector<128xf32>
    %3 = vector.multi_reduction <add>, %2, %cst [1] : vector<128x256xf32> to vector<128xf32>
    %4 = vector.shape_cast %3 : vector<128xf32> to vector<128x1xf32>
    %cst_2 = arith.constant 2.560000e+02 : f32
    %5 = vector.broadcast %cst_2 : f32 to vector<128x1xf32>
    %6 = arith.divf %4, %5 : vector<128x1xf32>
    %cst_3 = arith.constant 9.99999974E-6 : f32
    %7 = vector.broadcast %cst_3 : f32 to vector<128x1xf32>
    %8 = arith.addf %6, %7 : vector<128x1xf32>
    %9 = math.rsqrt %8 : vector<128x1xf32>
    %10 = vector.broadcast %9 : vector<128x1xf32> to vector<128x256xf32>
    %11 = arith.mulf %1, %10 : vector<128x256xf32>
    %c0_4 = arith.constant 0 : index
    %c0_5 = arith.constant 0 : index
    %12 = vector.load %arg7[%c0_4, %c0_5] : memref<1x256xf32, #tpu.memory_space<vmem>>, vector<1x256xf32>
    %13 = vector.broadcast %12 : vector<1x256xf32> to vector<128x256xf32>
    %14 = arith.mulf %11, %13 : vector<128x256xf32>
    %c0_6 = arith.constant 0 : index
    %c0_7 = arith.constant 0 : index
    %15 = vector.load %arg2[%c0_6, %c0_7] : memref<256x768xf32, #tpu.memory_space<vmem>>, vector<256x768xf32>
    %cst_8 = arith.constant dense<0.000000e+00> : vector<128x768xf32>
    %16 = tpu.matmul %14, %15, %cst_8 {dimension_numbers = #tpu.dot_dimension_numbers<[1], [0], [0], [1], [0, 0, 1, 1], [], []>} : vector<128x256xf32>, vector<256x768xf32>, vector<128x768xf32> -> vector<128x768xf32>
    %c0_9 = arith.constant 0 : index
    %c0_10 = arith.constant 0 : index
    %17 = vector.load %arg9[%c0_9, %c0_10] : memref<128x128xf32, #tpu.memory_space<vmem>>, vector<128x128xf32>
    %c0_11 = arith.constant 0 : index
    %c0_12 = arith.constant 0 : index
    %18 = vector.load %arg10[%c0_11, %c0_12] : memref<128x128xf32, #tpu.memory_space<vmem>>, vector<128x128xf32>
    %19 = tpu.iota {dimensions = array<i32: 0>} : vector<128x128xi32>
    %20 = tpu.iota {dimensions = array<i32: 1>} : vector<128x128xi32>
    %21 = arith.cmpi sge, %19, %20 : vector<128x128xi32>
    %22 = vector.extract_strided_slice %16 {offsets = [0, 0], sizes = [128, 128], strides = [1, 1]} : vector<128x768xf32> to vector<128x128xf32>
    %23 = vector.extract_strided_slice %16 {offsets = [0, 256], sizes = [128, 128], strides = [1, 1]} : vector<128x768xf32> to vector<128x128xf32>
    %24 = vector.extract_strided_slice %16 {offsets = [0, 512], sizes = [128, 128], strides = [1, 1]} : vector<128x768xf32> to vector<128x128xf32>
    %25 = arith.mulf %22, %17 : vector<128x128xf32>
    %c64_i32 = arith.constant 64 : i32
    %26 = tpu.dynamic_rotate %22 by %c64_i32 dim 1 : vector<128x128xf32>, i32 -> vector<128x128xf32>
    %27 = arith.mulf %26, %18 : vector<128x128xf32>
    %28 = arith.addf %25, %27 : vector<128x128xf32>
    %29 = arith.mulf %23, %17 : vector<128x128xf32>
    %c64_i32_13 = arith.constant 64 : i32
    %30 = tpu.dynamic_rotate %23 by %c64_i32_13 dim 1 : vector<128x128xf32>, i32 -> vector<128x128xf32>
    %31 = arith.mulf %30, %18 : vector<128x128xf32>
    %32 = arith.addf %29, %31 : vector<128x128xf32>
    %cst_14 = arith.constant dense<0.000000e+00> : vector<128x128xf32>
    %33 = tpu.matmul %28, %32, %cst_14 {dimension_numbers = #tpu.dot_dimension_numbers<[1], [1], [0], [0], [0, 0, 1, 0], [], []>} : vector<128x128xf32>, vector<128x128xf32>, vector<128x128xf32> -> vector<128x128xf32>
    %cst_15 = arith.constant -1.000000e+30 : f32
    %34 = vector.broadcast %cst_15 : f32 to vector<128x128xf32>
    %35 = arith.select %21, %33, %34 : vector<128x128xi1>, vector<128x128xf32>
    %cst_16 = arith.constant dense<0xFF800000> : vector<128xf32>
    %36 = vector.multi_reduction <maximumf>, %35, %cst_16 [1] : vector<128x128xf32> to vector<128xf32>
    %37 = vector.shape_cast %36 : vector<128xf32> to vector<128x1xf32>
    %38 = vector.broadcast %37 : vector<128x1xf32> to vector<128x128xf32>
    %39 = arith.subf %35, %38 : vector<128x128xf32>
    %40 = math.exp %39 : vector<128x128xf32>
    %cst_17 = arith.constant dense<0.000000e+00> : vector<128xf32>
    %41 = vector.multi_reduction <add>, %40, %cst_17 [1] : vector<128x128xf32> to vector<128xf32>
    %42 = vector.shape_cast %41 : vector<128xf32> to vector<128x1xf32>
    %43 = tpu.reciprocal %42 {approx = true} : vector<128x1xf32> -> vector<128x1xf32>
    %44 = vector.broadcast %43 : vector<128x1xf32> to vector<128x128xf32>
    %45 = arith.mulf %40, %44 : vector<128x128xf32>
    %cst_18 = arith.constant dense<0.000000e+00> : vector<128x128xf32>
    %46 = tpu.matmul %45, %24, %cst_18 {dimension_numbers = #tpu.dot_dimension_numbers<[1], [0], [0], [1], [0, 0, 1, 1], [], []>} : vector<128x128xf32>, vector<128x128xf32>, vector<128x128xf32> -> vector<128x128xf32>
    %c0_19 = arith.constant 0 : index
    %c0_20 = arith.constant 0 : index
    %47 = vector.load %arg12[%c0_19, %c0_20] : memref<128x256xf32, #tpu.memory_space<vmem>>, vector<128x128xf32>
    tpu.vector_store %arg12[%c0_19, %c0_20], %46 {strides = array<i32>} : memref<128x256xf32, #tpu.memory_space<vmem>>, vector<128x128xf32>,
    %48 = vector.extract_strided_slice %16 {offsets = [0, 128], sizes = [128, 128], strides = [1, 1]} : vector<128x768xf32> to vector<128x128xf32>
    %49 = vector.extract_strided_slice %16 {offsets = [0, 384], sizes = [128, 128], strides = [1, 1]} : vector<128x768xf32> to vector<128x128xf32>
    %50 = vector.extract_strided_slice %16 {offsets = [0, 640], sizes = [128, 128], strides = [1, 1]} : vector<128x768xf32> to vector<128x128xf32>
    %51 = arith.mulf %48, %17 : vector<128x128xf32>
    %c64_i32_21 = arith.constant 64 : i32
    %52 = tpu.dynamic_rotate %48 by %c64_i32_21 dim 1 : vector<128x128xf32>, i32 -> vector<128x128xf32>
    %53 = arith.mulf %52, %18 : vector<128x128xf32>
    %54 = arith.addf %51, %53 : vector<128x128xf32>
    %55 = arith.mulf %49, %17 : vector<128x128xf32>
    %c64_i32_22 = arith.constant 64 : i32
    %56 = tpu.dynamic_rotate %49 by %c64_i32_22 dim 1 : vector<128x128xf32>, i32 -> vector<128x128xf32>
    %57 = arith.mulf %56, %18 : vector<128x128xf32>
    %58 = arith.addf %55, %57 : vector<128x128xf32>
    %cst_23 = arith.constant dense<0.000000e+00> : vector<128x128xf32>
    %59 = tpu.matmul %54, %58, %cst_23 {dimension_numbers = #tpu.dot_dimension_numbers<[1], [1], [0], [0], [0, 0, 1, 0], [], []>} : vector<128x128xf32>, vector<128x128xf32>, vector<128x128xf32> -> vector<128x128xf32>
    %cst_24 = arith.constant -1.000000e+30 : f32
    %60 = vector.broadcast %cst_24 : f32 to vector<128x128xf32>
    %61 = arith.select %21, %59, %60 : vector<128x128xi1>, vector<128x128xf32>
    %cst_25 = arith.constant dense<0xFF800000> : vector<128xf32>
    %62 = vector.multi_reduction <maximumf>, %61, %cst_25 [1] : vector<128x128xf32> to vector<128xf32>
    %63 = vector.shape_cast %62 : vector<128xf32> to vector<128x1xf32>
    %64 = vector.broadcast %63 : vector<128x1xf32> to vector<128x128xf32>
    %65 = arith.subf %61, %64 : vector<128x128xf32>
    %66 = math.exp %65 : vector<128x128xf32>
    %cst_26 = arith.constant dense<0.000000e+00> : vector<128xf32>
    %67 = vector.multi_reduction <add>, %66, %cst_26 [1] : vector<128x128xf32> to vector<128xf32>
    %68 = vector.shape_cast %67 : vector<128xf32> to vector<128x1xf32>
    %69 = tpu.reciprocal %68 {approx = true} : vector<128x1xf32> -> vector<128x1xf32>
    %70 = vector.broadcast %69 : vector<128x1xf32> to vector<128x128xf32>
    %71 = arith.mulf %66, %70 : vector<128x128xf32>
    %cst_27 = arith.constant dense<0.000000e+00> : vector<128x128xf32>
    %72 = tpu.matmul %71, %50, %cst_27 {dimension_numbers = #tpu.dot_dimension_numbers<[1], [0], [0], [1], [0, 0, 1, 1], [], []>} : vector<128x128xf32>, vector<128x128xf32>, vector<128x128xf32> -> vector<128x128xf32>
    %c0_28 = arith.constant 0 : index
    %c128 = arith.constant 128 : index
    %73 = vector.load %arg12[%c0_28, %c128] : memref<128x256xf32, #tpu.memory_space<vmem>>, vector<128x128xf32>
    tpu.vector_store %arg12[%c0_28, %c128], %72 {strides = array<i32>} : memref<128x256xf32, #tpu.memory_space<vmem>>, vector<128x128xf32>,
    %c0_29 = arith.constant 0 : index
    %c0_30 = arith.constant 0 : index
    %74 = vector.load %arg12[%c0_29, %c0_30] : memref<128x256xf32, #tpu.memory_space<vmem>>, vector<128x256xf32>
    %c0_31 = arith.constant 0 : index
    %c0_32 = arith.constant 0 : index
    %75 = vector.load %arg3[%c0_31, %c0_32] : memref<256x256xf32, #tpu.memory_space<vmem>>, vector<256x256xf32>
    %cst_33 = arith.constant dense<0.000000e+00> : vector<128x256xf32>
    %76 = tpu.matmul %74, %75, %cst_33 {dimension_numbers = #tpu.dot_dimension_numbers<[1], [0], [0], [1], [0, 0, 1, 1], [], []>} : vector<128x256xf32>, vector<256x256xf32>, vector<128x256xf32> -> vector<128x256xf32>
    %77 = arith.addf %1, %76 : vector<128x256xf32>
    %78 = arith.mulf %77, %77 : vector<128x256xf32>
    %cst_34 = arith.constant dense<0.000000e+00> : vector<128xf32>
    %79 = vector.multi_reduction <add>, %78, %cst_34 [1] : vector<128x256xf32> to vector<128xf32>
    %80 = vector.shape_cast %79 : vector<128xf32> to vector<128x1xf32>
    %cst_35 = arith.constant 2.560000e+02 : f32
    %81 = vector.broadcast %cst_35 : f32 to vector<128x1xf32>
    %82 = arith.divf %80, %81 : vector<128x1xf32>
    %cst_36 = arith.constant 9.99999974E-6 : f32
    %83 = vector.broadcast %cst_36 : f32 to vector<128x1xf32>
    %84 = arith.addf %82, %83 : vector<128x1xf32>
    %85 = math.rsqrt %84 : vector<128x1xf32>
    %86 = vector.broadcast %85 : vector<128x1xf32> to vector<128x256xf32>
    %87 = arith.mulf %77, %86 : vector<128x256xf32>
    %c0_37 = arith.constant 0 : index
    %c0_38 = arith.constant 0 : index
    %88 = vector.load %arg8[%c0_37, %c0_38] : memref<1x256xf32, #tpu.memory_space<vmem>>, vector<1x256xf32>
    %89 = vector.broadcast %88 : vector<1x256xf32> to vector<128x256xf32>
    %90 = arith.mulf %87, %89 : vector<128x256xf32>
    %c0_39 = arith.constant 0 : index
    %c0_40 = arith.constant 0 : index
    %91 = vector.load %arg4[%c0_39, %c0_40] : memref<256x768xf32, #tpu.memory_space<vmem>>, vector<256x768xf32>
    %cst_41 = arith.constant dense<0.000000e+00> : vector<128x768xf32>
    %92 = tpu.matmul %90, %91, %cst_41 {dimension_numbers = #tpu.dot_dimension_numbers<[1], [0], [0], [1], [0, 0, 1, 1], [], []>} : vector<128x256xf32>, vector<256x768xf32>, vector<128x768xf32> -> vector<128x768xf32>
    %c0_42 = arith.constant 0 : index
    %c0_43 = arith.constant 0 : index
    %93 = vector.load %arg6[%c0_42, %c0_43] : memref<256x768xf32, #tpu.memory_space<vmem>>, vector<256x768xf32>
    %cst_44 = arith.constant dense<0.000000e+00> : vector<128x768xf32>
    %94 = tpu.matmul %90, %93, %cst_44 {dimension_numbers = #tpu.dot_dimension_numbers<[1], [0], [0], [1], [0, 0, 1, 1], [], []>} : vector<128x256xf32>, vector<256x768xf32>, vector<128x768xf32> -> vector<128x768xf32>
    %95 = arith.negf %92 : vector<128x768xf32>
    %96 = math.exp %95 : vector<128x768xf32>
    %cst_45 = arith.constant 1.000000e+00 : f32
    %97 = vector.broadcast %cst_45 : f32 to vector<128x768xf32>
    %98 = arith.addf %97, %96 : vector<128x768xf32>
    %99 = arith.divf %97, %98 : vector<128x768xf32>
    %100 = arith.mulf %92, %99 : vector<128x768xf32>
    %101 = arith.mulf %100, %94 : vector<128x768xf32>
    %c0_46 = arith.constant 0 : index
    %c0_47 = arith.constant 0 : index
    %102 = vector.load %arg5[%c0_46, %c0_47] : memref<768x256xf32, #tpu.memory_space<vmem>>, vector<768x256xf32>
    %cst_48 = arith.constant dense<0.000000e+00> : vector<128x256xf32>
    %103 = tpu.matmul %101, %102, %cst_48 {dimension_numbers = #tpu.dot_dimension_numbers<[1], [0], [0], [1], [0, 0, 1, 1], [], []>} : vector<128x768xf32>, vector<768x256xf32>, vector<128x256xf32> -> vector<128x256xf32>
    %104 = arith.addf %77, %103 : vector<128x256xf32>
    %c0_49 = arith.constant 0 : index
    %c0_50 = arith.constant 0 : index
    %c0_51 = arith.constant 0 : index
    %105 = vector.load %arg11[%c0_49, %c0_50, %c0_51] : memref<1x128x256xf32, #tpu.memory_space<vmem>>, vector<1x128x256xf32>
    %106 = vector.shape_cast %105 : vector<1x128x256xf32> to vector<128x256xf32>
    %107 = vector.shape_cast %104 : vector<128x256xf32> to vector<1x128x256xf32>
    tpu.vector_store %arg11[%c0_49, %c0_50, %c0_51], %107 {strides = array<i32>} : memref<1x128x256xf32, #tpu.memory_space<vmem>>, vector<1x128x256xf32>,
    return
  }
  func.func @transform_0(%arg0: i32) -> (i32, i32, i32) {
    %c0_i32 = arith.constant 0 : i32
    %c0_i32_0 = arith.constant 0 : i32
    %c0_i32_1 = arith.constant 0 : i32
    return %arg0, %c0_i32, %c0_i32_0 : i32, i32, i32
  }
  func.func @transform_1(%arg0: i32) -> (i32, i32) {
    %c0_i32 = arith.constant 0 : i32
    %c0_i32_0 = arith.constant 0 : i32
    %c0_i32_1 = arith.constant 0 : i32
    return %c0_i32, %c0_i32_0 : i32, i32
  }
  func.func @transform_2(%arg0: i32) -> (i32, i32) {
    %c0_i32 = arith.constant 0 : i32
    %c0_i32_0 = arith.constant 0 : i32
    %c0_i32_1 = arith.constant 0 : i32
    return %c0_i32, %c0_i32_0 : i32, i32
  }
  func.func @transform_3(%arg0: i32) -> (i32, i32) {
    %c0_i32 = arith.constant 0 : i32
    %c0_i32_0 = arith.constant 0 : i32
    %c0_i32_1 = arith.constant 0 : i32
    return %c0_i32, %c0_i32_0 : i32, i32
  }
  func.func @transform_4(%arg0: i32) -> (i32, i32) {
    %c0_i32 = arith.constant 0 : i32
    %c0_i32_0 = arith.constant 0 : i32
    %c0_i32_1 = arith.constant 0 : i32
    return %c0_i32, %c0_i32_0 : i32, i32
  }
  func.func @transform_5(%arg0: i32) -> (i32, i32) {
    %c0_i32 = arith.constant 0 : i32
    %c0_i32_0 = arith.constant 0 : i32
    %c0_i32_1 = arith.constant 0 : i32
    return %c0_i32, %c0_i32_0 : i32, i32
  }
  func.func @transform_6(%arg0: i32) -> (i32, i32) {
    %c0_i32 = arith.constant 0 : i32
    %c0_i32_0 = arith.constant 0 : i32
    %c0_i32_1 = arith.constant 0 : i32
    return %c0_i32, %c0_i32_0 : i32, i32
  }
  func.func @transform_7(%arg0: i32) -> (i32, i32) {
    %c0_i32 = arith.constant 0 : i32
    %c0_i32_0 = arith.constant 0 : i32
    %c0_i32_1 = arith.constant 0 : i32
    return %c0_i32, %c0_i32_0 : i32, i32
  }
  func.func @transform_8(%arg0: i32) -> (i32, i32) {
    %c0_i32 = arith.constant 0 : i32
    %c0_i32_0 = arith.constant 0 : i32
    %c0_i32_1 = arith.constant 0 : i32
    return %c0_i32, %c0_i32_0 : i32, i32
  }
  func.func @transform_9(%arg0: i32) -> (i32, i32) {
    %c0_i32 = arith.constant 0 : i32
    %c0_i32_0 = arith.constant 0 : i32
    %c0_i32_1 = arith.constant 0 : i32
    return %c0_i32, %c0_i32_0 : i32, i32
  }
  func.func @transform_10(%arg0: i32) -> (i32, i32, i32) {
    %c0_i32 = arith.constant 0 : i32
    %c0_i32_0 = arith.constant 0 : i32
    %c0_i32_1 = arith.constant 0 : i32
    return %arg0, %c0_i32, %c0_i32_0 : i32, i32, i32
  }
}

</mosaic_0001>

<bundles_post_ra>
// kernel: tpu_custom_call.1
= control target key start
LH: loop header
LB: loop body
LE: loop exit
PB: predicated region body
PF: predicated region fallthrough
CT: control target
= control target key end

     0   :  { %s12249_s0 = inlined_call_operand.hbm [shape: f32[2,128,256], index: 0, kind: input, shape index: {}]   ;;  %s12250_s1 = inlined_call_operand.hbm [shape: f32[256,768], index: 1, kind: input, shape index: {}]   ;;  %s12251_s2 = inlined_call_operand.hbm [shape: f32[256,256], index: 2, kind: input, shape index: {}]   ;;  %s12252_s3 = inlined_call_operand.hbm [shape: f32[256,768], index: 3, kind: input, shape index: {}]   ;;  %s12253_s4 = inlined_call_operand.hbm [shape: f32[768,256], index: 4, kind: input, shape index: {}]   ;;  %s12254_s5 = inlined_call_operand.hbm [shape: f32[256,768], index: 5, kind: input, shape index: {}]   ;;  %s12255_s6 = inlined_call_operand.vmem [shape: f32[1,256], index: 6, kind: input, shape index: {}]   ;;  %s12256_s7 = inlined_call_operand.vmem [shape: f32[1,256], index: 7, kind: input, shape index: {}]   ;;  %s12257_s8 = inlined_call_operand.hbm [shape: f32[128,128], index: 8, kind: input, shape index: {}]   ;;  %s12258_s9 = inlined_call_operand.hbm [shape: f32[128,128], index: 9, kind: input, shape index: {}]   ;;  %s12259_s10 = inlined_call_operand.hbm [shape: f32[2,128,256], index: 10, kind: output, shape index: {}]  }
   0x1   :  { %12432 = sst [smem:[#allocation134_spill]] %s12256_s7 }
   0x2   :  { %12433 = sst [smem:[#allocation135_spill]] %s12259_s10 }
   0x3   :  { %15 = vsyncpa [#allocation4], 0 }
   0x4   :  { %17 = vsyncpa [#allocation4 + $0x1], 0 }
   0x5   :  { %18 = vsyncpa [#allocation7], 0 }
   0x6   :  { %19 = vsyncpa [#allocation10], 0 }
   0x7   :  { %20 = vsyncpa [#allocation13], 0 }
   0x8   :  { %21 = vsyncpa [#allocation16], 0 }
   0x9   :  { %22 = vsyncpa [#allocation5], 0 }
   0xa   :  { %24 = vsyncpa [#allocation5 + $0x1], 0  ;;  %s8834_s13 = smov 0   ;;  %s8836_s14 = smov 0  }
   0xb   :  { %s8838_s15 = smov 0   ;;  %s8840_s16 = smov 0  }
   0xc LB: > { %s8761_s17 = smov [#allocation6]   ;;  %s8855_s19 = sadd.s32 4294967295, %s8759_s16   ;;  %s8759_s16 = sphi %s8840_s16, %s12912_s16   ;;  %s8755_s15 = sphi %s8838_s15, %s12911_s15   ;;  %s8751_s14 = sphi %s8836_s14, %s12910_s14   ;;  %s8747_s13 = sphi %s8834_s13, %s12909_s13  }
   0xd   : > { %s288_s18 = sshll.u32 %s8761_s17, 4  ;;  %p6216_p0 = scmp.ge.s32.totalorder %s8759_s16, 1  ;;  %s8860_s18 = int_to_ptr.vmem [resolvable:$true] %s288_s18 }
   0xe   : > { %p12261_p1 = scmp.eq.s32.totalorder %s8855_s19, 0  ;;  %p276_p2 = scmp.lt.s32.totalorder %s8759_s16, 3 }
   0xf   : > { %s8762_s21 = smov [#allocation9]   ;;  %s8763_s24 = smov [#allocation12]  }
  0x10   : > { %p8862_p3 = pnand %p6216_p0, %p276_p2  ;;  %s314_s22 = sshll.u32 %s8762_s21, 4  ;;  %s8875_s22 = int_to_ptr.vmem [resolvable:$true] %s314_s22 }
  0x11   : > { %s340_s25 = sshll.u32 %s8763_s24, 4  ;;  %s8451_s28 = scalar_lea.hbm %s12250_s1, 24576  ;;  %s8877_s25 = int_to_ptr.vmem [resolvable:$true] %s340_s25 }
  0x12   : > { %s12434_s20 = scalar_select %p8862_p3, 1, 0 }
  0x13   : > { %p7749_p5 = pneg %p8862_p3  ;;  %p8452_p7 = scmp.ne.s32.totalorder %s12250_s1, %s8451_s28 }
  0x14   : > { %p8458_p11 = scmp.lt.u32.totalorder %s8451_s28, %s12250_s1 }
  0x15   : > { %p8871_p6 = pnand %p7749_p5, %p12261_p1 }
  0x17   : > { %p8887_p8 = pneg %p8871_p6 }
  0x19   : > { %p8454_p9 = pnand %p8887_p8, %p8452_p7 }
  0x1b   : > { %p8455_p10 = pneg %p8454_p9 }
  0x1d   : > { %p8460_p12 = pnand %p8458_p11, %p8455_p10 }
  0x1f   : > { %8463 = shalt.err (!%p8460_p12)
}
  0x20   : > { %s8464_s21 = scalar_lea.vmem %s8860_s18, 24576  ;;  %p8472_p5 = scmp.lt.s32.totalorder %s8860_s18, %s8860_s18 }
  0x21   : > { %p8465_p13 = scmp.ne.s32.totalorder %s8860_s18, %s8464_s21  ;;  %p8473_p4 = scmp.lt.s32.totalorder %s8464_s21, %s8464_s21 }
  0x23   : > { %p8467_p0 = pnand %p8465_p13, %p8887_p8  ;;  %p8474_p7 = por %p8473_p4, %p8472_p5 }
  0x25   : > { %p8468_p2 = pneg %p8467_p0 }
  0x27   : > { %p8475_p9 = pnand %p8474_p7, %p8468_p2 }
  0x29   : > { %8478 = shalt.err (!%p8475_p9)
}
  0x2a   : > { %s8764_s24 = smov 768   ;;  %s8765_s26 = smov 48  }
  0x2b   : > { %7752 = dma.hbm_to_vmem [thread:$0]  (!%p8871_p6), %s12250_s1, 24576, %s8860_s18, [#allocation7], %s8764_s24, %s8764_s24, %s8765_s26  }
  0x2c   : > { %s8479_s12 = scalar_lea.hbm %s12252_s3, 24576 }
  0x2d   : > { %p8480_p4 = scmp.ne.s32.totalorder %s12252_s3, %s8479_s12  ;;  %p8486_p12 = scmp.lt.u32.totalorder %s8479_s12, %s12252_s3 }
  0x2f   : > { %p8482_p10 = pnand %p8480_p4, %p8887_p8 }
  0x31   : > { %p8483_p11 = pneg %p8482_p10 }
  0x33   : > { %p8488_p13 = pnand %p8486_p12, %p8483_p11 }
  0x35   : > { %8491 = shalt.err (!%p8488_p13)
}
  0x36   : > { %s8492_s18 = scalar_lea.vmem %s8875_s22, 24576  ;;  %p8500_p7 = scmp.lt.s32.totalorder %s8875_s22, %s8875_s22 }
  0x37   : > { %p8493_p0 = scmp.ne.s32.totalorder %s8875_s22, %s8492_s18  ;;  %p8501_p9 = scmp.lt.s32.totalorder %s8492_s18, %s8492_s18 }
  0x39   : > { %p8495_p2 = pnand %p8493_p0, %p8887_p8  ;;  %p8502_p4 = por %p8501_p9, %p8500_p7 }
  0x3b   : > { %p8496_p5 = pneg %p8495_p2 }
  0x3d   : > { %p8503_p10 = pnand %p8502_p4, %p8496_p5 }
  0x3f   : > { %8506 = shalt.err (!%p8503_p10)
}
  0x40   : > { %7758 = dma.hbm_to_vmem [thread:$0]  (!%p8871_p6), %s12252_s3, 24576, %s8875_s22, [#allocation10], %s8764_s24, %s8764_s24, %s8765_s26  }
  0x41   : > { %s8507_s29 = scalar_lea.hbm %s12254_s5, 24576 }
  0x42   : > { %p8508_p11 = scmp.ne.s32.totalorder %s12254_s5, %s8507_s29  ;;  %p8514_p0 = scmp.lt.u32.totalorder %s8507_s29, %s12254_s5 }
  0x44   : > { %p8510_p12 = pnand %p8508_p11, %p8887_p8 }
  0x46   : > { %p8511_p13 = pneg %p8510_p12 }
  0x48   : > { %p8516_p2 = pnand %p8514_p0, %p8511_p13 }
  0x4a   : > { %8519 = shalt.err (!%p8516_p2)
}
  0x4b   : > { %s8520_s22 = scalar_lea.vmem %s8877_s25, 24576  ;;  %p8528_p4 = scmp.lt.s32.totalorder %s8877_s25, %s8877_s25 }
  0x4c   : > { %p8521_p5 = scmp.ne.s32.totalorder %s8877_s25, %s8520_s22  ;;  %p8529_p10 = scmp.lt.s32.totalorder %s8520_s22, %s8520_s22 }
  0x4e   : > { %p8523_p7 = pnand %p8521_p5, %p8887_p8  ;;  %p8530_p11 = por %p8529_p10, %p8528_p4 }
  0x50   : > { %p8524_p9 = pneg %p8523_p7 }
  0x52   : > { %p8531_p12 = pnand %p8530_p11, %p8524_p9 }
  0x54   : > { %8534 = shalt.err (!%p8531_p12)
}
  0x55   : > { %7764 = dma.hbm_to_vmem [thread:$0]  (!%p8871_p6), %s12254_s5, 24576, %s8877_s25, [#allocation13], %s8764_s24, %s8764_s24, %s8765_s26  }
  0x56   : > { %s8766_s10 = smov [#allocation8]   ;;  %s8535_s30 = scalar_lea.hbm %s12251_s2, 8192 }
  0x57   : > { %s301_s27 = sshll.u32 %s8766_s10, 4  ;;  %p8536_p13 = scmp.ne.s32.totalorder %s12251_s2, %s8535_s30  ;;  %s302_s27 = int_to_ptr.vmem [resolvable:$true] %s301_s27 }
  0x58   : > { %p8542_p5 = scmp.lt.u32.totalorder %s8535_s30, %s12251_s2 }
  0x59   : > { %p8538_p0 = pnand %p8536_p13, %p8887_p8 }
  0x5b   : > { %p8539_p2 = pneg %p8538_p0 }
  0x5d   : > { %p8544_p7 = pnand %p8542_p5, %p8539_p2 }
  0x5f   : > { %8547 = shalt.err (!%p8544_p7)
}
  0x60   : > { %s8548_s25 = scalar_lea.vmem %s302_s27, 8192  ;;  %p8556_p11 = scmp.lt.s32.totalorder %s302_s27, %s302_s27 }
  0x61   : > { %p8549_p9 = scmp.ne.s32.totalorder %s302_s27, %s8548_s25  ;;  %p8557_p12 = scmp.lt.s32.totalorder %s8548_s25, %s8548_s25 }
  0x63   : > { %p8551_p4 = pnand %p8549_p9, %p8887_p8  ;;  %p8558_p1 = por %p8557_p12, %p8556_p11 }
  0x65   : > { %p8552_p10 = pneg %p8551_p4 }
  0x67   : > { %p8559_p3 = pnand %p8558_p1, %p8552_p10 }
  0x69   : > { %8562 = shalt.err (!%p8559_p3)
}
  0x6a   : > { %s12263_s24 = smov 256   ;;  %s12264_s26 = smov 16  }
  0x6b   : > { %7755 = dma.hbm_to_vmem [thread:$0]  (!%p8871_p6), %s12251_s2, 8192, %s302_s27, [#allocation7], %s12263_s24, %s12263_s24, %s12264_s26  }
  0x6c   : > { %s8769_s10 = smov [#allocation11]   ;;  %s8770_s29 = smov [#allocation14]  }
  0x6d   : > { %s327_s28 = sshll.u32 %s8769_s10, 4  ;;  %s359_s30 = sshll.u32 %s8770_s29, 4  ;;  %s328_s28 = int_to_ptr.vmem [resolvable:$true] %s327_s28  ;;  %s8984_s30 = int_to_ptr.vmem [resolvable:$true] %s359_s30 }
  0x6e   : > { %s8563_s21 = scalar_lea.hbm %s12253_s4, 24576 }
  0x6f   : > { %p8564_p1 = scmp.ne.s32.totalorder %s12253_s4, %s8563_s21  ;;  %p8570_p0 = scmp.lt.u32.totalorder %s8563_s21, %s12253_s4 }
  0x71   : > { %p8566_p3 = pnand %p8564_p1, %p8887_p8 }
  0x73   : > { %p8567_p13 = pneg %p8566_p3 }
  0x75   : > { %p8572_p2 = pnand %p8570_p0, %p8567_p13 }
  0x77   : > { %8575 = shalt.err (!%p8572_p2)
}
  0x78   : > { %s8576_s7 = scalar_lea.vmem %s328_s28, 24576  ;;  %p8584_p4 = scmp.lt.s32.totalorder %s328_s28, %s328_s28 }
  0x79   : > { %p8577_p5 = scmp.ne.s32.totalorder %s328_s28, %s8576_s7  ;;  %p8585_p10 = scmp.lt.s32.totalorder %s8576_s7, %s8576_s7 }
  0x7b   : > { %p8579_p7 = pnand %p8577_p5, %p8887_p8  ;;  %p8586_p11 = por %p8585_p10, %p8584_p4 }
  0x7d   : > { %p8580_p9 = pneg %p8579_p7 }
  0x7f   : > { %p8587_p12 = pnand %p8586_p11, %p8580_p9 }
  0x81   : > { %8590 = shalt.err (!%p8587_p12)
}
  0x82   : > { %7761 = dma.hbm_to_vmem [thread:$0]  (!%p8871_p6), %s12253_s4, 24576, %s328_s28, [#allocation10], %s12263_s24, %s12263_s24, %s12264_s26  }
  0x83   : > { %s8591_s21 = scalar_lea.hbm %s12257_s8, 2048 }
  0x84   : > { %p8592_p1 = scmp.ne.s32.totalorder %s12257_s8, %s8591_s21  ;;  %p8598_p0 = scmp.lt.u32.totalorder %s8591_s21, %s12257_s8 }
  0x86   : > { %p8594_p3 = pnand %p8592_p1, %p8887_p8 }
  0x88   : > { %p8595_p13 = pneg %p8594_p3 }
  0x8a   : > { %p8600_p2 = pnand %p8598_p0, %p8595_p13 }
  0x8c   : > { %8603 = shalt.err (!%p8600_p2)
}
  0x8d   : > { %s8604_s28 = scalar_lea.vmem %s8984_s30, 2048  ;;  %p8612_p4 = scmp.lt.s32.totalorder %s8984_s30, %s8984_s30 }
  0x8e   : > { %p8605_p5 = scmp.ne.s32.totalorder %s8984_s30, %s8604_s28  ;;  %p8613_p10 = scmp.lt.s32.totalorder %s8604_s28, %s8604_s28 }
  0x90   : > { %p8607_p7 = pnand %p8605_p5, %p8887_p8  ;;  %p8614_p11 = por %p8613_p10, %p8612_p4 }
  0x92   : > { %p8608_p9 = pneg %p8607_p7 }
  0x94   : > { %p8615_p12 = pnand %p8614_p11, %p8608_p9 }
  0x96   : > { %8618 = shalt.err (!%p8615_p12)
}
  0x97   : > { %s8771_s7 = smov 128   ;;  %s8772_s10 = smov 8  }
  0x98   : > { %7767 = dma.hbm_to_vmem [thread:$0]  (!%p8871_p6), %s12257_s8, 2048, %s8984_s30, [#allocation13], %s8771_s7, %s8771_s7, %s8772_s10  }
  0x99   : > { %s8773_s17 = smov [#allocation15]   ;;  %s8619_s18 = scalar_lea.hbm %s12258_s9, 2048 }
  0x9a   : > { %s372_s21 = sshll.u32 %s8773_s17, 4  ;;  %p8620_p1 = scmp.ne.s32.totalorder %s12258_s9, %s8619_s18  ;;  %s373_s21 = int_to_ptr.vmem [resolvable:$true] %s372_s21 }
  0x9b   : > { %p8626_p0 = scmp.lt.u32.totalorder %s8619_s18, %s12258_s9 }
  0x9c   : > { %p8622_p3 = pnand %p8620_p1, %p8887_p8 }
  0x9e   : > { %p8623_p13 = pneg %p8622_p3 }
  0xa0   : > { %p8628_p2 = pnand %p8626_p0, %p8623_p13 }
  0xa2   : > { %8631 = shalt.err (!%p8628_p2)
}
  0xa3   : > { %s8632_s30 = scalar_lea.vmem %s373_s21, 2048  ;;  %p8640_p4 = scmp.lt.s32.totalorder %s373_s21, %s373_s21 }
  0xa4   : > { %p8633_p5 = scmp.ne.s32.totalorder %s373_s21, %s8632_s30  ;;  %p8641_p10 = scmp.lt.s32.totalorder %s8632_s30, %s8632_s30 }
  0xa6   : > { %p8635_p7 = pnand %p8633_p5, %p8887_p8  ;;  %p8642_p11 = por %p8641_p10, %p8640_p4 }
  0xa8   : > { %p8636_p9 = pneg %p8635_p7 }
  0xaa   : > { %p8643_p12 = pnand %p8642_p11, %p8636_p9 }
  0xac   : > { %8646 = shalt.err (!%p8643_p12)
}
  0xad   : > { %7770 = dma.hbm_to_vmem [thread:$0]  (!%p8871_p6), %s12258_s9, 2048, %s373_s21, [#allocation16], %s8771_s7, %s8771_s7, %s8772_s10  }
  0xae   : > { %s6215_s11 = sadd.s32 4294967294, %s8759_s16   ;;  %s9050_s23 = sadd.s32 1, %s8759_s16  }
  0xaf   : > { %s37_s24 = sadd.s32 1, %s8755_s15  ;;  %s34_s26 = ssub.s32 %s8759_s16, %s9050_s23 }
  0xb0   : > { %p44_p8 = scmp.ne.s32.totalorder %s8755_s15, %s8751_s14  ;;  %p35_p1 = scmp.eq.s32.totalorder %s34_s26, 0 }
  0xb1   : > { %p45_p3 = scmp.eq.s32.totalorder %s8759_s16, 0  ;;  %p50_p13 = scmp.ne.s32.totalorder %s8751_s14, %s8747_s13 }
  0xb2   : > { %p263_p0 = scmp.eq.s32.totalorder %s8855_s19, 1  ;;  %p12437_p5 = scmp.eq.s32.totalorder %s8855_s19, 0 }
  0xb3   : > { %s9062_s17 = scalar_select %p35_p1, %s8755_s15, %s37_s24  }
  0xb4   : > { %p46_p2 = por %p45_p3, %p44_p8  ;;  %p9066_p7 = por %p12437_p5, %p50_p13 }
  0xb5   : > { %p9070_p6 = por %p263_p0, %p44_p8  ;;  %p269_p9 = scmp.eq.s32.totalorder %s6215_s11, 1 }
  0xb6   : > { %p7786_p4 = scmp.lt.s32.totalorder %s8759_s16, 2  ;;  %s386_s10 = sand.u32 1, %s8755_s15  }
  0xb7   : > { %s12439_s7 = scalar_select %p9070_p6, 1, 0 }
  0xb8   : > { %p9076_p10 = por %p269_p9, %p50_p13  ;;  %s6225_s25 = sshll.u32 %s386_s10, 8 }
  0xb9   : > { %s6339_s18 = sshll.u32 %s8759_s16, 12  ;;  %s390_s29 = scalar_lea.vmem [#allocation3], %s6225_s25 }
  0xba   : > { %s12440_s21 = scalar_select %p9076_p10, 1, 0 }
  0xbb   : > { %s9084_s30 = scalar_lea.hbm %s12249_s0, %s6339_s18  ;;  %s397_s12 = sshll.u32 %s390_s29, 4  ;;  %s9090_s12 = int_to_ptr.vmem [resolvable:$true] %s397_s12 }
  0xbc   : > { %p9086_p11 = pnand %p7786_p4, %p46_p2  ;;  %s9092_s24 = scalar_lea.sflag [#allocation4], %s386_s10 }
  0xbd   : > { %s8647_s26 = scalar_lea.hbm %s9084_s30, 4096  ;;  %s8652_s27 = scalar_lea.hbm %s12249_s0, 8192 }
  0xbe   : > { %p8648_p12 = scmp.ne.s32.totalorder %s9084_s30, %s8647_s26  ;;  %p8649_p8 = pneg %p9086_p11 }
  0xbf   : > { %p8653_p13 = scmp.lt.u32.totalorder %s9084_s30, %s12249_s0  ;;  %p8654_p0 = scmp.lt.u32.totalorder %s8652_s27, %s8647_s26 }
  0xc0   : > { %p8650_p1 = pnand %p8649_p8, %p8648_p12  ;;  %p8656_p5 = scmp.lt.u32.totalorder %s8647_s26, %s9084_s30 }
  0xc1   : > { %p8655_p2 = por %p8654_p0, %p8653_p13 }
  0xc2   : > { %p8651_p3 = pneg %p8650_p1 }
  0xc3   : > { %p8657_p9 = por %p8656_p5, %p8655_p2 }
  0xc5   : > { %p8658_p4 = pnand %p8657_p9, %p8651_p3 }
  0xc7   : > { %8661 = shalt.err (!%p8658_p4)
}
  0xc8   : > { %s8662_s10 = scalar_lea.vmem %s9090_s12, 4096  ;;  %s8774_s25 = smov [#allocation3]  }
  0xc9   : > { %p8663_p12 = scmp.ne.s32.totalorder %s9090_s12, %s8662_s10  ;;  %s8667_s18 = sshll.u32 %s8774_s25, 4  ;;  %s8668_s18 = int_to_ptr.vmem [resolvable:$false] %s8667_s18 }
  0xca   : > { %s8669_s28 = scalar_lea.vmem %s8668_s18, 8192  ;;  %p8670_p6 = scmp.lt.s32.totalorder %s9090_s12, %s8668_s18 }
  0xcb   : > { %p8665_p1 = pnand %p8663_p12, %p8649_p8  ;;  %p8671_p13 = scmp.lt.s32.totalorder %s8669_s28, %s8662_s10 }
  0xcd   : > { %p8666_p10 = pneg %p8665_p1  ;;  %p8672_p0 = por %p8671_p13, %p8670_p6 }
  0xcf   : > { %p8673_p2 = pnand %p8672_p0, %p8666_p10 }
  0xd1   : > { %8676 = shalt.err (!%p8673_p2)
}
  0xd2   : > { %s12442_s26 = smov 16   ;;  %s12443_s27 = smov 256  }
  0xd3   : > { %7774 = dma.hbm_to_vmem [thread:$0]  (!%p9086_p11), %s9084_s30, 4096, %s9090_s12, %s9092_s24, %s12443_s27, %s12443_s27, %s12442_s26  }
  0xd4   : > { %p12444_p8 = scmp.ne.s32.totalorder %s12434_s20, 0 }
  0xd6   : > { %409 = sbr.rel (%p12444_p8) target bundleno = 2750 (0xabe), region = 60 }
  0xdd   : > { %s9126_s29 = sand.u32 1, %s8751_s14  }
  0xde   : > { %s6229_s10 = sshll.u32 %s9126_s29, 8  ;;  %s412_s25 = scalar_lea.sflag [#allocation4], %s9126_s29 }
  0xdf   : > { %s9132_s11 = scalar_lea.vmem [#allocation3], %s6229_s10 }
  0xe0   : > { %8722 = dma.done.wait (%p9066_p7), %s412_s25, 4096  }
  0xe1   : > { %8724 = vsyncadd (%p9066_p7), %s412_s25, 4294963200  ;;  %p12445_p6 = scmp.eq.s32.totalorder %s8855_s19, 0 }
  0xe3   : > { %8726 = dma.done.wait (%p12445_p6), [#allocation7], 32768   ;;  %p12446_p10 = pmov %p12445_p6 }
  0xe4   : > { %p12447_p11 = pmov %p12445_p6 }
  0xe5   : > { %8728 = vsyncadd (%p12446_p10), [#allocation7], 4294934528 }
  0xe6   : > { %8730 = dma.done.wait (%p12447_p11), [#allocation10], 49152   ;;  %p12448_p3 = pmov %p12445_p6 }
  0xe8   : > { %8732 = vsyncadd (%p12448_p3), [#allocation10], 4294918144  ;;  %p12449_p5 = pmov %p12448_p3 }
  0xe9   : > { %p12450_p9 = pmov %p12448_p3 }
  0xea   : > { %8734 = dma.done.wait (%p12449_p5), [#allocation13], 26624  }
  0xeb   : > { %8736 = vsyncadd (%p12450_p9), [#allocation13], 4294940672  ;;  %p12451_p7 = pmov %p12448_p3 }
  0xec   : > { %p12452_p4 = pmov %p12448_p3 }
  0xed   : > { %8738 = dma.done.wait (%p12451_p7), [#allocation16], 2048  }
  0xee   : > { %8740 = vsyncadd (%p12452_p4), [#allocation16], 4294965248  ;;  %v9155_v0 = vld [vmem:[%s9132_s11] sm:$0xff]  ;;  %v9158_v1 = vld [vmem:[%s9132_s11 + $0x8] sm:$0xff]  ;;  %s8775_s30 = smov 64   ;;  %s12584_s18 = sld [smem:[#allocation134_spill]] }
  0xef   : > { %v9161_v2 = vld [vmem:[%s9132_s11 + $0x10] sm:$0xff]  ;;  %v512_v3 = vmul.f32 %v9155_v0, %v9155_v0  ;;  %v513_v4 = vmul.f32 %v9158_v1, %v9158_v1  ;;  %v9168_v5 = vld [vmem:[%s9132_s11 + $0x18] sm:$0xff]  ;;  %v9173_v7 = vld [vmem:[%s9132_s11 + $0x20] sm:$0xff]  ;;  %s12134_s28 = scalar_lea.vmem [#allocation17], %s6229_s10  ;;  %s6340_s26 = sshll.u32 %s8855_s19, 12 }
  0xf0   : > { %v514_v6 = vmul.f32 %v9161_v2, %v9161_v2  ;;  %v9176_v8 = vld [vmem:[%s9132_s11 + $0x28] sm:$0xff]  ;;  %v515_v9 = vmul.f32 %v9168_v5, %v9168_v5  ;;  %v516_v10 = vmul.f32 %v9173_v7, %v9173_v7  ;;  %v9185_v12 = vld [vmem:[%s9132_s11 + $0x30] sm:$0xff]  ;;  %v9188_v13 = vld [vmem:[%s9132_s11 + $0x38] sm:$0xff]  ;;  %s6075_s27 = sshll.u32 %s12134_s28, 4  ;;  %s6062_s19 = scalar_lea.sflag [#allocation5], %s9126_s29  ;;  %s12202_s27 = int_to_ptr.vmem [resolvable:$true] %s6075_s27 }
  0xf1   : > { %v517_v11 = vmul.f32 %v9176_v8, %v9176_v8  ;;  %v9191_v14 = vld [vmem:[%s9132_s11 + $0x40] sm:$0xff]  ;;  %v544_v15 = vadd.f32 %v513_v4, %v512_v3  ;;  %v518_v16 = vmul.f32 %v9185_v12, %v9185_v12  ;;  %v519_v17 = vmul.f32 %v9188_v13, %v9188_v13  ;;  %v9198_v18 = vld [vmem:[%s9132_s11 + $0x48] sm:$0xff]  ;;  %v9201_v19 = vld [vmem:[%s9132_s11 + $0x50] sm:$0xff]  ;;  %s8677_s22 = scalar_lea.vmem %s12202_s27, 4096  ;;  %p12906_p1 = scmp.ne.s32.totalorder %s12439_s7, 0 }
  0xf2   : > { %v9204_v20 = vld [vmem:[%s9132_s11 + $0x58] sm:$0xff]  ;;  %v547_v22 = vadd.f32 %v515_v9, %v514_v6  ;;  %v520_v23 = vmul.f32 %v9191_v14, %v9191_v14  ;;  %v521_v24 = vmul.f32 %v9198_v18, %v9198_v18  ;;  %v522_v26 = vmul.f32 %v9201_v19, %v9201_v19  ;;  %v9215_v28 = vld [vmem:[%s9132_s11 + $0x60] sm:$0xff]  ;;  %v9218_v29 = vld [vmem:[%s9132_s11 + $0x68] sm:$0xff]  ;;  %p8678_p12 = scmp.ne.s32.totalorder %s12202_s27, %s8677_s22 }
  0xf3   : > { %v550_v21 = vadd.f32 %v517_v11, %v516_v10  ;;  %545 = vadd.xlane.f32.xlu0 %v544_v15  ;;  %v553_v25 = vadd.f32 %v519_v17, %v518_v16  ;;  %v523_v27 = vmul.f32 %v9204_v20, %v9204_v20  ;;  %v9221_v30 = vld [vmem:[%s9132_s11 + $0x70] sm:$0xff]  ;;  %v9224_v31 = vld [vmem:[%s9132_s11 + $0x78] sm:$0xff]  ;;  %v524_v33 = vmul.f32 %v9215_v28, %v9215_v28  ;;  %v9231_v35 = vld [vmem:[%s9132_s11 + $0x80] sm:$0xff] }
  0xf4   : > { %v556_v32 = vadd.f32 %v521_v24, %v520_v23  ;;  %v525_v34 = vmul.f32 %v9218_v29, %v9218_v29  ;;  %v9234_v36 = vld [vmem:[%s9132_s11 + $0x88] sm:$0xff]  ;;  %v526_v38 = vmul.f32 %v9221_v30, %v9221_v30  ;;  %v527_v39 = vmul.f32 %v9224_v31, %v9224_v31  ;;  %v9241_v40 = vld [vmem:[%s9132_s11 + $0x90] sm:$0xff]  ;;  %v9244_v41 = vld [vmem:[%s9132_s11 + $0x98] sm:$0xff]  ;;  %p8679_p13 = pnand %p8678_p12, %p12906_p1 }
  0xf5   : > { %551 = vadd.xlane.f32.xlu1 %v550_v21  ;;  %v559_v37 = vadd.f32 %v523_v27, %v522_v26  ;;  %v718_v42 = vld [vmem:[#allocation6 + $0x8] sm:$0xff]  ;;  %v724_v43 = vld [vmem:[#allocation6 + $0x38] sm:$0xff]  ;;  %v717_v44 = vld [vmem:[#allocation6] sm:$0xff]  ;;  %v528_v46 = vmul.f32 %v9231_v35, %v9231_v35  ;;  %v529_v52 = vmul.f32 %v9234_v36, %v9234_v36  ;;  %v530_v59 = vmul.f32 %v9241_v40, %v9241_v40 }
  0xf6   : > { %v723_v45 = vld [vmem:[#allocation6 + $0x30] sm:$0xff]  ;;  %v6693_v47 = vpack.c.bf16 %v724_v43, %v718_v42  ;;  %v730_v48 = vld [vmem:[#allocation6 + $0x68] sm:$0xff]  ;;  %v736_v49 = vld [vmem:[#allocation6 + $0x98] sm:$0xff]  ;;  %v562_v51 = vadd.f32 %v525_v34, %v524_v33  ;;  %v565_v58 = vadd.f32 %v527_v39, %v526_v38  ;;  %v531_v60 = vmul.f32 %v9244_v41, %v9244_v41  ;;  %p8680_p0 = pneg %p8679_p13 }
  0xf7   : > { %548 = vadd.xlane.f32.xlu0 %v547_v22  ;;  %v729_v50 = vld [vmem:[#allocation6 + $0x60] sm:$0xff]  ;;  %v6695_v53 = vpack.c.bf16 %v723_v45, %v717_v44  ;;  %v6697_v54 = vpack.c.bf16 %v736_v49, %v730_v48  ;;  %v735_v55 = vld [vmem:[#allocation6 + $0x90] sm:$0xff]  ;;  %v742_v56 = vld [vmem:[#allocation6 + $0xc8] sm:$0xff]  ;;  %v568_v11 = vadd.f32 %v529_v52, %v528_v46 }
  0xf8   : > { %v748_v57 = vld [vmem:[#allocation6 + $0xf8] sm:$0xff]  ;;  %v9255_v61 = vld [vmem:[%s9132_s11 + $0xa0] sm:$0xff]  ;;  %v9258_v62 = vld [vmem:[%s9132_s11 + $0xa8] sm:$0xff]  ;;  %6694 = vmatprep.subr.bf16.mxu0 %v6693_v47  ;;  %v6699_v4 = vpack.c.bf16 %v735_v55, %v729_v50  ;;  %v571_v22 = vadd.f32 %v531_v60, %v530_v59 }
  0xf9   : > { %554 = vadd.xlane.f32.xlu1 %v553_v25  ;;  %v9261_v63 = vld [vmem:[%s9132_s11 + $0xb0] sm:$0xff]  ;;  %v9264_v3 = vld [vmem:[%s9132_s11 + $0xb8] sm:$0xff]  ;;  %6696 = vmatpush1.bf16.msra.mxu0 %v6695_v53  ;;  %v6701_v6 = vpack.c.bf16 %v748_v57, %v742_v56  ;;  %v741_v9 = vld [vmem:[#allocation6 + $0xc0] sm:$0xff]  ;;  %v532_v15 = vmul.f32 %v9255_v61, %v9255_v61  ;;  %v533_v16 = vmul.f32 %v9258_v62, %v9258_v62 }
  0xfa   : > { %6698 = vmatprep.subr.bf16.mxu0 %v6697_v54  ;;  %v747_v10 = vld [vmem:[#allocation6 + $0xf0] sm:$0xff]  ;;  %v754_v17 = vld [vmem:[#allocation6 + $0x128] sm:$0xff]  ;;  %v760_v21 = vld [vmem:[#allocation6 + $0x158] sm:$0xff]  ;;  %v534_v23 = vmul.f32 %v9261_v63, %v9261_v63  ;;  %v535_v24 = vmul.f32 %v9264_v3, %v9264_v3 }
  0xfb   : > { %557 = vadd.xlane.f32.xlu0 %v556_v32  ;;  %v9275_v25 = vld [vmem:[%s9132_s11 + $0xc0] sm:$0xff]  ;;  %v9278_v26 = vld [vmem:[%s9132_s11 + $0xc8] sm:$0xff]  ;;  %v9281_v27 = vld [vmem:[%s9132_s11 + $0xd0] sm:$0xff]  ;;  %v6703_v33 = vpack.c.bf16 %v747_v10, %v741_v9  ;;  %v6705_v34 = vpack.c.bf16 %v760_v21, %v754_v17  ;;  %v574_v39 = vadd.f32 %v533_v16, %v532_v15 }
  0xfc   : > { %v9284_v32 = vld [vmem:[%s9132_s11 + $0xd8] sm:$0xff]  ;;  %v759_v38 = vld [vmem:[#allocation6 + $0x150] sm:$0xff]  ;;  %v536_v42 = vmul.f32 %v9275_v25, %v9275_v25  ;;  %v537_v43 = vmul.f32 %v9278_v26, %v9278_v26  ;;  %v766_v44 = vld [vmem:[#allocation6 + $0x188] sm:$0xff]  ;;  %v577_v46 = vadd.f32 %v535_v24, %v534_v23  ;;  %v538_v47 = vmul.f32 %v9281_v27, %v9281_v27 }
  0xfd   : > { %560 = vadd.xlane.f32.xlu1 %v559_v37  ;;  %6700 = vmatpush1.bf16.msra.mxu0 %v6699_v4  ;;  %v753_v37 = vld [vmem:[#allocation6 + $0x120] sm:$0xff]  ;;  %v772_v45 = vld [vmem:[#allocation6 + $0x1b8] sm:$0xff]  ;;  %v539_v48 = vmul.f32 %v9284_v32, %v9284_v32  ;;  %v9298_v50 = vld [vmem:[%s9132_s11 + $0xe8] sm:$0xff] }
  0xfe   : > { %6702 = vmatprep.subr.bf16.mxu0 %v6701_v6  ;;  %v9295_v49 = vld [vmem:[%s9132_s11 + $0xe0] sm:$0xff]  ;;  %v9304_v52 = vld [vmem:[%s9132_s11 + $0xf8] sm:$0xff]  ;;  %v6707_v53 = vpack.c.bf16 %v759_v38, %v753_v37  ;;  %v6709_v54 = vpack.c.bf16 %v772_v45, %v766_v44  ;;  %v771_v56 = vld [vmem:[#allocation6 + $0x1b0] sm:$0xff]  ;;  %v580_v57 = vadd.f32 %v537_v43, %v536_v42  ;;  %v541_v59 = vmul.f32 %v9298_v50, %v9298_v50 }
  0xff   : > { %563 = vadd.xlane.f32.xlu0 %v562_v51  ;;  %v9301_v51 = vld [vmem:[%s9132_s11 + $0xf0] sm:$0xff]  ;;  %v765_v55 = vld [vmem:[#allocation6 + $0x180] sm:$0xff]  ;;  %v778_v60 = vld [vmem:[#allocation6 + $0x1e8] sm:$0xff]  ;;  %v583_v6 = vadd.f32 %v539_v48, %v538_v47  ;;  %v543_v10 = vmul.f32 %v9304_v52, %v9304_v52 }
 0x100   : > { %v784_v4 = vld [vmem:[#allocation6 + $0x218] sm:$0xff]  ;;  %v542_v9 = vmul.f32 %v9301_v51, %v9301_v51  ;;  %v777_v16 = vld [vmem:[#allocation6 + $0x1e0] sm:$0xff]  ;;  %v783_v17 = vld [vmem:[#allocation6 + $0x210] sm:$0xff] }
 0x101   : > { %566 = vadd.xlane.f32.xlu1 %v565_v58  ;;  %6704 = vmatpush1.bf16.msra.mxu0 %v6703_v33  ;;  %v540_v58 = vmul.f32 %v9295_v49, %v9295_v49  ;;  %v6713_v15 = vpack.c.bf16 %v784_v4, %v778_v60  ;;  %v796_v23 = vld [vmem:[#allocation6 + $0x278] sm:$0xff]  ;;  %v6715_v33 = vpack.c.bf16 %v783_v17, %v777_v16  ;;  %v789_v37 = vld [vmem:[#allocation6 + $0x240] sm:$0xff]  ;;  %v795_v38 = vld [vmem:[#allocation6 + $0x270] sm:$0xff] }
 0x102   : > { %6706 = vmatprep.subr.bf16.mxu0 %v6705_v34  ;;  %v589_v24 = vadd.f32 %v543_v10, %v542_v9  ;;  %v808_v42 = vld [vmem:[#allocation6 + $0x2d8] sm:$0xff]  ;;  %v6719_v43 = vpack.c.bf16 %v795_v38, %v789_v37  ;;  %v801_v45 = vld [vmem:[#allocation6 + $0x2a0] sm:$0xff]  ;;  %v814_v47 = vld [vmem:[#allocation6 + $0x308] sm:$0xff] }
 0x103   : > { %569 = vadd.xlane.f32.xlu0 %v568_v11  ;;  %v6711_v11 = vpack.c.bf16 %v771_v56, %v765_v55  ;;  %v586_v21 = vadd.f32 %v541_v59, %v540_v58  ;;  %v820_v48 = vld [vmem:[#allocation6 + $0x338] sm:$0xff]  ;;  %v813_v55 = vld [vmem:[#allocation6 + $0x300] sm:$0xff]  ;;  %v819_v56 = vld [vmem:[#allocation6 + $0x330] sm:$0xff] }
 0x104   : > { %v832_v58 = vld [vmem:[#allocation6 + $0x398] sm:$0xff]  ;;  %v6727_v59 = vpack.c.bf16 %v819_v56, %v813_v55  ;;  %v825_v4 = vld [vmem:[#allocation6 + $0x360] sm:$0xff]  ;;  %v838_v9 = vld [vmem:[#allocation6 + $0x3c8] sm:$0xff] }
 0x105   : > { %572 = vadd.xlane.f32.xlu1 %v571_v22  ;;  %6708 = vmatpush1.bf16.msra.mxu0 %v6707_v53  ;;  %v790_v22 = vld [vmem:[#allocation6 + $0x248] sm:$0xff]  ;;  %v844_v10 = vld [vmem:[#allocation6 + $0x3f8] sm:$0xff]  ;;  %v837_v16 = vld [vmem:[#allocation6 + $0x3c0] sm:$0xff] }
 0x106   : > { %6710 = vmatprep.subr.bf16.mxu0 %v6709_v54  ;;  %v6717_v34 = vpack.c.bf16 %v796_v23, %v790_v22  ;;  %v6725_v54 = vpack.c.bf16 %v820_v48, %v814_v47  ;;  %v843_v17 = vld [vmem:[#allocation6 + $0x3f0] sm:$0xff]  ;;  %v856_v22 = vld [vmem:[#allocation6 + $0x458] sm:$0xff]  ;;  %v862_v37 = vld [vmem:[#allocation6 + $0x488] sm:$0xff] }
 0x107   : > { %575 = vadd.xlane.f32.xlu0 %v574_v39  ;;  %v802_v39 = vld [vmem:[#allocation6 + $0x2a8] sm:$0xff]  ;;  %v6735_v23 = vpack.c.bf16 %v843_v17, %v837_v16  ;;  %v868_v38 = vld [vmem:[#allocation6 + $0x4b8] sm:$0xff] }
 0x108   : > { %v6721_v44 = vpack.c.bf16 %v808_v42, %v802_v39  ;;  %v6741_v42 = vpack.c.bf16 %v868_v38, %v862_v37  ;;  %v886_v55 = vld [vmem:[#allocation6 + $0x548] sm:$0xff]  ;;  %v892_v56 = vld [vmem:[#allocation6 + $0x578] sm:$0xff]  ;;  %v12268_v37 = vlaneseq }
 0x109   : > { %578 = vadd.xlane.f32.xlu1 %v577_v46  ;;  %6712 = vmatpush1.bf16.msra.mxu0 %v6711_v11  ;;  %v807_v46 = vld [vmem:[#allocation6 + $0x2d0] sm:$0xff]  ;;  %v720_v16 = vld [vmem:[#allocation6 + $0x18] sm:$0xff]  ;;  %v726_v17 = vld [vmem:[#allocation6 + $0x48] sm:$0xff] }
 0x10a   : > { %6714 = vmatprep.subr.bf16.mxu0 %v6713_v15  ;;  %v6723_v53 = vpack.c.bf16 %v807_v46, %v801_v45  ;;  %v6733_v15 = vpack.c.bf16 %v844_v10, %v838_v9  ;;  %v874_v45 = vld [vmem:[#allocation6 + $0x4e8] sm:$0xff]  ;;  %v880_v46 = vld [vmem:[#allocation6 + $0x518] sm:$0xff] }
 0x10b   : > { %581 = vadd.xlane.f32.xlu0 %v580_v57  ;;  %v826_v57 = vld [vmem:[#allocation6 + $0x368] sm:$0xff]  ;;  %v6745_v48 = vpack.c.bf16 %v880_v46, %v874_v45  ;;  %v9315_v46 = vshrl.u32 %v12268_v37, 7 }
 0x10c   : > { %v6729_v60 = vpack.c.bf16 %v832_v58, %v826_v57  ;;  %v6749_v58 = vpack.c.bf16 %v892_v56, %v886_v55 }
 0x10d   : > { %584 = vadd.xlane.f32.xlu1 %v583_v6  ;;  %6716 = vmatpush1.bf16.msra.mxu0 %v6715_v33  ;;  %v831_v6 = vld [vmem:[#allocation6 + $0x390] sm:$0xff]  ;;  %v849_v33 = vld [vmem:[#allocation6 + $0x420] sm:$0xff]  ;;  %12453 = vst [vmem:[#allocation24_spill] sm:$0xff] %v9315_v46 }
 0x10e   : > { %6718 = vmatprep.subr.bf16.mxu0 %v6717_v34  ;;  %v6731_v11 = vpack.c.bf16 %v831_v6, %v825_v4  ;;  %v855_v34 = vld [vmem:[#allocation6 + $0x450] sm:$0xff]  ;;  %v898_v4 = vld [vmem:[#allocation6 + $0x5a8] sm:$0xff]  ;;  %v904_v6 = vld [vmem:[#allocation6 + $0x5d8] sm:$0xff] }
 0x10f   : > { %587 = vadd.xlane.f32.xlu0 %v586_v21  ;;  %v850_v21 = vld [vmem:[#allocation6 + $0x428] sm:$0xff]  ;;  %v6739_v39 = vpack.c.bf16 %v855_v34, %v849_v33  ;;  %v6753_v10 = vpack.c.bf16 %v904_v6, %v898_v4 }
 0x111   : > { %590 = vadd.xlane.f32.xlu1 %v589_v24  ;;  %6720 = vmatpush1.bf16.msra.mxu0 %v6719_v43  ;;  %v6737_v24 = vpack.c.bf16 %v856_v22, %v850_v21  ;;  %v861_v43 = vld [vmem:[#allocation6 + $0x480] sm:$0xff]  ;;  %v6757_v22 = vpack.c.bf16 %v726_v17, %v720_v16  ;;  %v719_v17 = vld [vmem:[#allocation6 + $0x10] sm:$0xff] }
 0x112   : > { %6722 = vmatprep.subr.bf16.mxu0 %v6721_v44  ;;  %v867_v44 = vld [vmem:[#allocation6 + $0x4b0] sm:$0xff] }
 0x113   : > { %v6743_v47 = vpack.c.bf16 %v867_v44, %v861_v43 }
 0x115   : > { %6724 = vmatpush1.bf16.msra.mxu0 %v6723_v53  ;;  %v873_v53 = vld [vmem:[#allocation6 + $0x4e0] sm:$0xff] }
 0x116   : > { %6726 = vmatprep.subr.bf16.mxu0 %v6725_v54  ;;  %v879_v54 = vld [vmem:[#allocation6 + $0x510] sm:$0xff] }
 0x117   : > { %v6747_v57 = vpack.c.bf16 %v879_v54, %v873_v53 }
 0x119   : > { %6728 = vmatpush1.bf16.msra.mxu0 %v6727_v59  ;;  %v885_v59 = vld [vmem:[#allocation6 + $0x540] sm:$0xff] }
 0x11a   : > { %6730 = vmatprep.subr.bf16.mxu0 %v6729_v60  ;;  %v891_v60 = vld [vmem:[#allocation6 + $0x570] sm:$0xff] }
 0x11b   : > { %v6751_v9 = vpack.c.bf16 %v891_v60, %v885_v59  ;;  %v673_v60 = vld [vmem:[%s12255_s6] sm:$0x3] }
 0x11d   : > { %6732 = vmatpush1.bf16.msra.mxu0 %v6731_v11  ;;  %v897_v11 = vld [vmem:[#allocation6 + $0x5a0] sm:$0xff] }
 0x11e   : > { %6734 = vmatprep.subr.bf16.mxu0 %v6733_v15  ;;  %v903_v15 = vld [vmem:[#allocation6 + $0x5d0] sm:$0xff] }
 0x11f   : > { %v6755_v21 = vpack.c.bf16 %v903_v15, %v897_v11 }
 0x121   : > { %6736 = vmatpush1.bf16.msra.mxu0 %v6735_v23 }
 0x122   : > { %6738 = vmatprep.subr.bf16.mxu0 %v6737_v24 }
 0x125   : > { %6740 = vmatpush1.bf16.msra.mxu0 %v6739_v39 }
 0x126   : > { %6742 = vmatprep.subr.bf16.mxu0 %v6741_v42 }
 0x129   : > { %6744 = vmatpush1.bf16.msra.mxu0 %v6743_v47 }
 0x12a   : > { %6746 = vmatprep.subr.bf16.mxu0 %v6745_v48 }
 0x12d   : > { %6748 = vmatpush1.bf16.msra.mxu0 %v6747_v57  ;;  %v12267_v57 = vsub.s32 1, %v9315_v46 }
 0x12e   : > { %6750 = vmatprep.subr.bf16.mxu0 %v6749_v58  ;;  %v12266_v58 = vsub.s32 0, %v9315_v46 }
 0x130   : > { %v9328_v11 = vrot.slane %v673_v60, %v12266_v58 }
 0x131   : > { %6752 = vmatpush1.bf16.msra.mxu0 %v6751_v9 }
 0x132   : > { %6754 = vmatprep.subr.bf16.mxu0 %v6753_v10  ;;  %v9324_v10 = vrot.slane %v673_v60, %v12267_v57  ;;  %v744_v60 = vld [vmem:[#allocation6 + $0xd8] sm:$0xff] }
 0x135   : > { %6756 = vmatpush1.bf16.msra.mxu0 %v6755_v21  ;;  %v725_v21 = vld [vmem:[#allocation6 + $0x40] sm:$0xff] }
 0x136   : > { %6758 = vmatprep.subr.bf16.mxu0 %v6757_v22 }
 0x180   : > { %v546_v23 = vpop.xlane.xlu0 %545 }
 0x181   : > { %v593_v24 = vmul.f32 0.00390625, %v546_v23 }
 0x182   : > { %v552_v33 = vpop.xlane.xlu1 %551 }
 0x183   : > { %v595_v34 = vmul.f32 0.00390625, %v552_v33  ;;  %v609_v38 = vadd.f32 1e-05, %v593_v24  ;;  %v732_v33 = vld [vmem:[#allocation6 + $0x78] sm:$0xff] }
 0x184   : > { %v549_v39 = vpop.xlane.xlu0 %548 }
 0x185   : > { %v611_v42 = vadd.f32 1e-05, %v595_v34  ;;  %7843 = vrsqrt.f32 %v609_v38  ;;  %v594_v43 = vmul.f32 0.00390625, %v549_v39  ;;  %v738_v34 = vld [vmem:[#allocation6 + $0xa8] sm:$0xff]  ;;  %v731_v39 = vld [vmem:[#allocation6 + $0x70] sm:$0xff] }
 0x186   : > { %v555_v44 = vpop.xlane.xlu1 %554 }
 0x187   : > { %7845 = vrsqrt.f32 %v611_v42  ;;  %v596_v45 = vmul.f32 0.00390625, %v555_v44  ;;  %v610_v47 = vadd.f32 1e-05, %v594_v43  ;;  %v737_v42 = vld [vmem:[#allocation6 + $0xa0] sm:$0xff] }
 0x188   : > { %v558_v53 = vpop.xlane.xlu0 %557 }
 0x189   : > { %v612_v48 = vadd.f32 1e-05, %v596_v45  ;;  %7847 = vrsqrt.f32 %v610_v47  ;;  %v597_v54 = vmul.f32 0.00390625, %v558_v53  ;;  %v6759_v47 = vpack.c.bf16 %v725_v21, %v719_v17 }
 0x18a   : > { %v561_v55 = vpop.xlane.xlu1 %560 }
 0x18b   : > { %7849 = vrsqrt.f32 %v612_v48  ;;  %v598_v56 = vmul.f32 0.00390625, %v561_v55  ;;  %v613_v59 = vadd.f32 1e-05, %v597_v54  ;;  %v6761_v54 = vpack.c.bf16 %v738_v34, %v732_v33  ;;  %v749_v33 = vld [vmem:[#allocation6 + $0x100] sm:$0xff] }
 0x18c   : > { %v564_v4 = vpop.xlane.xlu0 %563 }
 0x18d   : > { %7851 = vrsqrt.f32 %v613_v59  ;;  %v614_v6 = vadd.f32 1e-05, %v598_v56  ;;  %v599_v9 = vmul.f32 0.00390625, %v564_v4  ;;  %v6763_v59 = vpack.c.bf16 %v737_v42, %v731_v39  ;;  %v750_v4 = vld [vmem:[#allocation6 + $0x108] sm:$0xff] }
 0x18e   : > { %v567_v15 = vpop.xlane.xlu1 %566 }
 0x18f   : > { %v7844_v16 = vpop.eup %7843  ;;  %7853 = vrsqrt.f32 %v614_v6  ;;  %v615_v38 = vadd.f32 1e-05, %v599_v9  ;;  %v600_v43 = vmul.f32 0.00390625, %v567_v15 }
 0x190   : > { %v642_v23 = vmul.f32 %v7844_v16, %v9158_v1  ;;  %v641_v24 = vmul.f32 %v7844_v16, %v9155_v0  ;;  %v570_v53 = vpop.xlane.xlu0 %569 }
 0x191   : > { %v7846_v22 = vpop.eup %7845  ;;  %7855 = vrsqrt.f32 %v615_v38  ;;  %v616_v6 = vadd.f32 1e-05, %v600_v43 }
 0x192   : > { %v9333_v44 = vmul.f32 %v9324_v10, %v642_v23  ;;  %v9336_v45 = vmul.f32 %v9328_v11, %v641_v24  ;;  %v646_v48 = vmul.f32 %v7846_v22, %v9176_v8  ;;  %v645_v9 = vmul.f32 %v7846_v22, %v9173_v7  ;;  %v573_v15 = vpop.xlane.xlu1 %572  ;;  %v743_v24 = vld [vmem:[#allocation6 + $0xd0] sm:$0xff]  ;;  %v756_v7 = vld [vmem:[#allocation6 + $0x138] sm:$0xff]  ;;  %v762_v22 = vld [vmem:[#allocation6 + $0x168] sm:$0xff] }
 0x193   : > { %v7848_v1 = vpop.eup %7847  ;;  %v601_v8 = vmul.f32 0.00390625, %v570_v53  ;;  %v6765_v23 = vpack.c.bf16 %v750_v4, %v744_v60  ;;  %v602_v34 = vmul.f32 0.00390625, %v573_v15  ;;  %7857 = vrsqrt.f32 %v616_v6  ;;  %v768_v60 = vld [vmem:[#allocation6 + $0x198] sm:$0xff]  ;;  %v774_v4 = vld [vmem:[#allocation6 + $0x1c8] sm:$0xff] }
 0x194   : > { %973 = vmatprep.mubr.f32.mxu0 %v9333_v44  ;;  %v644_v55 = vmul.f32 %v7848_v1, %v9168_v5  ;;  %v643_v56 = vmul.f32 %v7848_v1, %v9161_v2  ;;  %v9351_v2 = vmul.f32 %v9324_v10, %v646_v48  ;;  %v9357_v38 = vmul.f32 %v9328_v11, %v645_v9  ;;  %v576_v48 = vpop.xlane.xlu0 %575 }
 0x195   : > { %v7850_v0 = vpop.eup %7849  ;;  %974 = vmatmul.mubr.f32.vlgmr.msra.gmra.mrb[0].mxu0 %v9336_v45  ;;  %v617_v39 = vadd.f32 1e-05, %v601_v8  ;;  %v6769_v1 = vpack.c.bf16 %v762_v22, %v756_v7  ;;  %v786_v7 = vld [vmem:[#allocation6 + $0x228] sm:$0xff] }
 0x196   : > { %6760 = vmatpush1.bf16.msra.mxu0 %v6759_v47  ;;  %v9345_v16 = vmul.f32 %v9324_v10, %v644_v55  ;;  %v9348_v17 = vmul.f32 %v9328_v11, %v643_v56  ;;  %v648_v5 = vmul.f32 %v7850_v0, %v9188_v13  ;;  %v647_v42 = vmul.f32 %v7850_v0, %v9185_v12  ;;  %v761_v55 = vld [vmem:[#allocation6 + $0x160] sm:$0xff]  ;;  %v579_v6 = vpop.xlane.xlu1 %578 }
 0x197   : > { %v7852_v21 = vpop.eup %7851  ;;  %6762 = vmatprep.subr.bf16.mxu0 %v6761_v54  ;;  %v6767_v13 = vpack.c.bf16 %v749_v33, %v743_v24  ;;  %v755_v54 = vld [vmem:[#allocation6 + $0x130] sm:$0xff]  ;;  %v618_v56 = vadd.f32 1e-05, %v602_v34  ;;  %7859 = vrsqrt.f32 %v617_v39  ;;  %v773_v24 = vld [vmem:[#allocation6 + $0x1c0] sm:$0xff]  ;;  %v780_v33 = vld [vmem:[#allocation6 + $0x1f8] sm:$0xff]  ;;  %v604_v22 = vmul.f32 0.00390625, %v579_v6 }
 0x198   : > { %979 = vmatprep.mubr.f32.mxu0 %v9345_v16  ;;  %v9362_v43 = vmul.f32 %v9324_v10, %v648_v5  ;;  %v650_v47 = vmul.f32 %v7852_v21, %v9198_v18  ;;  %v9367_v12 = vmul.f32 %v9328_v11, %v647_v42  ;;  %v649_v0 = vmul.f32 %v7852_v21, %v9191_v14 }
 0x199   : > { %980 = vmatmul.mubr.f32.gmra.mrb[2].mxu0 %v9348_v17  ;;  %v7854_v53 = vpop.eup %7853  ;;  %v6771_v18 = vpack.c.bf16 %v761_v55, %v755_v54  ;;  %v6773_v5 = vpack.c.bf16 %v774_v4, %v768_v60  ;;  %7861 = vrsqrt.f32 %v618_v56  ;;  %v785_v54 = vld [vmem:[#allocation6 + $0x220] sm:$0xff]  ;;  %v620_v55 = vadd.f32 1e-05, %v604_v22  ;;  %v792_v56 = vld [vmem:[#allocation6 + $0x258] sm:$0xff]  ;;  %v798_v60 = vld [vmem:[#allocation6 + $0x288] sm:$0xff] }
 0x19a   : > { %6764 = vmatpush1.bf16.msra.mxu0 %v6763_v59  ;;  %985 = vmatprep.mubr.f32.mxu0 %v9351_v2  ;;  %v603_v59 = vmul.f32 0.00390625, %v576_v48  ;;  %v9372_v9 = vmul.f32 %v9324_v10, %v650_v47  ;;  %v652_v8 = vmul.f32 %v7854_v53, %v9204_v20  ;;  %v9377_v14 = vmul.f32 %v9328_v11, %v649_v0  ;;  %v585_v0 = vpop.xlane.xlu1 %584 }
 0x19b   : > { %6766 = vmatprep.subr.bf16.mxu0 %v6765_v23  ;;  %v7856_v15 = vpop.eup %7855  ;;  %v767_v23 = vld [vmem:[#allocation6 + $0x190] sm:$0xff]  ;;  %v651_v34 = vmul.f32 %v7854_v53, %v9201_v19  ;;  %v6777_v48 = vpack.c.bf16 %v786_v7, %v780_v33  ;;  %v810_v33 = vld [vmem:[#allocation6 + $0x2e8] sm:$0xff]  ;;  %v606_v7 = vmul.f32 0.00390625, %v585_v0 }
 0x19c   : > { %v619_v21 = vadd.f32 1e-05, %v603_v59  ;;  %v6775_v20 = vpack.c.bf16 %v773_v24, %v767_v23  ;;  %v9382_v39 = vmul.f32 %v9324_v10, %v652_v8  ;;  %v654_v42 = vmul.f32 %v7856_v15, %v9218_v29  ;;  %v797_v23 = vld [vmem:[#allocation6 + $0x280] sm:$0xff]  ;;  %v804_v24 = vld [vmem:[#allocation6 + $0x2b8] sm:$0xff] }
 0x19d   : > { %986 = vmatmul.mubr.f32.gmra.mrb[4].mxu0 %v9357_v38  ;;  %v7858_v47 = vpop.eup %7857  ;;  %v9387_v19 = vmul.f32 %v9328_v11, %v651_v34  ;;  %v653_v53 = vmul.f32 %v7856_v15, %v9215_v28  ;;  %v6781_v8 = vpack.c.bf16 %v798_v60, %v792_v56  ;;  %v822_v56 = vld [vmem:[#allocation6 + $0x348] sm:$0xff] }
 0x19e   : > { %6768 = vmatpush1.bf16.msra.mxu0 %v6767_v13  ;;  %991 = vmatprep.mubr.f32.mxu0 %v9362_v43  ;;  %v582_v13 = vpop.xlane.xlu0 %581  ;;  %7863 = vrsqrt.f32 %v619_v21  ;;  %v9392_v59 = vmul.f32 %v9324_v10, %v654_v42  ;;  %v656_v6 = vmul.f32 %v7858_v47, %v9224_v31  ;;  %v655_v22 = vmul.f32 %v7858_v47, %v9221_v30  ;;  %v591_v0 = vpop.xlane.xlu1 %590 }
 0x19f   : > { %6770 = vmatprep.subr.bf16.mxu0 %v6769_v1  ;;  %v779_v1 = vld [vmem:[#allocation6 + $0x1f0] sm:$0xff]  ;;  %v605_v4 = vmul.f32 0.00390625, %v582_v13  ;;  %7865 = vrsqrt.f32 %v620_v55  ;;  %v9397_v28 = vmul.f32 %v9328_v11, %v653_v53  ;;  %v6785_v13 = vpack.c.bf16 %v810_v33, %v804_v24  ;;  %v816_v55 = vld [vmem:[#allocation6 + $0x318] sm:$0xff]  ;;  %v834_v24 = vld [vmem:[#allocation6 + $0x3a8] sm:$0xff] }
 0x1a0   : > { %v6779_v29 = vpack.c.bf16 %v785_v54, %v779_v1  ;;  %v9402_v21 = vmul.f32 %v9324_v10, %v656_v6  ;;  %v809_v1 = vld [vmem:[#allocation6 + $0x2e0] sm:$0xff]  ;;  %v622_v54 = vadd.f32 1e-05, %v606_v7  ;;  %v9407_v30 = vmul.f32 %v9328_v11, %v655_v22 }
 0x1a1   : > { %992 = vmatmul.mubr.f32.gmra.mrb[6].mxu0 %v9367_v12  ;;  %v621_v15 = vadd.f32 1e-05, %v605_v4  ;;  %v6789_v6 = vpack.c.bf16 %v822_v56, %v816_v55  ;;  %v608_v7 = vmul.f32 0.00390625, %v591_v0  ;;  %v852_v0 = vld [vmem:[#allocation6 + $0x438] sm:$0xff] }
 0x1a2   : > { %6772 = vmatpush1.bf16.msra.mxu0 %v6771_v18  ;;  %997 = vmatprep.mubr.f32.mxu0 %v9372_v9  ;;  %v7860_v18 = vpop.eup %7859 }
 0x1a3   : > { %6774 = vmatprep.subr.bf16.mxu0 %v6773_v5  ;;  %v791_v5 = vld [vmem:[#allocation6 + $0x250] sm:$0xff]  ;;  %v658_v34 = vmul.f32 %v7860_v18, %v9234_v36  ;;  %v7862_v42 = vpop.eup %7861  ;;  %7867 = vrsqrt.f32 %v621_v15  ;;  %v657_v47 = vmul.f32 %v7860_v18, %v9231_v35 }
 0x1a4   : > { %v6783_v31 = vpack.c.bf16 %v797_v23, %v791_v5  ;;  %v660_v4 = vmul.f32 %v7862_v42, %v9244_v41  ;;  %v821_v5 = vld [vmem:[#allocation6 + $0x340] sm:$0xff]  ;;  %7869 = vrsqrt.f32 %v622_v54  ;;  %v828_v23 = vld [vmem:[#allocation6 + $0x378] sm:$0xff]  ;;  %v659_v33 = vmul.f32 %v7862_v42, %v9241_v40 }
 0x1a5   : > { %998 = vmatmul.mubr.f32.gmra.mrb[8].mxu0 %v9377_v14  ;;  %v9412_v53 = vmul.f32 %v9324_v10, %v658_v34  ;;  %v9417_v35 = vmul.f32 %v9328_v11, %v657_v47  ;;  %v6793_v34 = vpack.c.bf16 %v834_v24, %v828_v23  ;;  %v624_v42 = vadd.f32 1e-05, %v608_v7  ;;  %v864_v7 = vld [vmem:[#allocation6 + $0x498] sm:$0xff] }
 0x1a6   : > { %6776 = vmatpush1.bf16.msra.mxu0 %v6775_v20  ;;  %1003 = vmatprep.mubr.f32.mxu0 %v9382_v39  ;;  %v588_v20 = vpop.xlane.xlu0 %587  ;;  %v9422_v15 = vmul.f32 %v9324_v10, %v660_v4  ;;  %v9427_v40 = vmul.f32 %v9328_v11, %v659_v33  ;;  %v845_v4 = vld [vmem:[#allocation6 + $0x400] sm:$0xff] }
 0x1a7   : > { %6778 = vmatprep.subr.bf16.mxu0 %v6777_v48  ;;  %v803_v48 = vld [vmem:[#allocation6 + $0x2b0] sm:$0xff]  ;;  %v607_v60 = vmul.f32 0.00390625, %v588_v20  ;;  %v857_v33 = vld [vmem:[#allocation6 + $0x460] sm:$0xff] }
 0x1a8   : > { %v6787_v36 = vpack.c.bf16 %v809_v1, %v803_v48  ;;  %v827_v20 = vld [vmem:[#allocation6 + $0x370] sm:$0xff]  ;;  %v840_v48 = vld [vmem:[#allocation6 + $0x3d8] sm:$0xff]  ;;  %v846_v1 = vld [vmem:[#allocation6 + $0x408] sm:$0xff] }
 0x1a9   : > { %1004 = vmatmul.mubr.f32.gmra.mrb[10].mxu0 %v9387_v19  ;;  %v623_v18 = vadd.f32 1e-05, %v607_v60  ;;  %v6797_v60 = vpack.c.bf16 %v846_v1, %v840_v48  ;;  %v863_v48 = vld [vmem:[#allocation6 + $0x490] sm:$0xff]  ;;  %v869_v1 = vld [vmem:[#allocation6 + $0x4c0] sm:$0xff] }
 0x1aa   : > { %6780 = vmatpush1.bf16.msra.mxu0 %v6779_v29  ;;  %1009 = vmatprep.mubr.f32.mxu0 %v9392_v59  ;;  %v7864_v29 = vpop.eup %7863 }
 0x1ab   : > { %6782 = vmatprep.subr.bf16.mxu0 %v6781_v8  ;;  %v815_v8 = vld [vmem:[#allocation6 + $0x310] sm:$0xff]  ;;  %v662_v22 = vmul.f32 %v7864_v29, %v9258_v62  ;;  %7871 = vrsqrt.f32 %v623_v18  ;;  %v661_v54 = vmul.f32 %v7864_v29, %v9255_v61 }
 0x1ac   : > { %v6791_v41 = vpack.c.bf16 %v821_v5, %v815_v8  ;;  %7873 = vrsqrt.f32 %v624_v42  ;;  %v851_v18 = vld [vmem:[#allocation6 + $0x430] sm:$0xff]  ;;  %v876_v42 = vld [vmem:[#allocation6 + $0x4f8] sm:$0xff] }
 0x1ad   : > { %1010 = vmatmul.mubr.f32.gmra.mrb[12].mxu0 %v9397_v28  ;;  %v9432_v55 = vmul.f32 %v9324_v10, %v662_v22  ;;  %v9437_v61 = vmul.f32 %v9328_v11, %v661_v54  ;;  %v882_v54 = vld [vmem:[#allocation6 + $0x528] sm:$0xff] }
 0x1ae   : > { %6784 = vmatpush1.bf16.msra.mxu0 %v6783_v31  ;;  %1015 = vmatprep.mubr.f32.mxu0 %v9402_v21  ;;  %v7866_v31 = vpop.eup %7865 }
 0x1af   : > { %6786 = vmatprep.subr.bf16.mxu0 %v6785_v13  ;;  %v833_v13 = vld [vmem:[#allocation6 + $0x3a0] sm:$0xff]  ;;  %v664_v56 = vmul.f32 %v7866_v31, %v9264_v3  ;;  %v7868_v47 = vpop.eup %7867  ;;  %v663_v29 = vmul.f32 %v7866_v31, %v9261_v63  ;;  %v6803_v31 = vpack.c.bf16 %v857_v33, %v851_v18  ;;  %v887_v18 = vld [vmem:[#allocation6 + $0x550] sm:$0xff] }
 0x1b0   : > { %v6795_v62 = vpack.c.bf16 %v833_v13, %v827_v20  ;;  %v7870_v8 = vpop.eup %7869  ;;  %v666_v23 = vmul.f32 %v7868_v47, %v9278_v26  ;;  %v665_v22 = vmul.f32 %v7868_v47, %v9275_v25  ;;  %v893_v33 = vld [vmem:[#allocation6 + $0x580] sm:$0xff] }
 0x1b1   : > { %1016 = vmatmul.mubr.f32.gmra.mrb[14].mxu0 %v9407_v30  ;;  %v9442_v5 = vmul.f32 %v9324_v10, %v664_v56  ;;  %v9447_v63 = vmul.f32 %v9328_v11, %v663_v29  ;;  %v668_v26 = vmul.f32 %v7870_v8, %v9284_v32  ;;  %v6807_v56 = vpack.c.bf16 %v869_v1, %v863_v48  ;;  %v894_v29 = vld [vmem:[#allocation6 + $0x588] sm:$0xff]  ;;  %v728_v1 = vld [vmem:[#allocation6 + $0x58] sm:$0xff] }
 0x1b2   : > { %6788 = vmatpush1.bf16.msra.mxu0 %v6787_v36  ;;  %1021 = vmatprep.mubr.f32.mxu0 %v9412_v53  ;;  %v839_v36 = vld [vmem:[#allocation6 + $0x3d0] sm:$0xff]  ;;  %v9457_v25 = vmul.f32 %v9328_v11, %v665_v22  ;;  %v722_v48 = vld [vmem:[#allocation6 + $0x28] sm:$0xff] }
 0x1b3   : > { %6790 = vmatprep.subr.bf16.mxu0 %v6789_v6  ;;  %v858_v6 = vld [vmem:[#allocation6 + $0x468] sm:$0xff]  ;;  %v6799_v3 = vpack.c.bf16 %v845_v4, %v839_v36  ;;  %v9462_v32 = vmul.f32 %v9324_v10, %v668_v26  ;;  %v6809_v36 = vpack.c.bf16 %v882_v54, %v876_v42  ;;  %v875_v4 = vld [vmem:[#allocation6 + $0x4f0] sm:$0xff]  ;;  %v6821_v54 = vpack.c.bf16 %v728_v1, %v722_v48  ;;  %v769_v48 = vld [vmem:[#allocation6 + $0x1a0] sm:$0xff] }
 0x1b4   : > { %v6801_v24 = vpack.c.bf16 %v858_v6, %v852_v0  ;;  %v881_v0 = vld [vmem:[#allocation6 + $0x520] sm:$0xff]  ;;  %v888_v6 = vld [vmem:[#allocation6 + $0x558] sm:$0xff]  ;;  %v775_v1 = vld [vmem:[#allocation6 + $0x1d0] sm:$0xff] }
 0x1b5   : > { %1022 = vmatmul.mubr.f32.gmra.mrb[16].mxu0 %v9417_v35  ;;  %v7872_v20 = vpop.eup %7871 }
 0x1b6   : > { %6792 = vmatpush1.bf16.msra.mxu0 %v6791_v41  ;;  %1027 = vmatprep.mubr.f32.mxu0 %v9422_v15  ;;  %v870_v41 = vld [vmem:[#allocation6 + $0x4c8] sm:$0xff]  ;;  %v670_v47 = vmul.f32 %v7872_v20, %v9298_v50 }
 0x1b7   : > { %6794 = vmatprep.subr.bf16.mxu0 %v6793_v34  ;;  %v9452_v34 = vmul.f32 %v9324_v10, %v666_v23  ;;  %v6805_v13 = vpack.c.bf16 %v870_v41, %v864_v7  ;;  %v900_v7 = vld [vmem:[#allocation6 + $0x5b8] sm:$0xff]  ;;  %v906_v41 = vld [vmem:[#allocation6 + $0x5e8] sm:$0xff] }
 0x1b8   : > { %v9472_v50 = vmul.f32 %v9324_v10, %v670_v47  ;;  %v740_v47 = vld [vmem:[#allocation6 + $0xb8] sm:$0xff] }
 0x1b9   : > { %1028 = vmatmul.mubr.f32.gmra.mrb[18].mxu0 %v9427_v40 }
 0x1ba   : > { %6796 = vmatpush1.bf16.msra.mxu0 %v6795_v62  ;;  %1033 = vmatprep.mubr.f32.mxu0 %v9432_v55  ;;  %v667_v62 = vmul.f32 %v7870_v8, %v9281_v27  ;;  %v669_v8 = vmul.f32 %v7872_v20, %v9295_v49  ;;  %v899_v20 = vld [vmem:[#allocation6 + $0x5b0] sm:$0xff] }
 0x1bb   : > { %6798 = vmatprep.subr.bf16.mxu0 %v6797_v60  ;;  %v7874_v60 = vpop.eup %7873 }
 0x1bc   : > { %v9467_v27 = vmul.f32 %v9328_v11, %v667_v62  ;;  %v672_v23 = vmul.f32 %v7874_v60, %v9304_v52  ;;  %v9477_v22 = vmul.f32 %v9328_v11, %v669_v8  ;;  %v671_v49 = vmul.f32 %v7874_v60, %v9301_v51  ;;  %v721_v62 = vld [vmem:[#allocation6 + $0x20] sm:$0xff] }
 0x1bd   : > { %1034 = vmatmul.mubr.f32.gmra.mrb[20].mxu0 %v9437_v61  ;;  %v6817_v52 = vpack.c.bf16 %v906_v41, %v900_v7  ;;  %v757_v41 = vld [vmem:[#allocation6 + $0x140] sm:$0xff] }
 0x1be   : > { %6800 = vmatpush1.bf16.msra.mxu0 %v6799_v3  ;;  %1039 = vmatprep.mubr.f32.mxu0 %v9442_v5  ;;  %v6811_v3 = vpack.c.bf16 %v881_v0, %v875_v4  ;;  %v9482_v26 = vmul.f32 %v9324_v10, %v672_v23  ;;  %v9486_v42 = vmul.f32 %v9328_v11, %v671_v49  ;;  %v727_v10 = vld [vmem:[#allocation6 + $0x50] sm:$0xff]  ;;  %v733_v11 = vld [vmem:[#allocation6 + $0x80] sm:$0xff]  ;;  %v746_v0 = vld [vmem:[#allocation6 + $0xe8] sm:$0xff] }
 0x1bf   : > { %6802 = vmatprep.subr.bf16.mxu0 %v6801_v24  ;;  %v6813_v24 = vpack.c.bf16 %v894_v29, %v888_v6  ;;  %v6823_v60 = vpack.c.bf16 %v727_v10, %v721_v62  ;;  %v739_v4 = vld [vmem:[#allocation6 + $0xb0] sm:$0xff]  ;;  %v752_v6 = vld [vmem:[#allocation6 + $0x118] sm:$0xff]  ;;  %v6839_v62 = vpack.c.bf16 %v775_v1, %v769_v48 }
 0x1c0   : > { %v6827_v29 = vpack.c.bf16 %v739_v4, %v733_v11  ;;  %v6829_v8 = vpack.c.bf16 %v752_v6, %v746_v0  ;;  %v751_v23 = vld [vmem:[#allocation6 + $0x110] sm:$0xff]  ;;  %v793_v0 = vld [vmem:[#allocation6 + $0x260] sm:$0xff] }
 0x1c1   : > { %1040 = vmatmul.mubr.f32.gmra.mrb[22].mxu0 %v9447_v63  ;;  %v763_v49 = vld [vmem:[#allocation6 + $0x170] sm:$0xff] }
 0x1c2   : > { %6804 = vmatpush1.bf16.msra.mxu0 %v6803_v31  ;;  %1045 = vmatprep.mubr.f32.mxu0 %v9452_v34  ;;  %v6815_v31 = vpack.c.bf16 %v893_v33, %v887_v18  ;;  %v764_v18 = vld [vmem:[#allocation6 + $0x178] sm:$0xff]  ;;  %v799_v6 = vld [vmem:[#allocation6 + $0x290] sm:$0xff] }
 0x1c3   : > { %6806 = vmatprep.subr.bf16.mxu0 %v6805_v13  ;;  %v905_v13 = vld [vmem:[#allocation6 + $0x5e0] sm:$0xff] }
 0x1c4   : > { %v6819_v51 = vpack.c.bf16 %v905_v13, %v899_v20  ;;  %v6835_v20 = vpack.c.bf16 %v763_v49, %v757_v41 }
 0x1c5   : > { %1046 = vmatmul.mubr.f32.gmra.mrb[24].mxu0 %v9457_v25 }
 0x1c6   : > { %6808 = vmatpush1.bf16.msra.mxu0 %v6807_v56  ;;  %1051 = vmatprep.mubr.f32.mxu0 %v9462_v32  ;;  %v734_v56 = vld [vmem:[#allocation6 + $0x88] sm:$0xff] }
 0x1c7   : > { %6810 = vmatprep.subr.bf16.mxu0 %v6809_v36  ;;  %v6825_v36 = vpack.c.bf16 %v740_v47, %v734_v56  ;;  %v781_v56 = vld [vmem:[#allocation6 + $0x200] sm:$0xff]  ;;  %v787_v47 = vld [vmem:[#allocation6 + $0x230] sm:$0xff] }
 0x1c8   : > { %v6843_v11 = vpack.c.bf16 %v787_v47, %v781_v56 }
 0x1c9   : > { %1052 = vmatmul.mubr.f32.gmra.mrb[26].mxu0 %v9467_v27 }
 0x1ca   : > { %6812 = vmatpush1.bf16.msra.mxu0 %v6811_v3  ;;  %1057 = vmatprep.mubr.f32.mxu0 %v9472_v50  ;;  %v745_v3 = vld [vmem:[#allocation6 + $0xe0] sm:$0xff] }
 0x1cb   : > { %6814 = vmatprep.subr.bf16.mxu0 %v6813_v24  ;;  %v758_v24 = vld [vmem:[#allocation6 + $0x148] sm:$0xff]  ;;  %v6831_v33 = vpack.c.bf16 %v751_v23, %v745_v3  ;;  %v6847_v3 = vpack.c.bf16 %v799_v6, %v793_v0 }
 0x1cc   : > { %v6833_v7 = vpack.c.bf16 %v764_v18, %v758_v24  ;;  %v805_v24 = vld [vmem:[#allocation6 + $0x2c0] sm:$0xff]  ;;  %v811_v18 = vld [vmem:[#allocation6 + $0x2f0] sm:$0xff] }
 0x1cd   : > { %1058 = vmatmul.mubr.f32.gmra.mrb[28].mxu0 %v9477_v22  ;;  %v6851_v41 = vpack.c.bf16 %v811_v18, %v805_v24 }
 0x1ce   : > { %6816 = vmatpush1.bf16.msra.mxu0 %v6815_v31  ;;  %1063 = vmatprep.mubr.f32.mxu0 %v9482_v26  ;;  %v770_v31 = vld [vmem:[#allocation6 + $0x1a8] sm:$0xff] }
 0x1cf   : > { %6818 = vmatprep.subr.bf16.mxu0 %v6817_v52  ;;  %v776_v52 = vld [vmem:[#allocation6 + $0x1d8] sm:$0xff] }
 0x1d0   : > { %v6837_v13 = vpack.c.bf16 %v776_v52, %v770_v31  ;;  %v817_v31 = vld [vmem:[#allocation6 + $0x320] sm:$0xff]  ;;  %v823_v52 = vld [vmem:[#allocation6 + $0x350] sm:$0xff] }
 0x1d1   : > { %1064 = vmatmul.mubr.f32.gmra.mrb[30].mxu0 %v9486_v42  ;;  %v6855_v48 = vpack.c.bf16 %v823_v52, %v817_v31 }
 0x1d2   : > { %6820 = vmatpush1.bf16.msra.mxu0 %v6819_v51  ;;  %1134 = vmatprep.mubr.f32.mxu0 %v9333_v44  ;;  %v782_v51 = vld [vmem:[#allocation6 + $0x208] sm:$0xff] }
 0x1d3   : > { %6822 = vmatprep.subr.bf16.mxu0 %v6821_v54  ;;  %v788_v54 = vld [vmem:[#allocation6 + $0x238] sm:$0xff] }
 0x1d4   : > { %v6841_v10 = vpack.c.bf16 %v788_v54, %v782_v51  ;;  %v829_v51 = vld [vmem:[#allocation6 + $0x380] sm:$0xff]  ;;  %v835_v54 = vld [vmem:[#allocation6 + $0x3b0] sm:$0xff] }
 0x1d5   : > { %1135 = vmatmul.mubr.f32.vlgmr.msra.gmra.mrb[32].mxu0 %v9336_v45  ;;  %v6859_v56 = vpack.c.bf16 %v835_v54, %v829_v51 }
 0x1d6   : > { %1140 = vmatprep.mubr.f32.mxu0 %v9345_v16  ;;  %6824 = vmatpush1.bf16.msra.mxu0 %v6823_v60  ;;  %v794_v60 = vld [vmem:[#allocation6 + $0x268] sm:$0xff] }
 0x1d7   : > { %6826 = vmatprep.subr.bf16.mxu0 %v6825_v36  ;;  %v800_v36 = vld [vmem:[#allocation6 + $0x298] sm:$0xff] }
 0x1d8   : > { %v6845_v4 = vpack.c.bf16 %v800_v36, %v794_v60  ;;  %v841_v60 = vld [vmem:[#allocation6 + $0x3e0] sm:$0xff]  ;;  %v847_v36 = vld [vmem:[#allocation6 + $0x410] sm:$0xff] }
 0x1d9   : > { %1141 = vmatmul.mubr.f32.gmra.mrb[34].mxu0 %v9348_v17  ;;  %v6863_v0 = vpack.c.bf16 %v847_v36, %v841_v60 }
 0x1da   : > { %1146 = vmatprep.mubr.f32.mxu0 %v9351_v2  ;;  %6828 = vmatpush1.bf16.msra.mxu0 %v6827_v29  ;;  %v806_v29 = vld [vmem:[#allocation6 + $0x2c8] sm:$0xff] }
 0x1db   : > { %6830 = vmatprep.subr.bf16.mxu0 %v6829_v8  ;;  %v812_v8 = vld [vmem:[#allocation6 + $0x2f8] sm:$0xff] }
 0x1dc   : > { %v6849_v23 = vpack.c.bf16 %v812_v8, %v806_v29  ;;  %v853_v29 = vld [vmem:[#allocation6 + $0x440] sm:$0xff]  ;;  %v859_v8 = vld [vmem:[#allocation6 + $0x470] sm:$0xff] }
 0x1dd   : > { %1147 = vmatmul.mubr.f32.gmra.mrb[36].mxu0 %v9357_v38  ;;  %v6867_v24 = vpack.c.bf16 %v859_v8, %v853_v29 }
 0x1de   : > { %1152 = vmatprep.mubr.f32.mxu0 %v9362_v43  ;;  %6832 = vmatpush1.bf16.msra.mxu0 %v6831_v33  ;;  %v818_v33 = vld [vmem:[#allocation6 + $0x328] sm:$0xff] }
 0x1df   : > { %6834 = vmatprep.subr.bf16.mxu0 %v6833_v7  ;;  %v824_v7 = vld [vmem:[#allocation6 + $0x358] sm:$0xff] }
 0x1e0   : > { %v6853_v49 = vpack.c.bf16 %v824_v7, %v818_v33  ;;  %v865_v33 = vld [vmem:[#allocation6 + $0x4a0] sm:$0xff]  ;;  %v871_v7 = vld [vmem:[#allocation6 + $0x4d0] sm:$0xff] }
 0x1e1   : > { %1153 = vmatmul.mubr.f32.gmra.mrb[38].mxu0 %v9367_v12  ;;  %v6871_v31 = vpack.c.bf16 %v871_v7, %v865_v33 }
 0x1e2   : > { %1158 = vmatprep.mubr.f32.mxu0 %v9372_v9  ;;  %6836 = vmatpush1.bf16.msra.mxu0 %v6835_v20  ;;  %v830_v20 = vld [vmem:[#allocation6 + $0x388] sm:$0xff] }
 0x1e3   : > { %6838 = vmatprep.subr.bf16.mxu0 %v6837_v13  ;;  %v836_v13 = vld [vmem:[#allocation6 + $0x3b8] sm:$0xff] }
 0x1e4   : > { %v6857_v1 = vpack.c.bf16 %v836_v13, %v830_v20  ;;  %v877_v20 = vld [vmem:[#allocation6 + $0x500] sm:$0xff]  ;;  %v883_v13 = vld [vmem:[#allocation6 + $0x530] sm:$0xff] }
 0x1e5   : > { %1159 = vmatmul.mubr.f32.gmra.mrb[40].mxu0 %v9377_v14  ;;  %v6875_v51 = vpack.c.bf16 %v883_v13, %v877_v20 }
 0x1e6   : > { %1164 = vmatprep.mubr.f32.mxu0 %v9382_v39  ;;  %6840 = vmatpush1.bf16.msra.mxu0 %v6839_v62  ;;  %v842_v62 = vld [vmem:[#allocation6 + $0x3e8] sm:$0xff] }
 0x1e7   : > { %6842 = vmatprep.subr.bf16.mxu0 %v6841_v10  ;;  %v848_v10 = vld [vmem:[#allocation6 + $0x418] sm:$0xff] }
 0x1e8   : > { %v6861_v47 = vpack.c.bf16 %v848_v10, %v842_v62  ;;  %v889_v62 = vld [vmem:[#allocation6 + $0x560] sm:$0xff]  ;;  %v895_v10 = vld [vmem:[#allocation6 + $0x590] sm:$0xff] }
 0x1e9   : > { %1165 = vmatmul.mubr.f32.gmra.mrb[42].mxu0 %v9387_v19  ;;  %v6879_v60 = vpack.c.bf16 %v895_v10, %v889_v62 }
 0x1ea   : > { %1170 = vmatprep.mubr.f32.mxu0 %v9392_v59  ;;  %6844 = vmatpush1.bf16.msra.mxu0 %v6843_v11  ;;  %v854_v11 = vld [vmem:[#allocation6 + $0x448] sm:$0xff] }
 0x1eb   : > { %6846 = vmatprep.subr.bf16.mxu0 %v6845_v4  ;;  %v860_v4 = vld [vmem:[#allocation6 + $0x478] sm:$0xff] }
 0x1ec   : > { %v6865_v6 = vpack.c.bf16 %v860_v4, %v854_v11  ;;  %v901_v11 = vld [vmem:[#allocation6 + $0x5c0] sm:$0xff]  ;;  %v907_v4 = vld [vmem:[#allocation6 + $0x5f0] sm:$0xff] }
 0x1ed   : > { %1171 = vmatmul.mubr.f32.gmra.mrb[44].mxu0 %v9397_v28 }
 0x1ee   : > { %1176 = vmatprep.mubr.f32.mxu0 %v9402_v21  ;;  %6848 = vmatpush1.bf16.msra.mxu0 %v6847_v3  ;;  %v866_v3 = vld [vmem:[#allocation6 + $0x4a8] sm:$0xff] }
 0x1ef   : > { %6850 = vmatprep.subr.bf16.mxu0 %v6849_v23  ;;  %v872_v23 = vld [vmem:[#allocation6 + $0x4d8] sm:$0xff] }
 0x1f0   : > { %v6869_v18 = vpack.c.bf16 %v872_v23, %v866_v3 }
 0x1f1   : > { %1177 = vmatmul.mubr.f32.gmra.mrb[46].mxu0 %v9407_v30 }
 0x1f2   : > { %1182 = vmatprep.mubr.f32.mxu0 %v9412_v53  ;;  %6852 = vmatpush1.bf16.msra.mxu0 %v6851_v41  ;;  %v878_v41 = vld [vmem:[#allocation6 + $0x508] sm:$0xff] }
 0x1f3   : > { %6854 = vmatprep.subr.bf16.mxu0 %v6853_v49  ;;  %v884_v49 = vld [vmem:[#allocation6 + $0x538] sm:$0xff] }
 0x1f4   : > { %v6873_v52 = vpack.c.bf16 %v884_v49, %v878_v41 }
 0x1f5   : > { %1183 = vmatmul.mubr.f32.gmra.mrb[48].mxu0 %v9417_v35 }
 0x1f6   : > { %1188 = vmatprep.mubr.f32.mxu0 %v9422_v15  ;;  %6856 = vmatpush1.bf16.msra.mxu0 %v6855_v48  ;;  %v890_v48 = vld [vmem:[#allocation6 + $0x568] sm:$0xff] }
 0x1f7   : > { %6858 = vmatprep.subr.bf16.mxu0 %v6857_v1  ;;  %v896_v1 = vld [vmem:[#allocation6 + $0x598] sm:$0xff] }
 0x1f8   : > { %v6877_v54 = vpack.c.bf16 %v896_v1, %v890_v48 }
 0x1f9   : > { %1189 = vmatmul.mubr.f32.gmra.mrb[50].mxu0 %v9427_v40 }
 0x1fa   : > { %1194 = vmatprep.mubr.f32.mxu0 %v9432_v55  ;;  %6860 = vmatpush1.bf16.msra.mxu0 %v6859_v56  ;;  %v902_v56 = vld [vmem:[#allocation6 + $0x5c8] sm:$0xff] }
 0x1fb   : > { %6862 = vmatprep.subr.bf16.mxu0 %v6861_v47  ;;  %v908_v47 = vld [vmem:[#allocation6 + $0x5f8] sm:$0xff] }
 0x1fc   : > { %v6881_v36 = vpack.c.bf16 %v908_v47, %v902_v56 }
 0x1fd   : > { %1195 = vmatmul.mubr.f32.gmra.mrb[52].mxu0 %v9437_v61 }
 0x1fe   : > { %1200 = vmatprep.mubr.f32.mxu0 %v9442_v5  ;;  %6864 = vmatpush1.bf16.msra.mxu0 %v6863_v0  ;;  %v6883_v0 = vpack.c.bf16 %v907_v4, %v901_v11 }
 0x1ff   : > { %6866 = vmatprep.subr.bf16.mxu0 %v6865_v6 }
 0x201   : > { %1201 = vmatmul.mubr.f32.gmra.mrb[54].mxu0 %v9447_v63 }
 0x202   : > { %1206 = vmatprep.mubr.f32.mxu0 %v9452_v34  ;;  %6868 = vmatpush1.bf16.msra.mxu0 %v6867_v24 }
 0x203   : > { %6870 = vmatprep.subr.bf16.mxu0 %v6869_v18 }
 0x205   : > { %1207 = vmatmul.mubr.f32.gmra.mrb[56].mxu0 %v9457_v25 }
 0x206   : > { %1212 = vmatprep.mubr.f32.mxu0 %v9462_v32  ;;  %6872 = vmatpush1.bf16.msra.mxu0 %v6871_v31 }
 0x207   : > { %6874 = vmatprep.subr.bf16.mxu0 %v6873_v52 }
 0x209   : > { %1213 = vmatmul.mubr.f32.gmra.mrb[58].mxu0 %v9467_v27 }
 0x20a   : > { %1218 = vmatprep.mubr.f32.mxu0 %v9472_v50  ;;  %6876 = vmatpush1.bf16.msra.mxu0 %v6875_v51 }
 0x20b   : > { %6878 = vmatprep.subr.bf16.mxu0 %v6877_v54 }
 0x20d   : > { %1219 = vmatmul.mubr.f32.gmra.mrb[60].mxu0 %v9477_v22 }
 0x20e   : > { %1224 = vmatprep.mubr.f32.mxu0 %v9482_v26  ;;  %6880 = vmatpush1.bf16.msra.mxu0 %v6879_v60 }
 0x20f   : > { %6882 = vmatprep.subr.bf16.mxu0 %v6881_v36 }
 0x211   : > { %1225 = vmatmul.mubr.f32.gmra.mrb[62].mxu0 %v9486_v42 }
 0x212   : > { %6884 = vmatpush1.bf16.msra.mxu0 %v6883_v0  ;;  %1295 = vmatprep.mubr.f32.mxu0 %v9333_v44 }
 0x215   : > { %1296 = vmatmul.mubr.f32.vlgmr.msra.gmra.mrb[64].mxu0 %v9336_v45 }
 0x216   : > { %1301 = vmatprep.mubr.f32.mxu0 %v9345_v16 }
 0x219   : > { %1302 = vmatmul.mubr.f32.gmra.mrb[66].mxu0 %v9348_v17 }
 0x21a   : > { %1307 = vmatprep.mubr.f32.mxu0 %v9351_v2 }
 0x21d   : > { %1308 = vmatmul.mubr.f32.gmra.mrb[68].mxu0 %v9357_v38 }
 0x21e   : > { %1313 = vmatprep.mubr.f32.mxu0 %v9362_v43 }
 0x221   : > { %1314 = vmatmul.mubr.f32.gmra.mrb[70].mxu0 %v9367_v12 }
 0x222   : > { %1319 = vmatprep.mubr.f32.mxu0 %v9372_v9 }
 0x225   : > { %1320 = vmatmul.mubr.f32.gmra.mrb[72].mxu0 %v9377_v14 }
 0x226   : > { %1325 = vmatprep.mubr.f32.mxu0 %v9382_v39 }
 0x229   : > { %1326 = vmatmul.mubr.f32.gmra.mrb[74].mxu0 %v9387_v19 }
 0x22a   : > { %1331 = vmatprep.mubr.f32.mxu0 %v9392_v59 }
 0x22d   : > { %1332 = vmatmul.mubr.f32.gmra.mrb[76].mxu0 %v9397_v28 }
 0x22e   : > { %1337 = vmatprep.mubr.f32.mxu0 %v9402_v21 }
 0x231   : > { %1338 = vmatmul.mubr.f32.gmra.mrb[78].mxu0 %v9407_v30 }
 0x232   : > { %1343 = vmatprep.mubr.f32.mxu0 %v9412_v53 }
 0x235   : > { %1344 = vmatmul.mubr.f32.gmra.mrb[80].mxu0 %v9417_v35 }
 0x236   : > { %1349 = vmatprep.mubr.f32.mxu0 %v9422_v15 }
 0x239   : > { %1350 = vmatmul.mubr.f32.gmra.mrb[82].mxu0 %v9427_v40 }
 0x23a   : > { %1355 = vmatprep.mubr.f32.mxu0 %v9432_v55 }
 0x23d   : > { %1356 = vmatmul.mubr.f32.gmra.mrb[84].mxu0 %v9437_v61 }
 0x23e   : > { %1361 = vmatprep.mubr.f32.mxu0 %v9442_v5 }
 0x241   : > { %1362 = vmatmul.mubr.f32.gmra.mrb[86].mxu0 %v9447_v63 }
 0x242   : > { %1367 = vmatprep.mubr.f32.mxu0 %v9452_v34 }
 0x245   : > { %1368 = vmatmul.mubr.f32.gmra.mrb[88].mxu0 %v9457_v25 }
 0x246   : > { %1373 = vmatprep.mubr.f32.mxu0 %v9462_v32 }
 0x249   : > { %1374 = vmatmul.mubr.f32.gmra.mrb[90].mxu0 %v9467_v27 }
 0x24a   : > { %1379 = vmatprep.mubr.f32.mxu0 %v9472_v50 }
 0x24d   : > { %1380 = vmatmul.mubr.f32.gmra.mrb[92].mxu0 %v9477_v22 }
 0x24e   : > { %1385 = vmatprep.mubr.f32.mxu0 %v9482_v26 }
 0x251   : > { %1386 = vmatmul.mubr.f32.gmra.mrb[94].mxu0 %v9486_v42 }
 0x268   : > { %v9554_v44 = vpop.f32.mrb[0].mxu0 }
 0x269   : > { %12454 = vst [vmem:[#allocation25_spill] sm:$0xff] %v9554_v44  ;;  %v9556_v45 = vpop.f32.mrb[1].mxu0 }
 0x26a   : > { %12455 = vst [vmem:[#allocation26_spill] sm:$0xff] %v9556_v45 }
 0x26c   : > { %v9558_v16 = vpop.f32.mrb[2].mxu0 }
 0x26d   : > { %12456 = vst [vmem:[#allocation27_spill] sm:$0xff] %v9558_v16  ;;  %v9560_v17 = vpop.f32.mrb[3].mxu0 }
 0x26e   : > { %12457 = vst [vmem:[#allocation28_spill] sm:$0xff] %v9560_v17 }
 0x270   : > { %v9562_v2 = vpop.f32.mrb[4].mxu0 }
 0x271   : > { %12458 = vst [vmem:[#allocation29_spill] sm:$0xff] %v9562_v2  ;;  %v9564_v38 = vpop.f32.mrb[5].mxu0 }
 0x272   : > { %12459 = vst [vmem:[#allocation30_spill] sm:$0xff] %v9564_v38 }
 0x274   : > { %v9566_v43 = vpop.f32.mrb[6].mxu0 }
 0x275   : > { %12460 = vst [vmem:[#allocation31_spill] sm:$0xff] %v9566_v43  ;;  %v9568_v12 = vpop.f32.mrb[7].mxu0 }
 0x276   : > { %12461 = vst [vmem:[#allocation32_spill] sm:$0xff] %v9568_v12 }
 0x278   : > { %v9570_v9 = vpop.f32.mrb[8].mxu0 }
 0x279   : > { %v9572_v14 = vpop.f32.mrb[9].mxu0 }
 0x27a   : > { %12462 = vst [vmem:[#allocation33_spill] sm:$0xff] %v9572_v14 }
 0x27c   : > { %v9574_v39 = vpop.f32.mrb[10].mxu0 }
 0x27d   : > { %v9576_v19 = vpop.f32.mrb[11].mxu0 }
 0x27e   : > { %12463 = vst [vmem:[#allocation34_spill] sm:$0xff] %v9576_v19 }
 0x280   : > { %v9578_v59 = vpop.f32.mrb[12].mxu0 }
 0x281   : > { %12464 = vst [vmem:[#allocation35_spill] sm:$0xff] %v9578_v59  ;;  %v9580_v28 = vpop.f32.mrb[13].mxu0 }
 0x282   : > { %12465 = vst [vmem:[#allocation36_spill] sm:$0xff] %v9580_v28 }
 0x284   : > { %v9582_v21 = vpop.f32.mrb[14].mxu0 }
 0x285   : > { %v9584_v30 = vpop.f32.mrb[15].mxu0 }
 0x286   : > { %12466 = vst [vmem:[#allocation37_spill] sm:$0xff] %v9584_v30 }
 0x288   : > { %v9586_v53 = vpop.f32.mrb[16].mxu0 }
 0x289   : > { %12467 = vst [vmem:[#allocation38_spill] sm:$0xff] %v9586_v53  ;;  %v9588_v35 = vpop.f32.mrb[17].mxu0 }
 0x28a   : > { %12468 = vst [vmem:[#allocation39_spill] sm:$0xff] %v9588_v35 }
 0x28c   : > { %v9590_v15 = vpop.f32.mrb[18].mxu0 }
 0x28d   : > { %v9592_v40 = vpop.f32.mrb[19].mxu0 }
 0x28e   : > { %12469 = vst [vmem:[#allocation40_spill] sm:$0xff] %v9592_v40 }
 0x290   : > { %v9594_v55 = vpop.f32.mrb[20].mxu0 }
 0x291   : > { %v9596_v61 = vpop.f32.mrb[21].mxu0 }
 0x292   : > { %12470 = vst [vmem:[#allocation41_spill] sm:$0xff] %v9596_v61 }
 0x294   : > { %v9598_v5 = vpop.f32.mrb[22].mxu0 }
 0x295   : > { %v9600_v63 = vpop.f32.mrb[23].mxu0 }
 0x296   : > { %12471 = vst [vmem:[#allocation42_spill] sm:$0xff] %v9600_v63 }
 0x298   : > { %v9602_v34 = vpop.f32.mrb[24].mxu0 }
 0x299   : > { %v9604_v25 = vpop.f32.mrb[25].mxu0 }
 0x29a   : > { %12472 = vst [vmem:[#allocation43_spill] sm:$0xff] %v9604_v25 }
 0x29c   : > { %v9606_v32 = vpop.f32.mrb[26].mxu0 }
 0x29d   : > { %12473 = vst [vmem:[#allocation44_spill] sm:$0xff] %v9606_v32  ;;  %v9608_v27 = vpop.f32.mrb[27].mxu0 }
 0x29e   : > { %12474 = vst [vmem:[#allocation45_spill] sm:$0xff] %v9608_v27 }
 0x2a0   : > { %v9610_v50 = vpop.f32.mrb[28].mxu0 }
 0x2a1   : > { %12475 = vst [vmem:[#allocation46_spill] sm:$0xff] %v9610_v50  ;;  %v9612_v22 = vpop.f32.mrb[29].mxu0 }
 0x2a2   : > { %12476 = vst [vmem:[#allocation47_spill] sm:$0xff] %v9612_v22 }
 0x2a4   : > { %v9614_v26 = vpop.f32.mrb[30].mxu0 }
 0x2a5   : > { %12477 = vst [vmem:[#allocation48_spill] sm:$0xff] %v9614_v26  ;;  %v9616_v42 = vpop.f32.mrb[31].mxu0 }
 0x2a6   : > { %12478 = vst [vmem:[#allocation49_spill] sm:$0xff] %v9616_v42 }
 0x2a8   : > { %v9618_v6 = vpop.f32.mrb[32].mxu0 }
 0x2a9   : > { %1555 = vrot.lane.b32.xlu0 %v9618_v6, %s8775_s30  ;;  %v9622_v29 = vpop.f32.mrb[33].mxu0 }
 0x2ac   : > { %v9624_v8 = vpop.f32.mrb[34].mxu0 }
 0x2ad   : > { %2181 = vrot.lane.b32.xlu0 %v9622_v29, %s8775_s30  ;;  %1557 = vrot.lane.b32.xlu1 %v9624_v8, %s8775_s30  ;;  %v9630_v3 = vpop.f32.mrb[35].mxu0 }
 0x2b0   : > { %v9632_v23 = vpop.f32.mrb[36].mxu0 }
 0x2b1   : > { %1559 = vrot.lane.b32.xlu1 %v9632_v23, %s8775_s30  ;;  %v9636_v24 = vpop.f32.mrb[37].mxu0 }
 0x2b4   : > { %v9638_v18 = vpop.f32.mrb[38].mxu0 }
 0x2b5   : > { %1561 = vrot.lane.b32.xlu1 %v9638_v18, %s8775_s30  ;;  %v9642_v33 = vpop.f32.mrb[39].mxu0 }
 0x2b8   : > { %v9644_v7 = vpop.f32.mrb[40].mxu0 }
 0x2b9   : > { %2183 = vrot.lane.b32.xlu1 %v9630_v3, %s8775_s30  ;;  %1563 = vrot.lane.b32.xlu0 %v9644_v7, %s8775_s30  ;;  %v9650_v41 = vpop.f32.mrb[41].mxu0 }
 0x2bc   : > { %v9652_v49 = vpop.f32.mrb[42].mxu0 }
 0x2bd   : > { %2185 = vrot.lane.b32.xlu0 %v9636_v24, %s8775_s30  ;;  %1565 = vrot.lane.b32.xlu1 %v9652_v49, %s8775_s30  ;;  %v9658_v31 = vpop.f32.mrb[43].mxu0 }
 0x2c0   : > { %v9660_v52 = vpop.f32.mrb[44].mxu0 }
 0x2c1   : > { %2187 = vrot.lane.b32.xlu1 %v9642_v33, %s8775_s30  ;;  %1567 = vrot.lane.b32.xlu0 %v9660_v52, %s8775_s30  ;;  %v9666_v20 = vpop.f32.mrb[45].mxu0 }
 0x2c4   : > { %v9668_v13 = vpop.f32.mrb[46].mxu0 }
 0x2c5   : > { %2189 = vrot.lane.b32.xlu0 %v9650_v41, %s8775_s30  ;;  %1569 = vrot.lane.b32.xlu1 %v9668_v13, %s8775_s30  ;;  %v9674_v48 = vpop.f32.mrb[47].mxu0 }
 0x2c8   : > { %v9676_v1 = vpop.f32.mrb[48].mxu0 }
 0x2c9   : > { %2191 = vrot.lane.b32.xlu1 %v9658_v31, %s8775_s30  ;;  %1571 = vrot.lane.b32.xlu0 %v9676_v1, %s8775_s30  ;;  %v9682_v51 = vpop.f32.mrb[49].mxu0 }
 0x2cc   : > { %v9684_v54 = vpop.f32.mrb[50].mxu0 }
 0x2cd   : > { %2193 = vrot.lane.b32.xlu0 %v9666_v20, %s8775_s30  ;;  %1573 = vrot.lane.b32.xlu1 %v9684_v54, %s8775_s30  ;;  %v9690_v62 = vpop.f32.mrb[51].mxu0 }
 0x2d0   : > { %v9692_v10 = vpop.f32.mrb[52].mxu0 }
 0x2d1   : > { %2195 = vrot.lane.b32.xlu1 %v9674_v48, %s8775_s30  ;;  %1575 = vrot.lane.b32.xlu0 %v9692_v10, %s8775_s30  ;;  %v9698_v56 = vpop.f32.mrb[53].mxu0 }
 0x2d2   : > { %12479 = vst [vmem:[#allocation50_spill] sm:$0xff] %v9698_v56 }
 0x2d4   : > { %v9700_v47 = vpop.f32.mrb[54].mxu0 }
 0x2d5   : > { %2197 = vrot.lane.b32.xlu0 %v9682_v51, %s8775_s30  ;;  %1577 = vrot.lane.b32.xlu1 %v9700_v47, %s8775_s30  ;;  %v9706_v60 = vpop.f32.mrb[55].mxu0 }
 0x2d8   : > { %v9708_v36 = vpop.f32.mrb[56].mxu0 }
 0x2d9   : > { %12480 = vst [vmem:[#allocation51_spill] sm:$0xff] %v9708_v36  ;;  %2199 = vrot.lane.b32.xlu1 %v9690_v62, %s8775_s30  ;;  %1579 = vrot.lane.b32.xlu0 %v9708_v36, %s8775_s30  ;;  %v9714_v11 = vpop.f32.mrb[57].mxu0 }
 0x2dc   : > { %v9716_v4 = vpop.f32.mrb[58].mxu0 }
 0x2dd   : > { %12481 = vst [vmem:[#allocation52_spill] sm:$0xff] %v9716_v4  ;;  %1475 = vrot.lane.b32.xlu0 %v9554_v44, %s8775_s30  ;;  %1581 = vrot.lane.b32.xlu1 %v9716_v4, %s8775_s30  ;;  %v9722_v0 = vpop.f32.mrb[59].mxu0 }
 0x2e0   : > { %v9724_v58 = vpop.f32.mrb[60].mxu0 }
 0x2e1   : > { %12482 = vst [vmem:[#allocation53_spill] sm:$0xff] %v9724_v58  ;;  %1477 = vrot.lane.b32.xlu1 %v9558_v16, %s8775_s30  ;;  %1583 = vrot.lane.b32.xlu0 %v9724_v58, %s8775_s30  ;;  %v9730_v57 = vpop.f32.mrb[61].mxu0 }
 0x2e2   : > { %12483 = vst [vmem:[#allocation54_spill] sm:$0xff] %v9730_v57 }
 0x2e4   : > { %v9732_v37 = vpop.f32.mrb[62].mxu0 }
 0x2e5   : > { %12484 = vst [vmem:[#allocation55_spill] sm:$0xff] %v9732_v37  ;;  %1479 = vrot.lane.b32.xlu0 %v9562_v2, %s8775_s30  ;;  %1585 = vrot.lane.b32.xlu1 %v9732_v37, %s8775_s30  ;;  %v9738_v46 = vpop.f32.mrb[63].mxu0 }
 0x2e6   : > { %12485 = vst [vmem:[#allocation56_spill] sm:$0xff] %v9738_v46 }
 0x2e8   : > { %v1297_v4 = vpop.f32.mrb[64].mxu0 }
 0x2e9   : > { %2201 = vrot.lane.b32.xlu0 %v9698_v56, %s8775_s30  ;;  %1481 = vrot.lane.b32.xlu1 %v9566_v43, %s8775_s30  ;;  %v1299_v16 = vpop.f32.mrb[65].mxu0 }
 0x2ec   : > { %v1303_v58 = vpop.f32.mrb[66].mxu0 }
 0x2ed   : > { %v9744_v36 = vpack.c.bf16 %v1303_v58, %v1297_v4  ;;  %1483 = vrot.lane.b32.xlu0 %v9570_v9, %s8775_s30  ;;  %2203 = vrot.lane.b32.xlu1 %v9706_v60, %s8775_s30  ;;  %v1305_v2 = vpop.f32.mrb[67].mxu0 }
 0x2ee   : > { %v9750_v37 = vpack.c.bf16 %v1305_v2, %v1299_v16 }
 0x2f0   : > { %12486 = vst [vmem:[#allocation57_spill] sm:$0xff] %v9750_v37  ;;  %v1309_v44 = vpop.f32.mrb[68].mxu0 }
 0x2f1   : > { %1487 = vrot.lane.b32.xlu0 %v9578_v59, %s8775_s30  ;;  %1485 = vrot.lane.b32.xlu1 %v9574_v39, %s8775_s30  ;;  %v1311_v43 = vpop.f32.mrb[69].mxu0 }
 0x2f4   : > { %v1315_v56 = vpop.f32.mrb[70].mxu0 }
 0x2f5   : > { %v9756_v58 = vpack.c.bf16 %v1315_v56, %v1309_v44  ;;  %2205 = vrot.lane.b32.xlu0 %v9714_v11, %s8775_s30  ;;  %1489 = vrot.lane.b32.xlu1 %v9582_v21, %s8775_s30  ;;  %v1317_v4 = vpop.f32.mrb[71].mxu0 }
 0x2f6   : > { %v9762_v16 = vpack.c.bf16 %v1317_v4, %v1311_v43 }
 0x2f8   : > { %12487 = vst [vmem:[#allocation58_spill] sm:$0xff] %v9762_v16  ;;  %v1321_v2 = vpop.f32.mrb[72].mxu0 }
 0x2f9   : > { %1491 = vrot.lane.b32.xlu0 %v9586_v53, %s8775_s30  ;;  %2207 = vrot.lane.b32.xlu1 %v9722_v0, %s8775_s30  ;;  %v1323_v37 = vpop.f32.mrb[73].mxu0 }
 0x2fc   : > { %v1327_v59 = vpop.f32.mrb[74].mxu0 }
 0x2fd   : > { %v9768_v44 = vpack.c.bf16 %v1327_v59, %v1321_v2  ;;  %1495 = vrot.lane.b32.xlu0 %v9594_v55, %s8775_s30  ;;  %1493 = vrot.lane.b32.xlu1 %v9590_v15, %s8775_s30  ;;  %v1329_v56 = vpop.f32.mrb[75].mxu0 }
 0x2fe   : > { %v9774_v43 = vpack.c.bf16 %v1329_v56, %v1323_v37 }
 0x300   : > { %12488 = vst [vmem:[#allocation59_spill] sm:$0xff] %v9774_v43  ;;  %v1333_v4 = vpop.f32.mrb[76].mxu0 }
 0x301   : > { %2209 = vrot.lane.b32.xlu0 %v9730_v57, %s8775_s30  ;;  %1497 = vrot.lane.b32.xlu1 %v9598_v5, %s8775_s30  ;;  %v1335_v16 = vpop.f32.mrb[77].mxu0 }
 0x304   : > { %v1339_v53 = vpop.f32.mrb[78].mxu0 }
 0x305   : > { %v9780_v59 = vpack.c.bf16 %v1339_v53, %v1333_v4  ;;  %1499 = vrot.lane.b32.xlu0 %v9602_v34, %s8775_s30  ;;  %2211 = vrot.lane.b32.xlu1 %v9738_v46, %s8775_s30  ;;  %v1341_v2 = vpop.f32.mrb[79].mxu0 }
 0x306   : > { %v9786_v37 = vpack.c.bf16 %v1341_v2, %v1335_v16 }
 0x308   : > { %12489 = vst [vmem:[#allocation60_spill] sm:$0xff] %v9786_v37  ;;  %v1345_v56 = vpop.f32.mrb[80].mxu0 }
 0x309   : > { %1503 = vrot.lane.b32.xlu0 %v9610_v50, %s8775_s30  ;;  %1501 = vrot.lane.b32.xlu1 %v9606_v32, %s8775_s30  ;;  %v1347_v43 = vpop.f32.mrb[81].mxu0  ;;  %v9975_v32 = vld [vmem:[#allocation15 + $0x78] sm:$0xff] }
 0x30c   : > { %v1351_v57 = vpop.f32.mrb[82].mxu0 }
 0x30d   : > { %v9792_v53 = vpack.c.bf16 %v1351_v57, %v1345_v56  ;;  %2101 = vrot.lane.b32.xlu0 %v9556_v45, %s8775_s30  ;;  %1505 = vrot.lane.b32.xlu1 %v9614_v26, %s8775_s30  ;;  %v1353_v4 = vpop.f32.mrb[83].mxu0 }
 0x30e   : > { %v9798_v16 = vpack.c.bf16 %v1353_v4, %v1347_v43 }
 0x310   : > { %12490 = vst [vmem:[#allocation61_spill] sm:$0xff] %v9798_v16  ;;  %v1357_v2 = vpop.f32.mrb[84].mxu0 }
 0x311   : > { %2105 = vrot.lane.b32.xlu0 %v9564_v38, %s8775_s30  ;;  %2103 = vrot.lane.b32.xlu1 %v9560_v17, %s8775_s30  ;;  %v1359_v37 = vpop.f32.mrb[85].mxu0  ;;  %v9816_v38 = vld [vmem:[#allocation15] sm:$0xff] }
 0x312   : > { %12493 = vst [vmem:[#allocation64_spill] sm:$0xff] %v9816_v38 }
 0x314   : > { %v1363_v50 = vpop.f32.mrb[86].mxu0 }
 0x315   : > { %v9804_v57 = vpack.c.bf16 %v1363_v50, %v1357_v2  ;;  %2109 = vrot.lane.b32.xlu0 %v9572_v14, %s8775_s30  ;;  %2107 = vrot.lane.b32.xlu1 %v9568_v12, %s8775_s30  ;;  %v1365_v56 = vpop.f32.mrb[87].mxu0  ;;  %v9831_v14 = vld [vmem:[#allocation14 + $0x8] sm:$0xff] }
 0x316   : > { %v9810_v43 = vpack.c.bf16 %v1365_v56, %v1359_v37  ;;  %v9824_v56 = vld [vmem:[#allocation15 + $0x8] sm:$0xff] }
 0x317   : > { %12491 = vst [vmem:[#allocation62_spill] sm:$0xff] %v9804_v57  ;;  %12495 = vst [vmem:[#allocation66_spill] sm:$0xff] %v9824_v56  ;;  %v12507_v57 = vld [vmem:[#allocation50_spill] sm:$0xff] }
 0x318   : > { %12492 = vst [vmem:[#allocation63_spill] sm:$0xff] %v9810_v43  ;;  %v1369_v4 = vpop.f32.mrb[88].mxu0 }
 0x319   : > { %2113 = vrot.lane.b32.xlu0 %v9580_v28, %s8775_s30  ;;  %2111 = vrot.lane.b32.xlu1 %v9576_v19, %s8775_s30  ;;  %v1371_v16 = vpop.f32.mrb[89].mxu0  ;;  %v9829_v19 = vld [vmem:[#allocation14] sm:$0xff] }
 0x31a   : > { %12497 = vst [vmem:[#allocation68_spill] sm:$0xff] %v9829_v19 }
 0x31b   : > { %v1556_v50 = vpop.permute.xlu0 %1555 }
 0x31c   : > { %v1375_v2 = vpop.f32.mrb[90].mxu0  ;;  %v1587_v43 = vmul.f32 %v1556_v50, %v9816_v38 }
 0x31d   : > { %v9818_v17 = vpack.c.bf16 %v1375_v2, %v1369_v4  ;;  %2117 = vrot.lane.b32.xlu0 %v9588_v35, %s8775_s30  ;;  %2115 = vrot.lane.b32.xlu1 %v9584_v30, %s8775_s30  ;;  %v1377_v37 = vpop.f32.mrb[91].mxu0  ;;  %v1539_v4 = vmul.f32 %v9829_v19, %v9618_v6  ;;  %v1540_v2 = vmul.f32 %v9831_v14, %v9624_v8  ;;  %v9850_v8 = vld [vmem:[#allocation15 + $0x18] sm:$0xff] }
 0x31e   : > { %v9827_v28 = vpack.c.bf16 %v1377_v37, %v1371_v16 }
 0x31f   : > { %12494 = vst [vmem:[#allocation65_spill] sm:$0xff] %v9818_v17  ;;  %v1558_v12 = vpop.permute.xlu1 %1557  ;;  %v1603_v50 = vadd.f32 %v1587_v43, %v1539_v4  ;;  %v9857_v4 = vld [vmem:[#allocation14 + $0x18] sm:$0xff] }
 0x320   : > { %12496 = vst [vmem:[#allocation67_spill] sm:$0xff] %v9827_v28  ;;  %v1588_v35 = vmul.f32 %v1558_v12, %v9824_v56  ;;  %v1381_v30 = vpop.f32.mrb[92].mxu0  ;;  %v9842_v28 = vld [vmem:[#allocation15 + $0x10] sm:$0xff] }
 0x321   : > { %2121 = vrot.lane.b32.xlu0 %v9596_v61, %s8775_s30  ;;  %2119 = vrot.lane.b32.xlu1 %v9592_v40, %s8775_s30  ;;  %v1383_v16 = vpop.f32.mrb[93].mxu0 }
 0x322   : > { %v1604_v37 = vadd.f32 %v1588_v35, %v1540_v2  ;;  %v9855_v35 = vld [vmem:[#allocation14 + $0x10] sm:$0xff] }
 0x323   : > { %v1560_v26 = vpop.permute.xlu1 %1559  ;;  %v1541_v2 = vmul.f32 %v9855_v35, %v9632_v23  ;;  %v2165_v23 = vmul.f32 %v9829_v19, %v9622_v29 }
 0x324   : > { %v1387_v45 = vpop.f32.mrb[94].mxu0  ;;  %v6885_v6 = vpack.c.bf16 %v1604_v37, %v1603_v50  ;;  %v1589_v61 = vmul.f32 %v1560_v26, %v9842_v28  ;;  %v1542_v50 = vmul.f32 %v9857_v4, %v9638_v18  ;;  %v2166_v18 = vmul.f32 %v9831_v14, %v9630_v3 }
 0x325   : > { %v9844_v17 = vpack.c.bf16 %v1387_v45, %v1381_v30  ;;  %2125 = vrot.lane.b32.xlu0 %v9604_v25, %s8775_s30  ;;  %2123 = vrot.lane.b32.xlu1 %v9600_v63, %s8775_s30  ;;  %v1389_v12 = vpop.f32.mrb[95].mxu0  ;;  %v2182_v45 = vpop.permute.xlu0 %2181  ;;  %v2167_v63 = vmul.f32 %v9855_v35, %v9636_v24 }
 0x326   : > { %v9853_v43 = vpack.c.bf16 %v1389_v12, %v1383_v16  ;;  %6886 = vmatprep.subr.bf16.mxu1 %v6885_v6  ;;  %v2213_v26 = vmul.f32 %v2182_v45, %v9816_v38  ;;  %v1605_v16 = vadd.f32 %v1589_v61, %v1541_v2 }
 0x327   : > { %12498 = vst [vmem:[#allocation69_spill] sm:$0xff] %v9844_v17  ;;  %6888 = vmatpush3.bf16.xpose.msra.mxu1 %v6885_v6  ;;  %v1562_v30 = vpop.permute.xlu1 %1561 }
 0x328   : > { %12499 = vst [vmem:[#allocation70_spill] sm:$0xff] %v9853_v43  ;;  %v1590_v37 = vmul.f32 %v1562_v30, %v9850_v8  ;;  %v9869_v43 = vld [vmem:[#allocation15 + $0x20] sm:$0xff]  ;;  %v2229_v61 = vadd.f32 %v2213_v26, %v2165_v23 }
 0x329   : > { %2129 = vrot.lane.b32.xlu0 %v9612_v22, %s8775_s30  ;;  %2127 = vrot.lane.b32.xlu1 %v9608_v27, %s8775_s30  ;;  %v9878_v27 = vld [vmem:[#allocation15 + $0x28] sm:$0xff] }
 0x32a   : > { %v1606_v12 = vadd.f32 %v1590_v37, %v1542_v50  ;;  %v9881_v50 = vld [vmem:[#allocation14 + $0x20] sm:$0xff]  ;;  %v9883_v37 = vld [vmem:[#allocation14 + $0x28] sm:$0xff] }
 0x32b   : > { %v2184_v6 = vpop.permute.xlu1 %2183  ;;  %v1564_v25 = vpop.permute.xlu0 %1563 }
 0x32c   : > { %v2214_v30 = vmul.f32 %v2184_v6, %v9824_v56  ;;  %v6889_v22 = vpack.c.bf16 %v1606_v12, %v1605_v16  ;;  %v1591_v2 = vmul.f32 %v1564_v25, %v9869_v43  ;;  %v1543_v16 = vmul.f32 %v9881_v50, %v9644_v7 }
 0x32d   : > { %2131 = vrot.lane.b32.xlu1 %v9616_v42, %s8775_s30  ;;  %v1544_v12 = vmul.f32 %v9883_v37, %v9652_v49  ;;  %v9891_v42 = vld [vmem:[#allocation15 + $0x30] sm:$0xff]  ;;  %v2168_v7 = vmul.f32 %v9857_v4, %v9642_v33  ;;  %s8776_s30 = smov [#allocation17]  }
 0x32e   : > { %v2230_v45 = vadd.f32 %v2214_v30, %v2166_v18  ;;  %6890 = vmatprep.subr.bf16.mxu1 %v6889_v22  ;;  %v1607_v23 = vadd.f32 %v1591_v2, %v1543_v16  ;;  %v9901_v16 = vld [vmem:[#allocation14 + $0x30] sm:$0xff]  ;;  %s8681_s12 = sshll.u32 %s8776_s30, 4  ;;  %s8682_s12 = int_to_ptr.vmem [resolvable:$false] %s8681_s12 }
 0x32f   : > { %6892 = vmatpush3.bf16.xpose.msra.mxu1 %v6889_v22  ;;  %v2186_v29 = vpop.permute.xlu0 %2185  ;;  %v1566_v3 = vpop.permute.xlu1 %1565  ;;  %v1545_v33 = vmul.f32 %v9901_v16, %v9660_v52  ;;  %v2170_v52 = vmul.f32 %v9883_v37, %v9658_v31  ;;  %s8683_s24 = scalar_lea.vmem %s8682_s12, 8192  ;;  %p8684_p2 = scmp.lt.s32.totalorder %s12202_s27, %s8682_s12 }
 0x330   : > { %v1592_v6 = vmul.f32 %v1566_v3, %v9878_v27  ;;  %v6949_v26 = vpack.c.bf16 %v2230_v45, %v2229_v61  ;;  %v2215_v25 = vmul.f32 %v2186_v29, %v9842_v28  ;;  %v9898_v61 = vld [vmem:[#allocation15 + $0x38] sm:$0xff]  ;;  %p8685_p8 = scmp.lt.s32.totalorder %s8683_s24, %s8677_s22 }
 0x332   : > { %v1608_v18 = vadd.f32 %v1592_v6, %v1544_v12  ;;  %6950 = vmatprep.subr.bf16.mxu0 %v6949_v26  ;;  %v2231_v45 = vadd.f32 %v2215_v25, %v2167_v63  ;;  %v9903_v12 = vld [vmem:[#allocation14 + $0x38] sm:$0xff]  ;;  %p8686_p6 = por %p8685_p8, %p8684_p2 }
 0x333   : > { %6952 = vmatpush3.bf16.xpose.msra.mxu0 %v6949_v26  ;;  %v2188_v30 = vpop.permute.xlu1 %2187  ;;  %v1568_v22 = vpop.permute.xlu0 %1567  ;;  %v1546_v26 = vmul.f32 %v9903_v12, %v9668_v13 }
 0x334   : > { %v2216_v49 = vmul.f32 %v2188_v30, %v9850_v8  ;;  %v6893_v3 = vpack.c.bf16 %v1608_v18, %v1607_v23  ;;  %v1593_v29 = vmul.f32 %v1568_v22, %v9891_v42  ;;  %p8687_p10 = pnand %p8686_p6, %p8680_p0 }
 0x336   : > { %v2232_v2 = vadd.f32 %v2216_v49, %v2168_v7  ;;  %6894 = vmatprep.subr.bf16.mxu1 %v6893_v3  ;;  %v1609_v25 = vadd.f32 %v1593_v29, %v1545_v33  ;;  %v9911_v7 = vld [vmem:[#allocation15 + $0x40] sm:$0xff] }
 0x337   : > { %6896 = vmatpush3.bf16.xpose.msra.mxu1 %v6893_v3  ;;  %v2190_v6 = vpop.permute.xlu0 %2189  ;;  %v1570_v24 = vpop.permute.xlu1 %1569  ;;  %v2169_v3 = vmul.f32 %v9881_v50, %v9650_v41  ;;  %v9921_v33 = vld [vmem:[#allocation14 + $0x40] sm:$0xff] }
 0x338   : > { %v1594_v23 = vmul.f32 %v1570_v24, %v9898_v61  ;;  %v6953_v63 = vpack.c.bf16 %v2232_v2, %v2231_v45  ;;  %v2217_v18 = vmul.f32 %v2190_v6, %v9869_v43  ;;  %v9918_v45 = vld [vmem:[#allocation15 + $0x48] sm:$0xff]  ;;  %v1547_v31 = vmul.f32 %v9921_v33, %v9676_v1 }
 0x339   : > { %v2172_v1 = vmul.f32 %v9903_v12, %v9674_v48 }
 0x33a   : > { %v1610_v30 = vadd.f32 %v1594_v23, %v1546_v26  ;;  %6954 = vmatprep.subr.bf16.mxu0 %v6953_v63  ;;  %v2233_v2 = vadd.f32 %v2217_v18, %v2169_v3  ;;  %v9923_v26 = vld [vmem:[#allocation14 + $0x48] sm:$0xff] }
 0x33b   : > { %6956 = vmatpush3.bf16.xpose.msra.mxu0 %v6953_v63  ;;  %v2192_v22 = vpop.permute.xlu1 %2191  ;;  %v1572_v49 = vpop.permute.xlu0 %1571  ;;  %v1548_v63 = vmul.f32 %v9923_v26, %v9684_v54 }
 0x33c   : > { %v2218_v13 = vmul.f32 %v2192_v22, %v9878_v27  ;;  %v6897_v24 = vpack.c.bf16 %v1610_v30, %v1609_v25  ;;  %v1595_v6 = vmul.f32 %v1572_v49, %v9911_v7 }
 0x33e   : > { %v2234_v29 = vadd.f32 %v2218_v13, %v2170_v52  ;;  %6898 = vmatprep.subr.bf16.mxu1 %v6897_v24  ;;  %v1611_v30 = vadd.f32 %v1595_v6, %v1547_v31  ;;  %v9931_v52 = vld [vmem:[#allocation15 + $0x50] sm:$0xff] }
 0x33f   : > { %6900 = vmatpush3.bf16.xpose.msra.mxu1 %v6897_v24  ;;  %v2194_v23 = vpop.permute.xlu0 %2193  ;;  %v1574_v41 = vpop.permute.xlu1 %1573  ;;  %v2171_v24 = vmul.f32 %v9901_v16, %v9666_v20  ;;  %v9941_v31 = vld [vmem:[#allocation14 + $0x50] sm:$0xff] }
 0x340   : > { %v1596_v25 = vmul.f32 %v1574_v41, %v9918_v45  ;;  %v6957_v18 = vpack.c.bf16 %v2234_v29, %v2233_v2  ;;  %v2219_v22 = vmul.f32 %v2194_v23, %v9891_v42  ;;  %v9938_v2 = vld [vmem:[#allocation15 + $0x58] sm:$0xff]  ;;  %v1549_v48 = vmul.f32 %v9941_v31, %v9692_v10 }
 0x341   : > { %v2174_v10 = vmul.f32 %v9923_v26, %v9690_v62  ;;  %v2175_v46 = vmul.f32 %v9941_v31, %v12507_v57 }
 0x342   : > { %v1612_v49 = vadd.f32 %v1596_v25, %v1548_v63  ;;  %6958 = vmatprep.subr.bf16.mxu0 %v6957_v18  ;;  %v2235_v29 = vadd.f32 %v2219_v22, %v2171_v24  ;;  %v9943_v63 = vld [vmem:[#allocation14 + $0x58] sm:$0xff] }
 0x343   : > { %6960 = vmatpush3.bf16.xpose.msra.mxu0 %v6957_v18  ;;  %v2196_v3 = vpop.permute.xlu1 %2195  ;;  %v1576_v13 = vpop.permute.xlu0 %1575  ;;  %v1550_v18 = vmul.f32 %v9943_v63, %v9700_v47 }
 0x344   : > { %v2220_v54 = vmul.f32 %v2196_v3, %v9898_v61  ;;  %v6901_v41 = vpack.c.bf16 %v1612_v49, %v1611_v30  ;;  %v1597_v23 = vmul.f32 %v1576_v13, %v9931_v52 }
 0x346   : > { %v2236_v6 = vadd.f32 %v2220_v54, %v2172_v1  ;;  %6902 = vmatprep.subr.bf16.mxu1 %v6901_v41  ;;  %v1613_v49 = vadd.f32 %v1597_v23, %v1549_v48  ;;  %v9951_v1 = vld [vmem:[#allocation15 + $0x60] sm:$0xff] }
 0x347   : > { %6904 = vmatpush3.bf16.xpose.msra.mxu1 %v6901_v41  ;;  %v2198_v25 = vpop.permute.xlu0 %2197  ;;  %v1578_v20 = vpop.permute.xlu1 %1577  ;;  %v2173_v41 = vmul.f32 %v9921_v33, %v9682_v51  ;;  %v12501_v51 = vld [vmem:[#allocation51_spill] sm:$0xff] }
 0x348   : > { %v1598_v30 = vmul.f32 %v1578_v20, %v9938_v2  ;;  %v6961_v22 = vpack.c.bf16 %v2236_v6, %v2235_v29  ;;  %v2221_v3 = vmul.f32 %v2198_v25, %v9911_v7  ;;  %v9958_v29 = vld [vmem:[#allocation15 + $0x68] sm:$0xff]  ;;  %v9960_v6 = vld [vmem:[#allocation14 + $0x60] sm:$0xff] }
 0x349   : > { %v1551_v62 = vmul.f32 %v9960_v6, %v12501_v51 }
 0x34a   : > { %v1614_v13 = vadd.f32 %v1598_v30, %v1550_v18  ;;  %6962 = vmatprep.subr.bf16.mxu0 %v6961_v22  ;;  %v2237_v23 = vadd.f32 %v2221_v3, %v2173_v41  ;;  %v12500_v18 = vld [vmem:[#allocation25_spill] sm:$0xff] }
 0x34b   : > { %6964 = vmatpush3.bf16.xpose.msra.mxu0 %v6961_v22  ;;  %v2200_v24 = vpop.permute.xlu1 %2199  ;;  %v1580_v54 = vpop.permute.xlu0 %1579  ;;  %v1459_v30 = vmul.f32 %v9829_v19, %v12500_v18  ;;  %v9965_v22 = vld [vmem:[#allocation14 + $0x68] sm:$0xff]  ;;  %v9973_v19 = vld [vmem:[#allocation15 + $0x70] sm:$0xff]  ;;  %12503 = vst [vmem:[#allocation25_spill] sm:$0xff] %v9975_v32 }
 0x34c   : > { %v2222_v47 = vmul.f32 %v2200_v24, %v9918_v45  ;;  %v6905_v20 = vpack.c.bf16 %v1614_v13, %v1613_v49  ;;  %v1599_v48 = vmul.f32 %v1580_v54, %v9951_v1  ;;  %v12502_v13 = vld [vmem:[#allocation52_spill] sm:$0xff] }
 0x34d   : > { %v1552_v40 = vmul.f32 %v9965_v22, %v12502_v13 }
 0x34e   : > { %v2238_v25 = vadd.f32 %v2222_v47, %v2174_v10  ;;  %6906 = vmatprep.subr.bf16.mxu1 %v6905_v20  ;;  %v1615_v10 = vadd.f32 %v1599_v48, %v1551_v62 }
 0x34f   : > { %6908 = vmatpush3.bf16.xpose.msra.mxu1 %v6905_v20  ;;  %v1476_v24 = vpop.permute.xlu0 %1475  ;;  %v1582_v49 = vpop.permute.xlu1 %1581 }
 0x350   : > { %v1507_v3 = vmul.f32 %v1476_v24, %v9816_v38  ;;  %v1600_v41 = vmul.f32 %v1582_v49, %v9958_v29  ;;  %v6965_v54 = vpack.c.bf16 %v2238_v25, %v2237_v23  ;;  %v9978_v24 = vld [vmem:[#allocation14 + $0x70] sm:$0xff]  ;;  %v9980_v49 = vld [vmem:[#allocation14 + $0x78] sm:$0xff]  ;;  %v12505_v25 = vld [vmem:[#allocation53_spill] sm:$0xff] }
 0x351   : > { %12504 = vst [vmem:[#allocation51_spill] sm:$0xff] %v9980_v49  ;;  %v1553_v48 = vmul.f32 %v9978_v24, %v12505_v25  ;;  %v2176_v25 = vmul.f32 %v9943_v63, %v9706_v60 }
 0x352   : > { %v1616_v47 = vadd.f32 %v1600_v41, %v1552_v40  ;;  %6966 = vmatprep.subr.bf16.mxu0 %v6965_v54  ;;  %v1523_v18 = vadd.f32 %v1507_v3, %v1459_v30  ;;  %v12506_v30 = vld [vmem:[#allocation55_spill] sm:$0xff] }
 0x353   : > { %6968 = vmatpush3.bf16.xpose.msra.mxu0 %v6965_v54  ;;  %v1478_v17 = vpop.permute.xlu1 %1477  ;;  %v1584_v51 = vpop.permute.xlu0 %1583  ;;  %v1554_v62 = vmul.f32 %v9980_v49, %v12506_v30  ;;  %v12510_v49 = vld [vmem:[#allocation31_spill] sm:$0xff] }
 0x354   : > { %6501 = vmatprep.mubr.f32.mxu1 %v1523_v18  ;;  %v6909_v20 = vpack.c.bf16 %v1616_v47, %v1615_v10  ;;  %v1601_v13 = vmul.f32 %v1584_v51, %v9973_v19  ;;  %v1508_v30 = vmul.f32 %v1478_v17, %v9824_v56 }
 0x356   : > { %6910 = vmatprep.subr.bf16.mxu1 %v6909_v20  ;;  %v1617_v41 = vadd.f32 %v1601_v13, %v1553_v48  ;;  %v12508_v48 = vld [vmem:[#allocation27_spill] sm:$0xff] }
 0x357   : > { %6912 = vmatpush3.bf16.xpose.msra.mxu1 %v6909_v20  ;;  %v1480_v40 = vpop.permute.xlu0 %1479  ;;  %v1586_v23 = vpop.permute.xlu1 %1585 }
 0x358   : > { %v1602_v3 = vmul.f32 %v1586_v23, %v9975_v32  ;;  %v1509_v23 = vmul.f32 %v1480_v40, %v9842_v28  ;;  %v1462_v40 = vmul.f32 %v9857_v4, %v12510_v49 }
 0x35a   : > { %v1618_v54 = vadd.f32 %v1602_v3, %v1554_v62  ;;  %v1460_v62 = vmul.f32 %v9831_v14, %v12508_v48 }
 0x35b   : > { %v2202_v10 = vpop.permute.xlu0 %2201  ;;  %v1482_v47 = vpop.permute.xlu1 %1481 }
 0x35c   : > { %v6913_v18 = vpack.c.bf16 %v1618_v54, %v1617_v41  ;;  %v2223_v51 = vmul.f32 %v2202_v10, %v9931_v52  ;;  %v12509_v54 = vld [vmem:[#allocation29_spill] sm:$0xff]  ;;  %v1524_v32 = vadd.f32 %v1508_v30, %v1460_v62  ;;  %v1510_v60 = vmul.f32 %v1482_v47, %v9850_v8 }
 0x35d   : > { %v1461_v10 = vmul.f32 %v9855_v35, %v12509_v54 }
 0x35e   : > { %6914 = vmatprep.subr.bf16.mxu1 %v6913_v18  ;;  %v2239_v3 = vadd.f32 %v2223_v51, %v2175_v46  ;;  %v1463_v46 = vmul.f32 %v9881_v50, %v9570_v9  ;;  %v12511_v9 = vld [vmem:[#allocation35_spill] sm:$0xff] }
 0x35f   : > { %v1484_v38 = vpop.permute.xlu0 %1483  ;;  %v2204_v20 = vpop.permute.xlu1 %2203  ;;  %6916 = vmatpush3.bf16.xpose.msra.mxu1 %v6913_v18  ;;  %v1525_v56 = vadd.f32 %v1509_v23, %v1461_v10  ;;  %v1465_v23 = vmul.f32 %v9901_v16, %v12511_v9  ;;  %v12513_v9 = vld [vmem:[#allocation54_spill] sm:$0xff] }
 0x360   : > { %v2224_v13 = vmul.f32 %v2204_v20, %v9938_v2  ;;  %6918 = vmatprep.subr.bf16.mxu1 %v9744_v36  ;;  %v1511_v20 = vmul.f32 %v1484_v38, %v9869_v43 }
 0x362   : > { %v2240_v41 = vadd.f32 %v2224_v13, %v2176_v25  ;;  %v1526_v13 = vadd.f32 %v1510_v60, %v1462_v40  ;;  %v1527_v47 = vadd.f32 %v1511_v20, %v1463_v46  ;;  %v12512_v60 = vld [vmem:[#allocation38_spill] sm:$0xff] }
 0x363   : > { %v1488_v57 = vpop.permute.xlu0 %1487  ;;  %v1486_v18 = vpop.permute.xlu1 %1485 }
 0x364   : > { %v6969_v17 = vpack.c.bf16 %v2240_v41, %v2239_v3  ;;  %v1512_v30 = vmul.f32 %v1486_v18, %v9878_v27  ;;  %v1513_v38 = vmul.f32 %v1488_v57, %v9891_v42 }
 0x366   : > { %6502 = vmatmul.mubr.f32.vlgmr.msra.gmra.mrb[0].mxu1 %v1524_v32  ;;  %6970 = vmatprep.subr.bf16.mxu0 %v6969_v17  ;;  %v1464_v32 = vmul.f32 %v9883_v37, %v9574_v39  ;;  %v1529_v54 = vadd.f32 %v1513_v38, %v1465_v23  ;;  %v2179_v23 = vmul.f32 %v9978_v24, %v12513_v9  ;;  %v12525_v9 = vld [vmem:[#allocation69_spill] sm:$0xff] }
 0x367   : > { %v2206_v51 = vpop.permute.xlu0 %2205  ;;  %6972 = vmatpush3.bf16.xpose.msra.mxu0 %v6969_v17  ;;  %v1490_v25 = vpop.permute.xlu1 %1489  ;;  %6504 = vmatprep.mubr.f32.mxu1 %v1525_v56  ;;  %v2177_v56 = vmul.f32 %v9960_v6, %v9714_v11  ;;  %v1466_v11 = vmul.f32 %v9903_v12, %v9582_v21  ;;  %v1468_v21 = vmul.f32 %v9923_v26, %v9590_v15 }
 0x368   : > { %6920 = vmatpush3.bf16.msra.mxu1 %v9744_v36  ;;  %v2225_v49 = vmul.f32 %v2206_v51, %v9951_v1  ;;  %v2178_v36 = vmul.f32 %v9965_v22, %v9722_v0  ;;  %v1528_v3 = vadd.f32 %v1512_v30, %v1464_v32  ;;  %v1514_v41 = vmul.f32 %v1490_v25, %v9898_v61 }
 0x369   : > { %6922 = vmatprep.subr.bf16.mxu1 %v9756_v58  ;;  %v1467_v0 = vmul.f32 %v9921_v33, %v12512_v60  ;;  %v1470_v15 = vmul.f32 %v9943_v63, %v9598_v5  ;;  %v12519_v60 = vld [vmem:[#allocation46_spill] sm:$0xff] }
 0x36a   : > { %6505 = vmatmul.mubr.f32.gmra.mrb[2].mxu1 %v1526_v13  ;;  %v2241_v57 = vadd.f32 %v2225_v49, %v2177_v56  ;;  %v1530_v40 = vadd.f32 %v1514_v41, %v1466_v11  ;;  %v1469_v13 = vmul.f32 %v9941_v31, %v9594_v55  ;;  %v1471_v55 = vmul.f32 %v9960_v6, %v9602_v34 }
 0x36b   : > { %v1492_v48 = vpop.permute.xlu0 %1491  ;;  %v2208_v62 = vpop.permute.xlu1 %2207  ;;  %6507 = vmatprep.mubr.f32.mxu1 %v1527_v47 }
 0x36c   : > { %v2226_v39 = vmul.f32 %v2208_v62, %v9958_v29  ;;  %6924 = vmatpush3.bf16.msra.mxu1 %v9756_v58  ;;  %v1515_v10 = vmul.f32 %v1492_v48, %v9911_v7  ;;  %v12514_v62 = vld [vmem:[#allocation56_spill] sm:$0xff] }
 0x36d   : > { %6926 = vmatprep.subr.bf16.mxu1 %v9768_v44 }
 0x36e   : > { %v2242_v18 = vadd.f32 %v2226_v39, %v2178_v36  ;;  %6508 = vmatmul.mubr.f32.gmra.mrb[4].mxu1 %v1528_v3  ;;  %v1531_v51 = vadd.f32 %v1515_v10, %v1467_v0  ;;  %v12516_v39 = vld [vmem:[#allocation25_spill] sm:$0xff]  ;;  %v1473_v0 = vmul.f32 %v9978_v24, %v12519_v60 }
 0x36f   : > { %v1496_v17 = vpop.permute.xlu0 %1495  ;;  %v1494_v20 = vpop.permute.xlu1 %1493  ;;  %6510 = vmatprep.mubr.f32.mxu1 %v1529_v54  ;;  %v12517_v54 = vld [vmem:[#allocation62_spill] sm:$0xff] }
 0x370   : > { %v1516_v58 = vmul.f32 %v1494_v20, %v9918_v45  ;;  %6928 = vmatpush3.bf16.msra.mxu1 %v9768_v44  ;;  %v6973_v46 = vpack.c.bf16 %v2242_v18, %v2241_v57  ;;  %v1517_v25 = vmul.f32 %v1496_v17, %v9931_v52  ;;  %v12518_v57 = vld [vmem:[#allocation44_spill] sm:$0xff] }
 0x371   : > { %6930 = vmatprep.subr.bf16.mxu1 %v9780_v59  ;;  %v1472_v18 = vmul.f32 %v9965_v22, %v12518_v57 }
 0x372   : > { %6511 = vmatmul.mubr.f32.gmra.mrb[6].mxu1 %v1530_v40  ;;  %6974 = vmatprep.subr.bf16.mxu0 %v6973_v46  ;;  %v1532_v38 = vadd.f32 %v1516_v58, %v1468_v21  ;;  %v1533_v32 = vadd.f32 %v1517_v25, %v1469_v13 }
 0x373   : > { %v2210_v30 = vpop.permute.xlu0 %2209  ;;  %6976 = vmatpush3.bf16.xpose.msra.mxu0 %v6973_v46  ;;  %v1498_v47 = vpop.permute.xlu1 %1497  ;;  %6513 = vmatprep.mubr.f32.mxu1 %v1531_v51  ;;  %v12520_v46 = vld [vmem:[#allocation65_spill] sm:$0xff] }
 0x374   : > { %v1518_v44 = vmul.f32 %v1498_v47, %v9938_v2  ;;  %6932 = vmatpush3.bf16.msra.mxu1 %v9780_v59  ;;  %v2227_v49 = vmul.f32 %v2210_v30, %v9973_v19  ;;  %v12515_v59 = vld [vmem:[#allocation51_spill] sm:$0xff]  ;;  %v12521_v30 = vld [vmem:[#allocation26_spill] sm:$0xff]  ;;  %v12522_v47 = vld [vmem:[#allocation68_spill] sm:$0xff] }
 0x375   : > { %6934 = vmatprep.subr.bf16.mxu1 %v9792_v53  ;;  %v2180_v36 = vmul.f32 %v12515_v59, %v12514_v62 }
 0x376   : > { %6514 = vmatmul.mubr.f32.gmra.mrb[8].mxu1 %v1532_v38  ;;  %v1534_v3 = vadd.f32 %v1518_v44, %v1470_v15  ;;  %v2243_v10 = vadd.f32 %v2227_v49, %v2179_v23  ;;  %v2085_v38 = vmul.f32 %v12522_v47, %v12521_v30  ;;  %v12523_v44 = vld [vmem:[#allocation48_spill] sm:$0xff] }
 0x377   : > { %v1500_v56 = vpop.permute.xlu0 %1499  ;;  %6516 = vmatprep.mubr.f32.mxu1 %v1533_v32  ;;  %v2212_v48 = vpop.permute.xlu1 %2211  ;;  %v1474_v32 = vmul.f32 %v12515_v59, %v12523_v44  ;;  %v12524_v15 = vld [vmem:[#allocation64_spill] sm:$0xff]  ;;  %v12534_v44 = vld [vmem:[#allocation37_spill] sm:$0xff] }
 0x378   : > { %v1519_v41 = vmul.f32 %v1500_v56, %v9951_v1  ;;  %v2228_v5 = vmul.f32 %v2212_v48, %v12516_v39  ;;  %6936 = vmatpush3.bf16.msra.mxu1 %v9792_v53  ;;  %v12526_v48 = vld [vmem:[#allocation28_spill] sm:$0xff] }
 0x379   : > { %6938 = vmatprep.subr.bf16.mxu1 %v12517_v54  ;;  %v2086_v62 = vmul.f32 %v9831_v14, %v12526_v48  ;;  %v12530_v14 = vld [vmem:[#allocation32_spill] sm:$0xff]  ;;  %v12537_v48 = vld [vmem:[#allocation41_spill] sm:$0xff] }
 0x37a   : > { %v1535_v34 = vadd.f32 %v1519_v41, %v1471_v55  ;;  %v2244_v11 = vadd.f32 %v2228_v5, %v2180_v36  ;;  %6517 = vmatmul.mubr.f32.gmra.mrb[10].mxu1 %v1534_v3  ;;  %v12527_v41 = vld [vmem:[#allocation30_spill] sm:$0xff] }
 0x37b   : > { %v1504_v17 = vpop.permute.xlu0 %1503  ;;  %v1502_v20 = vpop.permute.xlu1 %1501  ;;  %v2087_v5 = vmul.f32 %v9855_v35, %v12527_v41  ;;  %v12538_v41 = vld [vmem:[#allocation42_spill] sm:$0xff] }
 0x37c   : > { %v1521_v40 = vmul.f32 %v1504_v17, %v9973_v19  ;;  %v1520_v58 = vmul.f32 %v1502_v20, %v9958_v29  ;;  %6940 = vmatpush3.bf16.msra.mxu1 %v12517_v54  ;;  %6519 = vmatprep.mubr.f32.mxu1 %v1535_v34  ;;  %v6977_v53 = vpack.c.bf16 %v2244_v11, %v2243_v10  ;;  %v12528_v10 = vld [vmem:[#allocation66_spill] sm:$0xff]  ;;  %v12529_v11 = vld [vmem:[#allocation57_spill] sm:$0xff] }
 0x37d   : > { %6942 = vmatprep.subr.bf16.mxu1 %v12520_v46  ;;  %v2088_v17 = vmul.f32 %v9857_v4, %v12530_v14  ;;  %v12531_v20 = vld [vmem:[#allocation33_spill] sm:$0xff] }
 0x37e   : > { %v1537_v51 = vadd.f32 %v1521_v40, %v1473_v0  ;;  %v1536_v25 = vadd.f32 %v1520_v58, %v1472_v18  ;;  %6978 = vmatprep.subr.bf16.mxu0 %v6977_v53  ;;  %v2089_v35 = vmul.f32 %v9881_v50, %v12531_v20  ;;  %v12542_v20 = vld [vmem:[#allocation49_spill] sm:$0xff] }
 0x37f   : > { %v2102_v21 = vpop.permute.xlu0 %2101  ;;  %v1506_v13 = vpop.permute.xlu1 %1505  ;;  %6980 = vmatpush3.bf16.xpose.msra.mxu0 %v6977_v53 }
 0x380   : > { %v2133_v49 = vmul.f32 %v2102_v21, %v12524_v15  ;;  %v1522_v55 = vmul.f32 %v1506_v13, %v12516_v39  ;;  %6944 = vmatpush3.bf16.msra.mxu1 %v12520_v46  ;;  %v12533_v13 = vld [vmem:[#allocation36_spill] sm:$0xff]  ;;  %v12535_v15 = vld [vmem:[#allocation39_spill] sm:$0xff] }
 0x381   : > { %6520 = vmatmul.mubr.f32.gmra.mrb[12].mxu1 %v1536_v25  ;;  %6946 = vmatprep.subr.bf16.mxu1 %v12525_v9  ;;  %v12532_v25 = vld [vmem:[#allocation34_spill] sm:$0xff]  ;;  %v2091_v30 = vmul.f32 %v9901_v16, %v12533_v13 }
 0x382   : > { %v2149_v23 = vadd.f32 %v2133_v49, %v2085_v38  ;;  %v1538_v56 = vadd.f32 %v1522_v55, %v1474_v32  ;;  %6522 = vmatprep.mubr.f32.mxu1 %v1537_v51  ;;  %v2090_v21 = vmul.f32 %v9883_v37, %v12532_v25  ;;  %v2092_v32 = vmul.f32 %v9903_v12, %v12534_v44 }
 0x383   : > { %v2106_v36 = vpop.permute.xlu0 %2105  ;;  %v2104_v3 = vpop.permute.xlu1 %2103  ;;  %v2093_v49 = vmul.f32 %v9921_v33, %v12535_v15 }
 0x384   : > { %v2135_v54 = vmul.f32 %v2106_v36, %v9842_v28  ;;  %v2134_v34 = vmul.f32 %v2104_v3, %v12528_v10  ;;  %6948 = vmatpush3.bf16.msra.mxu1 %v12525_v9  ;;  %6613 = vmatprep.mubr.f32.mxu0 %v2149_v23  ;;  %v12536_v23 = vld [vmem:[#allocation40_spill] sm:$0xff] }
 0x385   : > { %6523 = vmatmul.mubr.f32.gmra.mrb[14].mxu1 %v1538_v56  ;;  %6982 = vmatprep.subr.bf16.mxu1 %v12529_v11  ;;  %v2094_v56 = vmul.f32 %v9923_v26, %v12536_v23 }
 0x386   : > { %v2151_v57 = vadd.f32 %v2135_v54, %v2087_v5  ;;  %v2150_v18 = vadd.f32 %v2134_v34, %v2086_v62  ;;  %v2095_v62 = vmul.f32 %v9941_v31, %v12537_v48  ;;  %v2096_v5 = vmul.f32 %v9943_v63, %v12538_v41  ;;  %v12539_v54 = vld [vmem:[#allocation43_spill] sm:$0xff] }
 0x387   : > { %v2110_v60 = vpop.permute.xlu0 %2109  ;;  %v2108_v0 = vpop.permute.xlu1 %2107  ;;  %v2097_v10 = vmul.f32 %v9960_v6, %v12539_v54 }
 0x388   : > { %v2137_v28 = vmul.f32 %v2110_v60, %v9869_v43  ;;  %v2136_v40 = vmul.f32 %v2108_v0, %v9850_v8  ;;  %6614 = vmatmul.mubr.f32.vlgmr.msra.gmra.mrb[96].mxu0 %v2150_v18  ;;  %v12540_v18 = vld [vmem:[#allocation45_spill] sm:$0xff]  ;;  %v12541_v0 = vld [vmem:[#allocation47_spill] sm:$0xff] }
 0x389   : > { %6616 = vmatprep.mubr.f32.mxu0 %v2151_v57  ;;  %v2098_v60 = vmul.f32 %v9965_v22, %v12540_v18  ;;  %v2099_v14 = vmul.f32 %v9978_v24, %v12541_v0 }
 0x38a   : > { %v2153_v58 = vadd.f32 %v2137_v28, %v2089_v35  ;;  %v2152_v53 = vadd.f32 %v2136_v40, %v2088_v17  ;;  %v2100_v35 = vmul.f32 %v12515_v59, %v12542_v20  ;;  %v12543_v40 = vld [vmem:[#allocation24_spill] sm:$0xff] }
 0x38b   : > { %v2114_v46 = vpop.permute.xlu0 %2113  ;;  %v2112_v51 = vpop.permute.xlu1 %2111  ;;  %v10116_v24 = vadd.s32 8, %v12543_v40  ;;  %v10146_v25 = vadd.s32 16, %v12543_v40  ;;  %v10178_v44 = vadd.s32 72, %v12543_v40  ;;  %v10225_v48 = vadd.s32 80, %v12543_v40 }
 0x38c   : > { %v2139_v4 = vmul.f32 %v2114_v46, %v9891_v42  ;;  %v2138_v50 = vmul.f32 %v2112_v51, %v9878_v27  ;;  %6617 = vmatmul.mubr.f32.gmra.mrb[98].mxu0 %v2152_v53  ;;  %v10142_v51 = vadd.s32 40, %v12543_v40  ;;  %v1439_v54 = vadd.s32 112, %v12543_v40 }
 0x38d   : > { %6619 = vmatprep.mubr.f32.mxu0 %v2153_v58 }
 0x38e   : > { %v2155_v43 = vadd.f32 %v2139_v4, %v2091_v30  ;;  %v2154_v8 = vadd.f32 %v2138_v50, %v2090_v21  ;;  %v10156_v4 = vadd.s32 56, %v12543_v40  ;;  %v10162_v50 = vadd.s32 32, %v12543_v40 }
 0x38f   : > { %v2118_v47 = vpop.permute.xlu0 %2117  ;;  %v2116_v38 = vpop.permute.xlu1 %2115 }
 0x390   : > { %v2141_v37 = vmul.f32 %v2118_v47, %v9911_v7  ;;  %v2140_v16 = vmul.f32 %v2116_v38, %v9898_v61  ;;  %6620 = vmatmul.mubr.f32.gmra.mrb[100].mxu0 %v2154_v8 }
 0x391   : > { %6622 = vmatprep.mubr.f32.mxu0 %v2155_v43 }
 0x392   : > { %v2157_v42 = vadd.f32 %v2141_v37, %v2093_v49  ;;  %v2156_v27 = vadd.f32 %v2140_v16, %v2092_v32  ;;  %v10184_v32 = vadd.s32 48, %v12543_v40 }
 0x393   : > { %v2122_v55 = vpop.permute.xlu0 %2121  ;;  %v2120_v9 = vpop.permute.xlu1 %2119 }
 0x394   : > { %v2143_v12 = vmul.f32 %v2122_v55, %v9931_v52  ;;  %v2142_v33 = vmul.f32 %v2120_v9, %v9918_v45  ;;  %6623 = vmatmul.mubr.f32.gmra.mrb[102].mxu0 %v2156_v27  ;;  %v10206_v27 = vadd.s32 64, %v12543_v40 }
 0x395   : > { %6625 = vmatprep.mubr.f32.mxu0 %v2157_v42  ;;  %v10200_v42 = vadd.s32 88, %v12543_v40 }
 0x396   : > { %v2159_v7 = vadd.f32 %v2143_v12, %v2095_v62  ;;  %v2158_v61 = vadd.f32 %v2142_v33, %v2094_v56 }
 0x397   : > { %v2126_v36 = vpop.permute.xlu0 %2125  ;;  %v2124_v3 = vpop.permute.xlu1 %2123 }
 0x398   : > { %v2145_v26 = vmul.f32 %v2126_v36, %v9951_v1  ;;  %v2144_v31 = vmul.f32 %v2124_v3, %v9938_v2  ;;  %6626 = vmatmul.mubr.f32.gmra.mrb[104].mxu0 %v2158_v61  ;;  %v1437_v36 = vadd.s32 96, %v12543_v40  ;;  %v1440_v3 = vadd.s32 120, %v12543_v40 }
 0x399   : > { %6628 = vmatprep.mubr.f32.mxu0 %v2159_v7  ;;  %v10233_v7 = vadd.s32 104, %v12543_v40 }
 0x39a   : > { %v2161_v52 = vadd.f32 %v2145_v26, %v2097_v10  ;;  %v2160_v45 = vadd.f32 %v2144_v31, %v2096_v5 }
 0x39b   : > { %v2130_v34 = vpop.permute.xlu0 %2129  ;;  %v2128_v57 = vpop.permute.xlu1 %2127 }
 0x39c   : > { %v2147_v63 = vmul.f32 %v2130_v34, %v9973_v19  ;;  %v2146_v6 = vmul.f32 %v2128_v57, %v9958_v29  ;;  %6629 = vmatmul.mubr.f32.gmra.mrb[106].mxu0 %v2160_v45  ;;  %v12544_v19 = vlaneseq  ;;  %v10124_v29 = vadd.s32 24, %v12543_v40 }
 0x39d   : > { %6631 = vmatprep.mubr.f32.mxu0 %v2161_v52 }
 0x39e   : > { %v2163_v1 = vadd.f32 %v2147_v63, %v2099_v14  ;;  %v2162_v2 = vadd.f32 %v2146_v6, %v2098_v60  ;;  %v10119_v58 = vand.u32 127, %v12544_v19 }
 0x39f   : > { %v2132_v17 = vpop.permute.xlu1 %2131 }
 0x3a0   : > { %v2148_v28 = vmul.f32 %v2132_v17, %v12516_v39  ;;  %6632 = vmatmul.mubr.f32.gmra.mrb[108].mxu0 %v2162_v2  ;;  %vm1444_vm0 = vcmp.ge.s32.totalorder %v10116_v24, %v10119_v58  ;;  %vm1443_vm1 = vcmp.ge.s32.totalorder %v12543_v40, %v10119_v58  ;;  %vm1446_vm2 = vcmp.ge.s32.totalorder %v10124_v29, %v10119_v58 }
 0x3a1   : > { %6634 = vmatprep.mubr.f32.mxu0 %v2163_v1  ;;  %vm1448_vm3 = vcmp.ge.s32.totalorder %v10142_v51, %v10119_v58  ;;  %vm1445_vm4 = vcmp.ge.s32.totalorder %v10146_v25, %v10119_v58  ;;  %vm1450_vm5 = vcmp.ge.s32.totalorder %v10156_v4, %v10119_v58  ;;  %vm1447_vm6 = vcmp.ge.s32.totalorder %v10162_v50, %v10119_v58 }
 0x3a2   : > { %v2164_v22 = vadd.f32 %v2148_v28, %v2100_v35  ;;  %vm1452_vm7 = vcmp.ge.s32.totalorder %v10178_v44, %v10119_v58  ;;  %vm1449_vm8 = vcmp.ge.s32.totalorder %v10184_v32, %v10119_v58  ;;  %vm1454_vm9 = vcmp.ge.s32.totalorder %v10200_v42, %v10119_v58 }
 0x3a3   : > { %vm1451_vm10 = vcmp.ge.s32.totalorder %v10206_v27, %v10119_v58  ;;  %vm1453_vm11 = vcmp.ge.s32.totalorder %v10225_v48, %v10119_v58  ;;  %vm1456_vm12 = vcmp.ge.s32.totalorder %v10233_v7, %v10119_v58  ;;  %vm1455_vm13 = vcmp.ge.s32.totalorder %v1437_v36, %v10119_v58 }
 0x3a4   : > { %6635 = vmatmul.mubr.f32.gmra.mrb[110].mxu0 %v2164_v22  ;;  %vm1458_vm14 = vcmp.ge.s32.totalorder %v1440_v3, %v10119_v58  ;;  %vm1457_vm15 = vcmp.ge.s32.totalorder %v1439_v54, %v10119_v58 }
 0x439   : > { %v6503_v59 = vpop.f32.mrb[0].mxu1 }
 0x43a   : > { %v1685_v39 = vpop.f32.mrb[1].mxu1  ;;  %v10131_v53 = vsel %vm1444_vm0, %v6503_v59, -1e+30 }
 0x43b   : > { %1782 = vmax.xlane.f32.xlu1 %v10131_v53  ;;  %v10137_v46 = vsel %vm1443_vm1, %v1685_v39, -1e+30 }
 0x43c   : > { %1780 = vmax.xlane.f32.xlu0 %v10137_v46 }
 0x43d   : > { %v6506_v21 = vpop.f32.mrb[2].mxu1 }
 0x43e   : > { %v1695_v13 = vpop.f32.mrb[3].mxu1  ;;  %v10151_v30 = vsel %vm1446_vm2, %v6506_v21, -1e+30 }
 0x43f   : > { %v10173_v38 = vsel %vm1445_vm4, %v1695_v13, -1e+30 }
 0x440   : > { %1786 = vmax.xlane.f32.xlu0 %v10151_v30 }
 0x441   : > { %v6509_v43 = vpop.f32.mrb[4].mxu1 }
 0x442   : > { %v1705_v8 = vpop.f32.mrb[5].mxu1  ;;  %v10167_v47 = vsel %vm1448_vm3, %v6509_v43, -1e+30 }
 0x443   : > { %1790 = vmax.xlane.f32.xlu1 %v10167_v47  ;;  %v10195_v16 = vsel %vm1447_vm6, %v1705_v8, -1e+30 }
 0x444   : > { %1784 = vmax.xlane.f32.xlu0 %v10173_v38 }
 0x445   : > { %v6512_v15 = vpop.f32.mrb[6].mxu1 }
 0x446   : > { %v1715_v49 = vpop.f32.mrb[7].mxu1  ;;  %v10189_v37 = vsel %vm1450_vm5, %v6512_v15, -1e+30 }
 0x447   : > { %1794 = vmax.xlane.f32.xlu1 %v10189_v37  ;;  %v10217_v56 = vsel %vm1449_vm8, %v1715_v49, -1e+30 }
 0x448   : > { %1788 = vmax.xlane.f32.xlu0 %v10195_v16 }
 0x449   : > { %v6515_v55 = vpop.f32.mrb[8].mxu1 }
 0x44a   : > { %v1725_v9 = vpop.f32.mrb[9].mxu1  ;;  %v10211_v23 = vsel %vm1452_vm7, %v6515_v55, -1e+30 }
 0x44b   : > { %1798 = vmax.xlane.f32.xlu1 %v10211_v23  ;;  %v10239_v61 = vsel %vm1451_vm10, %v1725_v9, -1e+30 }
 0x44c   : > { %1792 = vmax.xlane.f32.xlu0 %v10217_v56 }
 0x44d   : > { %v6518_v62 = vpop.f32.mrb[10].mxu1 }
 0x44e   : > { %v1735_v12 = vpop.f32.mrb[11].mxu1  ;;  %v10230_v33 = vsel %vm1454_vm9, %v6518_v62, -1e+30 }
 0x44f   : > { %1802 = vmax.xlane.f32.xlu1 %v10230_v33  ;;  %v10251_v41 = vsel %vm1453_vm11, %v1735_v12, -1e+30 }
 0x450   : > { %1796 = vmax.xlane.f32.xlu0 %v10239_v61 }
 0x454   : > { %v6521_v5 = vpop.f32.mrb[12].mxu1  ;;  %1800 = vmax.xlane.f32.xlu0 %v10251_v41 }
 0x455   : > { %v1745_v10 = vpop.f32.mrb[13].mxu1  ;;  %v10259_v26 = vsel %vm1456_vm12, %v6521_v5, -1e+30 }
 0x456   : > { %1806 = vmax.xlane.f32.xlu1 %v10259_v26  ;;  %v10265_v31 = vsel %vm1455_vm13, %v1745_v10, -1e+30 }
 0x458   : > { %v6524_v52 = vpop.f32.mrb[14].mxu1  ;;  %1804 = vmax.xlane.f32.xlu0 %v10265_v31 }
 0x459   : > { %v1755_v45 = vpop.f32.mrb[15].mxu1  ;;  %v10271_v34 = vsel %vm1458_vm14, %v6524_v52, -1e+30 }
 0x45a   : > { %1810 = vmax.xlane.f32.xlu1 %v10271_v34  ;;  %v10276_v18 = vsel %vm1457_vm15, %v1755_v45, -1e+30 }
 0x45b   : > { %v6615_v57 = vpop.f32.mrb[96].mxu0 }
 0x45c   : > { %1808 = vmax.xlane.f32.xlu0 %v10276_v18  ;;  %v2311_v60 = vpop.f32.mrb[97].mxu0  ;;  %v10282_v0 = vsel %vm1444_vm0, %v6615_v57, -1e+30 }
 0x45d   : > { %v10288_v63 = vsel %vm1443_vm1, %v2311_v60, -1e+30 }
 0x45e   : > { %2408 = vmax.xlane.f32.xlu1 %v10282_v0 }
 0x45f   : > { %v6618_v14 = vpop.f32.mrb[98].mxu0 }
 0x460   : > { %v10293_v6 = vsel %vm1446_vm2, %v6618_v14, -1e+30  ;;  %2406 = vmax.xlane.f32.xlu0 %v10288_v63  ;;  %v2321_v1 = vpop.f32.mrb[99].mxu0 }
 0x461   : > { %v10300_v2 = vsel %vm1445_vm4, %v2321_v1, -1e+30 }
 0x462   : > { %2412 = vmax.xlane.f32.xlu1 %v10293_v6 }
 0x463   : > { %v6621_v17 = vpop.f32.mrb[100].mxu0 }
 0x464   : > { %v10305_v20 = vsel %vm1448_vm3, %v6621_v17, -1e+30  ;;  %2410 = vmax.xlane.f32.xlu0 %v10300_v2  ;;  %v2331_v35 = vpop.f32.mrb[101].mxu0 }
 0x465   : > { %v10312_v28 = vsel %vm1447_vm6, %v2331_v35, -1e+30 }
 0x466   : > { %2416 = vmax.xlane.f32.xlu1 %v10305_v20 }
 0x467   : > { %v6624_v22 = vpop.f32.mrb[102].mxu0 }
 0x468   : > { %v10317_v24 = vsel %vm1450_vm5, %v6624_v22, -1e+30  ;;  %2414 = vmax.xlane.f32.xlu0 %v10312_v28  ;;  %v2341_v19 = vpop.f32.mrb[103].mxu0 }
 0x469   : > { %v10324_v29 = vsel %vm1449_vm8, %v2341_v19, -1e+30 }
 0x46a   : > { %2420 = vmax.xlane.f32.xlu1 %v10317_v24 }
 0x46b   : > { %v6627_v59 = vpop.f32.mrb[104].mxu0 }
 0x46c   : > { %v10329_v39 = vsel %vm1452_vm7, %v6627_v59, -1e+30  ;;  %2418 = vmax.xlane.f32.xlu0 %v10324_v29  ;;  %v2351_v51 = vpop.f32.mrb[105].mxu0 }
 0x46d   : > { %v10336_v25 = vsel %vm1451_vm10, %v2351_v51, -1e+30 }
 0x46e   : > { %2424 = vmax.xlane.f32.xlu1 %v10329_v39 }
 0x46f   : > { %v6630_v21 = vpop.f32.mrb[106].mxu0 }
 0x470   : > { %v10341_v13 = vsel %vm1454_vm9, %v6630_v21, -1e+30  ;;  %2422 = vmax.xlane.f32.xlu0 %v10336_v25  ;;  %v2361_v4 = vpop.f32.mrb[107].mxu0 }
 0x471   : > { %v10348_v50 = vsel %vm1453_vm11, %v2361_v4, -1e+30 }
 0x472   : > { %2428 = vmax.xlane.f32.xlu1 %v10341_v13 }
 0x473   : > { %v6633_v43 = vpop.f32.mrb[108].mxu0 }
 0x474   : > { %v10353_v8 = vsel %vm1456_vm12, %v6633_v43, -1e+30  ;;  %2426 = vmax.xlane.f32.xlu0 %v10348_v50  ;;  %v2371_v44 = vpop.f32.mrb[109].mxu0 }
 0x475   : > { %v10359_v32 = vsel %vm1455_vm13, %v2371_v44, -1e+30 }
 0x476   : > { %2432 = vmax.xlane.f32.xlu1 %v10353_v8 }
 0x477   : > { %v6636_v15 = vpop.f32.mrb[110].mxu0 }
 0x478   : > { %v10363_v49 = vsel %vm1458_vm14, %v6636_v15, -1e+30  ;;  %2430 = vmax.xlane.f32.xlu0 %v10359_v32  ;;  %v2381_v42 = vpop.f32.mrb[111].mxu0 }
 0x479   : > { %v10369_v27 = vsel %vm1457_vm15, %v2381_v42, -1e+30 }
 0x47a   : > { %2436 = vmax.xlane.f32.xlu1 %v10363_v49 }
 0x47c   : > { %2434 = vmax.xlane.f32.xlu0 %v10369_v27 }
 0x4c8   : > { %v1783_v55 = vpop.xlane.xlu1 %1782 }
 0x4c9   : > { %v1813_v9 = vsub.f32 %v10131_v53, %v1783_v55  ;;  %v1781_v48 = vpop.xlane.xlu0 %1780 }
 0x4ca   : > { %v1812_v62 = vsub.f32 %v10137_v46, %v1781_v48 }
 0x4cb   : > { %v1830_v12 = vmul.f32 1.442695, %v1813_v9 }
 0x4cc   : > { %v1828_v7 = vmul.f32 1.442695, %v1812_v62 }
 0x4cd   : > { %7875 = vpow2.f32 %v1830_v12  ;;  %v1787_v36 = vpop.xlane.xlu0 %1786 }
 0x4ce   : > { %7877 = vpow2.f32 %v1828_v7  ;;  %v1815_v3 = vsub.f32 %v10151_v30, %v1787_v36 }
 0x4d0   : > { %v1834_v5 = vmul.f32 1.442695, %v1815_v3  ;;  %v1791_v10 = vpop.xlane.xlu1 %1790 }
 0x4d1   : > { %v1817_v58 = vsub.f32 %v10167_v47, %v1791_v10  ;;  %v1785_v54 = vpop.xlane.xlu0 %1784 }
 0x4d2   : > { %7879 = vpow2.f32 %v1834_v5  ;;  %v1814_v52 = vsub.f32 %v10173_v38, %v1785_v54 }
 0x4d3   : > { %v1838_v45 = vmul.f32 1.442695, %v1817_v58 }
 0x4d4   : > { %v1832_v53 = vmul.f32 1.442695, %v1814_v52  ;;  %v1795_v57 = vpop.xlane.xlu1 %1794 }
 0x4d5   : > { %7881 = vpow2.f32 %v1838_v45  ;;  %v1819_v46 = vsub.f32 %v10189_v37, %v1795_v57  ;;  %v1789_v60 = vpop.xlane.xlu0 %1788 }
 0x4d6   : > { %7883 = vpow2.f32 %v1832_v53  ;;  %v1816_v14 = vsub.f32 %v10195_v16, %v1789_v60 }
 0x4d7   : > { %v10379_v1 = vpop.eup %7875  ;;  %v1842_v30 = vmul.f32 1.442695, %v1819_v46 }
 0x4d8   : > { %v10381_v17 = vpop.eup %7877  ;;  %v1836_v47 = vmul.f32 1.442695, %v1816_v14  ;;  %v1799_v35 = vpop.xlane.xlu1 %1798  ;;  %1862 = vadd.xlane.f32.xlu1 %v10379_v1 }
 0x4d9   : > { %7885 = vpow2.f32 %v1842_v30  ;;  %v1821_v38 = vsub.f32 %v10211_v23, %v1799_v35  ;;  %v1793_v22 = vpop.xlane.xlu0 %1792  ;;  %1860 = vadd.xlane.f32.xlu0 %v10381_v17 }
 0x4da   : > { %7887 = vpow2.f32 %v1836_v47  ;;  %v1818_v37 = vsub.f32 %v10217_v56, %v1793_v22 }
 0x4db   : > { %v1846_v19 = vmul.f32 1.442695, %v1821_v38 }
 0x4dc   : > { %v10387_v16 = vpop.eup %7879  ;;  %v1840_v59 = vmul.f32 1.442695, %v1818_v37  ;;  %v1803_v51 = vpop.xlane.xlu1 %1802 }
 0x4dd   : > { %7889 = vpow2.f32 %v1846_v19  ;;  %v1823_v21 = vsub.f32 %v10230_v33, %v1803_v51  ;;  %v1797_v4 = vpop.xlane.xlu0 %1796  ;;  %1866 = vadd.xlane.f32.xlu1 %v10387_v16 }
 0x4de   : > { %7891 = vpow2.f32 %v1840_v59  ;;  %v1820_v23 = vsub.f32 %v10239_v61, %v1797_v4 }
 0x4df   : > { %v10392_v43 = vpop.eup %7881  ;;  %v1850_v44 = vmul.f32 1.442695, %v1823_v21 }
 0x4e0   : > { %v10394_v15 = vpop.eup %7883  ;;  %v1844_v56 = vmul.f32 1.442695, %v1820_v23 }
 0x4e1   : > { %7893 = vpow2.f32 %v1850_v44  ;;  %v1801_v42 = vpop.xlane.xlu0 %1800  ;;  %1870 = vadd.xlane.f32.xlu1 %v10392_v43  ;;  %1864 = vadd.xlane.f32.xlu0 %v10394_v15 }
 0x4e2   : > { %7895 = vpow2.f32 %v1844_v56  ;;  %v1822_v33 = vsub.f32 %v10251_v41, %v1801_v42 }
 0x4e3   : > { %v10399_v55 = vpop.eup %7885  ;;  %v1807_v9 = vpop.xlane.xlu1 %1806 }
 0x4e4   : > { %v10401_v48 = vpop.eup %7887  ;;  %v1848_v61 = vmul.f32 1.442695, %v1822_v33  ;;  %v1825_v62 = vsub.f32 %v10259_v26, %v1807_v9 }
 0x4e5   : > { %v1805_v12 = vpop.xlane.xlu0 %1804  ;;  %1874 = vadd.xlane.f32.xlu1 %v10399_v55  ;;  %1868 = vadd.xlane.f32.xlu0 %v10401_v48 }
 0x4e6   : > { %7897 = vpow2.f32 %v1848_v61  ;;  %v1854_v7 = vmul.f32 1.442695, %v1825_v62  ;;  %v1824_v36 = vsub.f32 %v10265_v31, %v1805_v12 }
 0x4e7   : > { %v10407_v3 = vpop.eup %7889  ;;  %v1811_v41 = vpop.xlane.xlu1 %1810 }
 0x4e8   : > { %v10409_v5 = vpop.eup %7891  ;;  %7899 = vpow2.f32 %v1854_v7  ;;  %v1852_v10 = vmul.f32 1.442695, %v1824_v36  ;;  %v1827_v58 = vsub.f32 %v10271_v34, %v1811_v41 }
 0x4e9   : > { %v1809_v54 = vpop.xlane.xlu0 %1808  ;;  %1878 = vadd.xlane.f32.xlu1 %v10407_v3  ;;  %1872 = vadd.xlane.f32.xlu0 %v10409_v5 }
 0x4ea   : > { %7901 = vpow2.f32 %v1852_v10  ;;  %v1858_v26 = vmul.f32 1.442695, %v1827_v58  ;;  %v1826_v52 = vsub.f32 %v10276_v18, %v1809_v54 }
 0x4eb   : > { %v10415_v45 = vpop.eup %7893  ;;  %v2409_v31 = vpop.xlane.xlu1 %2408 }
 0x4ec   : > { %v10417_v53 = vpop.eup %7895  ;;  %7903 = vpow2.f32 %v1858_v26  ;;  %v1856_v57 = vmul.f32 1.442695, %v1826_v52  ;;  %v2439_v46 = vsub.f32 %v10282_v0, %v2409_v31 }
 0x4ed   : > { %v2407_v60 = vpop.xlane.xlu0 %2406  ;;  %1882 = vadd.xlane.f32.xlu1 %v10415_v45  ;;  %1876 = vadd.xlane.f32.xlu0 %v10417_v53 }
 0x4ee   : > { %7905 = vpow2.f32 %v1856_v57  ;;  %v2456_v34 = vmul.f32 1.442695, %v2439_v46  ;;  %v2438_v14 = vsub.f32 %v10288_v63, %v2407_v60 }
 0x4ef   : > { %v2413_v30 = vpop.xlane.xlu1 %2412 }
 0x4f0   : > { %v10423_v18 = vpop.eup %7897  ;;  %7907 = vpow2.f32 %v2456_v34  ;;  %v2454_v47 = vmul.f32 1.442695, %v2438_v14  ;;  %v2441_v35 = vsub.f32 %v10293_v6, %v2413_v30 }
 0x4f1   : > { %v2411_v38 = vpop.xlane.xlu0 %2410  ;;  %1880 = vadd.xlane.f32.xlu0 %v10423_v18 }
 0x4f2   : > { %v10427_v0 = vpop.eup %7899  ;;  %7909 = vpow2.f32 %v2454_v47  ;;  %v2460_v22 = vmul.f32 1.442695, %v2441_v35  ;;  %v2440_v37 = vsub.f32 %v10300_v2, %v2411_v38 }
 0x4f3   : > { %v2417_v19 = vpop.xlane.xlu1 %2416  ;;  %1886 = vadd.xlane.f32.xlu1 %v10427_v0 }
 0x4f4   : > { %v10431_v63 = vpop.eup %7901  ;;  %7911 = vpow2.f32 %v2460_v22  ;;  %v2458_v59 = vmul.f32 1.442695, %v2440_v37  ;;  %v2443_v51 = vsub.f32 %v10305_v20, %v2417_v19 }
 0x4f5   : > { %v2415_v21 = vpop.xlane.xlu0 %2414  ;;  %1884 = vadd.xlane.f32.xlu0 %v10431_v63 }
 0x4f6   : > { %v10435_v6 = vpop.eup %7903  ;;  %7913 = vpow2.f32 %v2458_v59  ;;  %v2464_v4 = vmul.f32 1.442695, %v2443_v51  ;;  %v2442_v23 = vsub.f32 %v10312_v28, %v2415_v21 }
 0x4f7   : > { %v2421_v44 = vpop.xlane.xlu1 %2420  ;;  %1890 = vadd.xlane.f32.xlu1 %v10435_v6 }
 0x4f8   : > { %v10439_v2 = vpop.eup %7905  ;;  %7915 = vpow2.f32 %v2464_v4  ;;  %v2462_v56 = vmul.f32 1.442695, %v2442_v23  ;;  %v2445_v42 = vsub.f32 %v10317_v24, %v2421_v44 }
 0x4f9   : > { %v2419_v33 = vpop.xlane.xlu0 %2418  ;;  %1888 = vadd.xlane.f32.xlu0 %v10439_v2 }
 0x4fa   : > { %v10443_v20 = vpop.eup %7907  ;;  %7917 = vpow2.f32 %v2462_v56  ;;  %v2468_v9 = vmul.f32 1.442695, %v2445_v42  ;;  %v2444_v61 = vsub.f32 %v10324_v29, %v2419_v33  ;;  %v2744_v56 = vld [vmem:[#allocation8 + $0x8] sm:$0xff]  ;;  %v2746_v42 = vld [vmem:[#allocation8 + $0x18] sm:$0xff]  ;;  %v2743_v33 = vld [vmem:[#allocation8] sm:$0xff] }
 0x4fb   : > { %v2425_v62 = vpop.xlane.xlu1 %2424  ;;  %2488 = vadd.xlane.f32.xlu1 %v10443_v20 }
 0x4fc   : > { %v10447_v28 = vpop.eup %7909  ;;  %7919 = vpow2.f32 %v2468_v9  ;;  %v2466_v12 = vmul.f32 1.442695, %v2444_v61  ;;  %v2447_v7 = vsub.f32 %v10329_v39, %v2425_v62  ;;  %v7013_v9 = vpack.c.bf16 %v2746_v42, %v2744_v56  ;;  %v2745_v61 = vld [vmem:[#allocation8 + $0x10] sm:$0xff]  ;;  %v2748_v62 = vld [vmem:[#allocation8 + $0x28] sm:$0xff]  ;;  %v2766_v56 = vld [vmem:[#allocation8 + $0xb8] sm:$0xff] }
 0x4fd   : > { %v2423_v36 = vpop.xlane.xlu0 %2422  ;;  %2486 = vadd.xlane.f32.xlu0 %v10447_v28 }
 0x4fe   : > { %v10451_v24 = vpop.eup %7911  ;;  %7921 = vpow2.f32 %v2466_v12  ;;  %v2472_v41 = vmul.f32 1.442695, %v2447_v7  ;;  %v2446_v10 = vsub.f32 %v10336_v25, %v2423_v36  ;;  %v2750_v12 = vld [vmem:[#allocation8 + $0x38] sm:$0xff]  ;;  %v7015_v7 = vpack.c.bf16 %v2745_v61, %v2743_v33  ;;  %7014 = vmatprep.subr.bf16.mxu0 %v7013_v9  ;;  %v2763_v9 = vld [vmem:[#allocation8 + $0xa0] sm:$0xff]  ;;  %v2765_v61 = vld [vmem:[#allocation8 + $0xb0] sm:$0xff] }
 0x4ff   : > { %v2429_v58 = vpop.xlane.xlu1 %2428  ;;  %2492 = vadd.xlane.f32.xlu1 %v10451_v24  ;;  %v7017_v36 = vpack.c.bf16 %v2750_v12, %v2748_v62  ;;  %v2768_v62 = vld [vmem:[#allocation8 + $0xc8] sm:$0xff]  ;;  %v2770_v12 = vld [vmem:[#allocation8 + $0xd8] sm:$0xff] }
 0x500   : > { %v10455_v29 = vpop.eup %7913  ;;  %7923 = vpow2.f32 %v2472_v41  ;;  %v2470_v54 = vmul.f32 1.442695, %v2446_v10  ;;  %v2449_v26 = vsub.f32 %v10341_v13, %v2429_v58  ;;  %v2747_v41 = vld [vmem:[#allocation8 + $0x20] sm:$0xff]  ;;  %v2749_v10 = vld [vmem:[#allocation8 + $0x30] sm:$0xff]  ;;  %v2752_v58 = vld [vmem:[#allocation8 + $0x48] sm:$0xff]  ;;  %7016 = vmatpush1.bf16.msra.mxu0 %v7015_v7  ;;  %v7035_v7 = vpack.c.bf16 %v2765_v61, %v2763_v9 }
 0x501   : > { %v2427_v52 = vpop.xlane.xlu0 %2426  ;;  %2490 = vadd.xlane.f32.xlu0 %v10455_v29  ;;  %7018 = vmatprep.subr.bf16.mxu0 %v7017_v36  ;;  %v7037_v36 = vpack.c.bf16 %v2770_v12, %v2768_v62  ;;  %v12548_v12 = vld [vmem:[#allocation61_spill] sm:$0xff] }
 0x502   : > { %v10459_v39 = vpop.eup %7915  ;;  %7925 = vpow2.f32 %v2470_v54  ;;  %v2476_v31 = vmul.f32 1.442695, %v2449_v26  ;;  %v2448_v57 = vsub.f32 %v10348_v50, %v2427_v52  ;;  %v2754_v54 = vld [vmem:[#allocation8 + $0x58] sm:$0xff]  ;;  %v7019_v26 = vpack.c.bf16 %v2749_v10, %v2747_v41 }
 0x503   : > { %v2433_v46 = vpop.xlane.xlu1 %2432  ;;  %2496 = vadd.xlane.f32.xlu1 %v10459_v39  ;;  %v7021_v52 = vpack.c.bf16 %v2754_v54, %v2752_v58 }
 0x504   : > { %v10463_v25 = vpop.eup %7917  ;;  %7927 = vpow2.f32 %v2476_v31  ;;  %v2474_v60 = vmul.f32 1.442695, %v2448_v57  ;;  %v2451_v34 = vsub.f32 %v10353_v8, %v2433_v46  ;;  %v2751_v31 = vld [vmem:[#allocation8 + $0x40] sm:$0xff]  ;;  %v2753_v57 = vld [vmem:[#allocation8 + $0x50] sm:$0xff]  ;;  %v2756_v46 = vld [vmem:[#allocation8 + $0x68] sm:$0xff]  ;;  %7020 = vmatpush1.bf16.msra.mxu0 %v7019_v26 }
 0x505   : > { %v2431_v14 = vpop.xlane.xlu0 %2430  ;;  %2494 = vadd.xlane.f32.xlu0 %v10463_v25  ;;  %7022 = vmatprep.subr.bf16.mxu0 %v7021_v52 }
 0x506   : > { %v10467_v13 = vpop.eup %7919  ;;  %7929 = vpow2.f32 %v2474_v60  ;;  %v2480_v30 = vmul.f32 1.442695, %v2451_v34  ;;  %v2450_v47 = vsub.f32 %v10359_v32, %v2431_v14  ;;  %v2758_v60 = vld [vmem:[#allocation8 + $0x78] sm:$0xff]  ;;  %v7023_v34 = vpack.c.bf16 %v2753_v57, %v2751_v31 }
 0x507   : > { %2500 = vadd.xlane.f32.xlu1 %v10467_v13  ;;  %v2437_v50 = vpop.xlane.xlu1 %2436  ;;  %v7025_v14 = vpack.c.bf16 %v2758_v60, %v2756_v46 }
 0x508   : > { %v10471_v35 = vpop.eup %7921  ;;  %7931 = vpow2.f32 %v2480_v30  ;;  %v2478_v38 = vmul.f32 1.442695, %v2450_v47  ;;  %v2453_v22 = vsub.f32 %v10363_v49, %v2437_v50  ;;  %v2755_v30 = vld [vmem:[#allocation8 + $0x60] sm:$0xff]  ;;  %v2757_v47 = vld [vmem:[#allocation8 + $0x70] sm:$0xff]  ;;  %v2760_v50 = vld [vmem:[#allocation8 + $0x88] sm:$0xff]  ;;  %7024 = vmatpush1.bf16.msra.mxu0 %v7023_v34 }
 0x509   : > { %2498 = vadd.xlane.f32.xlu0 %v10471_v35  ;;  %v2435_v8 = vpop.xlane.xlu0 %2434  ;;  %7026 = vmatprep.subr.bf16.mxu0 %v7025_v14 }
 0x50a   : > { %v10475_v37 = vpop.eup %7923  ;;  %7933 = vpow2.f32 %v2478_v38  ;;  %v2484_v19 = vmul.f32 1.442695, %v2453_v22  ;;  %v2452_v59 = vsub.f32 %v10369_v27, %v2435_v8  ;;  %v2762_v38 = vld [vmem:[#allocation8 + $0x98] sm:$0xff]  ;;  %v7027_v22 = vpack.c.bf16 %v2757_v47, %v2755_v30  ;;  %v12545_v47 = vld [vmem:[#allocation58_spill] sm:$0xff] }
 0x50b   : > { %2504 = vadd.xlane.f32.xlu1 %v10475_v37  ;;  %v7029_v8 = vpack.c.bf16 %v2762_v38, %v2760_v50 }
 0x50c   : > { %v10479_v32 = vpop.eup %7925  ;;  %7935 = vpow2.f32 %v2484_v19  ;;  %v2482_v51 = vmul.f32 1.442695, %v2452_v59  ;;  %v2759_v19 = vld [vmem:[#allocation8 + $0x80] sm:$0xff]  ;;  %v2761_v59 = vld [vmem:[#allocation8 + $0x90] sm:$0xff]  ;;  %7028 = vmatpush1.bf16.msra.mxu0 %v7027_v22 }
 0x50d   : > { %2502 = vadd.xlane.f32.xlu0 %v10479_v32  ;;  %v7031_v42 = vpack.c.bf16 %v2761_v59, %v2759_v19  ;;  %7030 = vmatprep.subr.bf16.mxu0 %v7029_v8 }
 0x50e   : > { %v10482_v21 = vpop.eup %7927  ;;  %7937 = vpow2.f32 %v2482_v51  ;;  %v2764_v51 = vld [vmem:[#allocation8 + $0xa8] sm:$0xff] }
 0x50f   : > { %2508 = vadd.xlane.f32.xlu1 %v10482_v21  ;;  %v7033_v33 = vpack.c.bf16 %v2766_v56, %v2764_v51 }
 0x510   : > { %v10485_v49 = vpop.eup %7929  ;;  %7032 = vmatpush1.bf16.msra.mxu0 %v7031_v42  ;;  %v12547_v42 = vld [vmem:[#allocation60_spill] sm:$0xff] }
 0x511   : > { %2506 = vadd.xlane.f32.xlu0 %v10485_v49  ;;  %7034 = vmatprep.subr.bf16.mxu0 %v7033_v33 }
 0x512   : > { %v10488_v4 = vpop.eup %7931 }
 0x513   : > { %2512 = vadd.xlane.f32.xlu1 %v10488_v4 }
 0x514   : > { %v10491_v27 = vpop.eup %7933  ;;  %7036 = vmatpush1.bf16.msra.mxu0 %v7035_v7 }
 0x515   : > { %2510 = vadd.xlane.f32.xlu0 %v10491_v27  ;;  %7038 = vmatprep.subr.bf16.mxu0 %v7037_v36 }
 0x516   : > { %v10494_v23 = vpop.eup %7935 }
 0x517   : > { %2516 = vadd.xlane.f32.xlu1 %v10494_v23 }
 0x518   : > { %v10497_v44 = vpop.eup %7937 }
 0x519   : > { %2514 = vadd.xlane.f32.xlu0 %v10497_v44 }
 0x565   : > { %v1863_v41 = vpop.xlane.xlu1 %1862 }
 0x566   : > { %7939 = vrcp.f32 %v1863_v41  ;;  %v1861_v10 = vpop.xlane.xlu0 %1860 }
 0x567   : > { %7941 = vrcp.f32 %v1861_v10 }
 0x56a   : > { %v1867_v58 = vpop.xlane.xlu1 %1866 }
 0x56b   : > { %7943 = vrcp.f32 %v1867_v58 }
 0x56e   : > { %v1871_v54 = vpop.xlane.xlu1 %1870  ;;  %v1865_v26 = vpop.xlane.xlu0 %1864 }
 0x56f   : > { %7945 = vrcp.f32 %v1865_v26 }
 0x570   : > { %v7940_v52 = vpop.eup %7939  ;;  %7947 = vrcp.f32 %v1871_v54  ;;  %v12549_v54 = vld [vmem:[#allocation63_spill] sm:$0xff] }
 0x571   : > { %v7942_v31 = vpop.eup %7941  ;;  %v1909_v34 = vmul.f32 %v7940_v52, %v10379_v1  ;;  %v12546_v1 = vld [vmem:[#allocation59_spill] sm:$0xff] }
 0x572   : > { %v1875_v57 = vpop.xlane.xlu1 %1874  ;;  %v1869_v46 = vpop.xlane.xlu0 %1868  ;;  %v1908_v60 = vmul.f32 %v7942_v31, %v10381_v17 }
 0x573   : > { %7949 = vrcp.f32 %v1869_v46  ;;  %v12550_v46 = vld [vmem:[#allocation67_spill] sm:$0xff] }
 0x574   : > { %6557 = vmatprep.mubr.f32.mxu1 %v1908_v60  ;;  %7951 = vrcp.f32 %v1875_v57 }
 0x575   : > { %6558 = vmatmul.mubr.f32.vlgmr.msra.gmra.mrb[16].mxu1 %v1909_v34  ;;  %v7944_v50 = vpop.eup %7943 }
 0x576   : > { %6984 = vmatpush3.bf16.msra.mxu1 %v12529_v11  ;;  %v1879_v14 = vpop.xlane.xlu1 %1878  ;;  %v1873_v30 = vpop.xlane.xlu0 %1872  ;;  %v1911_v11 = vmul.f32 %v7944_v50, %v10387_v16 }
 0x577   : > { %6986 = vmatprep.subr.bf16.mxu1 %v12545_v47  ;;  %7953 = vrcp.f32 %v1873_v30  ;;  %v12551_v30 = vld [vmem:[#allocation70_spill] sm:$0xff] }
 0x578   : > { %7955 = vrcp.f32 %v1879_v14 }
 0x579   : > { %v7946_v38 = vpop.eup %7945 }
 0x57a   : > { %6988 = vmatpush3.bf16.msra.mxu1 %v12545_v47  ;;  %v1883_v22 = vpop.xlane.xlu1 %1882  ;;  %v1877_v17 = vpop.xlane.xlu0 %1876  ;;  %v1910_v8 = vmul.f32 %v7946_v38, %v10394_v15 }
 0x57b   : > { %6990 = vmatprep.subr.bf16.mxu1 %v12546_v1  ;;  %7957 = vrcp.f32 %v1877_v17  ;;  %v7948_v19 = vpop.eup %7947 }
 0x57c   : > { %6560 = vmatprep.mubr.f32.mxu1 %v1910_v8  ;;  %7959 = vrcp.f32 %v1883_v22  ;;  %v1913_v9 = vmul.f32 %v7948_v19, %v10392_v43 }
 0x57d   : > { %v7950_v59 = vpop.eup %7949  ;;  %6561 = vmatmul.mubr.f32.gmra.mrb[18].mxu1 %v1911_v11 }
 0x57e   : > { %v1881_v51 = vpop.xlane.xlu0 %1880  ;;  %6992 = vmatpush3.bf16.msra.mxu1 %v12546_v1  ;;  %v1912_v56 = vmul.f32 %v7950_v59, %v10401_v48  ;;  %v7952_v15 = vpop.eup %7951 }
 0x57f   : > { %7961 = vrcp.f32 %v1881_v51  ;;  %6994 = vmatprep.subr.bf16.mxu1 %v12547_v42  ;;  %v1915_v48 = vmul.f32 %v7952_v15, %v10399_v55 }
 0x580   : > { %v1887_v33 = vpop.xlane.xlu1 %1886  ;;  %6563 = vmatprep.mubr.f32.mxu1 %v1912_v56 }
 0x581   : > { %v7954_v61 = vpop.eup %7953  ;;  %7963 = vrcp.f32 %v1887_v33  ;;  %6564 = vmatmul.mubr.f32.gmra.mrb[20].mxu1 %v1913_v9 }
 0x582   : > { %v1885_v16 = vpop.xlane.xlu0 %1884  ;;  %6996 = vmatpush3.bf16.msra.mxu1 %v12547_v42  ;;  %v1914_v62 = vmul.f32 %v7954_v61, %v10409_v5  ;;  %v7956_v36 = vpop.eup %7955 }
 0x583   : > { %7965 = vrcp.f32 %v1885_v16  ;;  %6998 = vmatprep.subr.bf16.mxu1 %v12548_v12  ;;  %v1917_v26 = vmul.f32 %v7956_v36, %v10407_v3 }
 0x584   : > { %v1891_v7 = vpop.xlane.xlu1 %1890  ;;  %6566 = vmatprep.mubr.f32.mxu1 %v1914_v62 }
 0x585   : > { %v7958_v41 = vpop.eup %7957  ;;  %7967 = vrcp.f32 %v1891_v7  ;;  %6567 = vmatmul.mubr.f32.gmra.mrb[22].mxu1 %v1915_v48 }
 0x586   : > { %v1889_v43 = vpop.xlane.xlu0 %1888  ;;  %7000 = vmatpush3.bf16.msra.mxu1 %v12548_v12  ;;  %v1916_v10 = vmul.f32 %v7958_v41, %v10417_v53  ;;  %v7960_v58 = vpop.eup %7959 }
 0x587   : > { %7969 = vrcp.f32 %v1889_v43  ;;  %7002 = vmatprep.subr.bf16.mxu1 %v12549_v54  ;;  %v1919_v60 = vmul.f32 %v7960_v58, %v10415_v45 }
 0x588   : > { %v2489_v5 = vpop.xlane.xlu1 %2488  ;;  %6569 = vmatprep.mubr.f32.mxu1 %v1916_v10 }
 0x589   : > { %v7962_v52 = vpop.eup %7961  ;;  %7971 = vrcp.f32 %v2489_v5  ;;  %6570 = vmatmul.mubr.f32.gmra.mrb[24].mxu1 %v1917_v26 }
 0x58a   : > { %v2487_v55 = vpop.xlane.xlu0 %2486  ;;  %v1918_v31 = vmul.f32 %v7962_v52, %v10423_v18  ;;  %7004 = vmatpush3.bf16.msra.mxu1 %v12549_v54 }
 0x58b   : > { %7973 = vrcp.f32 %v2487_v55  ;;  %v7964_v57 = vpop.eup %7963  ;;  %7006 = vmatprep.subr.bf16.mxu1 %v12550_v46 }
 0x58c   : > { %v2493_v53 = vpop.xlane.xlu1 %2492  ;;  %6572 = vmatprep.mubr.f32.mxu1 %v1918_v31  ;;  %v1921_v50 = vmul.f32 %v7964_v57, %v10427_v0  ;;  %v2769_v57 = vld [vmem:[#allocation8 + $0xd0] sm:$0xff] }
 0x58d   : > { %v7966_v34 = vpop.eup %7965  ;;  %7975 = vrcp.f32 %v2493_v53  ;;  %6573 = vmatmul.mubr.f32.gmra.mrb[26].mxu1 %v1919_v60  ;;  %v2774_v53 = vld [vmem:[#allocation8 + $0xf8] sm:$0xff]  ;;  %v2771_v60 = vld [vmem:[#allocation8 + $0xe0] sm:$0xff] }
 0x58e   : > { %v2491_v3 = vpop.xlane.xlu0 %2490  ;;  %v1920_v14 = vmul.f32 %v7966_v34, %v10431_v63  ;;  %7008 = vmatpush3.bf16.msra.mxu1 %v12550_v46  ;;  %v2773_v34 = vld [vmem:[#allocation8 + $0xf0] sm:$0xff] }
 0x58f   : > { %7977 = vrcp.f32 %v2491_v3  ;;  %v7968_v18 = vpop.eup %7967  ;;  %7010 = vmatprep.subr.bf16.mxu1 %v12551_v30  ;;  %v2776_v3 = vld [vmem:[#allocation8 + $0x108] sm:$0xff] }
 0x590   : > { %v2497_v47 = vpop.xlane.xlu1 %2496  ;;  %6575 = vmatprep.mubr.f32.mxu1 %v1920_v14  ;;  %v1923_v1 = vmul.f32 %v7968_v18, %v10435_v6  ;;  %v2778_v14 = vld [vmem:[#allocation8 + $0x118] sm:$0xff] }
 0x591   : > { %v7970_v38 = vpop.eup %7969  ;;  %7979 = vrcp.f32 %v2497_v47  ;;  %6576 = vmatmul.mubr.f32.gmra.mrb[28].mxu1 %v1921_v50  ;;  %v7045_v18 = vpack.c.bf16 %v2778_v14, %v2776_v3  ;;  %v2780_v47 = vld [vmem:[#allocation8 + $0x128] sm:$0xff]  ;;  %v2782_v50 = vld [vmem:[#allocation8 + $0x138] sm:$0xff] }
 0x592   : > { %v2495_v45 = vpop.xlane.xlu0 %2494  ;;  %v1922_v22 = vmul.f32 %v7970_v38, %v10439_v2  ;;  %7012 = vmatpush3.bf16.msra.mxu1 %v12551_v30  ;;  %v2777_v30 = vld [vmem:[#allocation8 + $0x110] sm:$0xff]  ;;  %v7049_v38 = vpack.c.bf16 %v2782_v50, %v2780_v47 }
 0x593   : > { %7981 = vrcp.f32 %v2495_v45  ;;  %v7972_v63 = vpop.eup %7971  ;;  %v2779_v45 = vld [vmem:[#allocation8 + $0x120] sm:$0xff] }
 0x594   : > { %v2501_v17 = vpop.xlane.xlu1 %2500  ;;  %6578 = vmatprep.mubr.f32.mxu1 %v1922_v22  ;;  %v2535_v59 = vmul.f32 %v7972_v63, %v10443_v20  ;;  %v2781_v22 = vld [vmem:[#allocation8 + $0x130] sm:$0xff] }
 0x595   : > { %v7974_v8 = vpop.eup %7973  ;;  %7983 = vrcp.f32 %v2501_v17  ;;  %6579 = vmatmul.mubr.f32.gmra.mrb[30].mxu1 %v1923_v1  ;;  %v7051_v63 = vpack.c.bf16 %v2781_v22, %v2779_v45  ;;  %v2784_v17 = vld [vmem:[#allocation8 + $0x148] sm:$0xff]  ;;  %v2786_v1 = vld [vmem:[#allocation8 + $0x158] sm:$0xff] }
 0x596   : > { %v2499_v11 = vpop.xlane.xlu0 %2498  ;;  %v2534_v0 = vmul.f32 %v7974_v8, %v10447_v28  ;;  %v7053_v8 = vpack.c.bf16 %v2786_v1, %v2784_v17 }
 0x597   : > { %7985 = vrcp.f32 %v2499_v11  ;;  %v7976_v19 = vpop.eup %7975  ;;  %v2783_v11 = vld [vmem:[#allocation8 + $0x140] sm:$0xff] }
 0x598   : > { %v2505_v51 = vpop.xlane.xlu1 %2504  ;;  %6669 = vmatprep.mubr.f32.mxu1 %v2534_v0  ;;  %v2537_v9 = vmul.f32 %v7976_v19, %v10451_v24  ;;  %v2785_v0 = vld [vmem:[#allocation8 + $0x150] sm:$0xff] }
 0x599   : > { %v7978_v2 = vpop.eup %7977  ;;  %7987 = vrcp.f32 %v2505_v51  ;;  %6670 = vmatmul.mubr.f32.vlgmr.msra.gmra.mrb[32].mxu1 %v2535_v59  ;;  %v7055_v19 = vpack.c.bf16 %v2785_v0, %v2783_v11  ;;  %v2788_v59 = vld [vmem:[#allocation8 + $0x168] sm:$0xff]  ;;  %v2790_v51 = vld [vmem:[#allocation8 + $0x178] sm:$0xff] }
 0x59a   : > { %v2503_v56 = vpop.xlane.xlu0 %2502  ;;  %v2536_v42 = vmul.f32 %v7978_v2, %v10455_v29  ;;  %v7057_v2 = vpack.c.bf16 %v2790_v51, %v2788_v59  ;;  %v3211_v59 = vld [vmem:[#allocation9 + $0x38] sm:$0xff] }
 0x59b   : > { %7989 = vrcp.f32 %v2503_v56  ;;  %v7980_v6 = vpop.eup %7979  ;;  %v2787_v56 = vld [vmem:[#allocation8 + $0x160] sm:$0xff]  ;;  %v3207_v51 = vld [vmem:[#allocation9 + $0x18] sm:$0xff] }
 0x59c   : > { %v2509_v33 = vpop.xlane.xlu1 %2508  ;;  %6672 = vmatprep.mubr.f32.mxu1 %v2536_v42  ;;  %v2539_v62 = vmul.f32 %v7980_v6, %v10459_v39  ;;  %v2789_v42 = vld [vmem:[#allocation8 + $0x170] sm:$0xff] }
 0x59d   : > { %v7982_v15 = vpop.eup %7981  ;;  %7991 = vrcp.f32 %v2509_v33  ;;  %6673 = vmatmul.mubr.f32.gmra.mrb[34].mxu1 %v2537_v9  ;;  %v7059_v6 = vpack.c.bf16 %v2789_v42, %v2787_v56  ;;  %v2792_v33 = vld [vmem:[#allocation8 + $0x188] sm:$0xff]  ;;  %v2794_v9 = vld [vmem:[#allocation8 + $0x198] sm:$0xff]  ;;  %v3204_v42 = vld [vmem:[#allocation9] sm:$0xff] }
 0x59e   : > { %v2507_v28 = vpop.xlane.xlu0 %2506  ;;  %v2538_v20 = vmul.f32 %v7982_v15, %v10463_v25  ;;  %v7061_v15 = vpack.c.bf16 %v2794_v9, %v2792_v33  ;;  %v3213_v56 = vld [vmem:[#allocation9 + $0x48] sm:$0xff] }
 0x59f   : > { %7993 = vrcp.f32 %v2507_v28  ;;  %v7984_v61 = vpop.eup %7983  ;;  %v2791_v28 = vld [vmem:[#allocation8 + $0x180] sm:$0xff]  ;;  %v7141_v33 = vpack.c.bf16 %v3213_v56, %v3207_v51  ;;  %v3266_v56 = vld [vmem:[#allocation9 + $0x1f0] sm:$0xff] }
 0x5a0   : > { %v2513_v16 = vpop.xlane.xlu1 %2512  ;;  %6675 = vmatprep.mubr.f32.mxu1 %v2538_v20  ;;  %v2541_v36 = vmul.f32 %v7984_v61, %v10467_v13  ;;  %v2793_v20 = vld [vmem:[#allocation8 + $0x190] sm:$0xff]  ;;  %v3264_v51 = vld [vmem:[#allocation9 + $0x1e0] sm:$0xff] }
 0x5a1   : > { %v7986_v12 = vpop.eup %7985  ;;  %7995 = vrcp.f32 %v2513_v16  ;;  %6676 = vmatmul.mubr.f32.gmra.mrb[36].mxu1 %v2539_v62  ;;  %v7063_v61 = vpack.c.bf16 %v2793_v20, %v2791_v28  ;;  %v2796_v16 = vld [vmem:[#allocation8 + $0x1a8] sm:$0xff]  ;;  %v2798_v62 = vld [vmem:[#allocation8 + $0x1b8] sm:$0xff]  ;;  %v3212_v28 = vld [vmem:[#allocation9 + $0x40] sm:$0xff] }
 0x5a2   : > { %v2511_v29 = vpop.xlane.xlu0 %2510  ;;  %v2540_v7 = vmul.f32 %v7986_v12, %v10471_v35  ;;  %v7065_v12 = vpack.c.bf16 %v2798_v62, %v2796_v16  ;;  %v3217_v20 = vld [vmem:[#allocation9 + $0x68] sm:$0xff]  ;;  %v3223_v16 = vld [vmem:[#allocation9 + $0x98] sm:$0xff] }
 0x5a3   : > { %7997 = vrcp.f32 %v2511_v29  ;;  %v7988_v24 = vpop.eup %7987  ;;  %v2795_v29 = vld [vmem:[#allocation8 + $0x1a0] sm:$0xff]  ;;  %v3219_v62 = vld [vmem:[#allocation9 + $0x78] sm:$0xff] }
 0x5a4   : > { %v2517_v48 = vpop.xlane.xlu1 %2516  ;;  %6678 = vmatprep.mubr.f32.mxu1 %v2540_v7  ;;  %v2543_v10 = vmul.f32 %v7988_v24, %v10475_v37  ;;  %v2797_v7 = vld [vmem:[#allocation8 + $0x1b0] sm:$0xff] }
 0x5a5   : > { %v7990_v41 = vpop.eup %7989  ;;  %7999 = vrcp.f32 %v2517_v48  ;;  %6679 = vmatmul.mubr.f32.gmra.mrb[38].mxu1 %v2541_v36  ;;  %v7067_v24 = vpack.c.bf16 %v2797_v7, %v2795_v29  ;;  %v2800_v48 = vld [vmem:[#allocation8 + $0x1c8] sm:$0xff]  ;;  %v2802_v36 = vld [vmem:[#allocation8 + $0x1d8] sm:$0xff]  ;;  %v7081_v29 = vpack.c.bf16 %v3223_v16, %v3217_v20 }
 0x5a6   : > { %v2515_v25 = vpop.xlane.xlu0 %2514  ;;  %v2542_v43 = vmul.f32 %v7990_v41, %v10479_v32  ;;  %v7069_v41 = vpack.c.bf16 %v2802_v36, %v2800_v48  ;;  %v3222_v48 = vld [vmem:[#allocation9 + $0x90] sm:$0xff] }
 0x5a7   : > { %8001 = vrcp.f32 %v2515_v25  ;;  %v7992_v39 = vpop.eup %7991  ;;  %v2799_v25 = vld [vmem:[#allocation8 + $0x1c0] sm:$0xff]  ;;  %v3218_v36 = vld [vmem:[#allocation9 + $0x70] sm:$0xff] }
 0x5a8   : > { %6681 = vmatprep.mubr.f32.mxu1 %v2542_v43  ;;  %v2545_v5 = vmul.f32 %v7992_v39, %v10482_v21  ;;  %v2772_v21 = vld [vmem:[#allocation8 + $0xe8] sm:$0xff]  ;;  %v2801_v43 = vld [vmem:[#allocation8 + $0x1d0] sm:$0xff] }
 0x5a9   : > { %v7994_v58 = vpop.eup %7993  ;;  %6682 = vmatmul.mubr.f32.gmra.mrb[40].mxu1 %v2543_v10  ;;  %v7071_v39 = vpack.c.bf16 %v2801_v43, %v2799_v25  ;;  %v2804_v10 = vld [vmem:[#allocation8 + $0x1e8] sm:$0xff]  ;;  %v3224_v25 = vld [vmem:[#allocation9 + $0xa0] sm:$0xff] }
 0x5aa   : > { %v2544_v35 = vmul.f32 %v7994_v58, %v10485_v49  ;;  %v2767_v49 = vld [vmem:[#allocation8 + $0xc0] sm:$0xff]  ;;  %v2806_v58 = vld [vmem:[#allocation8 + $0x1f8] sm:$0xff]  ;;  %v3229_v43 = vld [vmem:[#allocation9 + $0xc8] sm:$0xff] }
 0x5ab   : > { %v7996_v54 = vpop.eup %7995  ;;  %v7039_v46 = vpack.c.bf16 %v2769_v57, %v2767_v49 }
 0x5ac   : > { %6684 = vmatprep.mubr.f32.mxu1 %v2544_v35  ;;  %v2547_v32 = vmul.f32 %v7996_v54, %v10488_v4  ;;  %v7043_v4 = vpack.c.bf16 %v2773_v34, %v2771_v60  ;;  %v7073_v35 = vpack.c.bf16 %v2806_v58, %v2804_v10  ;;  %v2803_v54 = vld [vmem:[#allocation8 + $0x1e0] sm:$0xff]  ;;  %v7147_v10 = vpack.c.bf16 %v3224_v25, %v3218_v36  ;;  %v3295_v36 = vld [vmem:[#allocation9 + $0x2d8] sm:$0xff]  ;;  %v3297_v25 = vld [vmem:[#allocation9 + $0x2e8] sm:$0xff] }
 0x5ad   : > { %v7998_v13 = vpop.eup %7997  ;;  %6685 = vmatmul.mubr.f32.gmra.mrb[42].mxu1 %v2545_v5  ;;  %7040 = vmatpush1.bf16.msra.mxu0 %v7039_v46  ;;  %v2805_v5 = vld [vmem:[#allocation8 + $0x1f0] sm:$0xff] }
 0x5ae   : > { %v2546_v26 = vmul.f32 %v7998_v13, %v10491_v27  ;;  %v7041_v27 = vpack.c.bf16 %v2774_v53, %v2772_v21  ;;  %v7075_v13 = vpack.c.bf16 %v2805_v5, %v2803_v54  ;;  %v3237_v54 = vld [vmem:[#allocation9 + $0x108] sm:$0xff]  ;;  %v3228_v5 = vld [vmem:[#allocation9 + $0xc0] sm:$0xff] }
 0x5af   : > { %v8000_v52 = vpop.eup %7999 }
 0x5b0   : > { %6687 = vmatprep.mubr.f32.mxu1 %v2546_v26  ;;  %v2549_v31 = vmul.f32 %v8000_v52, %v10494_v23  ;;  %7042 = vmatprep.subr.bf16.mxu0 %v7041_v27 }
 0x5b1   : > { %v8002_v55 = vpop.eup %8001  ;;  %6688 = vmatmul.mubr.f32.gmra.mrb[44].mxu1 %v2547_v32  ;;  %7044 = vmatpush1.bf16.msra.mxu0 %v7043_v4 }
 0x5b2   : > { %v2548_v37 = vmul.f32 %v8002_v55, %v10497_v44  ;;  %7046 = vmatprep.subr.bf16.mxu0 %v7045_v18  ;;  %v2775_v44 = vld [vmem:[#allocation8 + $0x100] sm:$0xff] }
 0x5b3   : > { %v7047_v23 = vpack.c.bf16 %v2777_v30, %v2775_v44 }
 0x5b4   : > { %6690 = vmatprep.mubr.f32.mxu1 %v2548_v37 }
 0x5b5   : > { %6691 = vmatmul.mubr.f32.gmra.mrb[46].mxu1 %v2549_v31  ;;  %7048 = vmatpush1.bf16.msra.mxu0 %v7047_v23 }
 0x5b6   : > { %7050 = vmatprep.subr.bf16.mxu0 %v7049_v38 }
 0x5b9   : > { %7052 = vmatpush1.bf16.msra.mxu0 %v7051_v63 }
 0x5ba   : > { %7054 = vmatprep.subr.bf16.mxu0 %v7053_v8 }
 0x5bd   : > { %7056 = vmatpush1.bf16.msra.mxu0 %v7055_v19  ;;  %v3205_v19 = vld [vmem:[#allocation9 + $0x8] sm:$0xff] }
 0x5be   : > { %7058 = vmatprep.subr.bf16.mxu0 %v7057_v2  ;;  %v7077_v2 = vpack.c.bf16 %v3211_v59, %v3205_v19 }
 0x5c0   : > { %7078 = vmatprep.subr.bf16.mxu1 %v7077_v2  ;;  %v3270_v2 = vld [vmem:[#allocation9 + $0x210] sm:$0xff] }
 0x5c1   : > { %7060 = vmatpush1.bf16.msra.mxu0 %v7059_v6  ;;  %v3210_v6 = vld [vmem:[#allocation9 + $0x30] sm:$0xff]  ;;  %v7099_v20 = vpack.c.bf16 %v3270_v2, %v3264_v51  ;;  %v3332_v2 = vld [vmem:[#allocation9 + $0x400] sm:$0xff] }
 0x5c2   : > { %7062 = vmatprep.subr.bf16.mxu0 %v7061_v15  ;;  %v7079_v9 = vpack.c.bf16 %v3210_v6, %v3204_v42  ;;  %v3206_v15 = vld [vmem:[#allocation9 + $0x10] sm:$0xff]  ;;  %v3272_v6 = vld [vmem:[#allocation9 + $0x220] sm:$0xff] }
 0x5c4   : > { %7080 = vmatpush1.bf16.msra.mxu1 %v7079_v9  ;;  %v3283_v9 = vld [vmem:[#allocation9 + $0x278] sm:$0xff] }
 0x5c5   : > { %7064 = vmatpush1.bf16.msra.mxu0 %v7063_v61  ;;  %v7143_v61 = vpack.c.bf16 %v3212_v28, %v3206_v15  ;;  %7082 = vmatprep.subr.bf16.mxu1 %v7081_v29  ;;  %v3279_v15 = vld [vmem:[#allocation9 + $0x258] sm:$0xff]  ;;  %v3285_v28 = vld [vmem:[#allocation9 + $0x288] sm:$0xff]  ;;  %v3278_v29 = vld [vmem:[#allocation9 + $0x250] sm:$0xff] }
 0x5c6   : > { %7066 = vmatprep.subr.bf16.mxu0 %v7065_v12  ;;  %v3225_v12 = vld [vmem:[#allocation9 + $0xa8] sm:$0xff] }
 0x5c7   : > { %v7145_v7 = vpack.c.bf16 %v3225_v12, %v3219_v62  ;;  %v3276_v62 = vld [vmem:[#allocation9 + $0x240] sm:$0xff]  ;;  %v3282_v12 = vld [vmem:[#allocation9 + $0x270] sm:$0xff] }
 0x5c9   : > { %7068 = vmatpush1.bf16.msra.mxu0 %v7067_v24  ;;  %v3216_v24 = vld [vmem:[#allocation9 + $0x60] sm:$0xff] }
 0x5ca   : > { %7070 = vmatprep.subr.bf16.mxu0 %v7069_v41  ;;  %v7083_v41 = vpack.c.bf16 %v3222_v48, %v3216_v24  ;;  %v3284_v24 = vld [vmem:[#allocation9 + $0x280] sm:$0xff]  ;;  %v3289_v48 = vld [vmem:[#allocation9 + $0x2a8] sm:$0xff] }
 0x5cc   : > { %7084 = vmatpush1.bf16.msra.mxu1 %v7083_v41  ;;  %v3291_v41 = vld [vmem:[#allocation9 + $0x2b8] sm:$0xff] }
 0x5cd   : > { %7072 = vmatpush1.bf16.msra.mxu0 %v7071_v39  ;;  %v3235_v39 = vld [vmem:[#allocation9 + $0xf8] sm:$0xff] }
 0x5ce   : > { %7074 = vmatprep.subr.bf16.mxu0 %v7073_v35  ;;  %v7085_v58 = vpack.c.bf16 %v3235_v39, %v3229_v43  ;;  %v3231_v35 = vld [vmem:[#allocation9 + $0xd8] sm:$0xff]  ;;  %v7103_v43 = vpack.c.bf16 %v3282_v12, %v3276_v62  ;;  %v7167_v39 = vpack.c.bf16 %v3284_v24, %v3278_v29  ;;  %v8420_v29 = vld [vmem:[%s9132_s11 + $0x8] sm:$0xff] }
 0x5d0   : > { %7086 = vmatprep.subr.bf16.mxu1 %v7085_v58  ;;  %v3288_v58 = vld [vmem:[#allocation9 + $0x2a0] sm:$0xff] }
 0x5d1   : > { %7076 = vmatpush1.bf16.msra.mxu0 %v7075_v13  ;;  %v7149_v13 = vpack.c.bf16 %v3237_v54, %v3231_v35  ;;  %v3294_v35 = vld [vmem:[#allocation9 + $0x2d0] sm:$0xff] }
 0x5d2   : > { %7142 = vmatprep.subr.bf16.mxu0 %v7141_v33  ;;  %v3277_v33 = vld [vmem:[#allocation9 + $0x248] sm:$0xff]  ;;  %v3290_v54 = vld [vmem:[#allocation9 + $0x2b0] sm:$0xff] }
 0x5d3   : > { %v7101_v16 = vpack.c.bf16 %v3283_v9, %v3277_v33  ;;  %v3345_v33 = vld [vmem:[#allocation9 + $0x468] sm:$0xff] }
 0x648   : > { %v6559_v26 = vpop.f32.mrb[16].mxu1 }
 0x649   : > { %v1990_v52 = vpop.f32.mrb[17].mxu1 }
 0x650   : > { %v6562_v32 = vpop.f32.mrb[18].mxu1 }
 0x651   : > { %v2000_v55 = vpop.f32.mrb[19].mxu1 }
 0x654   : > { %v6565_v37 = vpop.f32.mrb[20].mxu1 }
 0x655   : > { %v2010_v31 = vpop.f32.mrb[21].mxu1 }
 0x658   : > { %v6568_v49 = vpop.f32.mrb[22].mxu1 }
 0x659   : > { %v2020_v57 = vpop.f32.mrb[23].mxu1 }
 0x65c   : > { %v6571_v46 = vpop.f32.mrb[24].mxu1 }
 0x65d   : > { %v2030_v21 = vpop.f32.mrb[25].mxu1 }
 0x660   : > { %v6574_v53 = vpop.f32.mrb[26].mxu1 }
 0x661   : > { %v2040_v60 = vpop.f32.mrb[27].mxu1 }
 0x664   : > { %v6577_v27 = vpop.f32.mrb[28].mxu1 }
 0x665   : > { %v2050_v34 = vpop.f32.mrb[29].mxu1 }
 0x668   : > { %v6580_v3 = vpop.f32.mrb[30].mxu1 }
 0x669   : > { %v2060_v14 = vpop.f32.mrb[31].mxu1 }
 0x66c   : > { %v6671_v4 = vpop.f32.mrb[32].mxu1 }
 0x66d   : > { %v2616_v18 = vpop.f32.mrb[33].mxu1 }
 0x66e   : > { %2871 = vmatprep.mubr.f32.mxu0 %v2616_v18  ;;  %v3255_v18 = vld [vmem:[#allocation9 + $0x198] sm:$0xff] }
 0x66f   : > { %2872 = vmatmul.mubr.f32.vlgmr.msra.gmra.mrb[112].mxu0 %v1990_v52  ;;  %v3230_v52 = vld [vmem:[#allocation9 + $0xd0] sm:$0xff] }
 0x670   : > { %v6674_v44 = vpop.f32.mrb[34].mxu1  ;;  %2877 = vmatprep.mubr.f32.mxu0 %v6671_v4  ;;  %7144 = vmatpush1.bf16.msra.mxu0 %v7143_v61  ;;  %v3259_v4 = vld [vmem:[#allocation9 + $0x1b8] sm:$0xff]  ;;  %v7163_v61 = vpack.c.bf16 %v3272_v6, %v3266_v56  ;;  %v3337_v56 = vld [vmem:[#allocation9 + $0x428] sm:$0xff] }
 0x671   : > { %v2626_v30 = vpop.f32.mrb[35].mxu1  ;;  %7146 = vmatprep.subr.bf16.mxu0 %v7145_v7  ;;  %v7165_v7 = vpack.c.bf16 %v3285_v28, %v3279_v15  ;;  %v3339_v6 = vld [vmem:[#allocation9 + $0x438] sm:$0xff] }
 0x673   : > { %2878 = vmatmul.mubr.f32.gmra.mrb[114].mxu0 %v6559_v26  ;;  %v3234_v26 = vld [vmem:[#allocation9 + $0xf0] sm:$0xff] }
 0x674   : > { %v6677_v23 = vpop.f32.mrb[36].mxu1  ;;  %2883 = vmatprep.mubr.f32.mxu0 %v2626_v30  ;;  %7148 = vmatpush1.bf16.msra.mxu0 %v7147_v10  ;;  %v7105_v10 = vpack.c.bf16 %v3295_v36, %v3289_v48 }
 0x675   : > { %v2636_v47 = vpop.f32.mrb[37].mxu1  ;;  %7150 = vmatprep.subr.bf16.mxu0 %v7149_v13  ;;  %v3296_v13 = vld [vmem:[#allocation9 + $0x2e0] sm:$0xff] }
 0x677   : > { %2884 = vmatmul.mubr.f32.gmra.mrb[116].mxu0 %v2000_v55  ;;  %v7087_v55 = vpack.c.bf16 %v3234_v26, %v3228_v5  ;;  %v7169_v5 = vpack.c.bf16 %v3297_v25, %v3291_v41  ;;  %v3301_v26 = vld [vmem:[#allocation9 + $0x308] sm:$0xff]  ;;  %v8421_v41 = vld [vmem:[%s9132_s11 + $0x10] sm:$0xff] }
 0x678   : > { %v6680_v50 = vpop.f32.mrb[38].mxu1  ;;  %2889 = vmatprep.mubr.f32.mxu0 %v6674_v44  ;;  %v3261_v44 = vld [vmem:[#allocation9 + $0x1c8] sm:$0xff] }
 0x679   : > { %v2646_v38 = vpop.f32.mrb[39].mxu1  ;;  %7088 = vmatpush1.bf16.msra.mxu1 %v7087_v55  ;;  %v3309_v55 = vld [vmem:[#allocation9 + $0x348] sm:$0xff] }
 0x67b   : > { %2890 = vmatmul.mubr.f32.gmra.mrb[118].mxu0 %v6562_v32  ;;  %v3236_v32 = vld [vmem:[#allocation9 + $0x100] sm:$0xff] }
 0x67c   : > { %v6683_v45 = vpop.f32.mrb[40].mxu1  ;;  %2895 = vmatprep.mubr.f32.mxu0 %v2636_v47 }
 0x67d   : > { %v2656_v22 = vpop.f32.mrb[41].mxu1 }
 0x67f   : > { %2896 = vmatmul.mubr.f32.gmra.mrb[120].mxu0 %v2010_v31  ;;  %v3247_v31 = vld [vmem:[#allocation9 + $0x158] sm:$0xff] }
 0x680   : > { %v6686_v63 = vpop.f32.mrb[42].mxu1  ;;  %2901 = vmatprep.mubr.f32.mxu0 %v6677_v23 }
 0x681   : > { %v2666_v17 = vpop.f32.mrb[43].mxu1 }
 0x683   : > { %2902 = vmatmul.mubr.f32.gmra.mrb[122].mxu0 %v6565_v37  ;;  %v3241_v37 = vld [vmem:[#allocation9 + $0x128] sm:$0xff] }
 0x684   : > { %v6689_v1 = vpop.f32.mrb[44].mxu1  ;;  %2907 = vmatprep.mubr.f32.mxu0 %v2646_v38  ;;  %v3258_v38 = vld [vmem:[#allocation9 + $0x1b0] sm:$0xff] }
 0x685   : > { %v2676_v8 = vpop.f32.mrb[45].mxu1 }
 0x687   : > { %2908 = vmatmul.mubr.f32.gmra.mrb[124].mxu0 %v2020_v57  ;;  %v7151_v57 = vpack.c.bf16 %v3236_v32, %v3230_v52  ;;  %v3307_v52 = vld [vmem:[#allocation9 + $0x338] sm:$0xff] }
 0x688   : > { %v6692_v11 = vpop.f32.mrb[46].mxu1  ;;  %2913 = vmatprep.mubr.f32.mxu0 %v6680_v50  ;;  %v3252_v50 = vld [vmem:[#allocation9 + $0x180] sm:$0xff]  ;;  %v3303_v32 = vld [vmem:[#allocation9 + $0x318] sm:$0xff] }
 0x689   : > { %v2686_v0 = vpop.f32.mrb[47].mxu1  ;;  %7152 = vmatpush1.bf16.msra.mxu0 %v7151_v57  ;;  %v3300_v57 = vld [vmem:[#allocation9 + $0x300] sm:$0xff] }
 0x68b   : > { %2914 = vmatmul.mubr.f32.gmra.mrb[126].mxu0 %v6568_v49  ;;  %v3243_v49 = vld [vmem:[#allocation9 + $0x138] sm:$0xff] }
 0x68c   : > { %2919 = vmatprep.mubr.f32.mxu0 %v2656_v22  ;;  %v7157_v22 = vpack.c.bf16 %v3261_v44, %v3255_v18 }
 0x68f   : > { %2920 = vmatmul.mubr.f32.gmra.mrb[128].mxu0 %v2030_v21  ;;  %v3249_v21 = vld [vmem:[#allocation9 + $0x168] sm:$0xff] }
 0x690   : > { %2925 = vmatprep.mubr.f32.mxu0 %v6683_v45  ;;  %v3254_v45 = vld [vmem:[#allocation9 + $0x190] sm:$0xff] }
 0x693   : > { %2926 = vmatmul.mubr.f32.gmra.mrb[130].mxu0 %v6571_v46  ;;  %v7089_v46 = vpack.c.bf16 %v3247_v31, %v3241_v37  ;;  %v7107_v37 = vpack.c.bf16 %v3294_v35, %v3288_v58  ;;  %v7171_v31 = vpack.c.bf16 %v3296_v13, %v3290_v54  ;;  %v8423_v13 = vld [vmem:[%s9132_s11 + $0x20] sm:$0xff] }
 0x694   : > { %2931 = vmatprep.mubr.f32.mxu0 %v2666_v17  ;;  %v3265_v17 = vld [vmem:[#allocation9 + $0x1e8] sm:$0xff] }
 0x695   : > { %7090 = vmatprep.subr.bf16.mxu1 %v7089_v46  ;;  %v3306_v46 = vld [vmem:[#allocation9 + $0x330] sm:$0xff] }
 0x697   : > { %2932 = vmatmul.mubr.f32.gmra.mrb[132].mxu0 %v2040_v60  ;;  %v3246_v60 = vld [vmem:[#allocation9 + $0x150] sm:$0xff] }
 0x698   : > { %2937 = vmatprep.mubr.f32.mxu0 %v6686_v63  ;;  %v3260_v63 = vld [vmem:[#allocation9 + $0x1c0] sm:$0xff] }
 0x699   : > { %v7159_v19 = vpack.c.bf16 %v3260_v63, %v3254_v45  ;;  %v3325_v45 = vld [vmem:[#allocation9 + $0x3c8] sm:$0xff]  ;;  %v3327_v63 = vld [vmem:[#allocation9 + $0x3d8] sm:$0xff] }
 0x69b   : > { %2938 = vmatmul.mubr.f32.gmra.mrb[134].mxu0 %v6574_v53  ;;  %v3240_v53 = vld [vmem:[#allocation9 + $0x120] sm:$0xff] }
 0x69c   : > { %2943 = vmatprep.mubr.f32.mxu0 %v2676_v8  ;;  %v7091_v30 = vpack.c.bf16 %v3246_v60, %v3240_v53  ;;  %v3267_v8 = vld [vmem:[#allocation9 + $0x1f8] sm:$0xff]  ;;  %v7173_v53 = vpack.c.bf16 %v3309_v55, %v3303_v32  ;;  %v3308_v60 = vld [vmem:[#allocation9 + $0x340] sm:$0xff]  ;;  %v8424_v32 = vld [vmem:[%s9132_s11 + $0x28] sm:$0xff] }
 0x69e   : > { %7092 = vmatpush1.bf16.msra.mxu1 %v7091_v30  ;;  %v3312_v30 = vld [vmem:[#allocation9 + $0x360] sm:$0xff] }
 0x69f   : > { %2944 = vmatmul.mubr.f32.gmra.mrb[136].mxu0 %v2050_v34  ;;  %v3242_v34 = vld [vmem:[#allocation9 + $0x130] sm:$0xff] }
 0x6a0   : > { %2949 = vmatprep.mubr.f32.mxu0 %v6689_v1  ;;  %v3271_v1 = vld [vmem:[#allocation9 + $0x218] sm:$0xff] }
 0x6a1   : > { %v7097_v59 = vpack.c.bf16 %v3271_v1, %v3265_v17  ;;  %v3333_v17 = vld [vmem:[#allocation9 + $0x408] sm:$0xff] }
 0x6a2   : > { %v7181_v51 = vpack.c.bf16 %v3333_v17, %v3327_v63  ;;  %v8429_v63 = vld [vmem:[%s9132_s11 + $0x50] sm:$0xff] }
 0x6a3   : > { %2950 = vmatmul.mubr.f32.gmra.mrb[138].mxu0 %v6577_v27  ;;  %v7153_v27 = vpack.c.bf16 %v3249_v21, %v3243_v49  ;;  %v7109_v49 = vpack.c.bf16 %v3307_v52, %v3301_v26  ;;  %v3302_v21 = vld [vmem:[#allocation9 + $0x310] sm:$0xff] }
 0x6a4   : > { %2955 = vmatprep.mubr.f32.mxu0 %v2686_v0  ;;  %v7095_v0 = vpack.c.bf16 %v3258_v38, %v3252_v50  ;;  %v7175_v18 = vpack.c.bf16 %v3308_v60, %v3302_v21  ;;  %v3320_v38 = vld [vmem:[#allocation9 + $0x3a0] sm:$0xff]  ;;  %v8426_v60 = vld [vmem:[%s9132_s11 + $0x38] sm:$0xff] }
 0x6a5   : > { %7154 = vmatprep.subr.bf16.mxu0 %v7153_v27  ;;  %v3313_v27 = vld [vmem:[#allocation9 + $0x368] sm:$0xff] }
 0x6a7   : > { %2956 = vmatmul.mubr.f32.gmra.mrb[140].mxu0 %v2060_v14  ;;  %v3253_v14 = vld [vmem:[#allocation9 + $0x188] sm:$0xff] }
 0x6a8   : > { %2961 = vmatprep.mubr.f32.mxu0 %v6692_v11  ;;  %v7093_v47 = vpack.c.bf16 %v3259_v4, %v3253_v14  ;;  %v3273_v11 = vld [vmem:[#allocation9 + $0x228] sm:$0xff]  ;;  %v7111_v4 = vpack.c.bf16 %v3306_v46, %v3300_v57  ;;  %v8425_v46 = vld [vmem:[%s9132_s11 + $0x30] sm:$0xff] }
 0x6a9   : > { %v7161_v42 = vpack.c.bf16 %v3273_v11, %v3267_v8  ;;  %v3321_v14 = vld [vmem:[#allocation9 + $0x3a8] sm:$0xff] }
 0x6aa   : > { %7094 = vmatprep.subr.bf16.mxu1 %v7093_v47  ;;  %v3314_v47 = vld [vmem:[#allocation9 + $0x370] sm:$0xff] }
 0x6ab   : > { %2962 = vmatmul.mubr.f32.gmra.mrb[142].mxu0 %v6580_v3  ;;  %v3248_v3 = vld [vmem:[#allocation9 + $0x160] sm:$0xff]  ;;  %7096 = vmatpush1.bf16.msra.mxu1 %v7095_v0  ;;  %v7179_v8 = vpack.c.bf16 %v3320_v38, %v3314_v47 }
 0x6ac   : > { %v7155_v23 = vpack.c.bf16 %v3248_v3, %v3242_v34  ;;  %7098 = vmatprep.subr.bf16.mxu1 %v7097_v59  ;;  %v3319_v34 = vld [vmem:[#allocation9 + $0x398] sm:$0xff]  ;;  %v3324_v0 = vld [vmem:[#allocation9 + $0x3c0] sm:$0xff]  ;;  %v3326_v59 = vld [vmem:[#allocation9 + $0x3d0] sm:$0xff] }
 0x6ad   : > { %v3315_v3 = vld [vmem:[#allocation9 + $0x378] sm:$0xff]  ;;  %v7113_v44 = vpack.c.bf16 %v3319_v34, %v3313_v27  ;;  %v7183_v15 = vpack.c.bf16 %v3332_v2, %v3326_v59 }
 0x6ae   : > { %7156 = vmatpush1.bf16.msra.mxu0 %v7155_v23  ;;  %v3318_v23 = vld [vmem:[#allocation9 + $0x390] sm:$0xff]  ;;  %v7177_v50 = vpack.c.bf16 %v3321_v14, %v3315_v3 }
 0x6af   : > { %7158 = vmatprep.subr.bf16.mxu0 %v7157_v22  ;;  %7100 = vmatpush1.bf16.msra.mxu1 %v7099_v20  ;;  %v3331_v22 = vld [vmem:[#allocation9 + $0x3f8] sm:$0xff]  ;;  %v7115_v1 = vpack.c.bf16 %v3318_v23, %v3312_v30  ;;  %v7185_v20 = vpack.c.bf16 %v3345_v33, %v3339_v6  ;;  %v8428_v23 = vld [vmem:[%s9132_s11 + $0x48] sm:$0xff] }
 0x6b0   : > { %7102 = vmatprep.subr.bf16.mxu1 %v7101_v16  ;;  %v7117_v11 = vpack.c.bf16 %v3331_v22, %v3325_v45  ;;  %v8419_v16 = vld [vmem:[%s9132_s11] sm:$0xff] }
 0x6b2   : > { %7160 = vmatpush1.bf16.msra.mxu0 %v7159_v19  ;;  %v3330_v19 = vld [vmem:[#allocation9 + $0x3f0] sm:$0xff] }
 0x6b3   : > { %7162 = vmatprep.subr.bf16.mxu0 %v7161_v42  ;;  %7104 = vmatpush1.bf16.msra.mxu1 %v7103_v43  ;;  %v3343_v42 = vld [vmem:[#allocation9 + $0x458] sm:$0xff]  ;;  %v7119_v9 = vpack.c.bf16 %v3330_v19, %v3324_v0  ;;  %v3338_v0 = vld [vmem:[#allocation9 + $0x430] sm:$0xff] }
 0x6b4   : > { %7106 = vmatprep.subr.bf16.mxu1 %v7105_v10  ;;  %v7121_v28 = vpack.c.bf16 %v3343_v42, %v3337_v56  ;;  %v8430_v19 = vld [vmem:[%s9132_s11 + $0x58] sm:$0xff]  ;;  %v3344_v56 = vld [vmem:[#allocation9 + $0x460] sm:$0xff] }
 0x6b5   : > { %v7187_v6 = vpack.c.bf16 %v3344_v56, %v3338_v0  ;;  %v3373_v0 = vld [vmem:[#allocation9 + $0x548] sm:$0xff] }
 0x6b6   : > { %7164 = vmatpush1.bf16.msra.mxu0 %v7163_v61 }
 0x6b7   : > { %7166 = vmatprep.subr.bf16.mxu0 %v7165_v7  ;;  %7108 = vmatpush1.bf16.msra.mxu1 %v7107_v37 }
 0x6b8   : > { %7110 = vmatprep.subr.bf16.mxu1 %v7109_v49 }
 0x6ba   : > { %7168 = vmatpush1.bf16.msra.mxu0 %v7167_v39  ;;  %v8422_v39 = vld [vmem:[%s9132_s11 + $0x18] sm:$0xff] }
 0x6bb   : > { %7170 = vmatprep.subr.bf16.mxu0 %v7169_v5  ;;  %7112 = vmatpush1.bf16.msra.mxu1 %v7111_v4 }
 0x6bc   : > { %7114 = vmatprep.subr.bf16.mxu1 %v7113_v44 }
 0x6be   : > { %7172 = vmatpush1.bf16.msra.mxu0 %v7171_v31 }
 0x6bf   : > { %7174 = vmatprep.subr.bf16.mxu0 %v7173_v53  ;;  %7116 = vmatpush1.bf16.msra.mxu1 %v7115_v1 }
 0x6c0   : > { %7118 = vmatprep.subr.bf16.mxu1 %v7117_v11  ;;  %v3342_v11 = vld [vmem:[#allocation9 + $0x450] sm:$0xff] }
 0x6c2   : > { %7176 = vmatpush1.bf16.msra.mxu0 %v7175_v18  ;;  %v8427_v18 = vld [vmem:[%s9132_s11 + $0x40] sm:$0xff] }
 0x6c3   : > { %7178 = vmatprep.subr.bf16.mxu0 %v7177_v50  ;;  %7120 = vmatpush1.bf16.msra.mxu1 %v7119_v9 }
 0x6c4   : > { %7122 = vmatprep.subr.bf16.mxu1 %v7121_v28  ;;  %v3355_v28 = vld [vmem:[#allocation9 + $0x4b8] sm:$0xff] }
 0x6c6   : > { %7180 = vmatpush1.bf16.msra.mxu0 %v7179_v8  ;;  %v3336_v8 = vld [vmem:[#allocation9 + $0x420] sm:$0xff] }
 0x6c7   : > { %7182 = vmatprep.subr.bf16.mxu0 %v7181_v51  ;;  %v7123_v2 = vpack.c.bf16 %v3342_v11, %v3336_v8 }
 0x6c9   : > { %7124 = vmatpush1.bf16.msra.mxu1 %v7123_v2  ;;  %v8435_v2 = vld [vmem:[%s9132_s11 + $0x80] sm:$0xff] }
 0x6ca   : > { %7184 = vmatpush1.bf16.msra.mxu0 %v7183_v15  ;;  %v3349_v15 = vld [vmem:[#allocation9 + $0x488] sm:$0xff] }
 0x6cb   : > { %7186 = vmatprep.subr.bf16.mxu0 %v7185_v20  ;;  %v3351_v20 = vld [vmem:[#allocation9 + $0x498] sm:$0xff] }
 0x6ce   : > { %7188 = vmatpush1.bf16.msra.mxu0 %v7187_v6 }
 0x742   : > { %v2873_v61 = vpop.f32.mrb[112].mxu0 }
 0x743   : > { %v10548_v62 = vadd.f32 %v8419_v16, %v2873_v61  ;;  %v2875_v12 = vpop.f32.mrb[113].mxu0  ;;  %v8431_v61 = vld [vmem:[%s9132_s11 + $0x60] sm:$0xff] }
 0x744   : > { %v10551_v7 = vadd.f32 %v8420_v29, %v2875_v12  ;;  %v7125_v29 = vpack.c.bf16 %v3355_v28, %v3349_v15  ;;  %v3378_v15 = vld [vmem:[#allocation9 + $0x570] sm:$0xff]  ;;  %v8436_v28 = vld [vmem:[%s9132_s11 + $0x88] sm:$0xff] }
 0x745   : > { %12552 = vst [vmem:[#allocation52_spill] sm:$0xff] %v10548_v62  ;;  %v3000_v24 = vmul.f32 %v10548_v62, %v10548_v62 }
 0x746   : > { %12553 = vst [vmem:[#allocation53_spill] sm:$0xff] %v10551_v7  ;;  %v3001_v48 = vmul.f32 %v10551_v7, %v10551_v7  ;;  %v2879_v36 = vpop.f32.mrb[114].mxu0  ;;  %7126 = vmatprep.subr.bf16.mxu1 %v7125_v29 }
 0x747   : > { %v10558_v25 = vadd.f32 %v8421_v41, %v2879_v36  ;;  %v2881_v43 = vpop.f32.mrb[115].mxu0  ;;  %v3354_v36 = vld [vmem:[#allocation9 + $0x4b0] sm:$0xff]  ;;  %v8432_v41 = vld [vmem:[%s9132_s11 + $0x68] sm:$0xff] }
 0x748   : > { %v10561_v10 = vadd.f32 %v8422_v39, %v2881_v43  ;;  %v3032_v58 = vadd.f32 %v3001_v48, %v3000_v24  ;;  %v3357_v24 = vld [vmem:[#allocation9 + $0x4c8] sm:$0xff]  ;;  %v3348_v48 = vld [vmem:[#allocation9 + $0x480] sm:$0xff] }
 0x749   : > { %12554 = vst [vmem:[#allocation55_spill] sm:$0xff] %v10558_v25  ;;  %v3002_v35 = vmul.f32 %v10558_v25, %v10558_v25 }
 0x74a   : > { %12555 = vst [vmem:[#allocation50_spill] sm:$0xff] %v10561_v10  ;;  %v3003_v54 = vmul.f32 %v10561_v10, %v10561_v10  ;;  %3033 = vadd.xlane.f32.xlu0 %v3032_v58  ;;  %v2885_v5 = vpop.f32.mrb[116].mxu0  ;;  %v7189_v58 = vpack.c.bf16 %v3357_v24, %v3351_v20  ;;  %v3374_v24 = vld [vmem:[#allocation9 + $0x550] sm:$0xff] }
 0x74b   : > { %v10568_v26 = vadd.f32 %v8423_v13, %v2885_v5  ;;  %v2887_v52 = vpop.f32.mrb[117].mxu0  ;;  %v3356_v5 = vld [vmem:[#allocation9 + $0x4c0] sm:$0xff] }
 0x74c   : > { %v10571_v55 = vadd.f32 %v8424_v32, %v2887_v52  ;;  %v3035_v37 = vadd.f32 %v3003_v54, %v3002_v35  ;;  %v7127_v35 = vpack.c.bf16 %v3354_v36, %v3348_v48  ;;  %v3350_v54 = vld [vmem:[#allocation9 + $0x490] sm:$0xff]  ;;  %7190 = vmatprep.subr.bf16.mxu0 %v7189_v58  ;;  %v3380_v48 = vld [vmem:[#allocation9 + $0x580] sm:$0xff] }
 0x74d   : > { %12556 = vst [vmem:[#allocation27_spill] sm:$0xff] %v10568_v26  ;;  %v3004_v31 = vmul.f32 %v10568_v26, %v10568_v26  ;;  %v7191_v52 = vpack.c.bf16 %v3356_v5, %v3350_v54  ;;  %v3391_v54 = vld [vmem:[#allocation9 + $0x5d8] sm:$0xff] }
 0x74e   : > { %12557 = vst [vmem:[#allocation29_spill] sm:$0xff] %v10571_v55  ;;  %v3005_v49 = vmul.f32 %v10571_v55, %v10571_v55  ;;  %3036 = vadd.xlane.f32.xlu1 %v3035_v37  ;;  %v2891_v57 = vpop.f32.mrb[118].mxu0  ;;  %7128 = vmatpush1.bf16.msra.mxu1 %v7127_v35  ;;  %v3385_v35 = vld [vmem:[#allocation9 + $0x5a8] sm:$0xff]  ;;  %v3387_v5 = vld [vmem:[#allocation9 + $0x5b8] sm:$0xff] }
 0x74f   : > { %v10578_v21 = vadd.f32 %v8425_v46, %v2891_v57  ;;  %v2893_v53 = vpop.f32.mrb[119].mxu0  ;;  %v3363_v57 = vld [vmem:[#allocation9 + $0x4f8] sm:$0xff]  ;;  %v8433_v46 = vld [vmem:[%s9132_s11 + $0x70] sm:$0xff]  ;;  %7192 = vmatpush1.bf16.msra.mxu0 %v7191_v52 }
 0x750   : > { %v10581_v27 = vadd.f32 %v8426_v60, %v2893_v53  ;;  %v3038_v34 = vadd.f32 %v3005_v49, %v3004_v31  ;;  %v3361_v31 = vld [vmem:[#allocation9 + $0x4e8] sm:$0xff]  ;;  %v3367_v49 = vld [vmem:[#allocation9 + $0x518] sm:$0xff] }
 0x751   : > { %12558 = vst [vmem:[#allocation31_spill] sm:$0xff] %v10578_v21  ;;  %v3006_v3 = vmul.f32 %v10578_v21, %v10578_v21 }
 0x752   : > { %12559 = vst [vmem:[#allocation35_spill] sm:$0xff] %v10581_v27  ;;  %v3007_v14 = vmul.f32 %v10581_v27, %v10581_v27  ;;  %3039 = vadd.xlane.f32.xlu0 %v3038_v34  ;;  %v2897_v4 = vpop.f32.mrb[120].mxu0  ;;  %v7129_v34 = vpack.c.bf16 %v3367_v49, %v3361_v31  ;;  %v3393_v31 = vld [vmem:[#allocation9 + $0x5e8] sm:$0xff]  ;;  %v3384_v49 = vld [vmem:[#allocation9 + $0x5a0] sm:$0xff] }
 0x753   : > { %v10588_v44 = vadd.f32 %v8427_v18, %v2897_v4  ;;  %v2899_v30 = vpop.f32.mrb[121].mxu0  ;;  %v3366_v4 = vld [vmem:[#allocation9 + $0x510] sm:$0xff]  ;;  %v8434_v18 = vld [vmem:[%s9132_s11 + $0x78] sm:$0xff] }
 0x754   : > { %v10591_v47 = vadd.f32 %v8428_v23, %v2899_v30  ;;  %v3041_v50 = vadd.f32 %v3007_v14, %v3006_v3  ;;  %v3369_v3 = vld [vmem:[#allocation9 + $0x528] sm:$0xff]  ;;  %v3360_v14 = vld [vmem:[#allocation9 + $0x4e0] sm:$0xff]  ;;  %7130 = vmatprep.subr.bf16.mxu1 %v7129_v34 }
 0x755   : > { %12560 = vst [vmem:[#allocation38_spill] sm:$0xff] %v10588_v44  ;;  %v3008_v38 = vmul.f32 %v10588_v44, %v10588_v44 }
 0x756   : > { %12561 = vst [vmem:[#allocation54_spill] sm:$0xff] %v10591_v47  ;;  %v3009_v45 = vmul.f32 %v10591_v47, %v10591_v47  ;;  %3042 = vadd.xlane.f32.xlu1 %v3041_v50  ;;  %v2903_v22 = vpop.f32.mrb[122].mxu0  ;;  %v7193_v50 = vpack.c.bf16 %v3369_v3, %v3363_v57  ;;  %v3390_v57 = vld [vmem:[#allocation9 + $0x5d0] sm:$0xff]  ;;  %v7201_v3 = vpack.c.bf16 %v3393_v31, %v3387_v5 }
 0x757   : > { %v10598_v17 = vadd.f32 %v8429_v63, %v2903_v22  ;;  %v2905_v1 = vpop.f32.mrb[123].mxu0  ;;  %v3368_v22 = vld [vmem:[#allocation9 + $0x520] sm:$0xff] }
 0x758   : > { %v10601_v59 = vadd.f32 %v8430_v19, %v2905_v1  ;;  %v3044_v51 = vadd.f32 %v3009_v45, %v3008_v38  ;;  %v7131_v38 = vpack.c.bf16 %v3366_v4, %v3360_v14  ;;  %v3362_v45 = vld [vmem:[#allocation9 + $0x4f0] sm:$0xff]  ;;  %7194 = vmatprep.subr.bf16.mxu0 %v7193_v50  ;;  %v3379_v19 = vld [vmem:[#allocation9 + $0x578] sm:$0xff]  ;;  %v7139_v14 = vpack.c.bf16 %v3390_v57, %v3384_v49 }
 0x759   : > { %12562 = vst [vmem:[#allocation56_spill] sm:$0xff] %v10598_v17  ;;  %v3010_v42 = vmul.f32 %v10598_v17, %v10598_v17  ;;  %v7195_v1 = vpack.c.bf16 %v3368_v22, %v3362_v45  ;;  %v7133_v6 = vpack.c.bf16 %v3379_v19, %v3373_v0  ;;  %v3386_v4 = vld [vmem:[#allocation9 + $0x5b0] sm:$0xff]  ;;  %v3209_v22 = vld [vmem:[#allocation9 + $0x28] sm:$0xff] }
 0x75a   : > { %12563 = vst [vmem:[#allocation51_spill] sm:$0xff] %v10601_v59  ;;  %v3011_v33 = vmul.f32 %v10601_v59, %v10601_v59  ;;  %3045 = vadd.xlane.f32.xlu0 %v3044_v51  ;;  %v2909_v9 = vpop.f32.mrb[124].mxu0  ;;  %v3375_v51 = vld [vmem:[#allocation9 + $0x558] sm:$0xff]  ;;  %7132 = vmatpush1.bf16.msra.mxu1 %v7131_v38 }
 0x75b   : > { %v10608_v16 = vadd.f32 %v8431_v61, %v2909_v9  ;;  %v2911_v12 = vpop.f32.mrb[125].mxu0  ;;  %7196 = vmatpush1.bf16.msra.mxu0 %v7195_v1  ;;  %v3372_v9 = vld [vmem:[#allocation9 + $0x540] sm:$0xff]  ;;  %7134 = vmatprep.subr.bf16.mxu1 %v7133_v6  ;;  %v3880_v1 = vld [vmem:[#allocation12 + $0x8] sm:$0xff] }
 0x75c   : > { %v10611_v43 = vadd.f32 %v8432_v41, %v2911_v12  ;;  %v3047_v39 = vadd.f32 %v3011_v33, %v3010_v42  ;;  %v3381_v33 = vld [vmem:[#allocation9 + $0x588] sm:$0xff]  ;;  %v7135_v29 = vpack.c.bf16 %v3378_v15, %v3372_v9  ;;  %v7199_v41 = vpack.c.bf16 %v3380_v48, %v3374_v24  ;;  %v8442_v24 = vld [vmem:[%s9132_s11 + $0xb8] sm:$0xff] }
 0x75d   : > { %12564 = vst [vmem:[#allocation25_spill] sm:$0xff] %v10608_v16  ;;  %v3012_v13 = vmul.f32 %v10608_v16, %v10608_v16  ;;  %v7197_v12 = vpack.c.bf16 %v3381_v33, %v3375_v51  ;;  %v3886_v51 = vld [vmem:[#allocation12 + $0x38] sm:$0xff] }
 0x75e   : > { %12565 = vst [vmem:[#allocation62_spill] sm:$0xff] %v10611_v43  ;;  %v3013_v32 = vmul.f32 %v10611_v43, %v10611_v43  ;;  %3048 = vadd.xlane.f32.xlu1 %v3047_v39  ;;  %v2915_v37 = vpop.f32.mrb[126].mxu0  ;;  %7136 = vmatpush1.bf16.msra.mxu1 %v7135_v29  ;;  %v7269_v33 = vpack.c.bf16 %v3886_v51, %v3880_v1  ;;  %v8448_v1 = vld [vmem:[%s9132_s11 + $0xe8] sm:$0xff] }
 0x75f   : > { %v10618_v53 = vadd.f32 %v8433_v46, %v2915_v37  ;;  %v2917_v60 = vpop.f32.mrb[127].mxu0  ;;  %7198 = vmatprep.subr.bf16.mxu0 %v7197_v12  ;;  %v7137_v37 = vpack.c.bf16 %v3391_v54, %v3385_v35  ;;  %v8438_v46 = vld [vmem:[%s9132_s11 + $0x98] sm:$0xff]  ;;  %v8443_v35 = vld [vmem:[%s9132_s11 + $0xc0] sm:$0xff] }
 0x760   : > { %v10621_v30 = vadd.f32 %v8434_v18, %v2917_v60  ;;  %v3050_v23 = vadd.f32 %v3013_v32, %v3012_v13  ;;  %v8437_v13 = vld [vmem:[%s9132_s11 + $0x90] sm:$0xff]  ;;  %7200 = vmatpush1.bf16.msra.mxu0 %v7199_v41  ;;  %v3392_v18 = vld [vmem:[#allocation9 + $0x5e0] sm:$0xff] }
 0x761   : > { %12566 = vst [vmem:[#allocation44_spill] sm:$0xff] %v10618_v53  ;;  %v3014_v63 = vmul.f32 %v10618_v53, %v10618_v53  ;;  %7138 = vmatprep.subr.bf16.mxu1 %v7137_v37  ;;  %v7203_v50 = vpack.c.bf16 %v3392_v18, %v3386_v4  ;;  %7202 = vmatprep.subr.bf16.mxu0 %v7201_v3 }
 0x762   : > { %12567 = vst [vmem:[#allocation46_spill] sm:$0xff] %v10621_v30  ;;  %v3015_v8 = vmul.f32 %v10621_v30, %v10621_v30  ;;  %3051 = vadd.xlane.f32.xlu0 %v3050_v23  ;;  %v2921_v11 = vpop.f32.mrb[128].mxu0  ;;  %7140 = vmatpush1.bf16.msra.mxu1 %v7139_v14  ;;  %v8446_v14 = vld [vmem:[%s9132_s11 + $0xd8] sm:$0xff] }
 0x763   : > { %v10628_v56 = vadd.f32 %v8435_v2, %v2921_v11  ;;  %v2923_v42 = vpop.f32.mrb[129].mxu0  ;;  %v8440_v2 = vld [vmem:[%s9132_s11 + $0xa8] sm:$0xff] }
 0x764   : > { %v10631_v20 = vadd.f32 %v8436_v28, %v2923_v42  ;;  %v3053_v61 = vadd.f32 %v3015_v8, %v3014_v63  ;;  %v3215_v63 = vld [vmem:[#allocation9 + $0x58] sm:$0xff]  ;;  %v8439_v8 = vld [vmem:[%s9132_s11 + $0xa0] sm:$0xff]  ;;  %7204 = vmatpush1.bf16.msra.mxu0 %v7203_v50 }
 0x765   : > { %12568 = vst [vmem:[#allocation65_spill] sm:$0xff] %v10628_v56  ;;  %v3016_v36 = vmul.f32 %v10628_v56, %v10628_v56  ;;  %v7205_v19 = vpack.c.bf16 %v3215_v63, %v3209_v22  ;;  %7270 = vmatprep.subr.bf16.mxu0 %v7269_v33 }
 0x766   : > { %12569 = vst [vmem:[#allocation26_spill] sm:$0xff] %v10631_v20  ;;  %v3017_v39 = vmul.f32 %v10631_v20, %v10631_v20  ;;  %3054 = vadd.xlane.f32.xlu1 %v3053_v61  ;;  %v2927_v58 = vpop.f32.mrb[130].mxu0  ;;  %v8441_v61 = vld [vmem:[%s9132_s11 + $0xb0] sm:$0xff] }
 0x767   : > { %v10638_v52 = vadd.f32 %v8437_v13, %v2927_v58  ;;  %v2929_v32 = vpop.f32.mrb[131].mxu0  ;;  %7206 = vmatprep.subr.bf16.mxu1 %v7205_v19  ;;  %v8444_v13 = vld [vmem:[%s9132_s11 + $0xc8] sm:$0xff] }
 0x768   : > { %v10641_v60 = vadd.f32 %v8438_v46, %v2929_v32  ;;  %v3056_v34 = vadd.f32 %v3017_v39, %v3016_v36  ;;  %v8445_v46 = vld [vmem:[%s9132_s11 + $0xd0] sm:$0xff] }
 0x769   : > { %12570 = vst [vmem:[#allocation68_spill] sm:$0xff] %v10638_v52  ;;  %v3018_v23 = vmul.f32 %v10638_v52, %v10638_v52 }
 0x76a   : > { %12571 = vst [vmem:[#allocation48_spill] sm:$0xff] %v10641_v60  ;;  %v3019_v38 = vmul.f32 %v10641_v60, %v10641_v60  ;;  %3057 = vadd.xlane.f32.xlu0 %v3056_v34  ;;  %v2933_v45 = vpop.f32.mrb[132].mxu0 }
 0x76b   : > { %v10648_v11 = vadd.f32 %v8439_v8, %v2933_v45  ;;  %v2935_v0 = vpop.f32.mrb[133].mxu0  ;;  %v8447_v45 = vld [vmem:[%s9132_s11 + $0xe0] sm:$0xff] }
 0x76c   : > { %v10651_v42 = vadd.f32 %v8440_v2, %v2935_v0  ;;  %v3059_v6 = vadd.f32 %v3019_v38, %v3018_v23 }
 0x76d   : > { %12572 = vst [vmem:[#allocation64_spill] sm:$0xff] %v10648_v11  ;;  %v3020_v9 = vmul.f32 %v10648_v11, %v10648_v11 }
 0x76e   : > { %12573 = vst [vmem:[#allocation69_spill] sm:$0xff] %v10651_v42  ;;  %v3021_v15 = vmul.f32 %v10651_v42, %v10651_v42  ;;  %3060 = vadd.xlane.f32.xlu1 %v3059_v6  ;;  %v2939_v28 = vpop.f32.mrb[134].mxu0  ;;  %v8449_v6 = vld [vmem:[%s9132_s11 + $0xf0] sm:$0xff] }
 0x76f   : > { %v10658_v12 = vadd.f32 %v8441_v61, %v2939_v28  ;;  %v2941_v29 = vpop.f32.mrb[135].mxu0 }
 0x770   : > { %v10661_v48 = vadd.f32 %v8442_v24, %v2941_v29  ;;  %v3062_v36 = vadd.f32 %v3021_v15, %v3020_v9  ;;  %v8450_v15 = vld [vmem:[%s9132_s11 + $0xf8] sm:$0xff]  ;;  %s12904_s11 = sld [smem:[#allocation135_spill]] }
 0x771   : > { %12574 = vst [vmem:[#allocation28_spill] sm:$0xff] %v10658_v12  ;;  %v3022_v41 = vmul.f32 %v10658_v12, %v10658_v12 }
 0x772   : > { %12575 = vst [vmem:[#allocation30_spill] sm:$0xff] %v10661_v48  ;;  %v3023_v39 = vmul.f32 %v10661_v48, %v10661_v48  ;;  %3063 = vadd.xlane.f32.xlu0 %v3062_v36  ;;  %v2945_v58 = vpop.f32.mrb[136].mxu0 }
 0x773   : > { %v10668_v54 = vadd.f32 %v8443_v35, %v2945_v58  ;;  %v2947_v5 = vpop.f32.mrb[137].mxu0 }
 0x774   : > { %v10671_v32 = vadd.f32 %v8444_v13, %v2947_v5  ;;  %v3065_v37 = vadd.f32 %v3023_v39, %v3022_v41 }
 0x775   : > { %12576 = vst [vmem:[#allocation66_spill] sm:$0xff] %v10668_v54  ;;  %v3024_v31 = vmul.f32 %v10668_v54, %v10668_v54 }
 0x776   : > { %12577 = vst [vmem:[#allocation57_spill] sm:$0xff] %v10671_v32  ;;  %v3025_v49 = vmul.f32 %v10671_v32, %v10671_v32  ;;  %3066 = vadd.xlane.f32.xlu1 %v3065_v37  ;;  %v2951_v57 = vpop.f32.mrb[138].mxu0  ;;  %s12200_s20 = scalar_lea.hbm %s12904_s11, %s6340_s26 }
 0x777   : > { %v10678_v34 = vadd.f32 %v8445_v46, %v2951_v57  ;;  %v2953_v3 = vpop.f32.mrb[139].mxu0 }
 0x778   : > { %v10681_v4 = vadd.f32 %v8446_v14, %v2953_v3  ;;  %v3068_v18 = vadd.f32 %v3025_v49, %v3024_v31  ;;  %v3160_v49 = vld [vmem:[%s12584_s18] sm:$0x3]  ;;  %v12585_v14 = vsub.s32 1, %v12543_v40 }
 0x779   : > { %12578 = vst [vmem:[#allocation32_spill] sm:$0xff] %v10678_v34  ;;  %v3026_v23 = vmul.f32 %v10678_v34, %v10678_v34 }
 0x77a   : > { %12579 = vst [vmem:[#allocation33_spill] sm:$0xff] %v10681_v4  ;;  %v3027_v50 = vmul.f32 %v10681_v4, %v10681_v4  ;;  %3069 = vadd.xlane.f32.xlu0 %v3068_v18  ;;  %v2957_v38 = vpop.f32.mrb[140].mxu0  ;;  %v10712_v18 = vrot.slane %v3160_v49, %v12585_v14 }
 0x77b   : > { %v10688_v22 = vadd.f32 %v8447_v45, %v2957_v38  ;;  %v2959_v63 = vpop.f32.mrb[141].mxu0  ;;  %v3208_v38 = vld [vmem:[#allocation9 + $0x20] sm:$0xff]  ;;  %v3214_v45 = vld [vmem:[#allocation9 + $0x50] sm:$0xff] }
 0x77c   : > { %v10691_v8 = vadd.f32 %v8448_v1, %v2959_v63  ;;  %v3071_v0 = vadd.f32 %v3027_v50, %v3026_v23  ;;  %v12586_v23 = vsub.s32 0, %v12543_v40 }
 0x77d   : > { %12580 = vst [vmem:[#allocation34_spill] sm:$0xff] %v10688_v22  ;;  %v3028_v19 = vmul.f32 %v10688_v22, %v10688_v22 }
 0x77e   : > { %12581 = vst [vmem:[#allocation36_spill] sm:$0xff] %v10691_v8  ;;  %v3029_v51 = vmul.f32 %v10691_v8, %v10691_v8  ;;  %3072 = vadd.xlane.f32.xlu1 %v3071_v0  ;;  %v2963_v2 = vpop.f32.mrb[142].mxu0  ;;  %v10716_v50 = vrot.slane %v3160_v49, %v12586_v23  ;;  %v3879_v0 = vld [vmem:[#allocation12] sm:$0xff] }
 0x77f   : > { %v10698_v33 = vadd.f32 %v8449_v6, %v2963_v2  ;;  %v2965_v9 = vpop.f32.mrb[143].mxu0  ;;  %v3891_v49 = vld [vmem:[#allocation12 + $0x60] sm:$0xff] }
 0x780   : > { %v10701_v28 = vadd.f32 %v8450_v15, %v2965_v9  ;;  %v3074_v61 = vadd.f32 %v3029_v51, %v3028_v19  ;;  %v3885_v19 = vld [vmem:[#allocation12 + $0x30] sm:$0xff]  ;;  %v3221_v51 = vld [vmem:[#allocation9 + $0x88] sm:$0xff]  ;;  %v3227_v15 = vld [vmem:[#allocation9 + $0xb8] sm:$0xff] }
 0x781   : > { %12582 = vst [vmem:[#allocation37_spill] sm:$0xff] %v10698_v33  ;;  %v3030_v29 = vmul.f32 %v10698_v33, %v10698_v33 }
 0x782   : > { %12583 = vst [vmem:[#allocation39_spill] sm:$0xff] %v10701_v28  ;;  %v3031_v24 = vmul.f32 %v10701_v28, %v10701_v28  ;;  %3075 = vadd.xlane.f32.xlu0 %v3074_v61  ;;  %v3892_v61 = vld [vmem:[#allocation12 + $0x68] sm:$0xff] }
 0x784   : > { %v3077_v36 = vadd.f32 %v3031_v24, %v3030_v29  ;;  %v3898_v29 = vld [vmem:[#allocation12 + $0x98] sm:$0xff] }
 0x786   : > { %3078 = vadd.xlane.f32.xlu1 %v3077_v36 }
 0x7d7   : > { %v3034_v41 = vpop.xlane.xlu0 %3033 }
 0x7d8   : > { %v3080_v39 = vmul.f32 0.00390625, %v3034_v41  ;;  %v7207_v41 = vpack.c.bf16 %v3214_v45, %v3208_v38  ;;  %v3239_v38 = vld [vmem:[#allocation9 + $0x118] sm:$0xff]  ;;  %v3904_v45 = vld [vmem:[#allocation12 + $0xc8] sm:$0xff] }
 0x7da   : > { %v3096_v58 = vadd.f32 1e-05, %v3080_v39  ;;  %v7271_v39 = vpack.c.bf16 %v3885_v19, %v3879_v0 }
 0x7db   : > { %v3037_v35 = vpop.xlane.xlu1 %3036 }
 0x7dc   : > { %8003 = vrsqrt.f32 %v3096_v58  ;;  %v3081_v5 = vmul.f32 0.00390625, %v3037_v35  ;;  %v3220_v58 = vld [vmem:[#allocation9 + $0x80] sm:$0xff]  ;;  %v3226_v35 = vld [vmem:[#allocation9 + $0xb0] sm:$0xff] }
 0x7dd   : > { %v7211_v0 = vpack.c.bf16 %v3226_v35, %v3220_v58  ;;  %v3245_v58 = vld [vmem:[#allocation9 + $0x148] sm:$0xff] }
 0x7de   : > { %v3097_v13 = vadd.f32 1e-05, %v3081_v5 }
 0x7df   : > { %v3040_v37 = vpop.xlane.xlu0 %3039 }
 0x7e0   : > { %8005 = vrsqrt.f32 %v3097_v13  ;;  %v3082_v31 = vmul.f32 0.00390625, %v3040_v37  ;;  %v7209_v37 = vpack.c.bf16 %v3227_v15, %v3221_v51 }
 0x7e2   : > { %v3098_v57 = vadd.f32 1e-05, %v3082_v31  ;;  %v7273_v31 = vpack.c.bf16 %v3898_v29, %v3892_v61 }
 0x7e3   : > { %v3043_v46 = vpop.xlane.xlu1 %3042 }
 0x7e4   : > { %8007 = vrsqrt.f32 %v3098_v57  ;;  %v3083_v3 = vmul.f32 0.00390625, %v3043_v46  ;;  %v3897_v57 = vld [vmem:[#allocation12 + $0x90] sm:$0xff]  ;;  %v3233_v46 = vld [vmem:[#allocation9 + $0xe8] sm:$0xff] }
 0x7e5   : > { %v7213_v29 = vpack.c.bf16 %v3239_v38, %v3233_v46  ;;  %v3244_v38 = vld [vmem:[#allocation9 + $0x140] sm:$0xff] }
 0x7e6   : > { %v8004_v63 = vpop.eup %8003  ;;  %v3099_v1 = vadd.f32 1e-05, %v3083_v3 }
 0x7e7   : > { %v3128_v2 = vmul.f32 %v8004_v63, %v10548_v62  ;;  %v3129_v6 = vmul.f32 %v8004_v63, %v10551_v7  ;;  %v3046_v9 = vpop.xlane.xlu0 %3045  ;;  %v3910_v63 = vld [vmem:[#allocation12 + $0xf8] sm:$0xff] }
 0x7e8   : > { %8009 = vrsqrt.f32 %v3099_v1  ;;  %v3084_v24 = vmul.f32 0.00390625, %v3046_v9  ;;  %v3238_v9 = vld [vmem:[#allocation9 + $0x110] sm:$0xff] }
 0x7e9   : > { %v10721_v40 = vmul.f32 %v10716_v50, %v3128_v2  ;;  %v10724_v36 = vmul.f32 %v10712_v18, %v3129_v6  ;;  %v7275_v2 = vpack.c.bf16 %v3897_v57, %v3891_v49  ;;  %v3232_v6 = vld [vmem:[#allocation9 + $0xe0] sm:$0xff]  ;;  %v3916_v49 = vld [vmem:[#allocation12 + $0x128] sm:$0xff]  ;;  %v3922_v57 = vld [vmem:[#allocation12 + $0x158] sm:$0xff] }
 0x7ea   : > { %v8006_v5 = vpop.eup %8005  ;;  %v3100_v13 = vadd.f32 1e-05, %v3084_v24  ;;  %v7277_v24 = vpack.c.bf16 %v3910_v63, %v3904_v45  ;;  %v3250_v45 = vld [vmem:[#allocation9 + $0x170] sm:$0xff] }
 0x7eb   : > { %v3130_v3 = vmul.f32 %v8006_v5, %v10558_v25  ;;  %v3131_v14 = vmul.f32 %v8006_v5, %v10561_v10  ;;  %v3049_v23 = vpop.xlane.xlu1 %3048  ;;  %3460 = vmatprep.mubr.f32.mxu1 %v10724_v36  ;;  %3621 = vmatprep.mubr.f32.mxu0 %v10724_v36  ;;  %v3903_v5 = vld [vmem:[#allocation12 + $0xc0] sm:$0xff] }
 0x7ec   : > { %8011 = vrsqrt.f32 %v3100_v13  ;;  %v3085_v1 = vmul.f32 0.00390625, %v3049_v23  ;;  %3461 = vmatmul.mubr.f32.vlgmr.msra.gmra.mrb[48].mxu1 %v10721_v40  ;;  %3622 = vmatmul.mubr.f32.vlgmr.msra.gmra.mrb[144].mxu0 %v10721_v40  ;;  %v3909_v13 = vld [vmem:[#allocation12 + $0xf0] sm:$0xff] }
 0x7ed   : > { %v10733_v19 = vmul.f32 %v10716_v50, %v3130_v3  ;;  %v10736_v51 = vmul.f32 %v10712_v18, %v3131_v14  ;;  %7208 = vmatpush1.bf16.msra.mxu1 %v7207_v41  ;;  %7272 = vmatpush1.bf16.msra.mxu0 %v7271_v39  ;;  %v3251_v39 = vld [vmem:[#allocation9 + $0x178] sm:$0xff]  ;;  %v7279_v23 = vpack.c.bf16 %v3909_v13, %v3903_v5 }
 0x7ee   : > { %v8008_v15 = vpop.eup %8007  ;;  %v3101_v61 = vadd.f32 1e-05, %v3085_v1  ;;  %7210 = vmatprep.subr.bf16.mxu1 %v7209_v37  ;;  %7274 = vmatprep.subr.bf16.mxu0 %v7273_v31  ;;  %v7215_v31 = vpack.c.bf16 %v3238_v9, %v3232_v6  ;;  %v3257_v6 = vld [vmem:[#allocation9 + $0x1a8] sm:$0xff]  ;;  %v3934_v5 = vld [vmem:[#allocation12 + $0x1b8] sm:$0xff] }
 0x7ef   : > { %v3132_v35 = vmul.f32 %v8008_v15, %v10568_v26  ;;  %v3133_v3 = vmul.f32 %v8008_v15, %v10571_v55  ;;  %3466 = vmatprep.mubr.f32.mxu1 %v10736_v51  ;;  %3627 = vmatprep.mubr.f32.mxu0 %v10736_v51  ;;  %v3052_v41 = vpop.xlane.xlu0 %3051  ;;  %v7217_v15 = vpack.c.bf16 %v3251_v39, %v3245_v58  ;;  %v3921_v55 = vld [vmem:[#allocation12 + $0x150] sm:$0xff] }
 0x7f0   : > { %8013 = vrsqrt.f32 %v3101_v61  ;;  %v3086_v37 = vmul.f32 0.00390625, %v3052_v41  ;;  %3467 = vmatmul.mubr.f32.gmra.mrb[50].mxu1 %v10733_v19  ;;  %3628 = vmatmul.mubr.f32.gmra.mrb[146].mxu0 %v10733_v19  ;;  %v7281_v61 = vpack.c.bf16 %v3922_v57, %v3916_v49  ;;  %v3915_v41 = vld [vmem:[#allocation12 + $0x120] sm:$0xff]  ;;  %v3262_v57 = vld [vmem:[#allocation9 + $0x1d0] sm:$0xff] }
 0x7f1   : > { %v10745_v46 = vmul.f32 %v10716_v50, %v3132_v35  ;;  %v10748_v14 = vmul.f32 %v10712_v18, %v3133_v3  ;;  %7212 = vmatpush1.bf16.msra.mxu1 %v7211_v0  ;;  %7276 = vmatpush1.bf16.msra.mxu0 %v7275_v2  ;;  %v3263_v0 = vld [vmem:[#allocation9 + $0x1d8] sm:$0xff]  ;;  %v3928_v2 = vld [vmem:[#allocation12 + $0x188] sm:$0xff]  ;;  %v7283_v39 = vpack.c.bf16 %v3921_v55, %v3915_v41  ;;  %v3256_v49 = vld [vmem:[#allocation9 + $0x1a0] sm:$0xff] }
 0x7f2   : > { %v8010_v63 = vpop.eup %8009  ;;  %v3102_v1 = vadd.f32 1e-05, %v3086_v37  ;;  %7214 = vmatprep.subr.bf16.mxu1 %v7213_v29  ;;  %7278 = vmatprep.subr.bf16.mxu0 %v7277_v24  ;;  %v7219_v24 = vpack.c.bf16 %v3250_v45, %v3244_v38  ;;  %v3269_v38 = vld [vmem:[#allocation9 + $0x208] sm:$0xff]  ;;  %v3946_v41 = vld [vmem:[#allocation12 + $0x218] sm:$0xff] }
 0x7f3   : > { %v3134_v9 = vmul.f32 %v8010_v63, %v10578_v21  ;;  %v3135_v35 = vmul.f32 %v8010_v63, %v10581_v27  ;;  %v3055_v3 = vpop.xlane.xlu1 %3054  ;;  %3472 = vmatprep.mubr.f32.mxu1 %v10748_v14  ;;  %3633 = vmatprep.mubr.f32.mxu0 %v10748_v14  ;;  %v3927_v27 = vld [vmem:[#allocation12 + $0x180] sm:$0xff]  ;;  %v3933_v21 = vld [vmem:[#allocation12 + $0x1b0] sm:$0xff] }
 0x7f4   : > { %8015 = vrsqrt.f32 %v3102_v1  ;;  %v3087_v29 = vmul.f32 0.00390625, %v3055_v3  ;;  %3473 = vmatmul.mubr.f32.gmra.mrb[52].mxu1 %v10745_v46  ;;  %3634 = vmatmul.mubr.f32.gmra.mrb[148].mxu0 %v10745_v46  ;;  %v7221_v1 = vpack.c.bf16 %v3263_v0, %v3257_v6  ;;  %v7285_v3 = vpack.c.bf16 %v3934_v5, %v3928_v2  ;;  %v3268_v2 = vld [vmem:[#allocation9 + $0x200] sm:$0xff]  ;;  %v3274_v5 = vld [vmem:[#allocation9 + $0x230] sm:$0xff] }
 0x7f5   : > { %v10757_v13 = vmul.f32 %v10716_v50, %v3134_v9  ;;  %v10760_v58 = vmul.f32 %v10712_v18, %v3135_v35  ;;  %7216 = vmatpush1.bf16.msra.mxu1 %v7215_v31  ;;  %7280 = vmatpush1.bf16.msra.mxu0 %v7279_v23  ;;  %v3275_v31 = vld [vmem:[#allocation9 + $0x238] sm:$0xff]  ;;  %v3940_v23 = vld [vmem:[#allocation12 + $0x1e8] sm:$0xff]  ;;  %v7287_v0 = vpack.c.bf16 %v3933_v21, %v3927_v27 }
 0x7f6   : > { %v8012_v37 = vpop.eup %8011  ;;  %v3103_v63 = vadd.f32 1e-05, %v3087_v29  ;;  %7218 = vmatprep.subr.bf16.mxu1 %v7217_v15  ;;  %7282 = vmatprep.subr.bf16.mxu0 %v7281_v61  ;;  %v7223_v61 = vpack.c.bf16 %v3262_v57, %v3256_v49  ;;  %v3281_v49 = vld [vmem:[#allocation9 + $0x268] sm:$0xff]  ;;  %v3287_v21 = vld [vmem:[#allocation9 + $0x298] sm:$0xff] }
 0x7f7   : > { %v3136_v45 = vmul.f32 %v8012_v37, %v10588_v44  ;;  %v3137_v9 = vmul.f32 %v8012_v37, %v10591_v47  ;;  %3478 = vmatprep.mubr.f32.mxu1 %v10760_v58  ;;  %3639 = vmatprep.mubr.f32.mxu0 %v10760_v58  ;;  %v3058_v55 = vpop.xlane.xlu0 %3057  ;;  %v3939_v47 = vld [vmem:[#allocation12 + $0x1e0] sm:$0xff]  ;;  %v3945_v44 = vld [vmem:[#allocation12 + $0x210] sm:$0xff]  ;;  %v3952_v27 = vld [vmem:[#allocation12 + $0x248] sm:$0xff] }
 0x7f8   : > { %8017 = vrsqrt.f32 %v3103_v63  ;;  %v3088_v15 = vmul.f32 0.00390625, %v3058_v55  ;;  %3479 = vmatmul.mubr.f32.gmra.mrb[54].mxu1 %v10757_v13  ;;  %3640 = vmatmul.mubr.f32.gmra.mrb[150].mxu0 %v10757_v13  ;;  %v7225_v63 = vpack.c.bf16 %v3275_v31, %v3269_v38  ;;  %v7289_v55 = vpack.c.bf16 %v3946_v41, %v3940_v23  ;;  %v3280_v23 = vld [vmem:[#allocation9 + $0x260] sm:$0xff]  ;;  %v3286_v41 = vld [vmem:[#allocation9 + $0x290] sm:$0xff] }
 0x7f9   : > { %v10769_v6 = vmul.f32 %v10716_v50, %v3136_v45  ;;  %v10772_v35 = vmul.f32 %v10712_v18, %v3137_v9  ;;  %7220 = vmatpush1.bf16.msra.mxu1 %v7219_v24  ;;  %7284 = vmatpush1.bf16.msra.mxu0 %v7283_v39  ;;  %v3958_v24 = vld [vmem:[#allocation12 + $0x278] sm:$0xff]  ;;  %v7291_v31 = vpack.c.bf16 %v3945_v44, %v3939_v47 }
 0x7fa   : > { %v8014_v29 = vpop.eup %8013  ;;  %v3104_v37 = vadd.f32 1e-05, %v3088_v15  ;;  %7222 = vmatprep.subr.bf16.mxu1 %v7221_v1  ;;  %7286 = vmatprep.subr.bf16.mxu0 %v7285_v3  ;;  %v7227_v1 = vpack.c.bf16 %v3274_v5, %v3268_v2  ;;  %v3293_v2 = vld [vmem:[#allocation9 + $0x2c8] sm:$0xff]  ;;  %v3299_v47 = vld [vmem:[#allocation9 + $0x2f8] sm:$0xff] }
 0x7fb   : > { %v3138_v57 = vmul.f32 %v8014_v29, %v10598_v17  ;;  %v3139_v45 = vmul.f32 %v8014_v29, %v10601_v59  ;;  %v3061_v9 = vpop.xlane.xlu1 %3060  ;;  %3484 = vmatprep.mubr.f32.mxu1 %v10772_v35  ;;  %3645 = vmatprep.mubr.f32.mxu0 %v10772_v35  ;;  %v3951_v59 = vld [vmem:[#allocation12 + $0x240] sm:$0xff]  ;;  %v3957_v17 = vld [vmem:[#allocation12 + $0x270] sm:$0xff] }
 0x7fc   : > { %8019 = vrsqrt.f32 %v3104_v37  ;;  %v3089_v39 = vmul.f32 0.00390625, %v3061_v9  ;;  %3485 = vmatmul.mubr.f32.gmra.mrb[56].mxu1 %v10769_v6  ;;  %3646 = vmatmul.mubr.f32.gmra.mrb[152].mxu0 %v10769_v6  ;;  %v7229_v37 = vpack.c.bf16 %v3287_v21, %v3281_v49  ;;  %v7293_v9 = vpack.c.bf16 %v3958_v24, %v3952_v27  ;;  %v3292_v27 = vld [vmem:[#allocation9 + $0x2c0] sm:$0xff]  ;;  %v3298_v24 = vld [vmem:[#allocation9 + $0x2f0] sm:$0xff] }
 0x7fd   : > { %v10781_v3 = vmul.f32 %v10716_v50, %v3138_v57  ;;  %v10784_v38 = vmul.f32 %v10712_v18, %v3139_v45  ;;  %7224 = vmatpush1.bf16.msra.mxu1 %v7223_v61  ;;  %7288 = vmatpush1.bf16.msra.mxu0 %v7287_v0  ;;  %v3964_v61 = vld [vmem:[#allocation12 + $0x2a8] sm:$0xff]  ;;  %v3970_v0 = vld [vmem:[#allocation12 + $0x2d8] sm:$0xff]  ;;  %v7295_v21 = vpack.c.bf16 %v3957_v17, %v3951_v59 }
 0x7fe   : > { %v8016_v15 = vpop.eup %8015  ;;  %v3105_v29 = vadd.f32 1e-05, %v3089_v39  ;;  %7226 = vmatprep.subr.bf16.mxu1 %v7225_v63  ;;  %7290 = vmatprep.subr.bf16.mxu0 %v7289_v55  ;;  %v7231_v55 = vpack.c.bf16 %v3286_v41, %v3280_v23  ;;  %v3305_v23 = vld [vmem:[#allocation9 + $0x328] sm:$0xff]  ;;  %v3311_v17 = vld [vmem:[#allocation9 + $0x358] sm:$0xff] }
 0x7ff   : > { %v3140_v5 = vmul.f32 %v8016_v15, %v10608_v16  ;;  %v3141_v57 = vmul.f32 %v8016_v15, %v10611_v43  ;;  %3490 = vmatprep.mubr.f32.mxu1 %v10784_v38  ;;  %3651 = vmatprep.mubr.f32.mxu0 %v10784_v38  ;;  %v3064_v44 = vpop.xlane.xlu0 %3063  ;;  %v3963_v43 = vld [vmem:[#allocation12 + $0x2a0] sm:$0xff]  ;;  %v3969_v16 = vld [vmem:[#allocation12 + $0x2d0] sm:$0xff]  ;;  %v3976_v59 = vld [vmem:[#allocation12 + $0x308] sm:$0xff] }
 0x800   : > { %8021 = vrsqrt.f32 %v3105_v29  ;;  %v3090_v63 = vmul.f32 0.00390625, %v3064_v44  ;;  %3491 = vmatmul.mubr.f32.gmra.mrb[58].mxu1 %v10781_v3  ;;  %3652 = vmatmul.mubr.f32.gmra.mrb[154].mxu0 %v10781_v3  ;;  %v7233_v29 = vpack.c.bf16 %v3299_v47, %v3293_v2  ;;  %v7297_v44 = vpack.c.bf16 %v3970_v0, %v3964_v61  ;;  %v3304_v61 = vld [vmem:[#allocation9 + $0x320] sm:$0xff]  ;;  %v3310_v0 = vld [vmem:[#allocation9 + $0x350] sm:$0xff] }
 0x801   : > { %v10793_v49 = vmul.f32 %v10716_v50, %v3140_v5  ;;  %v10796_v45 = vmul.f32 %v10712_v18, %v3141_v57  ;;  %7228 = vmatpush1.bf16.msra.mxu1 %v7227_v1  ;;  %7292 = vmatpush1.bf16.msra.mxu0 %v7291_v31  ;;  %v3982_v1 = vld [vmem:[#allocation12 + $0x338] sm:$0xff]  ;;  %v7299_v47 = vpack.c.bf16 %v3969_v16, %v3963_v43 }
 0x802   : > { %v8018_v39 = vpop.eup %8017  ;;  %v3106_v15 = vadd.f32 1e-05, %v3090_v63  ;;  %7230 = vmatprep.subr.bf16.mxu1 %v7229_v37  ;;  %7294 = vmatprep.subr.bf16.mxu0 %v7293_v9  ;;  %v7235_v37 = vpack.c.bf16 %v3298_v24, %v3292_v27  ;;  %v3317_v27 = vld [vmem:[#allocation9 + $0x388] sm:$0xff]  ;;  %v3323_v43 = vld [vmem:[#allocation9 + $0x3b8] sm:$0xff] }
 0x803   : > { %v3142_v41 = vmul.f32 %v8018_v39, %v10618_v53  ;;  %v3143_v5 = vmul.f32 %v8018_v39, %v10621_v30  ;;  %v3067_v57 = vpop.xlane.xlu1 %3066  ;;  %3496 = vmatprep.mubr.f32.mxu1 %v10796_v45  ;;  %3657 = vmatprep.mubr.f32.mxu0 %v10796_v45  ;;  %v3975_v30 = vld [vmem:[#allocation12 + $0x300] sm:$0xff]  ;;  %v3981_v53 = vld [vmem:[#allocation12 + $0x330] sm:$0xff] }
 0x804   : > { %8023 = vrsqrt.f32 %v3106_v15  ;;  %v3091_v31 = vmul.f32 0.00390625, %v3067_v57  ;;  %3497 = vmatmul.mubr.f32.gmra.mrb[60].mxu1 %v10793_v49  ;;  %3658 = vmatmul.mubr.f32.gmra.mrb[156].mxu0 %v10793_v49  ;;  %v7237_v15 = vpack.c.bf16 %v3311_v17, %v3305_v23  ;;  %v7301_v57 = vpack.c.bf16 %v3982_v1, %v3976_v59  ;;  %v3316_v59 = vld [vmem:[#allocation9 + $0x380] sm:$0xff]  ;;  %v3322_v1 = vld [vmem:[#allocation9 + $0x3b0] sm:$0xff] }
 0x805   : > { %v10805_v9 = vmul.f32 %v10716_v50, %v3142_v41  ;;  %v10808_v2 = vmul.f32 %v10712_v18, %v3143_v5  ;;  %7232 = vmatpush1.bf16.msra.mxu1 %v7231_v55  ;;  %7296 = vmatpush1.bf16.msra.mxu0 %v7295_v21  ;;  %v3988_v55 = vld [vmem:[#allocation12 + $0x368] sm:$0xff]  ;;  %v3994_v21 = vld [vmem:[#allocation12 + $0x398] sm:$0xff]  ;;  %v7303_v17 = vpack.c.bf16 %v3981_v53, %v3975_v30 }
 0x806   : > { %v8020_v63 = vpop.eup %8019  ;;  %v3107_v39 = vadd.f32 1e-05, %v3091_v31  ;;  %7234 = vmatprep.subr.bf16.mxu1 %v7233_v29  ;;  %7298 = vmatprep.subr.bf16.mxu0 %v7297_v44  ;;  %v7239_v44 = vpack.c.bf16 %v3310_v0, %v3304_v61  ;;  %v3329_v61 = vld [vmem:[#allocation9 + $0x3e8] sm:$0xff]  ;;  %v3335_v53 = vld [vmem:[#allocation9 + $0x418] sm:$0xff] }
 0x807   : > { %v3144_v24 = vmul.f32 %v8020_v63, %v10628_v56  ;;  %v3145_v41 = vmul.f32 %v8020_v63, %v10631_v20  ;;  %3502 = vmatprep.mubr.f32.mxu1 %v10808_v2  ;;  %3663 = vmatprep.mubr.f32.mxu0 %v10808_v2  ;;  %v3070_v16 = vpop.xlane.xlu0 %3069  ;;  %v3987_v20 = vld [vmem:[#allocation12 + $0x360] sm:$0xff]  ;;  %v3993_v56 = vld [vmem:[#allocation12 + $0x390] sm:$0xff]  ;;  %v4000_v30 = vld [vmem:[#allocation12 + $0x3c8] sm:$0xff] }
 0x808   : > { %8025 = vrsqrt.f32 %v3107_v39  ;;  %v3092_v29 = vmul.f32 0.00390625, %v3070_v16  ;;  %3503 = vmatmul.mubr.f32.gmra.mrb[62].mxu1 %v10805_v9  ;;  %3664 = vmatmul.mubr.f32.gmra.mrb[158].mxu0 %v10805_v9  ;;  %v7241_v39 = vpack.c.bf16 %v3323_v43, %v3317_v27  ;;  %v7305_v16 = vpack.c.bf16 %v3994_v21, %v3988_v55  ;;  %v3328_v55 = vld [vmem:[#allocation9 + $0x3e0] sm:$0xff]  ;;  %v3334_v21 = vld [vmem:[#allocation9 + $0x410] sm:$0xff] }
 0x809   : > { %v10817_v23 = vmul.f32 %v10716_v50, %v3144_v24  ;;  %v10820_v5 = vmul.f32 %v10712_v18, %v3145_v41  ;;  %7236 = vmatpush1.bf16.msra.mxu1 %v7235_v37  ;;  %7300 = vmatpush1.bf16.msra.mxu0 %v7299_v47  ;;  %v4006_v37 = vld [vmem:[#allocation12 + $0x3f8] sm:$0xff]  ;;  %v7307_v43 = vpack.c.bf16 %v3993_v56, %v3987_v20 }
 0x80a   : > { %v8022_v31 = vpop.eup %8021  ;;  %v3108_v63 = vadd.f32 1e-05, %v3092_v29  ;;  %7238 = vmatprep.subr.bf16.mxu1 %v7237_v15  ;;  %7302 = vmatprep.subr.bf16.mxu0 %v7301_v57  ;;  %v7243_v15 = vpack.c.bf16 %v3322_v1, %v3316_v59  ;;  %v3341_v59 = vld [vmem:[#allocation9 + $0x448] sm:$0xff]  ;;  %v3347_v20 = vld [vmem:[#allocation9 + $0x478] sm:$0xff] }
 0x80b   : > { %v3146_v0 = vmul.f32 %v8022_v31, %v10638_v52  ;;  %v3147_v24 = vmul.f32 %v8022_v31, %v10641_v60  ;;  %v3073_v41 = vpop.xlane.xlu1 %3072  ;;  %3508 = vmatprep.mubr.f32.mxu1 %v10820_v5  ;;  %3669 = vmatprep.mubr.f32.mxu0 %v10820_v5  ;;  %v3999_v60 = vld [vmem:[#allocation12 + $0x3c0] sm:$0xff]  ;;  %v4005_v52 = vld [vmem:[#allocation12 + $0x3f0] sm:$0xff] }
 0x80c   : > { %8027 = vrsqrt.f32 %v3108_v63  ;;  %v3093_v47 = vmul.f32 0.00390625, %v3073_v41  ;;  %3509 = vmatmul.mubr.f32.gmra.mrb[64].mxu1 %v10817_v23  ;;  %3670 = vmatmul.mubr.f32.gmra.mrb[160].mxu0 %v10817_v23  ;;  %v7245_v63 = vpack.c.bf16 %v3335_v53, %v3329_v61  ;;  %v7309_v41 = vpack.c.bf16 %v4006_v37, %v4000_v30  ;;  %v3340_v30 = vld [vmem:[#allocation9 + $0x440] sm:$0xff]  ;;  %v3346_v37 = vld [vmem:[#allocation9 + $0x470] sm:$0xff] }
 0x80d   : > { %v10829_v57 = vmul.f32 %v10716_v50, %v3146_v0  ;;  %v10832_v27 = vmul.f32 %v10712_v18, %v3147_v24  ;;  %7240 = vmatpush1.bf16.msra.mxu1 %v7239_v44  ;;  %7304 = vmatpush1.bf16.msra.mxu0 %v7303_v17  ;;  %v4012_v44 = vld [vmem:[#allocation12 + $0x428] sm:$0xff]  ;;  %v4018_v17 = vld [vmem:[#allocation12 + $0x458] sm:$0xff]  ;;  %v7311_v53 = vpack.c.bf16 %v4005_v52, %v3999_v60 }
 0x80e   : > { %v8024_v29 = vpop.eup %8023  ;;  %v3109_v31 = vadd.f32 1e-05, %v3093_v47  ;;  %7242 = vmatprep.subr.bf16.mxu1 %v7241_v39  ;;  %7306 = vmatprep.subr.bf16.mxu0 %v7305_v16  ;;  %v7247_v16 = vpack.c.bf16 %v3334_v21, %v3328_v55  ;;  %v3353_v55 = vld [vmem:[#allocation9 + $0x4a8] sm:$0xff]  ;;  %v3359_v52 = vld [vmem:[#allocation9 + $0x4d8] sm:$0xff] }
 0x80f   : > { %v3148_v1 = vmul.f32 %v8024_v29, %v10648_v11  ;;  %v3149_v0 = vmul.f32 %v8024_v29, %v10651_v42  ;;  %3514 = vmatprep.mubr.f32.mxu1 %v10832_v27  ;;  %3675 = vmatprep.mubr.f32.mxu0 %v10832_v27  ;;  %v3076_v56 = vpop.xlane.xlu0 %3075  ;;  %v4011_v42 = vld [vmem:[#allocation12 + $0x420] sm:$0xff]  ;;  %v4017_v11 = vld [vmem:[#allocation12 + $0x450] sm:$0xff]  ;;  %v4024_v60 = vld [vmem:[#allocation12 + $0x488] sm:$0xff] }
 0x810   : > { %8029 = vrsqrt.f32 %v3109_v31  ;;  %v3094_v39 = vmul.f32 0.00390625, %v3076_v56  ;;  %3515 = vmatmul.mubr.f32.gmra.mrb[66].mxu1 %v10829_v57  ;;  %3676 = vmatmul.mubr.f32.gmra.mrb[162].mxu0 %v10829_v57  ;;  %v7249_v31 = vpack.c.bf16 %v3347_v20, %v3341_v59  ;;  %v7313_v56 = vpack.c.bf16 %v4018_v17, %v4012_v44  ;;  %v3352_v44 = vld [vmem:[#allocation9 + $0x4a0] sm:$0xff]  ;;  %v3358_v17 = vld [vmem:[#allocation9 + $0x4d0] sm:$0xff] }
 0x811   : > { %v10841_v61 = vmul.f32 %v10716_v50, %v3148_v1  ;;  %v10844_v24 = vmul.f32 %v10712_v18, %v3149_v0  ;;  %7244 = vmatpush1.bf16.msra.mxu1 %v7243_v15  ;;  %7308 = vmatpush1.bf16.msra.mxu0 %v7307_v43  ;;  %v4030_v15 = vld [vmem:[#allocation12 + $0x4b8] sm:$0xff]  ;;  %v7315_v20 = vpack.c.bf16 %v4017_v11, %v4011_v42  ;;  %v4036_v42 = vld [vmem:[#allocation12 + $0x4e8] sm:$0xff] }
 0x812   : > { %v8026_v47 = vpop.eup %8025  ;;  %v3110_v29 = vadd.f32 1e-05, %v3094_v39  ;;  %7246 = vmatprep.subr.bf16.mxu1 %v7245_v63  ;;  %7310 = vmatprep.subr.bf16.mxu0 %v7309_v41  ;;  %v7251_v63 = vpack.c.bf16 %v3346_v37, %v3340_v30  ;;  %v3365_v30 = vld [vmem:[#allocation9 + $0x508] sm:$0xff]  ;;  %v3371_v11 = vld [vmem:[#allocation9 + $0x538] sm:$0xff] }
 0x813   : > { %v3150_v21 = vmul.f32 %v8026_v47, %v10658_v12  ;;  %v3151_v1 = vmul.f32 %v8026_v47, %v10661_v48  ;;  %v3079_v0 = vpop.xlane.xlu1 %3078  ;;  %3520 = vmatprep.mubr.f32.mxu1 %v10844_v24  ;;  %3681 = vmatprep.mubr.f32.mxu0 %v10844_v24  ;;  %v4023_v48 = vld [vmem:[#allocation12 + $0x480] sm:$0xff]  ;;  %v4029_v12 = vld [vmem:[#allocation12 + $0x4b0] sm:$0xff] }
 0x814   : > { %8031 = vrsqrt.f32 %v3110_v29  ;;  %v3095_v43 = vmul.f32 0.00390625, %v3079_v0  ;;  %3521 = vmatmul.mubr.f32.gmra.mrb[68].mxu1 %v10841_v61  ;;  %3682 = vmatmul.mubr.f32.gmra.mrb[164].mxu0 %v10841_v61  ;;  %v7253_v29 = vpack.c.bf16 %v3359_v52, %v3353_v55  ;;  %v7317_v0 = vpack.c.bf16 %v4030_v15, %v4024_v60  ;;  %v3370_v52 = vld [vmem:[#allocation9 + $0x530] sm:$0xff] }
 0x815   : > { %v10853_v41 = vmul.f32 %v10716_v50, %v3150_v21  ;;  %v10856_v59 = vmul.f32 %v10712_v18, %v3151_v1  ;;  %7248 = vmatpush1.bf16.msra.mxu1 %v7247_v16  ;;  %7312 = vmatpush1.bf16.msra.mxu0 %v7311_v53  ;;  %v4042_v16 = vld [vmem:[#allocation12 + $0x518] sm:$0xff]  ;;  %v7255_v53 = vpack.c.bf16 %v3358_v17, %v3352_v44  ;;  %v3364_v1 = vld [vmem:[#allocation9 + $0x500] sm:$0xff] }
 0x816   : > { %v8028_v39 = vpop.eup %8027  ;;  %v3111_v47 = vadd.f32 1e-05, %v3095_v43  ;;  %7250 = vmatprep.subr.bf16.mxu1 %v7249_v31  ;;  %7314 = vmatprep.subr.bf16.mxu0 %v7313_v56  ;;  %v7319_v55 = vpack.c.bf16 %v4029_v12, %v4023_v48  ;;  %v7257_v15 = vpack.c.bf16 %v3371_v11, %v3365_v30  ;;  %v7321_v43 = vpack.c.bf16 %v4042_v16, %v4036_v42  ;;  %v4048_v12 = vld [vmem:[#allocation12 + $0x548] sm:$0xff]  ;;  %v4054_v48 = vld [vmem:[#allocation12 + $0x578] sm:$0xff] }
 0x817   : > { %v3152_v37 = vmul.f32 %v8028_v39, %v10668_v54  ;;  %v3153_v21 = vmul.f32 %v8028_v39, %v10671_v32  ;;  %3526 = vmatprep.mubr.f32.mxu1 %v10856_v59  ;;  %3687 = vmatprep.mubr.f32.mxu0 %v10856_v59  ;;  %v4035_v39 = vld [vmem:[#allocation12 + $0x4e0] sm:$0xff]  ;;  %v3377_v32 = vld [vmem:[#allocation9 + $0x568] sm:$0xff]  ;;  %v7325_v16 = vpack.c.bf16 %v4054_v48, %v4048_v12 }
 0x818   : > { %8033 = vrsqrt.f32 %v3111_v47  ;;  %3527 = vmatmul.mubr.f32.gmra.mrb[70].mxu1 %v10853_v41  ;;  %3688 = vmatmul.mubr.f32.gmra.mrb[166].mxu0 %v10853_v41  ;;  %v4041_v47 = vld [vmem:[#allocation12 + $0x510] sm:$0xff] }
 0x819   : > { %v10865_v31 = vmul.f32 %v10716_v50, %v3152_v37  ;;  %v10868_v56 = vmul.f32 %v10712_v18, %v3153_v21  ;;  %7252 = vmatpush1.bf16.msra.mxu1 %v7251_v63  ;;  %7316 = vmatpush1.bf16.msra.mxu0 %v7315_v20  ;;  %v3383_v63 = vld [vmem:[#allocation9 + $0x598] sm:$0xff]  ;;  %v7259_v20 = vpack.c.bf16 %v3370_v52, %v3364_v1  ;;  %v3376_v37 = vld [vmem:[#allocation9 + $0x560] sm:$0xff]  ;;  %v3382_v21 = vld [vmem:[#allocation9 + $0x590] sm:$0xff] }
 0x81a   : > { %v8030_v60 = vpop.eup %8029  ;;  %7254 = vmatprep.subr.bf16.mxu1 %v7253_v29  ;;  %7318 = vmatprep.subr.bf16.mxu0 %v7317_v0  ;;  %v7323_v30 = vpack.c.bf16 %v4041_v47, %v4035_v39  ;;  %v7261_v42 = vpack.c.bf16 %v3383_v63, %v3377_v32  ;;  %v4066_v39 = vld [vmem:[#allocation12 + $0x5d8] sm:$0xff]  ;;  %v7263_v32 = vpack.c.bf16 %v3382_v21, %v3376_v37 }
 0x81b   : > { %v3154_v44 = vmul.f32 %v8030_v60, %v10678_v34  ;;  %v3155_v17 = vmul.f32 %v8030_v60, %v10681_v4  ;;  %3532 = vmatprep.mubr.f32.mxu1 %v10868_v56  ;;  %3693 = vmatprep.mubr.f32.mxu0 %v10868_v56  ;;  %v4047_v60 = vld [vmem:[#allocation12 + $0x540] sm:$0xff]  ;;  %v4053_v4 = vld [vmem:[#allocation12 + $0x570] sm:$0xff]  ;;  %v3389_v34 = vld [vmem:[#allocation9 + $0x5c8] sm:$0xff] }
 0x81c   : > { %3533 = vmatmul.mubr.f32.gmra.mrb[72].mxu1 %v10865_v31  ;;  %3694 = vmatmul.mubr.f32.gmra.mrb[168].mxu0 %v10865_v31  ;;  %v7327_v47 = vpack.c.bf16 %v4053_v4, %v4047_v60 }
 0x81d   : > { %v10877_v29 = vmul.f32 %v10716_v50, %v3154_v44  ;;  %v10880_v0 = vmul.f32 %v10712_v18, %v3155_v17  ;;  %7256 = vmatpush1.bf16.msra.mxu1 %v7255_v53  ;;  %7320 = vmatpush1.bf16.msra.mxu0 %v7319_v55  ;;  %v3395_v53 = vld [vmem:[#allocation9 + $0x5f8] sm:$0xff]  ;;  %v4060_v55 = vld [vmem:[#allocation12 + $0x5a8] sm:$0xff]  ;;  %v3388_v44 = vld [vmem:[#allocation9 + $0x5c0] sm:$0xff] }
 0x81e   : > { %v8032_v11 = vpop.eup %8031  ;;  %7258 = vmatprep.subr.bf16.mxu1 %v7257_v15  ;;  %7322 = vmatprep.subr.bf16.mxu0 %v7321_v43  ;;  %v3394_v17 = vld [vmem:[#allocation9 + $0x5f0] sm:$0xff]  ;;  %v7265_v12 = vpack.c.bf16 %v3395_v53, %v3389_v34  ;;  %v7329_v48 = vpack.c.bf16 %v4066_v39, %v4060_v55  ;;  %v3890_v34 = vld [vmem:[#allocation12 + $0x58] sm:$0xff]  ;;  %v3887_v53 = vld [vmem:[#allocation12 + $0x40] sm:$0xff] }
 0x81f   : > { %v3156_v1 = vmul.f32 %v8032_v11, %v10688_v22  ;;  %v3157_v52 = vmul.f32 %v8032_v11, %v10691_v8  ;;  %3538 = vmatprep.mubr.f32.mxu1 %v10880_v0  ;;  %3699 = vmatprep.mubr.f32.mxu0 %v10880_v0  ;;  %v4059_v11 = vld [vmem:[#allocation12 + $0x5a0] sm:$0xff]  ;;  %v4065_v8 = vld [vmem:[#allocation12 + $0x5d0] sm:$0xff]  ;;  %v7267_v4 = vpack.c.bf16 %v3394_v17, %v3388_v44 }
 0x820   : > { %3539 = vmatmul.mubr.f32.gmra.mrb[74].mxu1 %v10877_v29  ;;  %3700 = vmatmul.mubr.f32.gmra.mrb[170].mxu0 %v10877_v29  ;;  %v3883_v44 = vld [vmem:[#allocation12 + $0x20] sm:$0xff]  ;;  %v3889_v17 = vld [vmem:[#allocation12 + $0x50] sm:$0xff] }
 0x821   : > { %v10889_v15 = vmul.f32 %v10716_v50, %v3156_v1  ;;  %v10892_v43 = vmul.f32 %v10712_v18, %v3157_v52  ;;  %7260 = vmatpush1.bf16.msra.mxu1 %v7259_v20  ;;  %7324 = vmatpush1.bf16.msra.mxu0 %v7323_v30  ;;  %v3882_v20 = vld [vmem:[#allocation12 + $0x18] sm:$0xff]  ;;  %v3888_v30 = vld [vmem:[#allocation12 + $0x48] sm:$0xff]  ;;  %v7331_v1 = vpack.c.bf16 %v4065_v8, %v4059_v11  ;;  %v3881_v52 = vld [vmem:[#allocation12 + $0x10] sm:$0xff] }
 0x822   : > { %v8034_v63 = vpop.eup %8033  ;;  %7262 = vmatprep.subr.bf16.mxu1 %v7261_v42  ;;  %7326 = vmatprep.subr.bf16.mxu0 %v7325_v16  ;;  %v3884_v42 = vld [vmem:[#allocation12 + $0x28] sm:$0xff]  ;;  %v7333_v55 = vpack.c.bf16 %v3888_v30, %v3882_v20  ;;  %v3902_v8 = vld [vmem:[#allocation12 + $0xb8] sm:$0xff]  ;;  %v3901_v20 = vld [vmem:[#allocation12 + $0xb0] sm:$0xff] }
 0x823   : > { %v3158_v37 = vmul.f32 %v8034_v63, %v10698_v33  ;;  %v3159_v21 = vmul.f32 %v8034_v63, %v10701_v28  ;;  %3544 = vmatprep.mubr.f32.mxu1 %v10892_v43  ;;  %3705 = vmatprep.mubr.f32.mxu0 %v10892_v43  ;;  %v7397_v39 = vpack.c.bf16 %v3890_v34, %v3884_v42  ;;  %v3906_v30 = vld [vmem:[#allocation12 + $0xd8] sm:$0xff]  ;;  %v3908_v42 = vld [vmem:[#allocation12 + $0xe8] sm:$0xff] }
 0x824   : > { %3545 = vmatmul.mubr.f32.gmra.mrb[76].mxu1 %v10889_v15  ;;  %3706 = vmatmul.mubr.f32.gmra.mrb[172].mxu0 %v10889_v15  ;;  %v7399_v63 = vpack.c.bf16 %v3889_v17, %v3883_v44  ;;  %v3914_v34 = vld [vmem:[#allocation12 + $0x118] sm:$0xff]  ;;  %v3907_v17 = vld [vmem:[#allocation12 + $0xe0] sm:$0xff] }
 0x825   : > { %v10901_v16 = vmul.f32 %v10716_v50, %v3158_v37  ;;  %v10904_v60 = vmul.f32 %v10712_v18, %v3159_v21  ;;  %7264 = vmatpush1.bf16.msra.mxu1 %v7263_v32  ;;  %7328 = vmatpush1.bf16.msra.mxu0 %v7327_v47  ;;  %v3894_v50 = vld [vmem:[#allocation12 + $0x78] sm:$0xff]  ;;  %v3900_v18 = vld [vmem:[#allocation12 + $0xa8] sm:$0xff]  ;;  %v7335_v47 = vpack.c.bf16 %v3887_v53, %v3881_v52  ;;  %v3895_v21 = vld [vmem:[#allocation12 + $0x80] sm:$0xff] }
 0x826   : > { %7266 = vmatprep.subr.bf16.mxu1 %v7265_v12  ;;  %7330 = vmatprep.subr.bf16.mxu0 %v7329_v48  ;;  %v3896_v32 = vld [vmem:[#allocation12 + $0x88] sm:$0xff]  ;;  %v3893_v12 = vld [vmem:[#allocation12 + $0x70] sm:$0xff]  ;;  %v3899_v48 = vld [vmem:[#allocation12 + $0xa0] sm:$0xff]  ;;  %v7337_v11 = vpack.c.bf16 %v3900_v18, %v3894_v50  ;;  %v7403_v52 = vpack.c.bf16 %v3901_v20, %v3895_v21  ;;  %v7405_v44 = vpack.c.bf16 %v3914_v34, %v3908_v42 }
 0x827   : > { %3550 = vmatprep.mubr.f32.mxu1 %v10904_v60  ;;  %3711 = vmatprep.mubr.f32.mxu0 %v10904_v60  ;;  %v7401_v37 = vpack.c.bf16 %v3902_v8, %v3896_v32  ;;  %v3905_v53 = vld [vmem:[#allocation12 + $0xd0] sm:$0xff]  ;;  %v3918_v18 = vld [vmem:[#allocation12 + $0x138] sm:$0xff]  ;;  %v3924_v32 = vld [vmem:[#allocation12 + $0x168] sm:$0xff] }
 0x828   : > { %3551 = vmatmul.mubr.f32.gmra.mrb[78].mxu1 %v10901_v16  ;;  %3712 = vmatmul.mubr.f32.gmra.mrb[174].mxu0 %v10901_v16  ;;  %v3913_v50 = vld [vmem:[#allocation12 + $0x110] sm:$0xff]  ;;  %v3920_v8 = vld [vmem:[#allocation12 + $0x148] sm:$0xff]  ;;  %v3919_v20 = vld [vmem:[#allocation12 + $0x140] sm:$0xff] }
 0x829   : > { %7268 = vmatpush1.bf16.msra.mxu1 %v7267_v4  ;;  %7332 = vmatpush1.bf16.msra.mxu0 %v7331_v1  ;;  %v3912_v4 = vld [vmem:[#allocation12 + $0x108] sm:$0xff]  ;;  %v7339_v1 = vpack.c.bf16 %v3899_v48, %v3893_v12  ;;  %v7407_v12 = vpack.c.bf16 %v3913_v50, %v3907_v17  ;;  %v3917_v48 = vld [vmem:[#allocation12 + $0x130] sm:$0xff]  ;;  %v3931_v50 = vld [vmem:[#allocation12 + $0x1a0] sm:$0xff] }
 0x82a   : > { %3782 = vmatprep.mubr.f32.mxu1 %v10724_v36  ;;  %4135 = vmatprep.mubr.f32.mxu0 %v10724_v36  ;;  %v3936_v42 = vld [vmem:[#allocation12 + $0x1c8] sm:$0xff] }
 0x82b   : > { %7334 = vmatprep.subr.bf16.mxu1 %v7333_v55  ;;  %7398 = vmatprep.subr.bf16.mxu0 %v7397_v39  ;;  %v3911_v55 = vld [vmem:[#allocation12 + $0x100] sm:$0xff]  ;;  %v7341_v39 = vpack.c.bf16 %v3912_v4, %v3906_v30  ;;  %v3925_v30 = vld [vmem:[#allocation12 + $0x170] sm:$0xff]  ;;  %v3930_v4 = vld [vmem:[#allocation12 + $0x198] sm:$0xff] }
 0x82c   : > { %3783 = vmatmul.mubr.f32.vlgmr.msra.gmra.mrb[80].mxu1 %v10721_v40  ;;  %4136 = vmatmul.mubr.f32.vlgmr.msra.gmra.mrb[176].mxu0 %v10721_v40  ;;  %v3932_v34 = vld [vmem:[#allocation12 + $0x1a8] sm:$0xff] }
 0x82d   : > { %7336 = vmatpush1.bf16.msra.mxu1 %v7335_v47  ;;  %3788 = vmatprep.mubr.f32.mxu1 %v10736_v51  ;;  %v3926_v47 = vld [vmem:[#allocation12 + $0x178] sm:$0xff] }
 0x82e   : > { %4141 = vmatprep.mubr.f32.mxu0 %v10736_v51  ;;  %7400 = vmatpush1.bf16.msra.mxu0 %v7399_v63  ;;  %v7343_v63 = vpack.c.bf16 %v3911_v55, %v3905_v53  ;;  %v7409_v21 = vpack.c.bf16 %v3926_v47, %v3920_v8  ;;  %v7411_v53 = vpack.c.bf16 %v3925_v30, %v3919_v20  ;;  %v3929_v55 = vld [vmem:[#allocation12 + $0x190] sm:$0xff]  ;;  %v3948_v8 = vld [vmem:[#allocation12 + $0x228] sm:$0xff]  ;;  %v3943_v30 = vld [vmem:[#allocation12 + $0x200] sm:$0xff] }
 0x82f   : > { %7338 = vmatprep.subr.bf16.mxu1 %v7337_v11  ;;  %7402 = vmatprep.subr.bf16.mxu0 %v7401_v37  ;;  %v3923_v11 = vld [vmem:[#allocation12 + $0x160] sm:$0xff]  ;;  %v7345_v37 = vpack.c.bf16 %v3924_v32, %v3918_v18  ;;  %v3937_v18 = vld [vmem:[#allocation12 + $0x1d0] sm:$0xff]  ;;  %v3942_v32 = vld [vmem:[#allocation12 + $0x1f8] sm:$0xff] }
 0x830   : > { %3789 = vmatmul.mubr.f32.gmra.mrb[82].mxu1 %v10733_v19  ;;  %4142 = vmatmul.mubr.f32.gmra.mrb[178].mxu0 %v10733_v19  ;;  %v3944_v47 = vld [vmem:[#allocation12 + $0x208] sm:$0xff] }
 0x831   : > { %7340 = vmatpush1.bf16.msra.mxu1 %v7339_v1  ;;  %3794 = vmatprep.mubr.f32.mxu1 %v10748_v14  ;;  %v3938_v1 = vld [vmem:[#allocation12 + $0x1d8] sm:$0xff] }
 0x832   : > { %4147 = vmatprep.mubr.f32.mxu0 %v10748_v14  ;;  %7404 = vmatpush1.bf16.msra.mxu0 %v7403_v52  ;;  %v7347_v52 = vpack.c.bf16 %v3923_v11, %v3917_v48  ;;  %v7413_v17 = vpack.c.bf16 %v3938_v1, %v3932_v34  ;;  %v7415_v48 = vpack.c.bf16 %v3937_v18, %v3931_v50  ;;  %v3941_v11 = vld [vmem:[#allocation12 + $0x1f0] sm:$0xff]  ;;  %v3960_v34 = vld [vmem:[#allocation12 + $0x288] sm:$0xff]  ;;  %v3955_v18 = vld [vmem:[#allocation12 + $0x260] sm:$0xff] }
 0x833   : > { %7342 = vmatprep.subr.bf16.mxu1 %v7341_v39  ;;  %7406 = vmatprep.subr.bf16.mxu0 %v7405_v44  ;;  %v3935_v39 = vld [vmem:[#allocation12 + $0x1c0] sm:$0xff]  ;;  %v7349_v44 = vpack.c.bf16 %v3936_v42, %v3930_v4  ;;  %v3949_v4 = vld [vmem:[#allocation12 + $0x230] sm:$0xff]  ;;  %v3954_v42 = vld [vmem:[#allocation12 + $0x258] sm:$0xff] }
 0x834   : > { %3795 = vmatmul.mubr.f32.gmra.mrb[84].mxu1 %v10745_v46  ;;  %4148 = vmatmul.mubr.f32.gmra.mrb[180].mxu0 %v10745_v46  ;;  %v3956_v1 = vld [vmem:[#allocation12 + $0x268] sm:$0xff] }
 0x835   : > { %7344 = vmatpush1.bf16.msra.mxu1 %v7343_v63  ;;  %3800 = vmatprep.mubr.f32.mxu1 %v10760_v58  ;;  %v3950_v63 = vld [vmem:[#allocation12 + $0x238] sm:$0xff] }
 0x836   : > { %4153 = vmatprep.mubr.f32.mxu0 %v10760_v58  ;;  %7408 = vmatpush1.bf16.msra.mxu0 %v7407_v12  ;;  %v7351_v12 = vpack.c.bf16 %v3935_v39, %v3929_v55  ;;  %v7417_v20 = vpack.c.bf16 %v3950_v63, %v3944_v47  ;;  %v7419_v55 = vpack.c.bf16 %v3949_v4, %v3943_v30  ;;  %v3953_v39 = vld [vmem:[#allocation12 + $0x250] sm:$0xff]  ;;  %v3972_v47 = vld [vmem:[#allocation12 + $0x2e8] sm:$0xff]  ;;  %v3967_v4 = vld [vmem:[#allocation12 + $0x2c0] sm:$0xff] }
 0x837   : > { %7346 = vmatprep.subr.bf16.mxu1 %v7345_v37  ;;  %7410 = vmatprep.subr.bf16.mxu0 %v7409_v21  ;;  %v3947_v37 = vld [vmem:[#allocation12 + $0x220] sm:$0xff]  ;;  %v7353_v21 = vpack.c.bf16 %v3948_v8, %v3942_v32  ;;  %v3961_v32 = vld [vmem:[#allocation12 + $0x290] sm:$0xff]  ;;  %v3966_v8 = vld [vmem:[#allocation12 + $0x2b8] sm:$0xff] }
 0x838   : > { %3801 = vmatmul.mubr.f32.gmra.mrb[86].mxu1 %v10757_v13  ;;  %4154 = vmatmul.mubr.f32.gmra.mrb[182].mxu0 %v10757_v13  ;;  %v3968_v63 = vld [vmem:[#allocation12 + $0x2c8] sm:$0xff] }
 0x839   : > { %7348 = vmatpush1.bf16.msra.mxu1 %v7347_v52  ;;  %3806 = vmatprep.mubr.f32.mxu1 %v10772_v35  ;;  %v3962_v52 = vld [vmem:[#allocation12 + $0x298] sm:$0xff] }
 0x83a   : > { %4159 = vmatprep.mubr.f32.mxu0 %v10772_v35  ;;  %7412 = vmatpush1.bf16.msra.mxu0 %v7411_v53  ;;  %v7355_v53 = vpack.c.bf16 %v3947_v37, %v3941_v11  ;;  %v7421_v50 = vpack.c.bf16 %v3962_v52, %v3956_v1  ;;  %v7423_v11 = vpack.c.bf16 %v3961_v32, %v3955_v18  ;;  %v3965_v37 = vld [vmem:[#allocation12 + $0x2b0] sm:$0xff]  ;;  %v3984_v1 = vld [vmem:[#allocation12 + $0x348] sm:$0xff]  ;;  %v3979_v32 = vld [vmem:[#allocation12 + $0x320] sm:$0xff] }
 0x83b   : > { %7350 = vmatprep.subr.bf16.mxu1 %v7349_v44  ;;  %7414 = vmatprep.subr.bf16.mxu0 %v7413_v17  ;;  %v3959_v44 = vld [vmem:[#allocation12 + $0x280] sm:$0xff]  ;;  %v7357_v17 = vpack.c.bf16 %v3960_v34, %v3954_v42  ;;  %v3973_v42 = vld [vmem:[#allocation12 + $0x2f0] sm:$0xff]  ;;  %v3978_v34 = vld [vmem:[#allocation12 + $0x318] sm:$0xff] }
 0x83c   : > { %3807 = vmatmul.mubr.f32.gmra.mrb[88].mxu1 %v10769_v6  ;;  %4160 = vmatmul.mubr.f32.gmra.mrb[184].mxu0 %v10769_v6  ;;  %v3980_v52 = vld [vmem:[#allocation12 + $0x328] sm:$0xff] }
 0x83d   : > { %7352 = vmatpush1.bf16.msra.mxu1 %v7351_v12  ;;  %3812 = vmatprep.mubr.f32.mxu1 %v10784_v38  ;;  %v3974_v12 = vld [vmem:[#allocation12 + $0x2f8] sm:$0xff] }
 0x83e   : > { %4165 = vmatprep.mubr.f32.mxu0 %v10784_v38  ;;  %7416 = vmatpush1.bf16.msra.mxu0 %v7415_v48  ;;  %v7359_v48 = vpack.c.bf16 %v3959_v44, %v3953_v39  ;;  %v7425_v30 = vpack.c.bf16 %v3974_v12, %v3968_v63  ;;  %v7427_v39 = vpack.c.bf16 %v3973_v42, %v3967_v4  ;;  %v3977_v44 = vld [vmem:[#allocation12 + $0x310] sm:$0xff]  ;;  %v3996_v63 = vld [vmem:[#allocation12 + $0x3a8] sm:$0xff]  ;;  %v3991_v42 = vld [vmem:[#allocation12 + $0x380] sm:$0xff] }
 0x83f   : > { %7354 = vmatprep.subr.bf16.mxu1 %v7353_v21  ;;  %7418 = vmatprep.subr.bf16.mxu0 %v7417_v20  ;;  %v3971_v21 = vld [vmem:[#allocation12 + $0x2e0] sm:$0xff]  ;;  %v7361_v20 = vpack.c.bf16 %v3972_v47, %v3966_v8  ;;  %v3985_v8 = vld [vmem:[#allocation12 + $0x350] sm:$0xff]  ;;  %v3990_v47 = vld [vmem:[#allocation12 + $0x378] sm:$0xff] }
 0x840   : > { %3813 = vmatmul.mubr.f32.gmra.mrb[90].mxu1 %v10781_v3  ;;  %4166 = vmatmul.mubr.f32.gmra.mrb[186].mxu0 %v10781_v3  ;;  %v3992_v12 = vld [vmem:[#allocation12 + $0x388] sm:$0xff] }
 0x841   : > { %7356 = vmatpush1.bf16.msra.mxu1 %v7355_v53  ;;  %3818 = vmatprep.mubr.f32.mxu1 %v10796_v45  ;;  %v3986_v53 = vld [vmem:[#allocation12 + $0x358] sm:$0xff] }
 0x842   : > { %4171 = vmatprep.mubr.f32.mxu0 %v10796_v45  ;;  %7420 = vmatpush1.bf16.msra.mxu0 %v7419_v55  ;;  %v7363_v55 = vpack.c.bf16 %v3971_v21, %v3965_v37  ;;  %v7429_v18 = vpack.c.bf16 %v3986_v53, %v3980_v52  ;;  %v7431_v37 = vpack.c.bf16 %v3985_v8, %v3979_v32  ;;  %v3989_v21 = vld [vmem:[#allocation12 + $0x370] sm:$0xff]  ;;  %v4008_v52 = vld [vmem:[#allocation12 + $0x408] sm:$0xff]  ;;  %v4003_v8 = vld [vmem:[#allocation12 + $0x3e0] sm:$0xff] }
 0x843   : > { %7358 = vmatprep.subr.bf16.mxu1 %v7357_v17  ;;  %7422 = vmatprep.subr.bf16.mxu0 %v7421_v50  ;;  %v3983_v17 = vld [vmem:[#allocation12 + $0x340] sm:$0xff]  ;;  %v7365_v50 = vpack.c.bf16 %v3984_v1, %v3978_v34  ;;  %v3997_v34 = vld [vmem:[#allocation12 + $0x3b0] sm:$0xff]  ;;  %v4002_v1 = vld [vmem:[#allocation12 + $0x3d8] sm:$0xff] }
 0x844   : > { %3819 = vmatmul.mubr.f32.gmra.mrb[92].mxu1 %v10793_v49  ;;  %4172 = vmatmul.mubr.f32.gmra.mrb[188].mxu0 %v10793_v49  ;;  %v4004_v53 = vld [vmem:[#allocation12 + $0x3e8] sm:$0xff] }
 0x845   : > { %7360 = vmatpush1.bf16.msra.mxu1 %v7359_v48  ;;  %3824 = vmatprep.mubr.f32.mxu1 %v10808_v2  ;;  %v3998_v48 = vld [vmem:[#allocation12 + $0x3b8] sm:$0xff] }
 0x846   : > { %4177 = vmatprep.mubr.f32.mxu0 %v10808_v2  ;;  %7424 = vmatpush1.bf16.msra.mxu0 %v7423_v11  ;;  %v7367_v11 = vpack.c.bf16 %v3983_v17, %v3977_v44  ;;  %v7433_v4 = vpack.c.bf16 %v3998_v48, %v3992_v12  ;;  %v7435_v44 = vpack.c.bf16 %v3997_v34, %v3991_v42  ;;  %v4001_v17 = vld [vmem:[#allocation12 + $0x3d0] sm:$0xff]  ;;  %v4020_v12 = vld [vmem:[#allocation12 + $0x468] sm:$0xff]  ;;  %v4015_v34 = vld [vmem:[#allocation12 + $0x440] sm:$0xff] }
 0x847   : > { %7362 = vmatprep.subr.bf16.mxu1 %v7361_v20  ;;  %7426 = vmatprep.subr.bf16.mxu0 %v7425_v30  ;;  %v3995_v20 = vld [vmem:[#allocation12 + $0x3a0] sm:$0xff]  ;;  %v7369_v30 = vpack.c.bf16 %v3996_v63, %v3990_v47  ;;  %v4009_v47 = vld [vmem:[#allocation12 + $0x410] sm:$0xff]  ;;  %v4014_v63 = vld [vmem:[#allocation12 + $0x438] sm:$0xff] }
 0x848   : > { %3825 = vmatmul.mubr.f32.gmra.mrb[94].mxu1 %v10805_v9  ;;  %4178 = vmatmul.mubr.f32.gmra.mrb[190].mxu0 %v10805_v9  ;;  %v4016_v48 = vld [vmem:[#allocation12 + $0x448] sm:$0xff] }
 0x849   : > { %7364 = vmatpush1.bf16.msra.mxu1 %v7363_v55  ;;  %3830 = vmatprep.mubr.f32.mxu1 %v10820_v5  ;;  %v4010_v55 = vld [vmem:[#allocation12 + $0x418] sm:$0xff] }
 0x84a   : > { %4183 = vmatprep.mubr.f32.mxu0 %v10820_v5  ;;  %7428 = vmatpush1.bf16.msra.mxu0 %v7427_v39  ;;  %v7371_v39 = vpack.c.bf16 %v3995_v20, %v3989_v21  ;;  %v7437_v32 = vpack.c.bf16 %v4010_v55, %v4004_v53  ;;  %v7439_v21 = vpack.c.bf16 %v4009_v47, %v4003_v8  ;;  %v4013_v20 = vld [vmem:[#allocation12 + $0x430] sm:$0xff]  ;;  %v4032_v53 = vld [vmem:[#allocation12 + $0x4c8] sm:$0xff]  ;;  %v4027_v47 = vld [vmem:[#allocation12 + $0x4a0] sm:$0xff] }
 0x84b   : > { %7366 = vmatprep.subr.bf16.mxu1 %v7365_v50  ;;  %7430 = vmatprep.subr.bf16.mxu0 %v7429_v18  ;;  %v4007_v50 = vld [vmem:[#allocation12 + $0x400] sm:$0xff]  ;;  %v7373_v18 = vpack.c.bf16 %v4008_v52, %v4002_v1  ;;  %v4021_v1 = vld [vmem:[#allocation12 + $0x470] sm:$0xff]  ;;  %v4026_v52 = vld [vmem:[#allocation12 + $0x498] sm:$0xff] }
 0x84c   : > { %3831 = vmatmul.mubr.f32.gmra.mrb[96].mxu1 %v10817_v23  ;;  %4184 = vmatmul.mubr.f32.gmra.mrb[192].mxu0 %v10817_v23  ;;  %v4028_v55 = vld [vmem:[#allocation12 + $0x4a8] sm:$0xff] }
 0x84d   : > { %7368 = vmatpush1.bf16.msra.mxu1 %v7367_v11  ;;  %3836 = vmatprep.mubr.f32.mxu1 %v10832_v27  ;;  %v4022_v11 = vld [vmem:[#allocation12 + $0x478] sm:$0xff] }
 0x84e   : > { %4189 = vmatprep.mubr.f32.mxu0 %v10832_v27  ;;  %7432 = vmatpush1.bf16.msra.mxu0 %v7431_v37  ;;  %v7375_v37 = vpack.c.bf16 %v4007_v50, %v4001_v17  ;;  %v7441_v42 = vpack.c.bf16 %v4022_v11, %v4016_v48  ;;  %v7443_v17 = vpack.c.bf16 %v4021_v1, %v4015_v34  ;;  %v4025_v50 = vld [vmem:[#allocation12 + $0x490] sm:$0xff]  ;;  %v4044_v48 = vld [vmem:[#allocation12 + $0x528] sm:$0xff]  ;;  %v4039_v1 = vld [vmem:[#allocation12 + $0x500] sm:$0xff] }
 0x84f   : > { %7370 = vmatprep.subr.bf16.mxu1 %v7369_v30  ;;  %7434 = vmatprep.subr.bf16.mxu0 %v7433_v4  ;;  %v4019_v30 = vld [vmem:[#allocation12 + $0x460] sm:$0xff]  ;;  %v7377_v4 = vpack.c.bf16 %v4020_v12, %v4014_v63  ;;  %v4033_v63 = vld [vmem:[#allocation12 + $0x4d0] sm:$0xff]  ;;  %v4038_v12 = vld [vmem:[#allocation12 + $0x4f8] sm:$0xff] }
 0x850   : > { %3837 = vmatmul.mubr.f32.gmra.mrb[98].mxu1 %v10829_v57  ;;  %4190 = vmatmul.mubr.f32.gmra.mrb[194].mxu0 %v10829_v57  ;;  %v4040_v11 = vld [vmem:[#allocation12 + $0x508] sm:$0xff] }
 0x851   : > { %7372 = vmatpush1.bf16.msra.mxu1 %v7371_v39  ;;  %3842 = vmatprep.mubr.f32.mxu1 %v10844_v24  ;;  %v4034_v39 = vld [vmem:[#allocation12 + $0x4d8] sm:$0xff] }
 0x852   : > { %4195 = vmatprep.mubr.f32.mxu0 %v10844_v24  ;;  %7436 = vmatpush1.bf16.msra.mxu0 %v7435_v44  ;;  %v7379_v44 = vpack.c.bf16 %v4019_v30, %v4013_v20  ;;  %v7445_v8 = vpack.c.bf16 %v4034_v39, %v4028_v55  ;;  %v7447_v20 = vpack.c.bf16 %v4033_v63, %v4027_v47  ;;  %v4037_v30 = vld [vmem:[#allocation12 + $0x4f0] sm:$0xff]  ;;  %v4056_v55 = vld [vmem:[#allocation12 + $0x588] sm:$0xff]  ;;  %v4051_v63 = vld [vmem:[#allocation12 + $0x560] sm:$0xff] }
 0x853   : > { %7374 = vmatprep.subr.bf16.mxu1 %v7373_v18  ;;  %7438 = vmatprep.subr.bf16.mxu0 %v7437_v32  ;;  %v4031_v18 = vld [vmem:[#allocation12 + $0x4c0] sm:$0xff]  ;;  %v7381_v32 = vpack.c.bf16 %v4032_v53, %v4026_v52  ;;  %v4045_v52 = vld [vmem:[#allocation12 + $0x530] sm:$0xff]  ;;  %v4050_v53 = vld [vmem:[#allocation12 + $0x558] sm:$0xff] }
 0x854   : > { %3843 = vmatmul.mubr.f32.gmra.mrb[100].mxu1 %v10841_v61  ;;  %4196 = vmatmul.mubr.f32.gmra.mrb[196].mxu0 %v10841_v61  ;;  %v4052_v39 = vld [vmem:[#allocation12 + $0x568] sm:$0xff] }
 0x855   : > { %7376 = vmatpush1.bf16.msra.mxu1 %v7375_v37  ;;  %3848 = vmatprep.mubr.f32.mxu1 %v10856_v59  ;;  %v4046_v37 = vld [vmem:[#allocation12 + $0x538] sm:$0xff] }
 0x856   : > { %4201 = vmatprep.mubr.f32.mxu0 %v10856_v59  ;;  %7440 = vmatpush1.bf16.msra.mxu0 %v7439_v21  ;;  %v7383_v21 = vpack.c.bf16 %v4031_v18, %v4025_v50  ;;  %v7449_v34 = vpack.c.bf16 %v4046_v37, %v4040_v11  ;;  %v7451_v50 = vpack.c.bf16 %v4045_v52, %v4039_v1  ;;  %v4049_v18 = vld [vmem:[#allocation12 + $0x550] sm:$0xff]  ;;  %v4068_v11 = vld [vmem:[#allocation12 + $0x5e8] sm:$0xff]  ;;  %v4063_v52 = vld [vmem:[#allocation12 + $0x5c0] sm:$0xff] }
 0x857   : > { %7378 = vmatprep.subr.bf16.mxu1 %v7377_v4  ;;  %7442 = vmatprep.subr.bf16.mxu0 %v7441_v42  ;;  %v4043_v4 = vld [vmem:[#allocation12 + $0x520] sm:$0xff]  ;;  %v7385_v42 = vpack.c.bf16 %v4044_v48, %v4038_v12  ;;  %v4057_v12 = vld [vmem:[#allocation12 + $0x590] sm:$0xff]  ;;  %v4062_v48 = vld [vmem:[#allocation12 + $0x5b8] sm:$0xff] }
 0x858   : > { %3849 = vmatmul.mubr.f32.gmra.mrb[102].mxu1 %v10853_v41  ;;  %4202 = vmatmul.mubr.f32.gmra.mrb[198].mxu0 %v10853_v41  ;;  %v4064_v37 = vld [vmem:[#allocation12 + $0x5c8] sm:$0xff] }
 0x859   : > { %7380 = vmatpush1.bf16.msra.mxu1 %v7379_v44  ;;  %3854 = vmatprep.mubr.f32.mxu1 %v10868_v56  ;;  %v4058_v44 = vld [vmem:[#allocation12 + $0x598] sm:$0xff] }
 0x85a   : > { %4207 = vmatprep.mubr.f32.mxu0 %v10868_v56  ;;  %7444 = vmatpush1.bf16.msra.mxu0 %v7443_v17  ;;  %v7387_v17 = vpack.c.bf16 %v4043_v4, %v4037_v30  ;;  %v7453_v47 = vpack.c.bf16 %v4058_v44, %v4052_v39  ;;  %v7455_v30 = vpack.c.bf16 %v4057_v12, %v4051_v63  ;;  %v4061_v4 = vld [vmem:[#allocation12 + $0x5b0] sm:$0xff]  ;;  %v5325_v39 = vld [vmem:[#allocation11 + $0x18] sm:$0xff] }
 0x85b   : > { %7382 = vmatprep.subr.bf16.mxu1 %v7381_v32  ;;  %7446 = vmatprep.subr.bf16.mxu0 %v7445_v8  ;;  %v4055_v32 = vld [vmem:[#allocation12 + $0x580] sm:$0xff]  ;;  %v7389_v8 = vpack.c.bf16 %v4056_v55, %v4050_v53  ;;  %v4069_v53 = vld [vmem:[#allocation12 + $0x5f0] sm:$0xff]  ;;  %v5323_v55 = vld [vmem:[#allocation11 + $0x8] sm:$0xff] }
 0x85c   : > { %3855 = vmatmul.mubr.f32.gmra.mrb[104].mxu1 %v10865_v31  ;;  %4208 = vmatmul.mubr.f32.gmra.mrb[200].mxu0 %v10865_v31 }
 0x85d   : > { %7384 = vmatpush1.bf16.msra.mxu1 %v7383_v21  ;;  %3860 = vmatprep.mubr.f32.mxu1 %v10880_v0  ;;  %v4070_v21 = vld [vmem:[#allocation12 + $0x5f8] sm:$0xff] }
 0x85e   : > { %4213 = vmatprep.mubr.f32.mxu0 %v10880_v0  ;;  %7448 = vmatpush1.bf16.msra.mxu0 %v7447_v20  ;;  %v7391_v20 = vpack.c.bf16 %v4055_v32, %v4049_v18  ;;  %v7457_v1 = vpack.c.bf16 %v4070_v21, %v4064_v37  ;;  %v5322_v18 = vld [vmem:[#allocation11] sm:$0xff]  ;;  %v5324_v32 = vld [vmem:[#allocation11 + $0x10] sm:$0xff]  ;;  %v5331_v37 = vld [vmem:[#allocation11 + $0x48] sm:$0xff] }
 0x85f   : > { %7386 = vmatprep.subr.bf16.mxu1 %v7385_v42  ;;  %7450 = vmatprep.subr.bf16.mxu0 %v7449_v34  ;;  %v4067_v42 = vld [vmem:[#allocation12 + $0x5e0] sm:$0xff]  ;;  %v7393_v34 = vpack.c.bf16 %v4068_v11, %v4062_v48  ;;  %v7463_v63 = vpack.c.bf16 %v5324_v32, %v5322_v18  ;;  %v5328_v11 = vld [vmem:[#allocation11 + $0x30] sm:$0xff]  ;;  %v5333_v21 = vld [vmem:[#allocation11 + $0x58] sm:$0xff] }
 0x860   : > { %3861 = vmatmul.mubr.f32.gmra.mrb[106].mxu1 %v10877_v29  ;;  %4214 = vmatmul.mubr.f32.gmra.mrb[202].mxu0 %v10877_v29  ;;  %v7395_v44 = vpack.c.bf16 %v4067_v42, %v4061_v4  ;;  %v5326_v48 = vld [vmem:[#allocation11 + $0x20] sm:$0xff]  ;;  %v5332_v4 = vld [vmem:[#allocation11 + $0x50] sm:$0xff]  ;;  %v5335_v42 = vld [vmem:[#allocation11 + $0x68] sm:$0xff] }
 0x861   : > { %7388 = vmatpush1.bf16.msra.mxu1 %v7387_v17  ;;  %3866 = vmatprep.mubr.f32.mxu1 %v10892_v43  ;;  %v7459_v17 = vpack.c.bf16 %v4069_v53, %v4063_v52  ;;  %v5336_v52 = vld [vmem:[#allocation11 + $0x70] sm:$0xff]  ;;  %v5339_v53 = vld [vmem:[#allocation11 + $0x88] sm:$0xff]  ;;  %v5342_v18 = vld [vmem:[#allocation11 + $0xa0] sm:$0xff] }
 0x862   : > { %4219 = vmatprep.mubr.f32.mxu0 %v10892_v43  ;;  %7452 = vmatpush1.bf16.msra.mxu0 %v7451_v50  ;;  %v7461_v50 = vpack.c.bf16 %v5325_v39, %v5323_v55  ;;  %v5341_v55 = vld [vmem:[#allocation11 + $0x98] sm:$0xff]  ;;  %v5338_v39 = vld [vmem:[#allocation11 + $0x80] sm:$0xff]  ;;  %v5344_v32 = vld [vmem:[#allocation11 + $0xb0] sm:$0xff] }
 0x863   : > { %7390 = vmatprep.subr.bf16.mxu1 %v7389_v8  ;;  %7454 = vmatprep.subr.bf16.mxu0 %v7453_v47  ;;  %v5327_v8 = vld [vmem:[#allocation11 + $0x28] sm:$0xff]  ;;  %v5329_v47 = vld [vmem:[#allocation11 + $0x38] sm:$0xff] }
 0x864   : > { %3867 = vmatmul.mubr.f32.gmra.mrb[108].mxu1 %v10889_v15  ;;  %4220 = vmatmul.mubr.f32.gmra.mrb[204].mxu0 %v10889_v15  ;;  %v7465_v12 = vpack.c.bf16 %v5329_v47, %v5327_v8  ;;  %v5347_v8 = vld [vmem:[#allocation11 + $0xc8] sm:$0xff]  ;;  %v5349_v47 = vld [vmem:[#allocation11 + $0xd8] sm:$0xff] }
 0x865   : > { %7392 = vmatpush1.bf16.msra.mxu1 %v7391_v20  ;;  %3872 = vmatprep.mubr.f32.mxu1 %v10904_v60  ;;  %v7467_v20 = vpack.c.bf16 %v5328_v11, %v5326_v48  ;;  %v5351_v48 = vld [vmem:[#allocation11 + $0xe8] sm:$0xff]  ;;  %v5353_v11 = vld [vmem:[#allocation11 + $0xf8] sm:$0xff] }
 0x866   : > { %4225 = vmatprep.mubr.f32.mxu0 %v10904_v60  ;;  %7456 = vmatpush1.bf16.msra.mxu0 %v7455_v30  ;;  %v7469_v30 = vpack.c.bf16 %v5333_v21, %v5331_v37  ;;  %v5350_v37 = vld [vmem:[#allocation11 + $0xe0] sm:$0xff]  ;;  %v5352_v21 = vld [vmem:[#allocation11 + $0xf0] sm:$0xff] }
 0x867   : > { %7394 = vmatprep.subr.bf16.mxu1 %v7393_v34  ;;  %7458 = vmatprep.subr.bf16.mxu0 %v7457_v1  ;;  %v5337_v34 = vld [vmem:[#allocation11 + $0x78] sm:$0xff]  ;;  %v5334_v1 = vld [vmem:[#allocation11 + $0x60] sm:$0xff] }
 0x868   : > { %3873 = vmatmul.mubr.f32.gmra.mrb[110].mxu1 %v10901_v16  ;;  %4226 = vmatmul.mubr.f32.gmra.mrb[206].mxu0 %v10901_v16 }
 0x869   : > { %7396 = vmatpush1.bf16.msra.mxu1 %v7395_v44  ;;  %4296 = vmatprep.mubr.f32.mxu1 %v10724_v36  ;;  %v5340_v44 = vld [vmem:[#allocation11 + $0x90] sm:$0xff] }
 0x86a   : > { %7460 = vmatpush1.bf16.msra.mxu0 %v7459_v17  ;;  %4457 = vmatprep.mubr.f32.mxu0 %v10724_v36  ;;  %v5330_v36 = vld [vmem:[#allocation11 + $0x40] sm:$0xff]  ;;  %v5343_v17 = vld [vmem:[#allocation11 + $0xa8] sm:$0xff] }
 0x86b   : > { %7462 = vmatprep.subr.bf16.mxu1 %v7461_v50  ;;  %v5345_v50 = vld [vmem:[#allocation11 + $0xb8] sm:$0xff] }
 0x86c   : > { %4297 = vmatmul.mubr.f32.vlgmr.msra.gmra.mrb[112].mxu1 %v10721_v40 }
 0x86d   : > { %4458 = vmatmul.mubr.f32.vlgmr.msra.gmra.mrb[208].mxu0 %v10721_v40  ;;  %4302 = vmatprep.mubr.f32.mxu1 %v10736_v51  ;;  %v7471_v40 = vpack.c.bf16 %v5332_v4, %v5330_v36  ;;  %v5354_v36 = vld [vmem:[#allocation11 + $0x100] sm:$0xff] }
 0x86e   : > { %4463 = vmatprep.mubr.f32.mxu0 %v10736_v51  ;;  %7464 = vmatpush1.bf16.msra.mxu1 %v7463_v63  ;;  %v7473_v51 = vpack.c.bf16 %v5337_v34, %v5335_v42  ;;  %v5346_v63 = vld [vmem:[#allocation11 + $0xc0] sm:$0xff] }
 0x86f   : > { %7466 = vmatprep.subr.bf16.mxu1 %v7465_v12  ;;  %v5348_v12 = vld [vmem:[#allocation11 + $0xd0] sm:$0xff]  ;;  %v5358_v34 = vld [vmem:[#allocation11 + $0x120] sm:$0xff] }
 0x870   : > { %4303 = vmatmul.mubr.f32.gmra.mrb[114].mxu1 %v10733_v19 }
 0x871   : > { %4464 = vmatmul.mubr.f32.gmra.mrb[210].mxu0 %v10733_v19  ;;  %4308 = vmatprep.mubr.f32.mxu1 %v10748_v14  ;;  %v7475_v19 = vpack.c.bf16 %v5336_v52, %v5334_v1  ;;  %v5362_v1 = vld [vmem:[#allocation11 + $0x140] sm:$0xff]  ;;  %v5364_v52 = vld [vmem:[#allocation11 + $0x150] sm:$0xff] }
 0x872   : > { %4469 = vmatprep.mubr.f32.mxu0 %v10748_v14  ;;  %7468 = vmatpush1.bf16.msra.mxu1 %v7467_v20  ;;  %v7477_v14 = vpack.c.bf16 %v5341_v55, %v5339_v53  ;;  %v5355_v20 = vld [vmem:[#allocation11 + $0x108] sm:$0xff]  ;;  %v7503_v53 = vpack.c.bf16 %v5364_v52, %v5362_v1  ;;  %v5369_v55 = vld [vmem:[#allocation11 + $0x178] sm:$0xff] }
 0x873   : > { %7470 = vmatprep.subr.bf16.mxu1 %v7469_v30  ;;  %v5357_v30 = vld [vmem:[#allocation11 + $0x118] sm:$0xff] }
 0x874   : > { %4309 = vmatmul.mubr.f32.gmra.mrb[116].mxu1 %v10745_v46 }
 0x875   : > { %4470 = vmatmul.mubr.f32.gmra.mrb[212].mxu0 %v10745_v46  ;;  %4314 = vmatprep.mubr.f32.mxu1 %v10760_v58  ;;  %v7479_v46 = vpack.c.bf16 %v5340_v44, %v5338_v39 }
 0x876   : > { %4475 = vmatprep.mubr.f32.mxu0 %v10760_v58  ;;  %7472 = vmatpush1.bf16.msra.mxu1 %v7471_v40  ;;  %v7481_v58 = vpack.c.bf16 %v5345_v50, %v5343_v17  ;;  %v5360_v40 = vld [vmem:[#allocation11 + $0x130] sm:$0xff] }
 0x877   : > { %7474 = vmatprep.subr.bf16.mxu1 %v7473_v51  ;;  %v5365_v51 = vld [vmem:[#allocation11 + $0x158] sm:$0xff]  ;;  %v5376_v17 = vld [vmem:[#allocation11 + $0x1b0] sm:$0xff] }
 0x878   : > { %4315 = vmatmul.mubr.f32.gmra.mrb[118].mxu1 %v10757_v13 }
 0x879   : > { %4476 = vmatmul.mubr.f32.gmra.mrb[214].mxu0 %v10757_v13  ;;  %4320 = vmatprep.mubr.f32.mxu1 %v10772_v35  ;;  %v7483_v13 = vpack.c.bf16 %v5344_v32, %v5342_v18  ;;  %v5378_v18 = vld [vmem:[#allocation11 + $0x1c0] sm:$0xff]  ;;  %v5380_v32 = vld [vmem:[#allocation11 + $0x1d0] sm:$0xff] }
 0x87a   : > { %4481 = vmatprep.mubr.f32.mxu0 %v10772_v35  ;;  %7476 = vmatpush1.bf16.msra.mxu1 %v7475_v19  ;;  %v7485_v35 = vpack.c.bf16 %v5349_v47, %v5347_v8  ;;  %v5366_v19 = vld [vmem:[#allocation11 + $0x160] sm:$0xff]  ;;  %v7519_v8 = vpack.c.bf16 %v5380_v32, %v5378_v18  ;;  %v5385_v47 = vld [vmem:[#allocation11 + $0x1f8] sm:$0xff] }
 0x87b   : > { %7478 = vmatprep.subr.bf16.mxu1 %v7477_v14  ;;  %v5368_v14 = vld [vmem:[#allocation11 + $0x170] sm:$0xff] }
 0x87c   : > { %4321 = vmatmul.mubr.f32.gmra.mrb[120].mxu1 %v10769_v6  ;;  %v7507_v39 = vpack.c.bf16 %v5368_v14, %v5366_v19 }
 0x87d   : > { %4482 = vmatmul.mubr.f32.gmra.mrb[216].mxu0 %v10769_v6  ;;  %4326 = vmatprep.mubr.f32.mxu1 %v10784_v38  ;;  %v7487_v6 = vpack.c.bf16 %v5348_v12, %v5346_v63  ;;  %v5382_v12 = vld [vmem:[#allocation11 + $0x1e0] sm:$0xff] }
 0x87e   : > { %4487 = vmatprep.mubr.f32.mxu0 %v10784_v38  ;;  %7480 = vmatpush1.bf16.msra.mxu1 %v7479_v46  ;;  %v7489_v38 = vpack.c.bf16 %v5353_v11, %v5351_v48  ;;  %v5381_v46 = vld [vmem:[#allocation11 + $0x1d8] sm:$0xff]  ;;  %v5384_v48 = vld [vmem:[#allocation11 + $0x1f0] sm:$0xff] }
 0x87f   : > { %7482 = vmatprep.subr.bf16.mxu1 %v7481_v58 }
 0x880   : > { %4327 = vmatmul.mubr.f32.gmra.mrb[122].mxu1 %v10781_v3 }
 0x881   : > { %4488 = vmatmul.mubr.f32.gmra.mrb[218].mxu0 %v10781_v3  ;;  %4332 = vmatprep.mubr.f32.mxu1 %v10796_v45  ;;  %v7491_v3 = vpack.c.bf16 %v5352_v21, %v5350_v37  ;;  %v7523_v21 = vpack.c.bf16 %v5384_v48, %v5382_v12 }
 0x882   : > { %4493 = vmatprep.mubr.f32.mxu0 %v10796_v45  ;;  %7484 = vmatpush1.bf16.msra.mxu1 %v7483_v13  ;;  %v7493_v45 = vpack.c.bf16 %v5357_v30, %v5355_v20 }
 0x883   : > { %7486 = vmatprep.subr.bf16.mxu1 %v7485_v35 }
 0x884   : > { %4333 = vmatmul.mubr.f32.gmra.mrb[124].mxu1 %v10793_v49 }
 0x885   : > { %4494 = vmatmul.mubr.f32.gmra.mrb[220].mxu0 %v10793_v49  ;;  %4338 = vmatprep.mubr.f32.mxu1 %v10808_v2  ;;  %v5356_v49 = vld [vmem:[#allocation11 + $0x110] sm:$0xff] }
 0x886   : > { %4499 = vmatprep.mubr.f32.mxu0 %v10808_v2  ;;  %7488 = vmatpush1.bf16.msra.mxu1 %v7487_v6  ;;  %v7495_v4 = vpack.c.bf16 %v5356_v49, %v5354_v36  ;;  %v5359_v2 = vld [vmem:[#allocation11 + $0x128] sm:$0xff] }
 0x887   : > { %7490 = vmatprep.subr.bf16.mxu1 %v7489_v38 }
 0x888   : > { %4339 = vmatmul.mubr.f32.gmra.mrb[126].mxu1 %v10805_v9 }
 0x889   : > { %4500 = vmatmul.mubr.f32.gmra.mrb[222].mxu0 %v10805_v9  ;;  %4344 = vmatprep.mubr.f32.mxu1 %v10820_v5  ;;  %v5361_v9 = vld [vmem:[#allocation11 + $0x138] sm:$0xff] }
 0x88a   : > { %4505 = vmatprep.mubr.f32.mxu0 %v10820_v5  ;;  %7492 = vmatpush1.bf16.msra.mxu1 %v7491_v3  ;;  %v7497_v42 = vpack.c.bf16 %v5361_v9, %v5359_v2  ;;  %v7499_v5 = vpack.c.bf16 %v5360_v40, %v5358_v34  ;;  %v5387_v3 = vld [vmem:[#allocation11 + $0x208] sm:$0xff] }
 0x88b   : > { %7494 = vmatprep.subr.bf16.mxu1 %v7493_v45  ;;  %v5389_v45 = vld [vmem:[#allocation11 + $0x218] sm:$0xff] }
 0x88c   : > { %4345 = vmatmul.mubr.f32.gmra.mrb[128].mxu1 %v10817_v23 }
 0x88d   : > { %4506 = vmatmul.mubr.f32.gmra.mrb[224].mxu0 %v10817_v23  ;;  %4350 = vmatprep.mubr.f32.mxu1 %v10832_v27  ;;  %v5363_v23 = vld [vmem:[#allocation11 + $0x148] sm:$0xff] }
 0x88e   : > { %4511 = vmatprep.mubr.f32.mxu0 %v10832_v27  ;;  %7496 = vmatpush1.bf16.msra.mxu1 %v7495_v4  ;;  %v7501_v27 = vpack.c.bf16 %v5365_v51, %v5363_v23  ;;  %v7525_v4 = vpack.c.bf16 %v5389_v45, %v5387_v3 }
 0x88f   : > { %7498 = vmatprep.subr.bf16.mxu1 %v7497_v42 }
 0x890   : > { %4351 = vmatmul.mubr.f32.gmra.mrb[130].mxu1 %v10829_v57 }
 0x891   : > { %4512 = vmatmul.mubr.f32.gmra.mrb[226].mxu0 %v10829_v57  ;;  %4356 = vmatprep.mubr.f32.mxu1 %v10844_v24  ;;  %v5367_v57 = vld [vmem:[#allocation11 + $0x168] sm:$0xff] }
 0x892   : > { %4517 = vmatprep.mubr.f32.mxu0 %v10844_v24  ;;  %7500 = vmatpush1.bf16.msra.mxu1 %v7499_v5  ;;  %v7505_v24 = vpack.c.bf16 %v5369_v55, %v5367_v57 }
 0x893   : > { %7502 = vmatprep.subr.bf16.mxu1 %v7501_v27 }
 0x894   : > { %4357 = vmatmul.mubr.f32.gmra.mrb[132].mxu1 %v10841_v61 }
 0x895   : > { %4518 = vmatmul.mubr.f32.gmra.mrb[228].mxu0 %v10841_v61  ;;  %4362 = vmatprep.mubr.f32.mxu1 %v10856_v59  ;;  %v5371_v61 = vld [vmem:[#allocation11 + $0x188] sm:$0xff] }
 0x896   : > { %4523 = vmatprep.mubr.f32.mxu0 %v10856_v59  ;;  %7504 = vmatpush1.bf16.msra.mxu1 %v7503_v53 }
 0x897   : > { %7506 = vmatprep.subr.bf16.mxu1 %v7505_v24 }
 0x898   : > { %4363 = vmatmul.mubr.f32.gmra.mrb[134].mxu1 %v10853_v41 }
 0x899   : > { %4524 = vmatmul.mubr.f32.gmra.mrb[230].mxu0 %v10853_v41  ;;  %4368 = vmatprep.mubr.f32.mxu1 %v10868_v56  ;;  %v5373_v41 = vld [vmem:[#allocation11 + $0x198] sm:$0xff] }
 0x89a   : > { %4529 = vmatprep.mubr.f32.mxu0 %v10868_v56  ;;  %7508 = vmatpush1.bf16.msra.mxu1 %v7507_v39  ;;  %v7509_v59 = vpack.c.bf16 %v5373_v41, %v5371_v61  ;;  %v5372_v56 = vld [vmem:[#allocation11 + $0x190] sm:$0xff] }
 0x89c   : > { %4369 = vmatmul.mubr.f32.gmra.mrb[136].mxu1 %v10865_v31  ;;  %7510 = vmatprep.subr.bf16.mxu1 %v7509_v59 }
 0x89d   : > { %4530 = vmatmul.mubr.f32.gmra.mrb[232].mxu0 %v10865_v31  ;;  %4374 = vmatprep.mubr.f32.mxu1 %v10880_v0  ;;  %v5370_v31 = vld [vmem:[#allocation11 + $0x180] sm:$0xff] }
 0x89e   : > { %4535 = vmatprep.mubr.f32.mxu0 %v10880_v0  ;;  %v5375_v0 = vld [vmem:[#allocation11 + $0x1a8] sm:$0xff] }
 0x8a0   : > { %4375 = vmatmul.mubr.f32.gmra.mrb[138].mxu1 %v10877_v29 }
 0x8a1   : > { %4536 = vmatmul.mubr.f32.gmra.mrb[234].mxu0 %v10877_v29  ;;  %4380 = vmatprep.mubr.f32.mxu1 %v10892_v43  ;;  %v7511_v29 = vpack.c.bf16 %v5372_v56, %v5370_v31 }
 0x8a2   : > { %4541 = vmatprep.mubr.f32.mxu0 %v10892_v43  ;;  %v5377_v43 = vld [vmem:[#allocation11 + $0x1b8] sm:$0xff] }
 0x8a3   : > { %7512 = vmatpush1.bf16.msra.mxu1 %v7511_v29  ;;  %v7513_v44 = vpack.c.bf16 %v5377_v43, %v5375_v0 }
 0x8a4   : > { %4381 = vmatmul.mubr.f32.gmra.mrb[140].mxu1 %v10889_v15 }
 0x8a5   : > { %4542 = vmatmul.mubr.f32.gmra.mrb[236].mxu0 %v10889_v15  ;;  %4386 = vmatprep.mubr.f32.mxu1 %v10904_v60  ;;  %v5374_v15 = vld [vmem:[#allocation11 + $0x1a0] sm:$0xff] }
 0x8a6   : > { %4547 = vmatprep.mubr.f32.mxu0 %v10904_v60  ;;  %v7515_v50 = vpack.c.bf16 %v5376_v17, %v5374_v15  ;;  %7514 = vmatprep.subr.bf16.mxu1 %v7513_v44  ;;  %v5379_v60 = vld [vmem:[#allocation11 + $0x1c8] sm:$0xff] }
 0x8a7   : > { %v7517_v58 = vpack.c.bf16 %v5381_v46, %v5379_v60 }
 0x8a8   : > { %4387 = vmatmul.mubr.f32.gmra.mrb[142].mxu1 %v10901_v16 }
 0x8a9   : > { %4548 = vmatmul.mubr.f32.gmra.mrb[238].mxu0 %v10901_v16  ;;  %7516 = vmatpush1.bf16.msra.mxu1 %v7515_v50  ;;  %v5383_v16 = vld [vmem:[#allocation11 + $0x1e8] sm:$0xff] }
 0x8aa   : > { %7518 = vmatprep.subr.bf16.mxu1 %v7517_v58  ;;  %v7521_v13 = vpack.c.bf16 %v5385_v47, %v5383_v16 }
 0x8ad   : > { %7520 = vmatpush1.bf16.msra.mxu1 %v7519_v8 }
 0x8ae   : > { %7522 = vmatprep.subr.bf16.mxu1 %v7521_v13 }
 0x8b1   : > { %7524 = vmatpush1.bf16.msra.mxu1 %v7523_v21 }
 0x8b2   : > { %7526 = vmatprep.subr.bf16.mxu1 %v7525_v4 }
 0x8bf   : > { %v11038_v35 = vpop.f32.mrb[48].mxu1  ;;  %v11040_v63 = vpop.f32.mrb[144].mxu0 }
 0x8c0   : > { %12587 = vst [vmem:[#allocation40_spill] sm:$0xff] %v11040_v63  ;;  %v6238_v11 = vmul.f32 -1.442695, %v11038_v35  ;;  %v6240_v6 = vmul.f32 -1.442695, %v11040_v63  ;;  %v11044_v38 = vpop.f32.mrb[49].mxu1 }
 0x8c1   : > { %v11046_v37 = vpop.f32.mrb[145].mxu0  ;;  %v6239_v20 = vmul.f32 -1.442695, %v11044_v38 }
 0x8c2   : > { %12588 = vst [vmem:[#allocation41_spill] sm:$0xff] %v11046_v37  ;;  %v6241_v30 = vmul.f32 -1.442695, %v11046_v37  ;;  %8035 = vpow2.f32 %v6238_v11 }
 0x8c3   : > { %8037 = vpow2.f32 %v6240_v6  ;;  %v11050_v36 = vpop.f32.mrb[50].mxu1  ;;  %v11052_v49 = vpop.f32.mrb[146].mxu0 }
 0x8c4   : > { %12589 = vst [vmem:[#allocation42_spill] sm:$0xff] %v11052_v49  ;;  %8039 = vpow2.f32 %v6239_v20  ;;  %v6244_v2 = vmul.f32 -1.442695, %v11050_v36  ;;  %v6246_v9 = vmul.f32 -1.442695, %v11052_v49  ;;  %v11056_v42 = vpop.f32.mrb[51].mxu1 }
 0x8c5   : > { %v11058_v34 = vpop.f32.mrb[147].mxu0  ;;  %8041 = vpow2.f32 %v6241_v30  ;;  %v6245_v40 = vmul.f32 -1.442695, %v11056_v42 }
 0x8c6   : > { %12590 = vst [vmem:[#allocation43_spill] sm:$0xff] %v11058_v34  ;;  %v6247_v5 = vmul.f32 -1.442695, %v11058_v34  ;;  %8043 = vpow2.f32 %v6244_v2 }
 0x8c7   : > { %8045 = vpow2.f32 %v6246_v9  ;;  %v11062_v23 = vpop.f32.mrb[52].mxu1  ;;  %v11064_v51 = vpop.f32.mrb[148].mxu0 }
 0x8c8   : > { %12591 = vst [vmem:[#allocation45_spill] sm:$0xff] %v11064_v51  ;;  %8047 = vpow2.f32 %v6245_v40  ;;  %v6250_v27 = vmul.f32 -1.442695, %v11062_v23  ;;  %v6252_v1 = vmul.f32 -1.442695, %v11064_v51  ;;  %v11068_v52 = vpop.f32.mrb[53].mxu1 }
 0x8c9   : > { %v11070_v53 = vpop.f32.mrb[149].mxu0  ;;  %8049 = vpow2.f32 %v6247_v5  ;;  %v6251_v57 = vmul.f32 -1.442695, %v11068_v52 }
 0x8ca   : > { %12592 = vst [vmem:[#allocation47_spill] sm:$0xff] %v11070_v53  ;;  %v6253_v55 = vmul.f32 -1.442695, %v11070_v53  ;;  %8051 = vpow2.f32 %v6250_v27 }
 0x8cb   : > { %8053 = vpow2.f32 %v6252_v1  ;;  %v11074_v24 = vpop.f32.mrb[54].mxu1  ;;  %v11076_v19 = vpop.f32.mrb[150].mxu0 }
 0x8cc   : > { %12593 = vst [vmem:[#allocation49_spill] sm:$0xff] %v11076_v19  ;;  %v8036_v14 = vpop.eup %8035  ;;  %8055 = vpow2.f32 %v6251_v57  ;;  %v6256_v39 = vmul.f32 -1.442695, %v11074_v24  ;;  %v11079_v61 = vpop.f32.mrb[55].mxu1  ;;  %v6258_v1 = vmul.f32 -1.442695, %v11076_v19 }
 0x8cd   : > { %v11081_v41 = vpop.f32.mrb[151].mxu0  ;;  %v8038_v59 = vpop.eup %8037  ;;  %v4842_v31 = vadd.f32 1.0, %v8036_v14  ;;  %8057 = vpow2.f32 %v6253_v55 }
 0x8ce   : > { %12594 = vst [vmem:[#allocation24_spill] sm:$0xff] %v11081_v41  ;;  %v8040_v56 = vpop.eup %8039  ;;  %v4844_v29 = vadd.f32 1.0, %v8038_v59  ;;  %8059 = vpow2.f32 %v6256_v39  ;;  %v6257_v39 = vmul.f32 -1.442695, %v11079_v61 }
 0x8cf   : > { %v8042_v0 = vpop.eup %8041  ;;  %8061 = vrcp.f32 %v4842_v31  ;;  %v4843_v43 = vadd.f32 1.0, %v8040_v56  ;;  %v11083_v44 = vpop.f32.mrb[56].mxu1  ;;  %v6259_v56 = vmul.f32 -1.442695, %v11081_v41 }
 0x8d0   : > { %v11085_v15 = vpop.f32.mrb[152].mxu0  ;;  %v8044_v17 = vpop.eup %8043  ;;  %8063 = vrcp.f32 %v4844_v29  ;;  %v4845_v50 = vadd.f32 1.0, %v8042_v0  ;;  %v6262_v0 = vmul.f32 -1.442695, %v11083_v44 }
 0x8d1   : > { %12595 = vst [vmem:[#allocation58_spill] sm:$0xff] %v11085_v15  ;;  %v11087_v60 = vpop.f32.mrb[57].mxu1  ;;  %v8046_v46 = vpop.eup %8045  ;;  %8065 = vrcp.f32 %v4843_v43  ;;  %v4848_v58 = vadd.f32 1.0, %v8044_v17 }
 0x8d2   : > { %v11089_v18 = vpop.f32.mrb[153].mxu0  ;;  %v8048_v32 = vpop.eup %8047  ;;  %8067 = vrcp.f32 %v4845_v50  ;;  %v4850_v8 = vadd.f32 1.0, %v8046_v46  ;;  %v6264_v46 = vmul.f32 -1.442695, %v11085_v15 }
 0x8d3   : > { %12596 = vst [vmem:[#allocation59_spill] sm:$0xff] %v11089_v18  ;;  %v8050_v16 = vpop.eup %8049  ;;  %8069 = vrcp.f32 %v4848_v58  ;;  %v4849_v47 = vadd.f32 1.0, %v8048_v32  ;;  %v11091_v13 = vpop.f32.mrb[58].mxu1 }
 0x8d4   : > { %v11093_v12 = vpop.f32.mrb[154].mxu0  ;;  %v8052_v48 = vpop.eup %8051  ;;  %8071 = vrcp.f32 %v4850_v8  ;;  %v4851_v11 = vadd.f32 1.0, %v8050_v16  ;;  %v6263_v16 = vmul.f32 -1.442695, %v11087_v60 }
 0x8d5   : > { %12597 = vst [vmem:[#allocation60_spill] sm:$0xff] %v11093_v12  ;;  %v11095_v6 = vpop.f32.mrb[59].mxu1  ;;  %v8054_v21 = vpop.eup %8053  ;;  %8073 = vrcp.f32 %v4849_v47  ;;  %v4854_v20 = vadd.f32 1.0, %v8052_v48  ;;  %v6265_v48 = vmul.f32 -1.442695, %v11089_v18 }
 0x8d6   : > { %v11097_v30 = vpop.f32.mrb[155].mxu0  ;;  %v8056_v3 = vpop.eup %8055  ;;  %8075 = vrcp.f32 %v4851_v11  ;;  %v4856_v45 = vadd.f32 1.0, %v8054_v21  ;;  %v6268_v21 = vmul.f32 -1.442695, %v11091_v13 }
 0x8d7   : > { %12598 = vst [vmem:[#allocation61_spill] sm:$0xff] %v11097_v30  ;;  %v8058_v4 = vpop.eup %8057  ;;  %8077 = vrcp.f32 %v4854_v20  ;;  %v4855_v2 = vadd.f32 1.0, %v8056_v3  ;;  %v11099_v9 = vpop.f32.mrb[60].mxu1 }
 0x8d8   : > { %v11101_v40 = vpop.f32.mrb[156].mxu0  ;;  %v8060_v5 = vpop.eup %8059  ;;  %8079 = vrcp.f32 %v4856_v45  ;;  %v4857_v27 = vadd.f32 1.0, %v8058_v4  ;;  %v6270_v4 = vmul.f32 -1.442695, %v11093_v12 }
 0x8d9   : > { %12599 = vst [vmem:[#allocation63_spill] sm:$0xff] %v11101_v40  ;;  %v11104_v57 = vpop.f32.mrb[61].mxu1  ;;  %v11106_v55 = vpop.eup %8061  ;;  %8081 = vrcp.f32 %v4855_v2  ;;  %v4860_v14 = vadd.f32 1.0, %v8060_v5 }
 0x8da   : > { %v11109_v59 = vpop.f32.mrb[157].mxu0  ;;  %v11111_v31 = vpop.eup %8063  ;;  %8083 = vrcp.f32 %v4857_v27 }
 0x8db   : > { %12600 = vst [vmem:[#allocation67_spill] sm:$0xff] %v11109_v59  ;;  %12601 = vst [vmem:[#allocation70_spill] sm:$0xff] %v11111_v31  ;;  %v11114_v29 = vpop.eup %8065  ;;  %8085 = vrcp.f32 %v4860_v14  ;;  %v11117_v43 = vpop.f32.mrb[62].mxu1 }
 0x8dc   : > { %v11119_v17 = vpop.f32.mrb[158].mxu0  ;;  %v11121_v50 = vpop.eup %8067  ;;  %8087 = vpow2.f32 %v6258_v1  ;;  %v6269_v1 = vmul.f32 -1.442695, %v11095_v6 }
 0x8dd   : > { %12602 = vst [vmem:[#allocation71_spill] sm:$0xff] %v11119_v17  ;;  %12603 = vst [vmem:[#allocation72_spill] sm:$0xff] %v11121_v50  ;;  %v11124_v58 = vpop.f32.mrb[63].mxu1  ;;  %v11126_v32 = vpop.f32.mrb[159].mxu0  ;;  %8089 = vpow2.f32 %v6257_v39  ;;  %v6271_v39 = vmul.f32 -1.442695, %v11097_v30 }
 0x8de   : > { %12604 = vst [vmem:[#allocation73_spill] sm:$0xff] %v11126_v32  ;;  %v11128_v8 = vpop.eup %8069  ;;  %8091 = vpow2.f32 %v6259_v56 }
 0x8df   : > { %v11131_v47 = vpop.eup %8071  ;;  %8093 = vpow2.f32 %v6262_v0  ;;  %v11137_v20 = vpop.f32.mrb[64].mxu1  ;;  %v6274_v0 = vmul.f32 -1.442695, %v11099_v9 }
 0x8e0   : > { %12605 = vst [vmem:[#allocation74_spill] sm:$0xff] %v11131_v47  ;;  %v11134_v11 = vpop.eup %8073  ;;  %v11139_v3 = vpop.f32.mrb[160].mxu0  ;;  %8095 = vpow2.f32 %v6264_v46  ;;  %v6277_v47 = vmul.f32 -1.442695, %v11109_v59  ;;  %v6281_v59 = vmul.f32 -1.442695, %v11124_v58 }
 0x8e1   : > { %12606 = vst [vmem:[#allocation75_spill] sm:$0xff] %v11139_v3  ;;  %v11141_v45 = vpop.eup %8075  ;;  %v11144_v2 = vpop.f32.mrb[65].mxu1  ;;  %8097 = vpow2.f32 %v6263_v16  ;;  %v6276_v16 = vmul.f32 -1.442695, %v11101_v40 }
 0x8e2   : > { %12607 = vst [vmem:[#allocation76_spill] sm:$0xff] %v11141_v45  ;;  %12608 = vst [vmem:[#allocation77_spill] sm:$0xff] %v11144_v2  ;;  %v11146_v5 = vpop.f32.mrb[161].mxu0  ;;  %v11148_v27 = vpop.eup %8077  ;;  %8099 = vpow2.f32 %v6265_v48 }
 0x8e3   : > { %12609 = vst [vmem:[#allocation78_spill] sm:$0xff] %v11146_v5  ;;  %v11151_v14 = vpop.eup %8079  ;;  %8101 = vpow2.f32 %v6268_v21  ;;  %v11157_v46 = vpop.f32.mrb[66].mxu1 }
 0x8e4   : > { %12610 = vst [vmem:[#allocation79_spill] sm:$0xff] %v11151_v14  ;;  %v11154_v56 = vpop.eup %8081  ;;  %12611 = vst [vmem:[#allocation80_spill] sm:$0xff] %v11157_v46  ;;  %v11159_v28 = vpop.f32.mrb[162].mxu0  ;;  %8103 = vpow2.f32 %v6270_v4 }
 0x8e5   : > { %12612 = vst [vmem:[#allocation81_spill] sm:$0xff] %v11159_v28  ;;  %v11161_v33 = vpop.eup %8083  ;;  %v11164_v22 = vpop.f32.mrb[67].mxu1  ;;  %8105 = vpow2.f32 %v6269_v1 }
 0x8e6   : > { %12613 = vst [vmem:[#allocation82_spill] sm:$0xff] %v11161_v33  ;;  %12614 = vst [vmem:[#allocation83_spill] sm:$0xff] %v11164_v22  ;;  %v11166_v54 = vpop.f32.mrb[163].mxu0  ;;  %v11168_v48 = vpop.eup %8085  ;;  %8107 = vpow2.f32 %v6271_v39 }
 0x8e7   : > { %12615 = vst [vmem:[#allocation84_spill] sm:$0xff] %v11166_v54  ;;  %v8088_v26 = vpop.eup %8087  ;;  %8109 = vpow2.f32 %v6274_v0  ;;  %v11170_v25 = vpop.f32.mrb[68].mxu1 }
 0x8e8   : > { %v8090_v21 = vpop.eup %8089  ;;  %v4862_v10 = vadd.f32 1.0, %v8088_v26  ;;  %v11172_v7 = vpop.f32.mrb[164].mxu0  ;;  %8111 = vpow2.f32 %v6276_v16 }
 0x8e9   : > { %12616 = vst [vmem:[#allocation85_spill] sm:$0xff] %v11172_v7  ;;  %v8092_v62 = vpop.eup %8091  ;;  %v4861_v4 = vadd.f32 1.0, %v8090_v21  ;;  %v11174_v40 = vpop.f32.mrb[69].mxu1 }
 0x8ea   : > { %v8094_v30 = vpop.eup %8093  ;;  %8113 = vrcp.f32 %v4862_v10  ;;  %v4863_v12 = vadd.f32 1.0, %v8092_v62  ;;  %v11176_v18 = vpop.f32.mrb[165].mxu0 }
 0x8eb   : > { %12617 = vst [vmem:[#allocation86_spill] sm:$0xff] %v11176_v18  ;;  %v8096_v1 = vpop.eup %8095  ;;  %8115 = vrcp.f32 %v4861_v4  ;;  %v4866_v39 = vadd.f32 1.0, %v8094_v30  ;;  %v11178_v0 = vpop.f32.mrb[70].mxu1 }
 0x8ec   : > { %v8098_v15 = vpop.eup %8097  ;;  %8117 = vrcp.f32 %v4863_v12  ;;  %v4868_v26 = vadd.f32 1.0, %v8096_v1  ;;  %v11180_v41 = vpop.f32.mrb[166].mxu0 }
 0x8ed   : > { %12618 = vst [vmem:[#allocation87_spill] sm:$0xff] %v11180_v41  ;;  %v8100_v19 = vpop.eup %8099  ;;  %8119 = vrcp.f32 %v4866_v39  ;;  %v4867_v16 = vadd.f32 1.0, %v8098_v15  ;;  %v11182_v21 = vpop.f32.mrb[71].mxu1 }
 0x8ee   : > { %v8102_v33 = vpop.eup %8101  ;;  %8121 = vrcp.f32 %v4868_v26  ;;  %v4869_v62 = vadd.f32 1.0, %v8100_v19  ;;  %v11184_v10 = vpop.f32.mrb[167].mxu0 }
 0x8ef   : > { %12619 = vst [vmem:[#allocation88_spill] sm:$0xff] %v11184_v10  ;;  %v8104_v53 = vpop.eup %8103  ;;  %8123 = vrcp.f32 %v4867_v16  ;;  %v4872_v30 = vadd.f32 1.0, %v8102_v33  ;;  %v11186_v1 = vpop.f32.mrb[72].mxu1  ;;  %v6275_v16 = vmul.f32 -1.442695, %v11104_v57 }
 0x8f0   : > { %v8106_v4 = vpop.eup %8105  ;;  %8125 = vrcp.f32 %v4869_v62  ;;  %v4874_v12 = vadd.f32 1.0, %v8104_v53  ;;  %v11188_v14 = vpop.f32.mrb[168].mxu0 }
 0x8f1   : > { %12620 = vst [vmem:[#allocation89_spill] sm:$0xff] %v11188_v14  ;;  %v8108_v51 = vpop.eup %8107  ;;  %8127 = vrcp.f32 %v4872_v30  ;;  %v4873_v15 = vadd.f32 1.0, %v8106_v4  ;;  %v11190_v39 = vpop.f32.mrb[73].mxu1 }
 0x8f2   : > { %v8110_v45 = vpop.eup %8109  ;;  %8129 = vrcp.f32 %v4874_v12  ;;  %v4875_v19 = vadd.f32 1.0, %v8108_v51  ;;  %v11192_v26 = vpop.f32.mrb[169].mxu0  ;;  %v6280_v51 = vmul.f32 -1.442695, %v11117_v43 }
 0x8f3   : > { %12621 = vst [vmem:[#allocation90_spill] sm:$0xff] %v11192_v26  ;;  %v8112_v34 = vpop.eup %8111  ;;  %8131 = vrcp.f32 %v4873_v15  ;;  %v4878_v33 = vadd.f32 1.0, %v8110_v45  ;;  %v11198_v30 = vpop.f32.mrb[74].mxu1 }
 0x8f4   : > { %v11195_v53 = vpop.eup %8113  ;;  %8133 = vrcp.f32 %v4875_v19  ;;  %v4880_v62 = vadd.f32 1.0, %v8112_v34  ;;  %12623 = vst [vmem:[#allocation92_spill] sm:$0xff] %v11198_v30  ;;  %v11200_v4 = vpop.f32.mrb[170].mxu0  ;;  %v6282_v34 = vmul.f32 -1.442695, %v11119_v17 }
 0x8f5   : > { %12622 = vst [vmem:[#allocation91_spill] sm:$0xff] %v11195_v53  ;;  %12624 = vst [vmem:[#allocation93_spill] sm:$0xff] %v11200_v4  ;;  %v11202_v49 = vpop.eup %8115  ;;  %8135 = vrcp.f32 %v4878_v33  ;;  %v11205_v12 = vpop.f32.mrb[75].mxu1  ;;  %v6283_v33 = vmul.f32 -1.442695, %v11126_v32 }
 0x8f6   : > { %12625 = vst [vmem:[#allocation94_spill] sm:$0xff] %v11205_v12  ;;  %v11207_v45 = vpop.f32.mrb[171].mxu0  ;;  %v11209_v15 = vpop.eup %8117  ;;  %8137 = vrcp.f32 %v4880_v62  ;;  %v6286_v62 = vmul.f32 -1.442695, %v11137_v20  ;;  %v6287_v32 = vmul.f32 -1.442695, %v11144_v2 }
 0x8f7   : > { %12626 = vst [vmem:[#allocation95_spill] sm:$0xff] %v11207_v45  ;;  %12627 = vst [vmem:[#allocation96_spill] sm:$0xff] %v11209_v15  ;;  %v11212_v19 = vpop.eup %8119  ;;  %8139 = vpow2.f32 %v6275_v16  ;;  %v11218_v50 = vpop.f32.mrb[76].mxu1 }
 0x8f8   : > { %v11215_v53 = vpop.eup %8121  ;;  %8141 = vpow2.f32 %v6277_v47  ;;  %12629 = vst [vmem:[#allocation98_spill] sm:$0xff] %v11218_v50  ;;  %v11220_v37 = vpop.f32.mrb[172].mxu0  ;;  %v6288_v47 = vmul.f32 -1.442695, %v11139_v3 }
 0x8f9   : > { %12628 = vst [vmem:[#allocation97_spill] sm:$0xff] %v11215_v53  ;;  %12630 = vst [vmem:[#allocation99_spill] sm:$0xff] %v11220_v37  ;;  %v11222_v31 = vpop.eup %8123  ;;  %8143 = vpow2.f32 %v6280_v51  ;;  %v11225_v17 = vpop.f32.mrb[77].mxu1  ;;  %v6289_v51 = vmul.f32 -1.442695, %v11146_v5  ;;  %v5130_v5 = vmul.f32 %v11106_v55, %v11038_v35 }
 0x8fa   : > { %12631 = vst [vmem:[#allocation100_spill] sm:$0xff] %v11225_v17  ;;  %v11227_v15 = vpop.f32.mrb[173].mxu0  ;;  %v11229_v16 = vpop.eup %8125  ;;  %8145 = vpow2.f32 %v6282_v34  ;;  %v6292_v34 = vmul.f32 -1.442695, %v11157_v46  ;;  %v5392_v46 = vld [vmem:[#allocation11 + $0x230] sm:$0xff] }
 0x8fb   : > { %12632 = vst [vmem:[#allocation101_spill] sm:$0xff] %v11227_v15  ;;  %12633 = vst [vmem:[#allocation102_spill] sm:$0xff] %v11229_v16  ;;  %v11232_v53 = vpop.eup %8127  ;;  %8147 = vpow2.f32 %v6281_v59  ;;  %v11238_v37 = vpop.f32.mrb[78].mxu1 }
 0x8fc   : > { %v11235_v63 = vpop.eup %8129  ;;  %8149 = vpow2.f32 %v6283_v33  ;;  %12635 = vst [vmem:[#allocation104_spill] sm:$0xff] %v11238_v37  ;;  %v11240_v17 = vpop.f32.mrb[174].mxu0  ;;  %v6294_v33 = vmul.f32 -1.442695, %v11159_v28  ;;  %v5388_v37 = vld [vmem:[#allocation11 + $0x210] sm:$0xff]  ;;  %v5391_v28 = vld [vmem:[#allocation11 + $0x228] sm:$0xff] }
 0x8fd   : > { %12634 = vst [vmem:[#allocation103_spill] sm:$0xff] %v11235_v63  ;;  %12636 = vst [vmem:[#allocation105_spill] sm:$0xff] %v11240_v17  ;;  %v11242_v15 = vpop.eup %8131  ;;  %8151 = vpow2.f32 %v6286_v62  ;;  %v11245_v3 = vpop.f32.mrb[79].mxu1  ;;  %v6293_v17 = vmul.f32 -1.442695, %v11164_v22  ;;  %v5386_v62 = vld [vmem:[#allocation11 + $0x200] sm:$0xff] }
 0x8fe   : > { %12637 = vst [vmem:[#allocation106_spill] sm:$0xff] %v11245_v3  ;;  %v11247_v16 = vpop.f32.mrb[175].mxu0  ;;  %v11249_v59 = vpop.eup %8133  ;;  %8153 = vpow2.f32 %v6288_v47  ;;  %v5393_v3 = vld [vmem:[#allocation11 + $0x238] sm:$0xff] }
 0x8ff   : > { %12638 = vst [vmem:[#allocation107_spill] sm:$0xff] %v11247_v16  ;;  %12639 = vst [vmem:[#allocation108_spill] sm:$0xff] %v11249_v59  ;;  %v11252_v63 = vpop.eup %8135  ;;  %8155 = vpow2.f32 %v6287_v32  ;;  %v5131_v16 = vmul.f32 %v11114_v29, %v11044_v38  ;;  %v11261_v59 = vpop.f32.mrb[80].mxu1  ;;  %v5136_v38 = vmul.f32 %v11128_v8, %v11050_v36 }
 0x900   : > { %v11257_v50 = vpop.eup %8137  ;;  %8157 = vpow2.f32 %v6289_v51  ;;  %12641 = vst [vmem:[#allocation110_spill] sm:$0xff] %v11261_v59  ;;  %v4137_v47 = vpop.f32.mrb[176].mxu0  ;;  %v7529_v51 = vpack.c.bf16 %v5393_v3, %v5391_v28  ;;  %v5390_v59 = vld [vmem:[#allocation11 + $0x220] sm:$0xff] }
 0x901   : > { %12640 = vst [vmem:[#allocation109_spill] sm:$0xff] %v11257_v50  ;;  %v8140_v45 = vpop.eup %8139  ;;  %8159 = vpow2.f32 %v6292_v34  ;;  %v5226_v12 = vmul.f32 %v5130_v5, %v4137_v47  ;;  %v11263_v35 = vpop.f32.mrb[81].mxu1  ;;  %v7527_v50 = vpack.c.bf16 %v5388_v37, %v5386_v62  ;;  %v5137_v5 = vmul.f32 %v11134_v11, %v11056_v42  ;;  %v5395_v37 = vld [vmem:[#allocation11 + $0x248] sm:$0xff] }
 0x902   : > { %v4139_v55 = vpop.f32.mrb[177].mxu0  ;;  %v8142_v32 = vpop.eup %8141  ;;  %v4879_v4 = vadd.f32 1.0, %v8140_v45  ;;  %8161 = vpow2.f32 %v6294_v33 }
 0x903   : > { %v5227_v30 = vmul.f32 %v5131_v16, %v4139_v55  ;;  %v8144_v22 = vpop.eup %8143  ;;  %v4881_v29 = vadd.f32 1.0, %v8142_v32  ;;  %8163 = vpow2.f32 %v6293_v17  ;;  %v11269_v47 = vpop.f32.mrb[82].mxu1  ;;  %v5397_v16 = vld [vmem:[#allocation11 + $0x258] sm:$0xff]  ;;  %v5396_v32 = vld [vmem:[#allocation11 + $0x250] sm:$0xff] }
 0x904   : > { %v8146_v2 = vpop.eup %8145  ;;  %8165 = vrcp.f32 %v4879_v4  ;;  %v4884_v34 = vadd.f32 1.0, %v8144_v22  ;;  %v4143_v45 = vpop.f32.mrb[178].mxu0  ;;  %v7531_v22 = vpack.c.bf16 %v5392_v46, %v5390_v59  ;;  %v7533_v55 = vpack.c.bf16 %v5397_v16, %v5395_v37  ;;  %v5399_v46 = vld [vmem:[#allocation11 + $0x268] sm:$0xff]  ;;  %v5401_v59 = vld [vmem:[#allocation11 + $0x278] sm:$0xff]  ;;  %v11281_v37 = vld [vmem:[#allocation11 + $0x260] sm:$0xff] }
 0x905   : > { %5578 = vmatprep.mubr.f32.mxu1 %v5227_v30  ;;  %v8148_v33 = vpop.eup %8147  ;;  %8167 = vrcp.f32 %v4881_v29  ;;  %v4886_v36 = vadd.f32 1.0, %v8146_v2  ;;  %v5232_v8 = vmul.f32 %v5136_v38, %v4143_v45  ;;  %v11271_v17 = vpop.f32.mrb[83].mxu1  ;;  %v5142_v30 = vmul.f32 %v11148_v27, %v11062_v23  ;;  %v5394_v2 = vld [vmem:[#allocation11 + $0x240] sm:$0xff]  ;;  %v11283_v16 = vld [vmem:[#allocation11 + $0x270] sm:$0xff] }
 0x906   : > { %12642 = vst [vmem:[#allocation111_spill] sm:$0xff] %v11271_v17  ;;  %v4145_v28 = vpop.f32.mrb[179].mxu0  ;;  %5579 = vmatmul.mubr.f32.vlgmr.msra.gmra.mrb[144].mxu1 %v5226_v12  ;;  %v8150_v3 = vpop.eup %8149  ;;  %8169 = vrcp.f32 %v4884_v34  ;;  %v4885_v62 = vadd.f32 1.0, %v8148_v33  ;;  %v5143_v12 = vmul.f32 %v11154_v56, %v11068_v52 }
 0x907   : > { %v5233_v42 = vmul.f32 %v5137_v5, %v4145_v28  ;;  %7528 = vmatpush1.bf16.msra.mxu1 %v7527_v50  ;;  %v8152_v11 = vpop.eup %8151  ;;  %8171 = vrcp.f32 %v4886_v36  ;;  %v4887_v4 = vadd.f32 1.0, %v8150_v3  ;;  %v11277_v34 = vpop.f32.mrb[84].mxu1  ;;  %v7535_v36 = vpack.c.bf16 %v5396_v32, %v5394_v2  ;;  %v5403_v2 = vld [vmem:[#allocation11 + $0x288] sm:$0xff]  ;;  %v5405_v32 = vld [vmem:[#allocation11 + $0x298] sm:$0xff] }
 0x908   : > { %7530 = vmatprep.subr.bf16.mxu1 %v7529_v51  ;;  %v8154_v38 = vpop.eup %8153  ;;  %8173 = vrcp.f32 %v4885_v62  ;;  %v4890_v29 = vadd.f32 1.0, %v8152_v11  ;;  %12643 = vst [vmem:[#allocation112_spill] sm:$0xff] %v11277_v34  ;;  %v4149_v50 = vpop.f32.mrb[180].mxu0  ;;  %v5148_v3 = vmul.f32 %v11168_v48, %v11074_v24 }
 0x909   : > { %5584 = vmatprep.mubr.f32.mxu1 %v5233_v42  ;;  %v8156_v5 = vpop.eup %8155  ;;  %8175 = vrcp.f32 %v4887_v4  ;;  %v4892_v23 = vadd.f32 1.0, %v8154_v38  ;;  %v5238_v27 = vmul.f32 %v5142_v30, %v4149_v50  ;;  %v11279_v51 = vpop.f32.mrb[85].mxu1  ;;  %v7537_v42 = vpack.c.bf16 %v5401_v59, %v5399_v46 }
 0x90a   : > { %12644 = vst [vmem:[#allocation113_spill] sm:$0xff] %v11279_v51  ;;  %v4151_v45 = vpop.f32.mrb[181].mxu0  ;;  %5585 = vmatmul.mubr.f32.gmra.mrb[146].mxu1 %v5232_v8  ;;  %v8158_v52 = vpop.eup %8157  ;;  %8177 = vrcp.f32 %v4890_v29  ;;  %v4891_v56 = vadd.f32 1.0, %v8156_v5  ;;  %v5149_v8 = vmul.f32 %v11202_v49, %v11079_v61  ;;  %v6298_v46 = vmul.f32 -1.442695, %v11170_v25 }
 0x90b   : > { %v5239_v33 = vmul.f32 %v5143_v12, %v4151_v45  ;;  %7532 = vmatpush1.bf16.msra.mxu1 %v7531_v22  ;;  %v8160_v28 = vpop.eup %8159  ;;  %8179 = vrcp.f32 %v4892_v23  ;;  %v4893_v62 = vadd.f32 1.0, %v8158_v52  ;;  %v11289_v4 = vpop.f32.mrb[86].mxu1  ;;  %v7539_v22 = vpack.c.bf16 %v11283_v16, %v11281_v37  ;;  %v5402_v16 = vld [vmem:[#allocation11 + $0x280] sm:$0xff] }
 0x90c   : > { %7534 = vmatprep.subr.bf16.mxu1 %v7533_v55  ;;  %v8162_v11 = vpop.eup %8161  ;;  %8181 = vrcp.f32 %v4891_v56  ;;  %v4896_v30 = vadd.f32 1.0, %v8160_v28  ;;  %12645 = vst [vmem:[#allocation114_spill] sm:$0xff] %v11289_v4  ;;  %v4155_v38 = vpop.f32.mrb[182].mxu0  ;;  %v6295_v55 = vmul.f32 -1.442695, %v11166_v54  ;;  %v5154_v23 = vmul.f32 %v11212_v19, %v11083_v44  ;;  %v5407_v44 = vld [vmem:[#allocation11 + $0x2a8] sm:$0xff] }
 0x90d   : > { %5590 = vmatprep.mubr.f32.mxu1 %v5239_v33  ;;  %v8164_v24 = vpop.eup %8163  ;;  %8183 = vrcp.f32 %v4893_v62  ;;  %v4898_v48 = vadd.f32 1.0, %v8162_v11  ;;  %v5244_v12 = vmul.f32 %v5148_v3, %v4155_v38  ;;  %v11294_v29 = vpop.f32.mrb[87].mxu1  ;;  %v6300_v45 = vmul.f32 -1.442695, %v11172_v7  ;;  %v5409_v19 = vld [vmem:[#allocation11 + $0x2b8] sm:$0xff] }
 0x90e   : > { %v4157_v49 = vpop.f32.mrb[183].mxu0  ;;  %5591 = vmatmul.mubr.f32.gmra.mrb[148].mxu1 %v5238_v27  ;;  %v11296_v61 = vpop.eup %8165  ;;  %8185 = vrcp.f32 %v4896_v30  ;;  %v4897_v50 = vadd.f32 1.0, %v8164_v24  ;;  %v7541_v37 = vpack.c.bf16 %v5405_v32, %v5403_v2  ;;  %v5404_v27 = vld [vmem:[#allocation11 + $0x290] sm:$0xff]  ;;  %v5155_v56 = vmul.f32 %v11222_v31, %v11087_v60  ;;  %v12703_v54 = vld [vmem:[#allocation47_spill] sm:$0xff] }
 0x90f   : > { %v5245_v59 = vmul.f32 %v5149_v8, %v4157_v49  ;;  %7536 = vmatpush1.bf16.msra.mxu1 %v7535_v36  ;;  %v11299_v5 = vpop.eup %8167  ;;  %8187 = vrcp.f32 %v4898_v48  ;;  %v6299_v33 = vmul.f32 -1.442695, %v11174_v40  ;;  %v11309_v36 = vpop.f32.mrb[88].mxu1  ;;  %v6301_v62 = vmul.f32 -1.442695, %v11176_v18 }
 0x910   : > { %7538 = vmatprep.subr.bf16.mxu1 %v7537_v42  ;;  %v11304_v52 = vpop.eup %8169  ;;  %8189 = vrcp.f32 %v4897_v50  ;;  %12646 = vst [vmem:[#allocation115_spill] sm:$0xff] %v11309_v36  ;;  %v4161_v28 = vpop.f32.mrb[184].mxu0  ;;  %v6304_v31 = vmul.f32 -1.442695, %v11178_v0  ;;  %v7543_v38 = vpack.c.bf16 %v5404_v27, %v5402_v16  ;;  %v5160_v32 = vmul.f32 %v11232_v53, %v11091_v13  ;;  %v5411_v13 = vld [vmem:[#allocation11 + $0x2c8] sm:$0xff]  ;;  %v5413_v53 = vld [vmem:[#allocation11 + $0x2d8] sm:$0xff] }
 0x911   : > { %5596 = vmatprep.mubr.f32.mxu1 %v5245_v59  ;;  %v11311_v3 = vpop.eup %8171  ;;  %8191 = vpow2.f32 %v6295_v55  ;;  %v5250_v42 = vmul.f32 %v5154_v23, %v4161_v28  ;;  %v11314_v11 = vpop.f32.mrb[89].mxu1  ;;  %v6306_v24 = vmul.f32 -1.442695, %v11180_v41  ;;  %v7545_v48 = vpack.c.bf16 %v5409_v19, %v5407_v44  ;;  %v5406_v55 = vld [vmem:[#allocation11 + $0x2a0] sm:$0xff] }
 0x912   : > { %12647 = vst [vmem:[#allocation116_spill] sm:$0xff] %v11314_v11  ;;  %v4163_v8 = vpop.f32.mrb[185].mxu0  ;;  %5597 = vmatmul.mubr.f32.gmra.mrb[150].mxu1 %v5244_v12  ;;  %v11316_v60 = vpop.eup %8173  ;;  %8193 = vpow2.f32 %v6298_v46  ;;  %v5408_v12 = vld [vmem:[#allocation11 + $0x2b0] sm:$0xff]  ;;  %v5161_v50 = vmul.f32 %v11242_v15, %v11095_v6  ;;  %v6310_v15 = vmul.f32 -1.442695, %v11186_v1  ;;  %v5166_v44 = vmul.f32 %v11252_v63, %v11099_v9  ;;  %v5415_v63 = vld [vmem:[#allocation11 + $0x2e8] sm:$0xff] }
 0x913   : > { %v5251_v30 = vmul.f32 %v5155_v56, %v4163_v8  ;;  %7540 = vmatpush1.bf16.msra.mxu1 %v7539_v22  ;;  %v11319_v2 = vpop.eup %8175  ;;  %8195 = vpow2.f32 %v6300_v45  ;;  %v6305_v22 = vmul.f32 -1.442695, %v11182_v21  ;;  %v11329_v46 = vpop.f32.mrb[90].mxu1  ;;  %v6307_v45 = vmul.f32 -1.442695, %v11184_v10  ;;  %v5410_v8 = vld [vmem:[#allocation11 + $0x2c0] sm:$0xff] }
 0x914   : > { %7542 = vmatprep.subr.bf16.mxu1 %v7541_v37  ;;  %v11324_v49 = vpop.eup %8177  ;;  %8197 = vpow2.f32 %v6299_v33  ;;  %12648 = vst [vmem:[#allocation117_spill] sm:$0xff] %v11329_v46  ;;  %v4167_v59 = vpop.f32.mrb[186].mxu0  ;;  %v7547_v33 = vpack.c.bf16 %v5408_v12, %v5406_v55  ;;  %v6312_v19 = vmul.f32 -1.442695, %v11188_v14  ;;  %v5417_v9 = vld [vmem:[#allocation11 + $0x2f8] sm:$0xff] }
 0x915   : > { %5602 = vmatprep.mubr.f32.mxu1 %v5251_v30  ;;  %v11331_v23 = vpop.eup %8179  ;;  %8199 = vpow2.f32 %v6301_v62  ;;  %v5256_v37 = vmul.f32 %v5160_v32, %v4167_v59  ;;  %v11334_v16 = vpop.f32.mrb[91].mxu1  ;;  %v7549_v62 = vpack.c.bf16 %v5413_v53, %v5411_v13  ;;  %v5172_v53 = vmul.f32 %v11304_v52, %v11117_v43 }
 0x916   : > { %12649 = vst [vmem:[#allocation118_spill] sm:$0xff] %v11334_v16  ;;  %v4169_v27 = vpop.f32.mrb[187].mxu0  ;;  %5603 = vmatmul.mubr.f32.gmra.mrb[152].mxu1 %v5250_v42  ;;  %v11336_v6 = vpop.eup %8181  ;;  %8201 = vpow2.f32 %v6304_v31  ;;  %v5412_v42 = vld [vmem:[#allocation11 + $0x2d0] sm:$0xff]  ;;  %v5167_v31 = vmul.f32 %v11296_v61, %v11104_v57 }
 0x917   : > { %v5257_v56 = vmul.f32 %v5161_v50, %v4169_v27  ;;  %7544 = vmatpush1.bf16.msra.mxu1 %v7543_v38  ;;  %v11339_v28 = vpop.eup %8183  ;;  %8203 = vpow2.f32 %v6306_v24  ;;  %v6311_v38 = vmul.f32 -1.442695, %v11190_v39  ;;  %v11349_v32 = vpop.f32.mrb[92].mxu1  ;;  %v5414_v27 = vld [vmem:[#allocation11 + $0x2e0] sm:$0xff] }
 0x918   : > { %12650 = vst [vmem:[#allocation119_spill] sm:$0xff] %v11339_v28  ;;  %7546 = vmatprep.subr.bf16.mxu1 %v7545_v48  ;;  %v11344_v30 = vpop.eup %8185  ;;  %8205 = vpow2.f32 %v6305_v22  ;;  %12651 = vst [vmem:[#allocation120_spill] sm:$0xff] %v11349_v32  ;;  %v4173_v55 = vpop.f32.mrb[188].mxu0  ;;  %v6313_v48 = vmul.f32 -1.442695, %v11192_v26  ;;  %v7551_v22 = vpack.c.bf16 %v5412_v42, %v5410_v8  ;;  %v5421_v8 = vld [vmem:[#allocation11 + $0x318] sm:$0xff] }
 0x919   : > { %5608 = vmatprep.mubr.f32.mxu1 %v5257_v56  ;;  %v11351_v24 = vpop.eup %8187  ;;  %8207 = vpow2.f32 %v6307_v45  ;;  %v5262_v12 = vmul.f32 %v5166_v44, %v4173_v55  ;;  %v11354_v50 = vpop.f32.mrb[93].mxu1  ;;  %v7553_v45 = vpack.c.bf16 %v5417_v9, %v5415_v63  ;;  %v5416_v56 = vld [vmem:[#allocation11 + $0x2f0] sm:$0xff]  ;;  %v5173_v55 = vmul.f32 %v11316_v60, %v11124_v58 }
 0x91a   : > { %12652 = vst [vmem:[#allocation121_spill] sm:$0xff] %v11351_v24  ;;  %12653 = vst [vmem:[#allocation122_spill] sm:$0xff] %v11354_v50  ;;  %v4175_v59 = vpop.f32.mrb[189].mxu0  ;;  %5609 = vmatmul.mubr.f32.gmra.mrb[154].mxu1 %v5256_v37  ;;  %v11356_v57 = vpop.eup %8189  ;;  %8209 = vpow2.f32 %v6310_v15  ;;  %v7555_v60 = vpack.c.bf16 %v5416_v56, %v5414_v27  ;;  %v5178_v9 = vmul.f32 %v11324_v49, %v11137_v20  ;;  %v5423_v27 = vld [vmem:[#allocation11 + $0x328] sm:$0xff]  ;;  %v5425_v56 = vld [vmem:[#allocation11 + $0x338] sm:$0xff] }
 0x91b   : > { %v5263_v61 = vmul.f32 %v5167_v31, %v4175_v59  ;;  %7548 = vmatpush1.bf16.msra.mxu1 %v7547_v33  ;;  %v8192_v13 = vpop.eup %8191  ;;  %8211 = vpow2.f32 %v6312_v19  ;;  %v11362_v26 = vpop.f32.mrb[94].mxu1  ;;  %v5419_v33 = vld [vmem:[#allocation11 + $0x308] sm:$0xff]  ;;  %v12718_v24 = vld [vmem:[#allocation108_spill] sm:$0xff] }
 0x91c   : > { %7550 = vmatprep.subr.bf16.mxu1 %v7549_v62  ;;  %v8194_v44 = vpop.eup %8193  ;;  %v4899_v37 = vadd.f32 1.0, %v8192_v13  ;;  %8213 = vpow2.f32 %v6311_v38  ;;  %12654 = vst [vmem:[#allocation123_spill] sm:$0xff] %v11362_v26  ;;  %v4179_v15 = vpop.f32.mrb[190].mxu0  ;;  %v5420_v13 = vld [vmem:[#allocation11 + $0x310] sm:$0xff]  ;;  %v12716_v26 = vld [vmem:[#allocation103_spill] sm:$0xff] }
 0x91d   : > { %5614 = vmatprep.mubr.f32.mxu1 %v5263_v61  ;;  %v8196_v42 = vpop.eup %8195  ;;  %v4902_v31 = vadd.f32 1.0, %v8194_v44  ;;  %8215 = vpow2.f32 %v6313_v48  ;;  %v5268_v43 = vmul.f32 %v5172_v53, %v4179_v15  ;;  %v11364_v52 = vpop.f32.mrb[95].mxu1  ;;  %v7557_v61 = vpack.c.bf16 %v5421_v8, %v5419_v33  ;;  %v5418_v48 = vld [vmem:[#allocation11 + $0x300] sm:$0xff]  ;;  %v12656_v44 = vld [vmem:[#allocation77_spill] sm:$0xff] }
 0x91e   : > { %12655 = vst [vmem:[#allocation124_spill] sm:$0xff] %v11364_v52  ;;  %v4181_v19 = vpop.f32.mrb[191].mxu0  ;;  %5615 = vmatmul.mubr.f32.gmra.mrb[156].mxu1 %v5262_v12  ;;  %v8198_v62 = vpop.eup %8197  ;;  %8217 = vrcp.f32 %v4899_v37  ;;  %v4904_v63 = vadd.f32 1.0, %v8196_v42  ;;  %v5179_v12 = vmul.f32 %v11336_v6, %v12656_v44  ;;  %v12660_v44 = vld [vmem:[#allocation83_spill] sm:$0xff]  ;;  %v12715_v52 = vld [vmem:[#allocation60_spill] sm:$0xff] }
 0x91f   : > { %v5269_v58 = vmul.f32 %v5173_v55, %v4181_v19  ;;  %7552 = vmatpush1.bf16.msra.mxu1 %v7551_v22  ;;  %v8200_v38 = vpop.eup %8199  ;;  %8219 = vrcp.f32 %v4902_v31  ;;  %v4903_v59 = vadd.f32 1.0, %v8198_v62  ;;  %v11370_v15 = vpop.f32.mrb[96].mxu1  ;;  %v7559_v31 = vpack.c.bf16 %v5420_v13, %v5418_v48  ;;  %v12659_v62 = vld [vmem:[#allocation80_spill] sm:$0xff]  ;;  %v5427_v48 = vld [vmem:[#allocation11 + $0x348] sm:$0xff]  ;;  %v5429_v13 = vld [vmem:[#allocation11 + $0x358] sm:$0xff] }
 0x920   : > { %7554 = vmatprep.subr.bf16.mxu1 %v7553_v45  ;;  %v8202_v53 = vpop.eup %8201  ;;  %8221 = vrcp.f32 %v4904_v63  ;;  %v4905_v37 = vadd.f32 1.0, %v8200_v38  ;;  %12657 = vst [vmem:[#allocation77_spill] sm:$0xff] %v11370_v15  ;;  %v4185_v22 = vpop.f32.mrb[192].mxu0  ;;  %v5184_v63 = vmul.f32 %v11344_v30, %v12659_v62  ;;  %v7561_v38 = vpack.c.bf16 %v5425_v56, %v5423_v27 }
 0x921   : > { %5620 = vmatprep.mubr.f32.mxu1 %v5269_v58  ;;  %v8204_v55 = vpop.eup %8203  ;;  %8223 = vrcp.f32 %v4903_v59  ;;  %v4908_v20 = vadd.f32 1.0, %v8202_v53  ;;  %v5274_v49 = vmul.f32 %v5178_v9, %v4185_v22  ;;  %v11372_v45 = vpop.f32.mrb[97].mxu1  ;;  %v5422_v59 = vld [vmem:[#allocation11 + $0x320] sm:$0xff]  ;;  %v5424_v9 = vld [vmem:[#allocation11 + $0x330] sm:$0xff]  ;;  %v7565_v62 = vpack.c.bf16 %v5429_v13, %v5427_v48 }
 0x922   : > { %12658 = vst [vmem:[#allocation125_spill] sm:$0xff] %v11372_v45  ;;  %v4187_v33 = vpop.f32.mrb[193].mxu0  ;;  %5621 = vmatmul.mubr.f32.gmra.mrb[158].mxu1 %v5268_v43  ;;  %v8206_v8 = vpop.eup %8205  ;;  %8225 = vrcp.f32 %v4905_v37  ;;  %v4910_v42 = vadd.f32 1.0, %v8204_v55  ;;  %v5185_v43 = vmul.f32 %v11356_v57, %v12660_v44 }
 0x923   : > { %v5275_v6 = vmul.f32 %v5179_v12, %v4187_v33  ;;  %7556 = vmatpush1.bf16.msra.mxu1 %v7555_v60  ;;  %v8208_v19 = vpop.eup %8207  ;;  %8227 = vrcp.f32 %v4908_v20  ;;  %v4909_v58 = vadd.f32 1.0, %v8206_v8  ;;  %v11378_v22 = vpop.f32.mrb[98].mxu1  ;;  %v7563_v33 = vpack.c.bf16 %v5424_v9, %v5422_v59  ;;  %v5433_v59 = vld [vmem:[#allocation11 + $0x378] sm:$0xff] }
 0x924   : > { %7558 = vmatprep.subr.bf16.mxu1 %v7557_v61  ;;  %v8210_v53 = vpop.eup %8209  ;;  %8229 = vrcp.f32 %v4910_v42  ;;  %v4911_v37 = vadd.f32 1.0, %v8208_v19  ;;  %12661 = vst [vmem:[#allocation80_spill] sm:$0xff] %v11378_v22  ;;  %v4191_v60 = vpop.f32.mrb[194].mxu0  ;;  %v12714_v22 = vld [vmem:[#allocation102_spill] sm:$0xff] }
 0x925   : > { %5626 = vmatprep.mubr.f32.mxu1 %v5275_v6  ;;  %v8212_v12 = vpop.eup %8211  ;;  %8231 = vrcp.f32 %v4909_v58  ;;  %v4914_v30 = vadd.f32 1.0, %v8210_v53  ;;  %v5280_v55 = vmul.f32 %v5184_v63, %v4191_v60  ;;  %v11380_v61 = vpop.f32.mrb[99].mxu1  ;;  %v12663_v6 = vld [vmem:[#allocation92_spill] sm:$0xff]  ;;  %v5428_v53 = vld [vmem:[#allocation11 + $0x350] sm:$0xff]  ;;  %v5431_v63 = vld [vmem:[#allocation11 + $0x368] sm:$0xff] }
 0x926   : > { %12662 = vst [vmem:[#allocation83_spill] sm:$0xff] %v11380_v61  ;;  %v4193_v27 = vpop.f32.mrb[195].mxu0  ;;  %5627 = vmatmul.mubr.f32.gmra.mrb[160].mxu1 %v5274_v49  ;;  %v8214_v56 = vpop.eup %8213  ;;  %8233 = vrcp.f32 %v4911_v37  ;;  %v4916_v20 = vadd.f32 1.0, %v8212_v12  ;;  %v6316_v19 = vmul.f32 -1.442695, %v12663_v6  ;;  %v5426_v58 = vld [vmem:[#allocation11 + $0x340] sm:$0xff]  ;;  %v7569_v41 = vpack.c.bf16 %v5433_v59, %v5431_v63 }
 0x927   : > { %v5281_v57 = vmul.f32 %v5185_v43, %v4193_v27  ;;  %7560 = vmatpush1.bf16.msra.mxu1 %v7559_v31  ;;  %v8216_v8 = vpop.eup %8215  ;;  %8235 = vrcp.f32 %v4914_v30  ;;  %v4915_v42 = vadd.f32 1.0, %v8214_v56  ;;  %v12665_v60 = vld [vmem:[#allocation93_spill] sm:$0xff]  ;;  %v11386_v12 = vpop.f32.mrb[100].mxu1  ;;  %v12667_v43 = vld [vmem:[#allocation94_spill] sm:$0xff]  ;;  %v12670_v56 = vld [vmem:[#allocation95_spill] sm:$0xff] }
 0x928   : > { %7562 = vmatprep.subr.bf16.mxu1 %v7561_v38  ;;  %v11383_v44 = vpop.eup %8217  ;;  %8237 = vrcp.f32 %v4916_v20  ;;  %v4917_v49 = vadd.f32 1.0, %v8216_v8  ;;  %v6318_v37 = vmul.f32 -1.442695, %v12665_v60  ;;  %12666 = vst [vmem:[#allocation126_spill] sm:$0xff] %v11386_v12  ;;  %v4197_v31 = vpop.f32.mrb[196].mxu0  ;;  %v7567_v8 = vpack.c.bf16 %v5428_v53, %v5426_v58  ;;  %v5430_v60 = vld [vmem:[#allocation11 + $0x360] sm:$0xff] }
 0x929   : > { %12664 = vst [vmem:[#allocation92_spill] sm:$0xff] %v11383_v44  ;;  %5632 = vmatprep.mubr.f32.mxu1 %v5281_v57  ;;  %v8220_v9 = vpop.eup %8219  ;;  %8239 = vrcp.f32 %v4915_v42  ;;  %v6317_v30 = vmul.f32 -1.442695, %v12667_v43  ;;  %v11389_v38 = vpop.f32.mrb[101].mxu1  ;;  %v6319_v20 = vmul.f32 -1.442695, %v12670_v56 }
 0x92a   : > { %12668 = vst [vmem:[#allocation94_spill] sm:$0xff] %v11389_v38  ;;  %v4199_v48 = vpop.f32.mrb[197].mxu0  ;;  %5633 = vmatmul.mubr.f32.gmra.mrb[162].mxu1 %v5280_v55  ;;  %v11391_v13 = vpop.eup %8221  ;;  %v5190_v27 = vmul.f32 %v8220_v9, %v11170_v25  ;;  %8241 = vrcp.f32 %v4917_v49  ;;  %v5432_v57 = vld [vmem:[#allocation11 + $0x370] sm:$0xff]  ;;  %v5435_v58 = vld [vmem:[#allocation11 + $0x388] sm:$0xff]  ;;  %v5437_v53 = vld [vmem:[#allocation11 + $0x398] sm:$0xff] }
 0x92b   : > { %12669 = vst [vmem:[#allocation127_spill] sm:$0xff] %v11391_v13  ;;  %7564 = vmatpush1.bf16.msra.mxu1 %v7563_v33  ;;  %v8224_v14 = vpop.eup %8223  ;;  %8243 = vpow2.f32 %v6316_v19  ;;  %v12671_v42 = vld [vmem:[#allocation98_spill] sm:$0xff]  ;;  %v12673_v13 = vld [vmem:[#allocation99_spill] sm:$0xff]  ;;  %v11400_v9 = vpop.f32.mrb[102].mxu1  ;;  %v12675_v19 = vld [vmem:[#allocation100_spill] sm:$0xff]  ;;  %v7571_v63 = vpack.c.bf16 %v5432_v57, %v5430_v60  ;;  %v7573_v12 = vpack.c.bf16 %v5437_v53, %v5435_v58 }
 0x92c   : > { %v6322_v10 = vmul.f32 -1.442695, %v12671_v42  ;;  %7566 = vmatprep.subr.bf16.mxu1 %v7565_v62  ;;  %v11396_v18 = vpop.eup %8225  ;;  %v5191_v55 = vmul.f32 %v8224_v14, %v11174_v40  ;;  %8245 = vpow2.f32 %v6318_v37  ;;  %v6324_v25 = vmul.f32 -1.442695, %v12673_v13  ;;  %12674 = vst [vmem:[#allocation128_spill] sm:$0xff] %v11400_v9  ;;  %v4203_v33 = vpop.f32.mrb[198].mxu0 }
 0x92d   : > { %12672 = vst [vmem:[#allocation98_spill] sm:$0xff] %v11396_v18  ;;  %v5286_v49 = vmul.f32 %v5190_v27, %v4197_v31  ;;  %v8228_v56 = vpop.eup %8227  ;;  %8247 = vpow2.f32 %v6317_v30  ;;  %v6323_v7 = vmul.f32 -1.442695, %v12675_v19  ;;  %v11403_v38 = vpop.f32.mrb[103].mxu1  ;;  %v12678_v14 = vld [vmem:[#allocation101_spill] sm:$0xff]  ;;  %v5434_v27 = vld [vmem:[#allocation11 + $0x380] sm:$0xff] }
 0x92e   : > { %12676 = vst [vmem:[#allocation100_spill] sm:$0xff] %v11403_v38  ;;  %v4205_v62 = vpop.f32.mrb[199].mxu0  ;;  %v11405_v59 = vpop.eup %8229  ;;  %v5196_v40 = vmul.f32 %v8228_v56, %v11178_v0  ;;  %8249 = vpow2.f32 %v6319_v20  ;;  %v6325_v37 = vmul.f32 -1.442695, %v12678_v14  ;;  %v5287_v31 = vmul.f32 %v5191_v55, %v4199_v48  ;;  %v5436_v13 = vld [vmem:[#allocation11 + $0x390] sm:$0xff]  ;;  %v12679_v30 = vld [vmem:[#allocation104_spill] sm:$0xff] }
 0x92f   : > { %12677 = vst [vmem:[#allocation129_spill] sm:$0xff] %v11405_v59  ;;  %7568 = vmatpush1.bf16.msra.mxu1 %v7567_v8  ;;  %v8232_v18 = vpop.eup %8231  ;;  %8251 = vpow2.f32 %v6322_v10  ;;  %v6328_v9 = vmul.f32 -1.442695, %v12679_v30  ;;  %v12681_v57 = vld [vmem:[#allocation105_spill] sm:$0xff]  ;;  %v11414_v20 = vpop.f32.mrb[104].mxu1  ;;  %v5441_v55 = vld [vmem:[#allocation11 + $0x3b8] sm:$0xff]  ;;  %v7575_v53 = vpack.c.bf16 %v5436_v13, %v5434_v27 }
 0x930   : > { %7570 = vmatprep.subr.bf16.mxu1 %v7569_v41  ;;  %v11410_v38 = vpop.eup %8233  ;;  %v5197_v60 = vmul.f32 %v8232_v18, %v11182_v21  ;;  %8253 = vpow2.f32 %v6324_v25  ;;  %v6330_v0 = vmul.f32 -1.442695, %v12681_v57  ;;  %v5292_v56 = vmul.f32 %v5196_v40, %v4203_v33  ;;  %5638 = vmatprep.mubr.f32.mxu1 %v5287_v31  ;;  %12682 = vst [vmem:[#allocation130_spill] sm:$0xff] %v11414_v20  ;;  %v4209_v48 = vpop.f32.mrb[200].mxu0  ;;  %v5439_v8 = vld [vmem:[#allocation11 + $0x3a8] sm:$0xff]  ;;  %v12683_v10 = vld [vmem:[#allocation106_spill] sm:$0xff] }
 0x931   : > { %12680 = vst [vmem:[#allocation104_spill] sm:$0xff] %v11410_v38  ;;  %v8236_v14 = vpop.eup %8235  ;;  %8255 = vpow2.f32 %v6323_v7  ;;  %v6329_v59 = vmul.f32 -1.442695, %v12683_v10  ;;  %5639 = vmatmul.mubr.f32.gmra.mrb[164].mxu1 %v5286_v49  ;;  %v11417_v41 = vpop.f32.mrb[105].mxu1  ;;  %v12686_v25 = vld [vmem:[#allocation107_spill] sm:$0xff]  ;;  %v12687_v57 = vld [vmem:[#allocation110_spill] sm:$0xff]  ;;  %v7577_v38 = vpack.c.bf16 %v5441_v55, %v5439_v8 }
 0x932   : > { %12684 = vst [vmem:[#allocation106_spill] sm:$0xff] %v11417_v41  ;;  %v4211_v58 = vpop.f32.mrb[201].mxu0  ;;  %v11419_v18 = vpop.eup %8237  ;;  %v5202_v21 = vmul.f32 %v8236_v14, %v11186_v1  ;;  %8257 = vpow2.f32 %v6325_v37  ;;  %v6331_v33 = vmul.f32 -1.442695, %v12686_v25  ;;  %v5293_v40 = vmul.f32 %v5197_v60, %v4205_v62  ;;  %v5438_v49 = vld [vmem:[#allocation11 + $0x3a0] sm:$0xff]  ;;  %v5440_v20 = vld [vmem:[#allocation11 + $0x3b0] sm:$0xff] }
 0x933   : > { %12685 = vst [vmem:[#allocation131_spill] sm:$0xff] %v11419_v18  ;;  %7572 = vmatpush1.bf16.msra.mxu1 %v7571_v63  ;;  %v8240_v31 = vpop.eup %8239  ;;  %8259 = vpow2.f32 %v6328_v9  ;;  %v6242_v7 = vmul.f32 -1.442695, %v12687_v57  ;;  %v11427_v1 = vpop.f32.mrb[106].mxu1  ;;  %v5443_v62 = vld [vmem:[#allocation11 + $0x3c8] sm:$0xff]  ;;  %v5445_v63 = vld [vmem:[#allocation11 + $0x3d8] sm:$0xff] }
 0x934   : > { %7574 = vmatprep.subr.bf16.mxu1 %v7573_v12  ;;  %v11424_v41 = vpop.eup %8241  ;;  %v5203_v13 = vmul.f32 %v8240_v31, %v11190_v39  ;;  %8261 = vpow2.f32 %v6330_v0  ;;  %v5298_v27 = vmul.f32 %v5202_v21, %v4209_v48  ;;  %5644 = vmatprep.mubr.f32.mxu1 %v5293_v40  ;;  %12689 = vst [vmem:[#allocation132_spill] sm:$0xff] %v11427_v1  ;;  %v11429_v14 = vpop.f32.mrb[202].mxu0  ;;  %v5442_v40 = vld [vmem:[#allocation11 + $0x3c0] sm:$0xff]  ;;  %v5444_v31 = vld [vmem:[#allocation11 + $0x3d0] sm:$0xff]  ;;  %v12701_v1 = vld [vmem:[#allocation45_spill] sm:$0xff] }
 0x935   : > { %12688 = vst [vmem:[#allocation110_spill] sm:$0xff] %v11424_v41  ;;  %v8244_v9 = vpop.eup %8243  ;;  %8263 = vpow2.f32 %v6329_v59  ;;  %5645 = vmatmul.mubr.f32.gmra.mrb[166].mxu1 %v5292_v56  ;;  %v11431_v12 = vpop.f32.mrb[107].mxu1  ;;  %v7579_v0 = vpack.c.bf16 %v5440_v20, %v5438_v49  ;;  %v7581_v21 = vpack.c.bf16 %v5445_v63, %v5443_v62  ;;  %v12691_v59 = vld [vmem:[#allocation40_spill] sm:$0xff]  ;;  %v12692_v56 = vld [vmem:[#allocation70_spill] sm:$0xff]  ;;  %v5447_v20 = vld [vmem:[#allocation11 + $0x3e8] sm:$0xff] }
 0x936   : > { %12690 = vst [vmem:[#allocation133_spill] sm:$0xff] %v11431_v12  ;;  %v11433_v37 = vpop.f32.mrb[203].mxu0  ;;  %v8246_v60 = vpop.eup %8245  ;;  %v4920_v8 = vadd.f32 1.0, %v8244_v9  ;;  %8265 = vpow2.f32 %v6331_v33  ;;  %v5299_v39 = vmul.f32 %v5203_v13, %v4211_v58  ;;  %v11437_v41 = vmul.f32 %v12692_v56, %v12691_v59  ;;  %v12696_v13 = vld [vmem:[#allocation42_spill] sm:$0xff]  ;;  %v12699_v59 = vld [vmem:[#allocation43_spill] sm:$0xff]  ;;  %v12700_v56 = vld [vmem:[#allocation76_spill] sm:$0xff] }
 0x937   : > { %7576 = vmatpush1.bf16.msra.mxu1 %v7575_v53  ;;  %v8248_v48 = vpop.eup %8247  ;;  %v4922_v55 = vadd.f32 1.0, %v8246_v60  ;;  %8267 = vpow2.f32 %v6242_v7  ;;  %v11439_v9 = vpop.f32.mrb[108].mxu1  ;;  %v5449_v53 = vld [vmem:[#allocation11 + $0x3f8] sm:$0xff]  ;;  %v12694_v7 = vld [vmem:[#allocation41_spill] sm:$0xff]  ;;  %v12697_v62 = vld [vmem:[#allocation74_spill] sm:$0xff] }
 0x938   : > { %7578 = vmatprep.subr.bf16.mxu1 %v7577_v38  ;;  %v8250_v25 = vpop.eup %8249  ;;  %8269 = vrcp.f32 %v4920_v8  ;;  %v4921_v12 = vadd.f32 1.0, %v8248_v48  ;;  %5650 = vmatprep.mubr.f32.mxu1 %v5299_v39  ;;  %12693 = vst [vmem:[#allocation40_spill] sm:$0xff] %v11439_v9  ;;  %v11441_v58 = vpop.f32.mrb[204].mxu0  ;;  %v12695_v38 = vld [vmem:[#allocation72_spill] sm:$0xff]  ;;  %v11449_v63 = vmul.f32 %v12697_v62, %v12696_v13  ;;  %v11457_v9 = vmul.f32 %v12700_v56, %v12699_v59  ;;  %v12702_v13 = vld [vmem:[#allocation79_spill] sm:$0xff]  ;;  %v12704_v61 = vld [vmem:[#allocation82_spill] sm:$0xff] }
 0x939   : > { %v8252_v33 = vpop.eup %8251  ;;  %v11445_v49 = vmul.f32 %v12695_v38, %v12694_v7  ;;  %8271 = vrcp.f32 %v4922_v55  ;;  %v4923_v60 = vadd.f32 1.0, %v8250_v25  ;;  %5651 = vmatmul.mubr.f32.gmra.mrb[168].mxu1 %v5298_v27  ;;  %v11451_v8 = vpop.f32.mrb[109].mxu1  ;;  %v7583_v7 = vpack.c.bf16 %v5444_v31, %v5442_v40  ;;  %v5446_v55 = vld [vmem:[#allocation11 + $0x3e0] sm:$0xff] }
 0x93a   : > { %12698 = vst [vmem:[#allocation70_spill] sm:$0xff] %v11451_v8  ;;  %v11453_v39 = vpop.f32.mrb[205].mxu0  ;;  %v8254_v48 = vpop.eup %8253  ;;  %8273 = vrcp.f32 %v4921_v12  ;;  %v4926_v18 = vadd.f32 1.0, %v8252_v33  ;;  %v11461_v62 = vmul.f32 %v12702_v13, %v12701_v1  ;;  %v7585_v27 = vpack.c.bf16 %v5449_v53, %v5447_v20  ;;  %v5448_v8 = vld [vmem:[#allocation11 + $0x3f0] sm:$0xff]  ;;  %v12705_v12 = vld [vmem:[#allocation49_spill] sm:$0xff]  ;;  %v12706_v33 = vld [vmem:[#allocation91_spill] sm:$0xff] }
 0x93b   : > { %7580 = vmatpush1.bf16.msra.mxu1 %v7579_v0  ;;  %v8256_v38 = vpop.eup %8255  ;;  %8275 = vrcp.f32 %v4923_v60  ;;  %v4928_v25 = vadd.f32 1.0, %v8254_v48  ;;  %v11465_v59 = vmul.f32 %v12704_v61, %v12703_v54  ;;  %v11469_v0 = vmul.f32 %v12706_v33, %v12705_v12  ;;  %v11471_v31 = vpop.f32.mrb[110].mxu1  ;;  %v5451_v60 = vld [vmem:[#allocation11 + $0x408] sm:$0xff]  ;;  %v12708_v53 = vld [vmem:[#allocation24_spill] sm:$0xff]  ;;  %v12710_v13 = vld [vmem:[#allocation58_spill] sm:$0xff] }
 0x93c   : > { %7582 = vmatprep.subr.bf16.mxu1 %v7581_v21  ;;  %v8258_v44 = vpop.eup %8257  ;;  %8277 = vrcp.f32 %v4926_v18  ;;  %v4927_v40 = vadd.f32 1.0, %v8256_v38  ;;  %12707 = vst [vmem:[#allocation41_spill] sm:$0xff] %v11471_v31  ;;  %v11473_v1 = vpop.f32.mrb[206].mxu0  ;;  %v5453_v21 = vld [vmem:[#allocation11 + $0x418] sm:$0xff]  ;;  %v12709_v48 = vld [vmem:[#allocation96_spill] sm:$0xff]  ;;  %v12711_v54 = vld [vmem:[#allocation97_spill] sm:$0xff] }
 0x93d   : > { %v8260_v20 = vpop.eup %8259  ;;  %v11477_v56 = vmul.f32 %v12709_v48, %v12708_v53  ;;  %v11481_v61 = vmul.f32 %v12711_v54, %v12710_v13  ;;  %8279 = vrcp.f32 %v4928_v25  ;;  %v4929_v12 = vadd.f32 1.0, %v8258_v44  ;;  %v11483_v33 = vpop.f32.mrb[111].mxu1  ;;  %v12713_v31 = vld [vmem:[#allocation59_spill] sm:$0xff] }
 0x93e   : > { %12712 = vst [vmem:[#allocation72_spill] sm:$0xff] %v11483_v33  ;;  %v11485_v18 = vpop.f32.mrb[207].mxu0  ;;  %v8262_v38 = vpop.eup %8261  ;;  %v11489_v45 = vmul.f32 %v12714_v22, %v12713_v31  ;;  %8281 = vrcp.f32 %v4927_v40  ;;  %v4932_v15 = vadd.f32 1.0, %v8260_v20  ;;  %v7587_v53 = vpack.c.bf16 %v5448_v8, %v5446_v55  ;;  %v12717_v33 = vld [vmem:[#allocation61_spill] sm:$0xff]  ;;  %v11500_v8 = vld [vmem:[#allocation11 + $0x400] sm:$0xff]  ;;  %v11502_v55 = vld [vmem:[#allocation11 + $0x410] sm:$0xff] }
 0x93f   : > { %7584 = vmatpush1.bf16.msra.mxu1 %v7583_v7  ;;  %v8264_v48 = vpop.eup %8263  ;;  %v11493_v13 = vmul.f32 %v12716_v26, %v12715_v52  ;;  %8283 = vrcp.f32 %v4929_v12  ;;  %v4934_v44 = vadd.f32 1.0, %v8262_v38  ;;  %v7589_v25 = vpack.c.bf16 %v5453_v21, %v5451_v60  ;;  %v4298_v7 = vpop.f32.mrb[112].mxu1  ;;  %v12719_v52 = vld [vmem:[#allocation63_spill] sm:$0xff]  ;;  %v12720_v31 = vld [vmem:[#allocation109_spill] sm:$0xff] }
 0x940   : > { %7586 = vmatprep.subr.bf16.mxu1 %v7585_v27  ;;  %v8266_v54 = vpop.eup %8265  ;;  %v11497_v28 = vmul.f32 %v12718_v24, %v12717_v33  ;;  %8285 = vrcp.f32 %v4932_v15  ;;  %v4933_v22 = vadd.f32 1.0, %v8264_v48  ;;  %v6243_v40 = vmul.f32 -1.442695, %v11263_v35  ;;  %v11511_v24 = vpop.f32.mrb[208].mxu0  ;;  %v11513_v21 = vld [vmem:[#allocation11 + $0x428] sm:$0xff]  ;;  %v11515_v12 = vld [vmem:[#allocation11 + $0x438] sm:$0xff] }
 0x941   : > { %v8268_v26 = vpop.eup %8267  ;;  %v11506_v20 = vmul.f32 %v12720_v31, %v12719_v52  ;;  %8287 = vrcp.f32 %v4934_v44  ;;  %v4935_v27 = vadd.f32 1.0, %v8266_v54  ;;  %v11509_v60 = vmul.f32 %v11437_v41, %v4298_v7  ;;  %v4300_v15 = vpop.f32.mrb[113].mxu1  ;;  %v11531_v31 = vld [vmem:[#allocation11 + $0x430] sm:$0xff] }
 0x942   : > { %v8270_v33 = vpop.eup %8269  ;;  %8289 = vrcp.f32 %v4933_v22  ;;  %v4846_v38 = vadd.f32 1.0, %v8268_v26  ;;  %v6248_v48 = vmul.f32 -1.442695, %v11269_v47  ;;  %v11519_v52 = vmul.f32 %v11445_v49, %v4300_v15  ;;  %v11521_v44 = vpop.f32.mrb[209].mxu0  ;;  %v11529_v26 = vld [vmem:[#allocation11 + $0x420] sm:$0xff] }
 0x943   : > { %12721 = vst [vmem:[#allocation42_spill] sm:$0xff] %v11521_v44  ;;  %7588 = vmatpush1.bf16.msra.mxu1 %v7587_v53  ;;  %v11523_v41 = vpop.eup %8271  ;;  %v5208_v54 = vmul.f32 %v8270_v33, %v12663_v6  ;;  %8291 = vrcp.f32 %v4935_v27  ;;  %v6249_v7 = vmul.f32 -1.442695, %v11271_v17  ;;  %v6254_v15 = vmul.f32 -1.442695, %v11277_v34  ;;  %v11546_v34 = vld [vmem:[#allocation11 + $0x448] sm:$0xff] }
 0x944   : > { %12722 = vst [vmem:[#allocation74_spill] sm:$0xff] %v11523_v41  ;;  %7590 = vmatprep.subr.bf16.mxu1 %v7589_v25  ;;  %v8274_v49 = vpop.eup %8273  ;;  %8293 = vrcp.f32 %v4846_v38  ;;  %v6255_v53 = vmul.f32 -1.442695, %v11279_v51  ;;  %v4304_v41 = vpop.f32.mrb[114].mxu1  ;;  %v11548_v51 = vld [vmem:[#allocation11 + $0x458] sm:$0xff] }
 0x945   : > { %v11537_v27 = vpop.eup %8275  ;;  %v5209_v25 = vmul.f32 %v8274_v49, %v12667_v43  ;;  %8295 = vpow2.f32 %v6243_v40  ;;  %v5304_v33 = vmul.f32 %v5208_v54, %v11429_v14  ;;  %v11542_v22 = vmul.f32 %v11449_v63, %v4304_v41  ;;  %v11544_v44 = vpop.f32.mrb[210].mxu0  ;;  %v11565_v49 = vld [vmem:[#allocation11 + $0x450] sm:$0xff] }
 0x946   : > { %12723 = vst [vmem:[#allocation43_spill] sm:$0xff] %v11537_v27  ;;  %v4306_v38 = vpop.f32.mrb[115].mxu1  ;;  %v8278_v17 = vpop.eup %8277  ;;  %8297 = vpow2.f32 %v6248_v48  ;;  %v6260_v6 = vmul.f32 -1.442695, %v11289_v4  ;;  %v6261_v41 = vmul.f32 -1.442695, %v11294_v29 }
 0x947   : > { %v11552_v27 = vmul.f32 %v11457_v9, %v4306_v38  ;;  %v11554_v43 = vpop.f32.mrb[211].mxu0  ;;  %v11558_v63 = vpop.eup %8279  ;;  %v5214_v40 = vmul.f32 %v8278_v17, %v12671_v42  ;;  %8299 = vpow2.f32 %v6249_v7  ;;  %v5305_v54 = vmul.f32 %v5209_v25, %v11433_v37  ;;  %v11563_v48 = vld [vmem:[#allocation11 + $0x440] sm:$0xff] }
 0x948   : > { %12724 = vst [vmem:[#allocation76_spill] sm:$0xff] %v11558_v63  ;;  %v8282_v9 = vpop.eup %8281  ;;  %8301 = vpow2.f32 %v6254_v15  ;;  %v6266_v38 = vmul.f32 -1.442695, %v11309_v36  ;;  %v6267_v4 = vmul.f32 -1.442695, %v11314_v11  ;;  %v4310_v14 = vpop.f32.mrb[116].mxu1 }
 0x949   : > { %v11571_v17 = vpop.eup %8283  ;;  %v5215_v42 = vmul.f32 %v8282_v9, %v12675_v19  ;;  %8303 = vpow2.f32 %v6255_v53  ;;  %v5310_v37 = vmul.f32 %v5214_v40, %v11441_v58  ;;  %5656 = vmatprep.mubr.f32.mxu1 %v5305_v54  ;;  %v11576_v7 = vmul.f32 %v11461_v62, %v4310_v14  ;;  %v11578_v15 = vpop.f32.mrb[212].mxu0  ;;  %v11593_v14 = vld [vmem:[#allocation11 + $0x468] sm:$0xff]  ;;  %v12727_v54 = vld [vmem:[#allocation67_spill] sm:$0xff] }
 0x94a   : > { %12725 = vst [vmem:[#allocation45_spill] sm:$0xff] %v11571_v17  ;;  %v4312_v25 = vpop.f32.mrb[117].mxu1  ;;  %v8286_v36 = vpop.eup %8285  ;;  %8305 = vpow2.f32 %v6260_v6  ;;  %v6272_v11 = vmul.f32 -1.442695, %v11329_v46  ;;  %5657 = vmatmul.mubr.f32.gmra.mrb[170].mxu1 %v5304_v33  ;;  %v6273_v53 = vmul.f32 -1.442695, %v11334_v16  ;;  %v11601_v9 = vmul.f32 %v11299_v5, %v12727_v54 }
 0x94b   : > { %v11582_v63 = vmul.f32 %v11465_v59, %v4312_v25  ;;  %v11584_v17 = vpop.f32.mrb[213].mxu0  ;;  %v11588_v58 = vpop.eup %8287  ;;  %v5220_v62 = vmul.f32 %v8286_v36, %v12679_v30  ;;  %8307 = vpow2.f32 %v6261_v41  ;;  %v5311_v6 = vmul.f32 %v5215_v42, %v11453_v39  ;;  %v11595_v33 = vld [vmem:[#allocation11 + $0x478] sm:$0xff]  ;;  %v11597_v59 = vld [vmem:[#allocation11 + $0x460] sm:$0xff]  ;;  %v11605_v41 = vld [vmem:[#allocation11 + $0x470] sm:$0xff] }
 0x94c   : > { %12726 = vst [vmem:[#allocation79_spill] sm:$0xff] %v11588_v58  ;;  %v8290_v40 = vpop.eup %8289  ;;  %8309 = vpow2.f32 %v6266_v38  ;;  %v6278_v25 = vmul.f32 -1.442695, %v11349_v32  ;;  %v6279_v36 = vmul.f32 -1.442695, %v11354_v50  ;;  %v4316_v30 = vpop.f32.mrb[118].mxu1 }
 0x94d   : > { %v11607_v39 = vpop.eup %8291  ;;  %v5221_v42 = vmul.f32 %v8290_v40, %v12683_v10  ;;  %8311 = vpow2.f32 %v6267_v4  ;;  %v5316_v19 = vmul.f32 %v5220_v62, %v11473_v1  ;;  %5662 = vmatprep.mubr.f32.mxu1 %v5311_v6  ;;  %v11612_v58 = vmul.f32 %v11469_v0, %v4316_v30  ;;  %v11614_v5 = vpop.f32.mrb[214].mxu0  ;;  %v11616_v54 = vld [vmem:[#allocation11 + $0x488] sm:$0xff]  ;;  %v11618_v50 = vld [vmem:[#allocation11 + $0x498] sm:$0xff] }
 0x94e   : > { %12728 = vst [vmem:[#allocation47_spill] sm:$0xff] %v11607_v39  ;;  %v4318_v38 = vpop.f32.mrb[119].mxu1  ;;  %v8294_v32 = vpop.eup %8293  ;;  %v12729_v16 = vld [vmem:[#allocation71_spill] sm:$0xff]  ;;  %8313 = vpow2.f32 %v6272_v11  ;;  %5663 = vmatmul.mubr.f32.gmra.mrb[172].mxu1 %v5310_v37  ;;  %v12732_v37 = vld [vmem:[#allocation73_spill] sm:$0xff] }
 0x94f   : > { %v11622_v39 = vmul.f32 %v11311_v3, %v12729_v16  ;;  %v11625_v4 = vmul.f32 %v11477_v56, %v4318_v38  ;;  %v11627_v10 = vpop.f32.mrb[215].mxu0  ;;  %v8296_v1 = vpop.eup %8295  ;;  %v5134_v62 = vmul.f32 %v8294_v32, %v12687_v57  ;;  %8315 = vpow2.f32 %v6273_v53  ;;  %v11635_v16 = vld [vmem:[#allocation11 + $0x480] sm:$0xff]  ;;  %v11643_v32 = vld [vmem:[#allocation11 + $0x490] sm:$0xff]  ;;  %v11645_v57 = vld [vmem:[#allocation11 + $0x4a8] sm:$0xff] }
 0x950   : > { %12730 = vst [vmem:[#allocation82_spill] sm:$0xff] %v11627_v10  ;;  %v5317_v6 = vmul.f32 %v5221_v42, %v11485_v18  ;;  %12731 = vst [vmem:[#allocation49_spill] sm:$0xff] %v11635_v16  ;;  %v8298_v11 = vpop.eup %8297  ;;  %v11639_v56 = vmul.f32 %v11319_v2, %v12732_v37  ;;  %v4847_v40 = vadd.f32 1.0, %v8296_v1  ;;  %8317 = vpow2.f32 %v6278_v25  ;;  %v4322_v30 = vpop.f32.mrb[120].mxu1  ;;  %v11647_v18 = vld [vmem:[#allocation11 + $0x4b8] sm:$0xff]  ;;  %v11657_v37 = vld [vmem:[#allocation11 + $0x4a0] sm:$0xff] }
 0x951   : > { %12733 = vst [vmem:[#allocation91_spill] sm:$0xff] %v11645_v57  ;;  %12734 = vst [vmem:[#allocation24_spill] sm:$0xff] %v11647_v18  ;;  %v8300_v53 = vpop.eup %8299  ;;  %v4852_v42 = vadd.f32 1.0, %v8298_v11  ;;  %8319 = vpow2.f32 %v6279_v36  ;;  %v11650_v3 = vmul.f32 %v5134_v62, %v11511_v24  ;;  %v11653_v2 = vmul.f32 %v11481_v61, %v4322_v30  ;;  %v11655_v25 = vpop.f32.mrb[216].mxu0  ;;  %v11659_v38 = vld [vmem:[#allocation11 + $0x4b0] sm:$0xff]  ;;  %v12738_v46 = vld [vmem:[#allocation75_spill] sm:$0xff] }
 0x952   : > { %5668 = vmatprep.mubr.f32.mxu1 %v5317_v6  ;;  %v4324_v1 = vpop.f32.mrb[121].mxu1  ;;  %12736 = vst [vmem:[#allocation58_spill] sm:$0xff] %v11657_v37  ;;  %12737 = vst [vmem:[#allocation97_spill] sm:$0xff] %v11659_v38  ;;  %v8302_v0 = vpop.eup %8301  ;;  %v11663_v10 = vmul.f32 %v11331_v23, %v12738_v46  ;;  %8321 = vrcp.f32 %v4847_v40  ;;  %v4853_v36 = vadd.f32 1.0, %v8300_v53  ;;  %v11670_v62 = vld [vmem:[#allocation11 + $0x4c8] sm:$0xff]  ;;  %v11672_v6 = vld [vmem:[#allocation11 + $0x4d8] sm:$0xff] }
 0x953   : > { %12735 = vst [vmem:[#allocation96_spill] sm:$0xff] %v11650_v3  ;;  %5669 = vmatmul.mubr.f32.gmra.mrb[174].mxu1 %v5316_v19  ;;  %v11666_v24 = vmul.f32 %v11489_v45, %v4324_v1  ;;  %v11668_v61 = vpop.f32.mrb[217].mxu0  ;;  %v8304_v11 = vpop.eup %8303  ;;  %8323 = vrcp.f32 %v4852_v42  ;;  %v4858_v30 = vadd.f32 1.0, %v8302_v0  ;;  %v11679_v19 = vld [vmem:[#allocation11 + $0x4c0] sm:$0xff]  ;;  %v12741_v40 = vld [vmem:[#allocation78_spill] sm:$0xff]  ;;  %v12742_v53 = vld [vmem:[#allocation119_spill] sm:$0xff] }
 0x954   : > { %12739 = vst [vmem:[#allocation59_spill] sm:$0xff] %v11668_v61  ;;  %5739 = vmatprep.mubr.f32.mxu1 %v11519_v52  ;;  %12740 = vst [vmem:[#allocation102_spill] sm:$0xff] %v11679_v19  ;;  %v8306_v45 = vpop.eup %8305  ;;  %v11683_v1 = vmul.f32 %v12742_v53, %v12741_v40  ;;  %8325 = vrcp.f32 %v4853_v36  ;;  %v4859_v3 = vadd.f32 1.0, %v8304_v11  ;;  %v4328_v61 = vpop.f32.mrb[122].mxu1  ;;  %v11687_v52 = vld [vmem:[#allocation11 + $0x4d0] sm:$0xff]  ;;  %v11689_v42 = vld [vmem:[#allocation11 + $0x4e8] sm:$0xff]  ;;  %v12748_v11 = vpack.c.bf16 %v11502_v55, %v11500_v8 }
 0x955   : > { %12743 = vst [vmem:[#allocation60_spill] sm:$0xff] %v11687_v52  ;;  %12744 = vst [vmem:[#allocation103_spill] sm:$0xff] %v11689_v42  ;;  %v11691_v46 = vld [vmem:[#allocation11 + $0x4f8] sm:$0xff]  ;;  %v8308_v23 = vpop.eup %8307  ;;  %8327 = vrcp.f32 %v4858_v30  ;;  %v4864_v57 = vadd.f32 1.0, %v8306_v45  ;;  %v11694_v18 = vmul.f32 %v11493_v13, %v4328_v61  ;;  %v11696_v40 = vpop.f32.mrb[218].mxu0  ;;  %v12746_v0 = vld [vmem:[#allocation81_spill] sm:$0xff] }
 0x956   : > { %12745 = vst [vmem:[#allocation61_spill] sm:$0xff] %v11691_v46  ;;  %v4330_v36 = vpop.f32.mrb[123].mxu1  ;;  %v8310_v53 = vpop.eup %8309  ;;  %v12747_v37 = vld [vmem:[#allocation121_spill] sm:$0xff]  ;;  %8329 = vrcp.f32 %v4859_v3  ;;  %v4865_v16 = vadd.f32 1.0, %v8308_v23  ;;  %v12749_v23 = vld [vmem:[#allocation123_spill] sm:$0xff]  ;;  %v12759_v46 = vld [vmem:[#allocation126_spill] sm:$0xff] }
 0x957   : > { %v11702_v38 = vmul.f32 %v12747_v37, %v12746_v0  ;;  %5740 = vmatmul.mubr.f32.vlgmr.msra.gmra.mrb[144].mxu1 %v11509_v60  ;;  %v11706_v30 = vmul.f32 %v11497_v28, %v4330_v36  ;;  %v11708_v13 = vpop.f32.mrb[219].mxu0  ;;  %v8312_v61 = vpop.eup %8311  ;;  %8331 = vrcp.f32 %v4864_v57  ;;  %v4870_v45 = vadd.f32 1.0, %v8310_v53  ;;  %v12750_v36 = vld [vmem:[#allocation124_spill] sm:$0xff] }
 0x958   : > { %7592 = vmatpush1.bf16.msra.mxu1 %v12748_v11  ;;  %5745 = vmatprep.mubr.f32.mxu1 %v11552_v27  ;;  %v8314_v37 = vpop.eup %8313  ;;  %8333 = vrcp.f32 %v4865_v16  ;;  %v4871_v28 = vadd.f32 1.0, %v8312_v61  ;;  %v6284_v0 = vmul.f32 -1.442695, %v12749_v23  ;;  %v6285_v57 = vmul.f32 -1.442695, %v12750_v36  ;;  %v4334_v8 = vpop.f32.mrb[124].mxu1 }
 0x959   : > { %v12751_v53 = vpack.c.bf16 %v11515_v12, %v11513_v21  ;;  %v8316_v55 = vpop.eup %8315  ;;  %8335 = vrcp.f32 %v4870_v45  ;;  %v4876_v27 = vadd.f32 1.0, %v8314_v37  ;;  %v12752_v11 = vld [vmem:[#allocation77_spill] sm:$0xff]  ;;  %v11725_v19 = vmul.f32 %v11506_v20, %v4334_v8  ;;  %v11727_v60 = vpop.f32.mrb[220].mxu0  ;;  %v12754_v20 = vld [vmem:[#allocation80_spill] sm:$0xff]  ;;  %v12755_v8 = vld [vmem:[#allocation83_spill] sm:$0xff] }
 0x95a   : > { %v6290_v3 = vmul.f32 -1.442695, %v12752_v11  ;;  %v4336_v16 = vpop.f32.mrb[125].mxu1  ;;  %v8318_v61 = vpop.eup %8317  ;;  %8337 = vrcp.f32 %v4871_v28  ;;  %v4877_v23 = vadd.f32 1.0, %v8316_v55  ;;  %v12753_v36 = vld [vmem:[#allocation125_spill] sm:$0xff]  ;;  %v12756_v28 = vpack.c.bf16 %v11531_v31, %v11529_v26  ;;  %v12761_v31 = vld [vmem:[#allocation94_spill] sm:$0xff] }
 0x95b   : > { %7594 = vmatprep.subr.bf16.mxu1 %v12751_v53  ;;  %v6291_v42 = vmul.f32 -1.442695, %v12753_v36  ;;  %5746 = vmatmul.mubr.f32.gmra.mrb[146].mxu1 %v11542_v22  ;;  %v11732_v21 = vmul.f32 %v11601_v9, %v4336_v16  ;;  %v11734_v12 = vpop.f32.mrb[221].mxu0  ;;  %v8320_v45 = vpop.eup %8319  ;;  %8339 = vrcp.f32 %v4876_v27  ;;  %v4882_v37 = vadd.f32 1.0, %v8318_v61  ;;  %v12757_v22 = vld [vmem:[#allocation84_spill] sm:$0xff] }
 0x95c   : > { %v6296_v53 = vmul.f32 -1.442695, %v12754_v20  ;;  %v6297_v11 = vmul.f32 -1.442695, %v12755_v8  ;;  %7596 = vmatpush1.bf16.msra.mxu1 %v12756_v28  ;;  %5751 = vmatprep.mubr.f32.mxu1 %v11582_v63  ;;  %v8322_v55 = vpop.eup %8321  ;;  %v12758_v36 = vld [vmem:[#allocation92_spill] sm:$0xff]  ;;  %8341 = vrcp.f32 %v4877_v23  ;;  %v4883_v16 = vadd.f32 1.0, %v8320_v45 }
 0x95d   : > { %v11744_v9 = vmul.f32 %v12758_v36, %v12757_v22  ;;  %v6302_v27 = vmul.f32 -1.442695, %v12759_v46  ;;  %v12760_v61 = vpack.c.bf16 %v11548_v51, %v11546_v34  ;;  %v4340_v8 = vpop.f32.mrb[126].mxu1  ;;  %v8324_v20 = vpop.eup %8323  ;;  %v5135_v26 = vmul.f32 %v8322_v55, %v11263_v35  ;;  %v12763_v22 = vld [vmem:[#allocation85_spill] sm:$0xff]  ;;  %v12764_v46 = vld [vmem:[#allocation127_spill] sm:$0xff]  ;;  %v12766_v55 = vld [vmem:[#allocation128_spill] sm:$0xff] }
 0x95e   : > { %8343 = vrcp.f32 %v4882_v37  ;;  %v6303_v63 = vmul.f32 -1.442695, %v12761_v31  ;;  %v11753_v28 = vmul.f32 %v11622_v39, %v4340_v8  ;;  %v11755_v36 = vpop.f32.mrb[222].mxu0  ;;  %v4342_v23 = vpop.f32.mrb[127].mxu1  ;;  %v11759_v52 = vmul.f32 %v12764_v46, %v12763_v22  ;;  %v12765_v37 = vld [vmem:[#allocation111_spill] sm:$0xff]  ;;  %v12767_v31 = vld [vmem:[#allocation42_spill] sm:$0xff] }
 0x95f   : > { %7598 = vmatprep.subr.bf16.mxu1 %v12760_v61  ;;  %12762 = vst [vmem:[#allocation108_spill] sm:$0xff] %v11755_v36  ;;  %v8326_v45 = vpop.eup %8325  ;;  %v5140_v34 = vmul.f32 %v8324_v20, %v11269_v47  ;;  %8345 = vrcp.f32 %v4883_v16  ;;  %5752 = vmatmul.mubr.f32.gmra.mrb[148].mxu1 %v11576_v7  ;;  %v11764_v35 = vmul.f32 %v11639_v56, %v4342_v23  ;;  %v11766_v51 = vpop.f32.mrb[223].mxu0  ;;  %v6308_v61 = vmul.f32 -1.442695, %v12766_v55  ;;  %v12770_v56 = vld [vmem:[#allocation112_spill] sm:$0xff] }
 0x960   : > { %v8328_v39 = vpop.eup %8327  ;;  %v5141_v8 = vmul.f32 %v8326_v45, %v12765_v37  ;;  %8347 = vpow2.f32 %v6284_v0  ;;  %v11771_v36 = vmul.f32 %v5135_v26, %v12767_v31  ;;  %v12769_v47 = vpack.c.bf16 %v11565_v49, %v11563_v48  ;;  %5757 = vmatprep.mubr.f32.mxu1 %v11625_v4  ;;  %v12771_v20 = vld [vmem:[#allocation100_spill] sm:$0xff]  ;;  %v4346_v26 = vpop.f32.mrb[128].mxu1  ;;  %v12774_v45 = vld [vmem:[#allocation113_spill] sm:$0xff]  ;;  %v12778_v37 = vld [vmem:[#allocation130_spill] sm:$0xff] }
 0x961   : > { %v8330_v7 = vpop.eup %8329  ;;  %v5146_v46 = vmul.f32 %v8328_v39, %v12770_v56  ;;  %8349 = vpow2.f32 %v6285_v57  ;;  %v6309_v16 = vmul.f32 -1.442695, %v12771_v20  ;;  %v11780_v23 = vmul.f32 %v5140_v34, %v11544_v44  ;;  %v11792_v57 = vpop.f32.mrb[224].mxu0  ;;  %v12776_v34 = vld [vmem:[#allocation114_spill] sm:$0xff] }
 0x962   : > { %12768 = vst [vmem:[#allocation63_spill] sm:$0xff] %v11771_v36  ;;  %7600 = vmatpush1.bf16.msra.mxu1 %v12769_v47  ;;  %v12773_v0 = vpack.c.bf16 %v11595_v33, %v11593_v14  ;;  %v8332_v31 = vpop.eup %8331  ;;  %v5147_v48 = vmul.f32 %v8330_v7, %v12774_v45  ;;  %8351 = vpow2.f32 %v6290_v3  ;;  %v11787_v49 = vmul.f32 %v5141_v8, %v11554_v43  ;;  %v4348_v22 = vpop.f32.mrb[129].mxu1  ;;  %v12782_v7 = vld [vmem:[#allocation106_spill] sm:$0xff]  ;;  %v12788_v45 = vld [vmem:[#allocation117_spill] sm:$0xff] }
 0x963   : > { %12772 = vst [vmem:[#allocation109_spill] sm:$0xff] %v11780_v23  ;;  %v11790_v4 = vmul.f32 %v11663_v10, %v4346_v26  ;;  %v8334_v44 = vpop.eup %8333  ;;  %v5152_v39 = vmul.f32 %v8332_v31, %v12776_v34  ;;  %8353 = vpow2.f32 %v6291_v42  ;;  %v11796_v14 = vmul.f32 %v5146_v46, %v11578_v15  ;;  %5758 = vmatmul.mubr.f32.gmra.mrb[150].mxu1 %v11612_v58  ;;  %v11802_v43 = vpop.f32.mrb[225].mxu0  ;;  %v12791_v34 = vld [vmem:[#allocation132_spill] sm:$0xff] }
 0x964   : > { %7602 = vmatprep.subr.bf16.mxu1 %v12773_v0  ;;  %12775 = vst [vmem:[#allocation67_spill] sm:$0xff] %v11787_v49  ;;  %v11800_v33 = vmul.f32 %v11683_v1, %v4348_v22  ;;  %v8336_v3 = vpop.eup %8335  ;;  %v5153_v10 = vmul.f32 %v8334_v44, %v11294_v29  ;;  %8355 = vpow2.f32 %v6296_v53  ;;  %v6314_v8 = vmul.f32 -1.442695, %v12778_v37  ;;  %5763 = vmatprep.mubr.f32.mxu1 %v11666_v24  ;;  %v12781_v1 = vld [vmem:[#allocation115_spill] sm:$0xff]  ;;  %v12785_v0 = vld [vmem:[#allocation116_spill] sm:$0xff] }
 0x965   : > { %12777 = vst [vmem:[#allocation71_spill] sm:$0xff] %v11796_v14  ;;  %v11807_v47 = vmul.f32 %v5147_v48, %v11584_v17  ;;  %v12780_v15 = vpack.c.bf16 %v11605_v41, %v11597_v59  ;;  %v8338_v58 = vpop.eup %8337  ;;  %v5158_v42 = vmul.f32 %v8336_v3, %v12781_v1  ;;  %8357 = vpow2.f32 %v6297_v11  ;;  %v4352_v17 = vpop.f32.mrb[130].mxu1  ;;  %v12786_v41 = vld [vmem:[#allocation82_spill] sm:$0xff]  ;;  %v12792_v3 = vld [vmem:[#allocation59_spill] sm:$0xff]  ;;  %v12798_v1 = vld [vmem:[#allocation120_spill] sm:$0xff] }
 0x966   : > { %v6315_v56 = vmul.f32 -1.442695, %v12782_v7  ;;  %v11816_v29 = vmul.f32 %v5152_v39, %v11614_v5  ;;  %v12784_v53 = vpack.c.bf16 %v11618_v50, %v11616_v54  ;;  %v8340_v46 = vpop.eup %8339  ;;  %v5159_v59 = vmul.f32 %v8338_v58, %v12785_v0  ;;  %v11828_v11 = vpop.f32.mrb[226].mxu0  ;;  %v12840_v49 = vld [vmem:[#allocation124_spill] sm:$0xff] }
 0x967   : > { %12779 = vst [vmem:[#allocation73_spill] sm:$0xff] %v11807_v47  ;;  %7604 = vmatpush1.bf16.msra.mxu1 %v12780_v15  ;;  %8359 = vpow2.f32 %v6302_v27  ;;  %v11823_v24 = vmul.f32 %v5153_v10, %v12786_v41  ;;  %v11826_v26 = vmul.f32 %v11702_v38, %v4352_v17  ;;  %v4354_v31 = vpop.f32.mrb[131].mxu1  ;;  %v8342_v5 = vpop.eup %8341  ;;  %v5164_v48 = vmul.f32 %v8340_v46, %v12788_v45  ;;  %v12790_v38 = vld [vmem:[#allocation118_spill] sm:$0xff]  ;;  %v12801_v17 = vld [vmem:[#allocation91_spill] sm:$0xff]  ;;  %v12836_v47 = vld [vmem:[#allocation41_spill] sm:$0xff] }
 0x968   : > { %12783 = vst [vmem:[#allocation75_spill] sm:$0xff] %v11816_v29  ;;  %7606 = vmatprep.subr.bf16.mxu1 %v12784_v53  ;;  %8361 = vpow2.f32 %v6303_v63  ;;  %v11832_v50 = vmul.f32 %v5158_v42, %v11655_v25  ;;  %5764 = vmatmul.mubr.f32.gmra.mrb[152].mxu1 %v11653_v2  ;;  %v11836_v54 = vmul.f32 %v11744_v9, %v4354_v31  ;;  %v11838_v27 = vpop.f32.mrb[227].mxu0  ;;  %v8344_v22 = vpop.eup %8343  ;;  %v6320_v39 = vmul.f32 -1.442695, %v12791_v34  ;;  %v12794_v63 = vld [vmem:[#allocation49_spill] sm:$0xff]  ;;  %v12796_v9 = vld [vmem:[#allocation86_spill] sm:$0xff] }
 0x969   : > { %12787 = vst [vmem:[#allocation78_spill] sm:$0xff] %v11823_v24  ;;  %v5165_v44 = vmul.f32 %v8342_v5, %v12790_v38  ;;  %8363 = vpow2.f32 %v6308_v61  ;;  %v11843_v10 = vmul.f32 %v5159_v59, %v12792_v3  ;;  %v12795_v25 = vpack.c.bf16 %v11643_v32, %v12794_v63  ;;  %5769 = vmatprep.mubr.f32.mxu1 %v11706_v30  ;;  %v8346_v2 = vpop.eup %8345  ;;  %v12797_v15 = vld [vmem:[#allocation98_spill] sm:$0xff]  ;;  %v12800_v53 = vld [vmem:[#allocation24_spill] sm:$0xff]  ;;  %v4358_v0 = vpop.f32.mrb[132].mxu1  ;;  %v12806_v63 = vld [vmem:[#allocation87_spill] sm:$0xff] }
 0x96a   : > { %12789 = vst [vmem:[#allocation119_spill] sm:$0xff] %v11832_v50  ;;  %v5193_v58 = vmul.f32 %v12797_v15, %v12796_v9  ;;  %v5170_v42 = vmul.f32 %v8344_v22, %v12798_v1  ;;  %8365 = vpow2.f32 %v6309_v16  ;;  %v11853_v61 = vmul.f32 %v5164_v48, %v11696_v40  ;;  %v8348_v59 = vpop.eup %8347  ;;  %v12803_v32 = vld [vmem:[#allocation122_spill] sm:$0xff]  ;;  %v11862_v31 = vld [vmem:[#allocation11 + $0x4e0] sm:$0xff]  ;;  %v11869_v40 = vpop.f32.mrb[228].mxu0 }
 0x96b   : > { %12793 = vst [vmem:[#allocation81_spill] sm:$0xff] %v11843_v10  ;;  %7608 = vmatpush1.bf16.msra.mxu1 %v12795_v25  ;;  %v12802_v46 = vpack.c.bf16 %v12800_v53, %v12801_v17  ;;  %v5171_v41 = vmul.f32 %v8346_v2, %v12803_v32  ;;  %8367 = vpow2.f32 %v6314_v8  ;;  %v11860_v30 = vmul.f32 %v5165_v44, %v11708_v13  ;;  %v11864_v5 = vld [vmem:[#allocation11 + $0x4f0] sm:$0xff]  ;;  %v4360_v45 = vpop.f32.mrb[133].mxu1  ;;  %v8350_v48 = vpop.eup %8349  ;;  %v11875_v13 = vld [vmem:[#allocation11 + $0x508] sm:$0xff]  ;;  %v11877_v8 = vld [vmem:[#allocation11 + $0x518] sm:$0xff] }
 0x96c   : > { %12799 = vst [vmem:[#allocation121_spill] sm:$0xff] %v11853_v61  ;;  %v11867_v16 = vmul.f32 %v11759_v52, %v4358_v0  ;;  %v4888_v22 = vadd.f32 1.0, %v8348_v59  ;;  %8369 = vpow2.f32 %v6315_v56  ;;  %v11872_v38 = vmul.f32 %v5170_v42, %v11727_v60  ;;  %5770 = vmatmul.mubr.f32.gmra.mrb[154].mxu1 %v11694_v18  ;;  %v11881_v3 = vpop.f32.mrb[229].mxu0  ;;  %v8352_v52 = vpop.eup %8351  ;;  %v12807_v25 = vld [vmem:[#allocation129_spill] sm:$0xff]  ;;  %v12810_v15 = vld [vmem:[#allocation58_spill] sm:$0xff]  ;;  %v11892_v1 = vld [vmem:[#allocation11 + $0x500] sm:$0xff] }
 0x96d   : > { %7610 = vmatprep.subr.bf16.mxu1 %v12802_v46  ;;  %12804 = vst [vmem:[#allocation84_spill] sm:$0xff] %v11860_v30  ;;  %v11879_v44 = vmul.f32 %v5193_v58, %v4360_v45  ;;  %v5198_v2 = vmul.f32 %v12807_v25, %v12806_v63  ;;  %v4889_v9 = vadd.f32 1.0, %v8350_v48  ;;  %8371 = vpow2.f32 %v6320_v39  ;;  %v12809_v60 = vld [vmem:[#allocation97_spill] sm:$0xff]  ;;  %5775 = vmatprep.mubr.f32.mxu1 %v11732_v21  ;;  %v11894_v58 = vld [vmem:[#allocation11 + $0x510] sm:$0xff]  ;;  %v8354_v42 = vpop.eup %8353  ;;  %v12812_v53 = vld [vmem:[#allocation88_spill] sm:$0xff]  ;;  %v4364_v32 = vpop.f32.mrb[134].mxu1 }
 0x96e   : > { %12805 = vst [vmem:[#allocation92_spill] sm:$0xff] %v11872_v38  ;;  %v11886_v56 = vmul.f32 %v5171_v41, %v11734_v12  ;;  %v12811_v18 = vpack.c.bf16 %v12809_v60, %v12810_v15  ;;  %v12813_v17 = vld [vmem:[#allocation104_spill] sm:$0xff]  ;;  %8373 = vrcp.f32 %v4888_v22  ;;  %v4894_v0 = vadd.f32 1.0, %v8352_v52  ;;  %v11903_v59 = vld [vmem:[#allocation11 + $0x528] sm:$0xff]  ;;  %v11905_v21 = vld [vmem:[#allocation11 + $0x538] sm:$0xff]  ;;  %v8356_v41 = vpop.eup %8355 }
 0x96f   : > { %v5199_v46 = vmul.f32 %v12813_v17, %v12812_v53  ;;  %v12814_v12 = vpack.c.bf16 %v11672_v6, %v11670_v62  ;;  %v7619_v39 = vpack.c.bf16 %v11864_v5, %v11862_v31  ;;  %8375 = vrcp.f32 %v4889_v9  ;;  %v11909_v22 = vld [vmem:[#allocation11 + $0x520] sm:$0xff]  ;;  %v11911_v52 = vld [vmem:[#allocation11 + $0x530] sm:$0xff]  ;;  %v11915_v6 = vpop.f32.mrb[230].mxu0  ;;  %v4366_v31 = vpop.f32.mrb[135].mxu1  ;;  %v11920_v9 = vld [vmem:[#allocation11 + $0x548] sm:$0xff] }
 0x970   : > { %12808 = vst [vmem:[#allocation85_spill] sm:$0xff] %v11886_v56  ;;  %7612 = vmatpush1.bf16.msra.mxu1 %v12811_v18  ;;  %v4895_v45 = vadd.f32 1.0, %v8354_v42  ;;  %v7621_v48 = vpack.c.bf16 %v11877_v8, %v11875_v13  ;;  %v11913_v62 = vmul.f32 %v5198_v2, %v4364_v32  ;;  %v8358_v5 = vpop.eup %8357  ;;  %8377 = vrcp.f32 %v4894_v0  ;;  %v11922_v13 = vld [vmem:[#allocation11 + $0x558] sm:$0xff]  ;;  %v11926_v60 = vpop.f32.mrb[231].mxu0  ;;  %v12815_v15 = vld [vmem:[#allocation89_spill] sm:$0xff]  ;;  %v12817_v17 = vld [vmem:[#allocation60_spill] sm:$0xff] }
 0x971   : > { %7614 = vmatprep.subr.bf16.mxu1 %v12814_v12  ;;  %v4900_v63 = vadd.f32 1.0, %v8356_v41  ;;  %5776 = vmatmul.mubr.f32.gmra.mrb[156].mxu1 %v11725_v19  ;;  %v11924_v8 = vmul.f32 %v5199_v46, %v4366_v31  ;;  %v8360_v2 = vpop.eup %8359  ;;  %v12816_v18 = vld [vmem:[#allocation131_spill] sm:$0xff]  ;;  %v4901_v53 = vadd.f32 1.0, %v8358_v5  ;;  %v12818_v0 = vld [vmem:[#allocation102_spill] sm:$0xff]  ;;  %v11936_v32 = vld [vmem:[#allocation11 + $0x540] sm:$0xff] }
 0x972   : > { %v5204_v42 = vmul.f32 %v12816_v18, %v12815_v15  ;;  %8379 = vrcp.f32 %v4895_v45  ;;  %v12819_v19 = vpack.c.bf16 %v12817_v17, %v12818_v0  ;;  %5781 = vmatprep.mubr.f32.mxu1 %v11764_v35  ;;  %v11938_v46 = vld [vmem:[#allocation11 + $0x550] sm:$0xff]  ;;  %v8362_v41 = vpop.eup %8361  ;;  %v4906_v45 = vadd.f32 1.0, %v8360_v2  ;;  %v12822_v5 = vld [vmem:[#allocation61_spill] sm:$0xff]  ;;  %v12823_v15 = vld [vmem:[#allocation103_spill] sm:$0xff]  ;;  %v4370_v17 = vpop.f32.mrb[136].mxu1 }
 0x973   : > { %v12820_v31 = vld [vmem:[#allocation90_spill] sm:$0xff]  ;;  %8381 = vrcp.f32 %v4900_v63  ;;  %v12824_v18 = vpack.c.bf16 %v12822_v5, %v12823_v15  ;;  %v11947_v0 = vld [vmem:[#allocation11 + $0x568] sm:$0xff]  ;;  %v8364_v12 = vpop.eup %8363  ;;  %v4907_v56 = vadd.f32 1.0, %v8362_v41  ;;  %v11955_v2 = vpop.f32.mrb[232].mxu0  ;;  %v12828_v30 = vld [vmem:[#allocation43_spill] sm:$0xff] }
 0x974   : > { %7616 = vmatpush1.bf16.msra.mxu1 %v12819_v19  ;;  %v12821_v25 = vld [vmem:[#allocation110_spill] sm:$0xff]  ;;  %v11949_v19 = vld [vmem:[#allocation11 + $0x578] sm:$0xff]  ;;  %8383 = vrcp.f32 %v4901_v53  ;;  %v11953_v63 = vmul.f32 %v5204_v42, %v4370_v17  ;;  %v8366_v5 = vpop.eup %8365  ;;  %v4912_v15 = vadd.f32 1.0, %v8364_v12  ;;  %v11962_v53 = vpop.f32.mrb[233].mxu0  ;;  %v12825_v61 = vld [vmem:[#allocation93_spill] sm:$0xff] }
 0x975   : > { %v5205_v38 = vmul.f32 %v12821_v25, %v12820_v31  ;;  %7618 = vmatprep.subr.bf16.mxu1 %v12824_v18  ;;  %v4372_v31 = vpop.f32.mrb[137].mxu1  ;;  %8385 = vrcp.f32 %v4906_v45  ;;  %5782 = vmatmul.mubr.f32.gmra.mrb[158].mxu1 %v11753_v28  ;;  %v8368_v41 = vpop.eup %8367  ;;  %v12826_v25 = vld [vmem:[#allocation74_spill] sm:$0xff]  ;;  %v4913_v17 = vadd.f32 1.0, %v8366_v5  ;;  %v12827_v45 = vld [vmem:[#allocation95_spill] sm:$0xff]  ;;  %v6332_v23 = vmul.f32 -1.442695, %v12836_v47 }
 0x976   : > { %v5210_v42 = vmul.f32 %v12826_v25, %v12825_v61  ;;  %8387 = vrcp.f32 %v4907_v56  ;;  %5787 = vmatprep.mubr.f32.mxu1 %v11800_v33  ;;  %v8370_v28 = vpop.eup %8369  ;;  %v5211_v18 = vmul.f32 %v12828_v30, %v12827_v45  ;;  %v4376_v10 = vpop.f32.mrb[138].mxu1  ;;  %v12830_v56 = vld [vmem:[#allocation40_spill] sm:$0xff]  ;;  %v12831_v30 = vld [vmem:[#allocation70_spill] sm:$0xff] }
 0x977   : > { %v11960_v35 = vmul.f32 %v5205_v38, %v4372_v31  ;;  %8389 = vrcp.f32 %v4912_v15  ;;  %v4918_v38 = vadd.f32 1.0, %v8368_v41  ;;  %v12829_v31 = vld [vmem:[#allocation133_spill] sm:$0xff]  ;;  %v8372_v29 = vpop.eup %8371  ;;  %v4919_v61 = vadd.f32 1.0, %v8370_v28  ;;  %v11975_v33 = vpop.f32.mrb[234].mxu0  ;;  %v12833_v28 = vld [vmem:[#allocation99_spill] sm:$0xff]  ;;  %v12834_v45 = vld [vmem:[#allocation76_spill] sm:$0xff] }
 0x978   : > { %7620 = vmatpush1.bf16.msra.mxu1 %v7619_v39  ;;  %v6321_v50 = vmul.f32 -1.442695, %v12829_v31  ;;  %8391 = vrcp.f32 %v4913_v17  ;;  %v6326_v39 = vmul.f32 -1.442695, %v12830_v56  ;;  %v11973_v25 = vmul.f32 %v5210_v42, %v4376_v10  ;;  %v4378_v5 = vpop.f32.mrb[139].mxu1  ;;  %v8374_v12 = vpop.eup %8373  ;;  %v12835_v10 = vld [vmem:[#allocation123_spill] sm:$0xff] }
 0x979   : > { %7622 = vmatprep.subr.bf16.mxu1 %v7621_v48  ;;  %8393 = vrcp.f32 %v4918_v38  ;;  %v4924_v24 = vadd.f32 1.0, %v8372_v29  ;;  %v6327_v15 = vmul.f32 -1.442695, %v12831_v30  ;;  %5788 = vmatmul.mubr.f32.gmra.mrb[160].mxu1 %v11790_v4  ;;  %v11979_v41 = vmul.f32 %v5211_v18, %v4378_v5  ;;  %v11981_v48 = vpop.f32.mrb[235].mxu0  ;;  %v8376_v17 = vpop.eup %8375  ;;  %v12838_v18 = vld [vmem:[#allocation101_spill] sm:$0xff] }
 0x97a   : > { %12832 = vst [vmem:[#allocation127_spill] sm:$0xff] %v11981_v48  ;;  %v5216_v14 = vmul.f32 %v12834_v45, %v12833_v28  ;;  %v5176_v42 = vmul.f32 %v8374_v12, %v12835_v10  ;;  %8395 = vrcp.f32 %v4919_v61  ;;  %v12837_v29 = vpack.c.bf16 %v11894_v58, %v11892_v1  ;;  %5793 = vmatprep.mubr.f32.mxu1 %v11836_v54  ;;  %v8378_v4 = vpop.eup %8377  ;;  %v12839_v38 = vld [vmem:[#allocation45_spill] sm:$0xff]  ;;  %v12841_v48 = vld [vmem:[#allocation72_spill] sm:$0xff]  ;;  %v4382_v61 = vpop.f32.mrb[140].mxu1 }
 0x97b   : > { %v5217_v5 = vmul.f32 %v12839_v38, %v12838_v18  ;;  %v5177_v36 = vmul.f32 %v8376_v17, %v12840_v49  ;;  %8397 = vrcp.f32 %v4924_v24  ;;  %v6333_v28 = vmul.f32 -1.442695, %v12841_v48  ;;  %v12843_v10 = vld [vmem:[#allocation77_spill] sm:$0xff]  ;;  %v12844_v58 = vld [vmem:[#allocation108_spill] sm:$0xff]  ;;  %v12004_v18 = vpop.f32.mrb[236].mxu0  ;;  %v4384_v49 = vpop.f32.mrb[141].mxu1 }
 0x97c   : > { %7624 = vmatpush1.bf16.msra.mxu1 %v12837_v29  ;;  %v12842_v12 = vpack.c.bf16 %v11905_v21, %v11903_v59  ;;  %v8380_v45 = vpop.eup %8379  ;;  %v5182_v1 = vmul.f32 %v8378_v4, %v12843_v10  ;;  %8399 = vpow2.f32 %v6321_v50  ;;  %v12000_v54 = vmul.f32 %v5176_v42, %v12844_v58  ;;  %v12845_v17 = vld [vmem:[#allocation125_spill] sm:$0xff]  ;;  %v12013_v50 = vpop.f32.mrb[237].mxu0 }
 0x97d   : > { %v12002_v29 = vmul.f32 %v5216_v14, %v4382_v61  ;;  %v8382_v24 = vpop.eup %8381  ;;  %v5183_v38 = vmul.f32 %v8380_v45, %v12845_v17  ;;  %8401 = vpow2.f32 %v6326_v39  ;;  %v12008_v59 = vmul.f32 %v5177_v36, %v11766_v51  ;;  %5794 = vmatmul.mubr.f32.gmra.mrb[162].mxu1 %v11826_v26  ;;  %v12846_v4 = vld [vmem:[#allocation105_spill] sm:$0xff]  ;;  %v12847_v14 = vld [vmem:[#allocation79_spill] sm:$0xff]  ;;  %v12848_v61 = vld [vmem:[#allocation80_spill] sm:$0xff] }
 0x97e   : > { %7626 = vmatprep.subr.bf16.mxu1 %v12842_v12  ;;  %v12011_v21 = vmul.f32 %v5217_v5, %v4384_v49  ;;  %v8384_v42 = vpop.eup %8383  ;;  %v5222_v12 = vmul.f32 %v12847_v14, %v12846_v4  ;;  %v5188_v10 = vmul.f32 %v8382_v24, %v12848_v61  ;;  %8403 = vpow2.f32 %v6327_v15  ;;  %5799 = vmatprep.mubr.f32.mxu1 %v11879_v44  ;;  %v12850_v26 = vld [vmem:[#allocation107_spill] sm:$0xff]  ;;  %v5494_v15 = vld [vmem:[#allocation11 + $0x560] sm:$0xff]  ;;  %v12854_v24 = vld [vmem:[#allocation126_spill] sm:$0xff] }
 0x97f   : > { %v12019_v58 = vmul.f32 %v5182_v1, %v11792_v57  ;;  %v12849_v36 = vpack.c.bf16 %v11911_v52, %v11909_v22  ;;  %v8386_v51 = vpop.eup %8385  ;;  %v12851_v39 = vld [vmem:[#allocation47_spill] sm:$0xff]  ;;  %8405 = vpow2.f32 %v6332_v23  ;;  %v12029_v17 = vmul.f32 %v5183_v38, %v11802_v43  ;;  %v5496_v1 = vld [vmem:[#allocation11 + $0x570] sm:$0xff]  ;;  %v4388_v22 = vpop.f32.mrb[142].mxu1  ;;  %v5499_v14 = vld [vmem:[#allocation11 + $0x588] sm:$0xff] }
 0x980   : > { %v5223_v5 = vmul.f32 %v12851_v39, %v12850_v26  ;;  %v12852_v45 = vld [vmem:[#allocation83_spill] sm:$0xff]  ;;  %v12853_v57 = vpack.c.bf16 %v11922_v13, %v11920_v9  ;;  %v8388_v52 = vpop.eup %8387  ;;  %v5194_v44 = vmul.f32 %v8386_v51, %v12854_v24  ;;  %8407 = vpow2.f32 %v6333_v28  ;;  %v12040_v43 = vpop.f32.mrb[238].mxu0  ;;  %v12855_v9 = vld [vmem:[#allocation94_spill] sm:$0xff] }
 0x981   : > { %7628 = vmatpush1.bf16.msra.mxu1 %v12849_v36  ;;  %v5189_v49 = vmul.f32 %v8384_v42, %v12852_v45  ;;  %v12036_v4 = vmul.f32 %v5188_v10, %v11828_v11  ;;  %v5501_v42 = vld [vmem:[#allocation11 + $0x598] sm:$0xff]  ;;  %v12038_v23 = vmul.f32 %v5222_v12, %v4388_v22  ;;  %v4390_v38 = vpop.f32.mrb[143].mxu1  ;;  %v8390_v61 = vpop.eup %8389  ;;  %v5195_v13 = vmul.f32 %v8388_v52, %v12855_v9 }
 0x982   : > { %7630 = vmatprep.subr.bf16.mxu1 %v12853_v57  ;;  %5800 = vmatmul.mubr.f32.gmra.mrb[164].mxu1 %v11867_v16  ;;  %v12047_v51 = vmul.f32 %v5223_v5, %v4390_v38  ;;  %v12049_v28 = vpop.f32.mrb[239].mxu0  ;;  %v8392_v11 = vpop.eup %8391  ;;  %v5200_v10 = vmul.f32 %v8390_v61, %v12766_v55  ;;  %v12053_v12 = vmul.f32 %v5194_v44, %v11869_v40  ;;  %v5498_v40 = vld [vmem:[#allocation11 + $0x580] sm:$0xff]  ;;  %v5504_v44 = vld [vmem:[#allocation11 + $0x5b0] sm:$0xff] }
 0x983   : > { %v12044_v36 = vmul.f32 %v5189_v49, %v11838_v27  ;;  %v12856_v26 = vpack.c.bf16 %v11938_v46, %v11936_v32  ;;  %5805 = vmatprep.mubr.f32.mxu1 %v11924_v8  ;;  %v7635_v27 = vpack.c.bf16 %v5496_v1, %v5494_v15  ;;  %v8394_v39 = vpop.eup %8393  ;;  %v5201_v16 = vmul.f32 %v8392_v11, %v12771_v20  ;;  %v5500_v49 = vld [vmem:[#allocation11 + $0x590] sm:$0xff]  ;;  %v5503_v8 = vld [vmem:[#allocation11 + $0x5a8] sm:$0xff]  ;;  %v5505_v15 = vld [vmem:[#allocation11 + $0x5b8] sm:$0xff] }
 0x984   : > { %v12061_v5 = vmul.f32 %v5195_v13, %v11881_v3  ;;  %v12857_v45 = vpack.c.bf16 %v11949_v19, %v11947_v0  ;;  %v7637_v55 = vpack.c.bf16 %v5501_v42, %v5499_v14  ;;  %v8396_v57 = vpop.eup %8395  ;;  %v5206_v32 = vmul.f32 %v8394_v39, %v12778_v37  ;;  %v5509_v42 = vld [vmem:[#allocation11 + $0x5d8] sm:$0xff] }
 0x985   : > { %7632 = vmatpush1.bf16.msra.mxu1 %v12856_v26  ;;  %v12068_v46 = vmul.f32 %v5200_v10, %v11915_v6  ;;  %v8398_v1 = vpop.eup %8397  ;;  %v5207_v20 = vmul.f32 %v8396_v57, %v12782_v7  ;;  %v12072_v3 = vmul.f32 %v5201_v16, %v11926_v60  ;;  %v7639_v37 = vpack.c.bf16 %v5500_v49, %v5498_v40  ;;  %v5502_v60 = vld [vmem:[#allocation11 + $0x5a0] sm:$0xff]  ;;  %v5508_v10 = vld [vmem:[#allocation11 + $0x5d0] sm:$0xff]  ;;  %v5511_v26 = vld [vmem:[#allocation11 + $0x5e8] sm:$0xff] }
 0x986   : > { %7634 = vmatprep.subr.bf16.mxu1 %v12857_v45  ;;  %5806 = vmatmul.mubr.f32.gmra.mrb[166].mxu1 %v11913_v62  ;;  %v8400_v0 = vpop.eup %8399  ;;  %v5212_v19 = vmul.f32 %v8398_v1, %v12791_v34  ;;  %v12077_v22 = vmul.f32 %v5206_v32, %v11955_v2  ;;  %v7641_v7 = vpack.c.bf16 %v5505_v15, %v5503_v8  ;;  %v5507_v2 = vld [vmem:[#allocation11 + $0x5c8] sm:$0xff]  ;;  %v5512_v16 = vld [vmem:[#allocation11 + $0x5f0] sm:$0xff]  ;;  %v12858_v8 = vld [vmem:[#allocation127_spill] sm:$0xff] }
 0x987   : > { %5811 = vmatprep.mubr.f32.mxu1 %v11960_v35  ;;  %v8402_v6 = vpop.eup %8401  ;;  %v4925_v52 = vadd.f32 1.0, %v8400_v0  ;;  %v12081_v24 = vmul.f32 %v5207_v20, %v11962_v53  ;;  %v7643_v9 = vpack.c.bf16 %v5504_v44, %v5502_v60  ;;  %v7645_v11 = vpack.c.bf16 %v5509_v42, %v5507_v2  ;;  %v12872_v60 = vld [vmem:[#allocation92_spill] sm:$0xff]  ;;  %v12878_v2 = vld [vmem:[#allocation29_spill] sm:$0xff] }
 0x988   : > { %v8404_v62 = vpop.eup %8403  ;;  %v4930_v14 = vadd.f32 1.0, %v8402_v6  ;;  %v12084_v34 = vmul.f32 %v5212_v19, %v11975_v33  ;;  %v5506_v33 = vld [vmem:[#allocation11 + $0x5c0] sm:$0xff]  ;;  %v12861_v19 = vld [vmem:[#allocation67_spill] sm:$0xff]  ;;  %v12863_v6 = vld [vmem:[#allocation73_spill] sm:$0xff] }
 0x989   : > { %7636 = vmatpush1.bf16.msra.mxu1 %v7635_v27  ;;  %v8406_v38 = vpop.eup %8405  ;;  %8409 = vrcp.f32 %v4925_v52  ;;  %v4931_v35 = vadd.f32 1.0, %v8404_v62  ;;  %v5513_v27 = vld [vmem:[#allocation11 + $0x5f8] sm:$0xff] }
 0x98a   : > { %7638 = vmatprep.subr.bf16.mxu1 %v7637_v55  ;;  %5812 = vmatmul.mubr.f32.gmra.mrb[168].mxu1 %v11953_v63  ;;  %v8408_v61 = vpop.eup %8407  ;;  %8411 = vrcp.f32 %v4930_v14  ;;  %v4936_v53 = vadd.f32 1.0, %v8406_v38  ;;  %v7647_v63 = vpack.c.bf16 %v5508_v10, %v5506_v33  ;;  %v7649_v39 = vpack.c.bf16 %v5513_v27, %v5511_v26  ;;  %v12864_v52 = vld [vmem:[#allocation71_spill] sm:$0xff]  ;;  %v12881_v33 = vld [vmem:[#allocation38_spill] sm:$0xff] }
 0x98b   : > { %5817 = vmatprep.mubr.f32.mxu1 %v11979_v41  ;;  %8413 = vrcp.f32 %v4931_v35  ;;  %v4937_v13 = vadd.f32 1.0, %v8408_v61  ;;  %v5510_v41 = vld [vmem:[#allocation11 + $0x5e0] sm:$0xff]  ;;  %v12877_v62 = vld [vmem:[#allocation27_spill] sm:$0xff]  ;;  %v12882_v27 = vld [vmem:[#allocation54_spill] sm:$0xff] }
 0x98c   : > { %8415 = vrcp.f32 %v4936_v53  ;;  %v7651_v45 = vpack.c.bf16 %v5512_v16, %v5510_v41  ;;  %v12879_v35 = vld [vmem:[#allocation31_spill] sm:$0xff]  ;;  %v12883_v41 = vld [vmem:[#allocation56_spill] sm:$0xff] }
 0x98d   : > { %7640 = vmatpush1.bf16.msra.mxu1 %v7639_v37  ;;  %8417 = vrcp.f32 %v4937_v13  ;;  %v12862_v37 = vld [vmem:[#allocation109_spill] sm:$0xff] }
 0x98e   : > { %7642 = vmatprep.subr.bf16.mxu1 %v7641_v7  ;;  %5818 = vmatmul.mubr.f32.gmra.mrb[170].mxu1 %v11973_v25  ;;  %v12870_v7 = vld [vmem:[#allocation121_spill] sm:$0xff] }
 0x98f   : > { %5823 = vmatprep.mubr.f32.mxu1 %v12011_v21 }
 0x991   : > { %7644 = vmatpush1.bf16.msra.mxu1 %v7643_v9  ;;  %v12880_v9 = vld [vmem:[#allocation35_spill] sm:$0xff] }
 0x992   : > { %7646 = vmatprep.subr.bf16.mxu1 %v7645_v11  ;;  %5824 = vmatmul.mubr.f32.gmra.mrb[172].mxu1 %v12002_v29  ;;  %v12859_v29 = vld [vmem:[#allocation63_spill] sm:$0xff] }
 0x993   : > { %5829 = vmatprep.mubr.f32.mxu1 %v12047_v51  ;;  %v8410_v55 = vpop.eup %8409 }
 0x994   : > { %v8412_v40 = vpop.eup %8411  ;;  %v5213_v49 = vmul.f32 %v8410_v55, %v12829_v31  ;;  %v12884_v55 = vld [vmem:[#allocation51_spill] sm:$0xff] }
 0x995   : > { %7648 = vmatpush1.bf16.msra.mxu1 %v7647_v63  ;;  %v8414_v25 = vpop.eup %8413  ;;  %v5218_v57 = vmul.f32 %v8412_v40, %v12830_v56 }
 0x996   : > { %7650 = vmatprep.subr.bf16.mxu1 %v7649_v39  ;;  %5830 = vmatmul.mubr.f32.gmra.mrb[174].mxu1 %v12038_v23  ;;  %v8416_v21 = vpop.eup %8415  ;;  %v5219_v32 = vmul.f32 %v8414_v25, %v12831_v30  ;;  %v5309_v15 = vmul.f32 %v5213_v49, %v12858_v8  ;;  %v12860_v23 = vld [vmem:[#allocation96_spill] sm:$0xff]  ;;  %v12885_v25 = vld [vmem:[#allocation25_spill] sm:$0xff] }
 0x997   : > { %5900 = vmatprep.mubr.f32.mxu1 %v12859_v29  ;;  %v8418_v51 = vpop.eup %8417  ;;  %v5224_v1 = vmul.f32 %v8416_v21, %v12836_v47  ;;  %v5314_v20 = vmul.f32 %v5218_v57, %v12004_v18  ;;  %v12865_v47 = vld [vmem:[#allocation78_spill] sm:$0xff]  ;;  %v12866_v18 = vld [vmem:[#allocation75_spill] sm:$0xff]  ;;  %v12887_v29 = vld [vmem:[#allocation44_spill] sm:$0xff] }
 0x998   : > { %v5225_v31 = vmul.f32 %v8418_v51, %v12841_v48  ;;  %v5315_v0 = vmul.f32 %v5219_v32, %v12013_v50  ;;  %v12867_v48 = vld [vmem:[#allocation81_spill] sm:$0xff]  ;;  %v12868_v50 = vld [vmem:[#allocation119_spill] sm:$0xff]  ;;  %v12886_v32 = vld [vmem:[#allocation62_spill] sm:$0xff] }
 0x999   : > { %7652 = vmatpush1.bf16.msra.mxu1 %v7651_v45  ;;  %v5320_v56 = vmul.f32 %v5224_v1, %v12040_v43  ;;  %v12869_v43 = vld [vmem:[#allocation84_spill] sm:$0xff] }
 0x99a   : > { %v5321_v30 = vmul.f32 %v5225_v31, %v12049_v28  ;;  %v12871_v28 = vld [vmem:[#allocation85_spill] sm:$0xff] }
 0x99c   : > { %5901 = vmatmul.mubr.f32.vlgmr.msra.gmra.mrb[144].mxu1 %v12860_v23 }
 0x99d   : > { %5906 = vmatprep.mubr.f32.mxu1 %v12861_v19  ;;  %v12890_v19 = vld [vmem:[#allocation26_spill] sm:$0xff] }
 0x9a0   : > { %5907 = vmatmul.mubr.f32.gmra.mrb[146].mxu1 %v12862_v37 }
 0x9a1   : > { %5912 = vmatprep.mubr.f32.mxu1 %v12863_v6 }
 0x9a4   : > { %5913 = vmatmul.mubr.f32.gmra.mrb[148].mxu1 %v12864_v52  ;;  %v12891_v52 = vld [vmem:[#allocation68_spill] sm:$0xff] }
 0x9a5   : > { %5918 = vmatprep.mubr.f32.mxu1 %v12865_v47 }
 0x9a8   : > { %5919 = vmatmul.mubr.f32.gmra.mrb[150].mxu1 %v12866_v18 }
 0x9a9   : > { %5924 = vmatprep.mubr.f32.mxu1 %v12867_v48  ;;  %v12892_v48 = vld [vmem:[#allocation48_spill] sm:$0xff] }
 0x9ac   : > { %5925 = vmatmul.mubr.f32.gmra.mrb[152].mxu1 %v12868_v50 }
 0x9ad   : > { %5930 = vmatprep.mubr.f32.mxu1 %v12869_v43 }
 0x9b0   : > { %5931 = vmatmul.mubr.f32.gmra.mrb[154].mxu1 %v12870_v7  ;;  %v12893_v7 = vld [vmem:[#allocation64_spill] sm:$0xff] }
 0x9b1   : > { %5936 = vmatprep.mubr.f32.mxu1 %v12871_v28 }
 0x9b4   : > { %5937 = vmatmul.mubr.f32.gmra.mrb[156].mxu1 %v12872_v60 }
 0x9b5   : > { %5942 = vmatprep.mubr.f32.mxu1 %v12008_v59  ;;  %v12873_v59 = vld [vmem:[#allocation52_spill] sm:$0xff] }
 0x9b8   : > { %5943 = vmatmul.mubr.f32.gmra.mrb[158].mxu1 %v12000_v54 }
 0x9b9   : > { %5948 = vmatprep.mubr.f32.mxu1 %v12029_v17 }
 0x9bc   : > { %5949 = vmatmul.mubr.f32.gmra.mrb[160].mxu1 %v12019_v58 }
 0x9bd   : > { %5954 = vmatprep.mubr.f32.mxu1 %v12044_v36 }
 0x9c0   : > { %5955 = vmatmul.mubr.f32.gmra.mrb[162].mxu1 %v12036_v4  ;;  %v12874_v4 = vld [vmem:[#allocation53_spill] sm:$0xff] }
 0x9c1   : > { %5960 = vmatprep.mubr.f32.mxu1 %v12061_v5  ;;  %v12875_v5 = vld [vmem:[#allocation55_spill] sm:$0xff] }
 0x9c4   : > { %5961 = vmatmul.mubr.f32.gmra.mrb[164].mxu1 %v12053_v12 }
 0x9c5   : > { %5966 = vmatprep.mubr.f32.mxu1 %v12072_v3 }
 0x9c8   : > { %5967 = vmatmul.mubr.f32.gmra.mrb[166].mxu1 %v12068_v46 }
 0x9c9   : > { %5972 = vmatprep.mubr.f32.mxu1 %v12081_v24 }
 0x9cc   : > { %5973 = vmatmul.mubr.f32.gmra.mrb[168].mxu1 %v12077_v22  ;;  %v12876_v22 = vld [vmem:[#allocation50_spill] sm:$0xff] }
 0x9cd   : > { %5978 = vmatprep.mubr.f32.mxu1 %v5309_v15 }
 0x9d0   : > { %5979 = vmatmul.mubr.f32.gmra.mrb[170].mxu1 %v12084_v34 }
 0x9d1   : > { %5984 = vmatprep.mubr.f32.mxu1 %v5315_v0 }
 0x9d4   : > { %5985 = vmatmul.mubr.f32.gmra.mrb[172].mxu1 %v5314_v20  ;;  %v12888_v20 = vld [vmem:[#allocation46_spill] sm:$0xff] }
 0x9d5   : > { %5990 = vmatprep.mubr.f32.mxu1 %v5321_v30 }
 0x9d8   : > { %5991 = vmatmul.mubr.f32.gmra.mrb[174].mxu1 %v5320_v56  ;;  %v12889_v56 = vld [vmem:[#allocation65_spill] sm:$0xff] }
 0xa6f   : > { %v5902_v54 = vpop.f32.mrb[144].mxu1 }
 0xa70   : > { %v5997_v58 = vadd.f32 %v5902_v54, %v12873_v59  ;;  %v5904_v17 = vpop.f32.mrb[145].mxu1  ;;  %v12894_v54 = vld [vmem:[#allocation69_spill] sm:$0xff] }
 0xa71   : > { %v5998_v36 = vadd.f32 %v5904_v17, %v12874_v4  ;;  %v12895_v17 = vld [vmem:[#allocation28_spill] sm:$0xff] }
 0xa72   : > { %6029 = vst [vmem:[%s12134_s28] sm:$0xff] %v5997_v58 }
 0xa73   : > { %6030 = vst [vmem:[%s12134_s28 + $0x8] sm:$0xff] %v5998_v36  ;;  %v5908_v12 = vpop.f32.mrb[146].mxu1 }
 0xa74   : > { %v5999_v46 = vadd.f32 %v5908_v12, %v12875_v5  ;;  %v5910_v3 = vpop.f32.mrb[147].mxu1  ;;  %v12896_v12 = vld [vmem:[#allocation30_spill] sm:$0xff] }
 0xa75   : > { %v6000_v24 = vadd.f32 %v5910_v3, %v12876_v22  ;;  %v12897_v3 = vld [vmem:[#allocation66_spill] sm:$0xff] }
 0xa76   : > { %6031 = vst [vmem:[%s12134_s28 + $0x10] sm:$0xff] %v5999_v46 }
 0xa77   : > { %6032 = vst [vmem:[%s12134_s28 + $0x18] sm:$0xff] %v6000_v24  ;;  %v5914_v44 = vpop.f32.mrb[148].mxu1 }
 0xa78   : > { %v6001_v14 = vadd.f32 %v5914_v44, %v12877_v62  ;;  %v5916_v34 = vpop.f32.mrb[149].mxu1  ;;  %v12898_v44 = vld [vmem:[#allocation57_spill] sm:$0xff] }
 0xa79   : > { %v6002_v42 = vadd.f32 %v5916_v34, %v12878_v2  ;;  %v12899_v34 = vld [vmem:[#allocation32_spill] sm:$0xff] }
 0xa7a   : > { %6033 = vst [vmem:[%s12134_s28 + $0x20] sm:$0xff] %v6001_v14 }
 0xa7b   : > { %6034 = vst [vmem:[%s12134_s28 + $0x28] sm:$0xff] %v6002_v42  ;;  %v5920_v38 = vpop.f32.mrb[150].mxu1 }
 0xa7c   : > { %v6003_v61 = vadd.f32 %v5920_v38, %v12879_v35  ;;  %v5922_v53 = vpop.f32.mrb[151].mxu1  ;;  %v12900_v38 = vld [vmem:[#allocation33_spill] sm:$0xff] }
 0xa7d   : > { %v6004_v13 = vadd.f32 %v5922_v53, %v12880_v9  ;;  %v12901_v53 = vld [vmem:[#allocation34_spill] sm:$0xff] }
 0xa7e   : > { %6035 = vst [vmem:[%s12134_s28 + $0x30] sm:$0xff] %v6003_v61 }
 0xa7f   : > { %6036 = vst [vmem:[%s12134_s28 + $0x38] sm:$0xff] %v6004_v13  ;;  %v5926_v11 = vpop.f32.mrb[152].mxu1 }
 0xa80   : > { %v6005_v10 = vadd.f32 %v5926_v11, %v12881_v33  ;;  %v5928_v26 = vpop.f32.mrb[153].mxu1  ;;  %v12902_v11 = vld [vmem:[#allocation36_spill] sm:$0xff] }
 0xa81   : > { %v6006_v63 = vadd.f32 %v5928_v26, %v12882_v27  ;;  %v12903_v26 = vld [vmem:[#allocation37_spill] sm:$0xff] }
 0xa82   : > { %6037 = vst [vmem:[%s12134_s28 + $0x40] sm:$0xff] %v6005_v10 }
 0xa83   : > { %6038 = vst [vmem:[%s12134_s28 + $0x48] sm:$0xff] %v6006_v63  ;;  %v5932_v39 = vpop.f32.mrb[154].mxu1 }
 0xa84   : > { %v6007_v16 = vadd.f32 %v5932_v39, %v12883_v41  ;;  %v5934_v45 = vpop.f32.mrb[155].mxu1  ;;  %v12905_v39 = vld [vmem:[#allocation39_spill] sm:$0xff] }
 0xa85   : > { %v6008_v40 = vadd.f32 %v5934_v45, %v12884_v55 }
 0xa86   : > { %6039 = vst [vmem:[%s12134_s28 + $0x50] sm:$0xff] %v6007_v16 }
 0xa87   : > { %6040 = vst [vmem:[%s12134_s28 + $0x58] sm:$0xff] %v6008_v40  ;;  %v5938_v49 = vpop.f32.mrb[156].mxu1 }
 0xa88   : > { %v6009_v57 = vadd.f32 %v5938_v49, %v12885_v25  ;;  %v5940_v21 = vpop.f32.mrb[157].mxu1 }
 0xa89   : > { %v6010_v8 = vadd.f32 %v5940_v21, %v12886_v32 }
 0xa8a   : > { %6041 = vst [vmem:[%s12134_s28 + $0x60] sm:$0xff] %v6009_v57 }
 0xa8b   : > { %6042 = vst [vmem:[%s12134_s28 + $0x68] sm:$0xff] %v6010_v8  ;;  %v5944_v15 = vpop.f32.mrb[158].mxu1 }
 0xa8c   : > { %v6011_v51 = vadd.f32 %v5944_v15, %v12887_v29  ;;  %v5946_v1 = vpop.f32.mrb[159].mxu1 }
 0xa8d   : > { %v6012_v31 = vadd.f32 %v5946_v1, %v12888_v20 }
 0xa8e   : > { %6043 = vst [vmem:[%s12134_s28 + $0x70] sm:$0xff] %v6011_v51 }
 0xa8f   : > { %6044 = vst [vmem:[%s12134_s28 + $0x78] sm:$0xff] %v6012_v31  ;;  %v5950_v0 = vpop.f32.mrb[160].mxu1 }
 0xa90   : > { %v6013_v23 = vadd.f32 %v5950_v0, %v12889_v56  ;;  %v5952_v30 = vpop.f32.mrb[161].mxu1 }
 0xa91   : > { %v6014_v37 = vadd.f32 %v5952_v30, %v12890_v19 }
 0xa92   : > { %6045 = vst [vmem:[%s12134_s28 + $0x80] sm:$0xff] %v6013_v23 }
 0xa93   : > { %6046 = vst [vmem:[%s12134_s28 + $0x88] sm:$0xff] %v6014_v37  ;;  %v5956_v6 = vpop.f32.mrb[162].mxu1 }
 0xa94   : > { %v6015_v47 = vadd.f32 %v5956_v6, %v12891_v52  ;;  %v5958_v18 = vpop.f32.mrb[163].mxu1 }
 0xa95   : > { %v6016_v50 = vadd.f32 %v5958_v18, %v12892_v48 }
 0xa96   : > { %6047 = vst [vmem:[%s12134_s28 + $0x90] sm:$0xff] %v6015_v47 }
 0xa97   : > { %6048 = vst [vmem:[%s12134_s28 + $0x98] sm:$0xff] %v6016_v50  ;;  %v5962_v43 = vpop.f32.mrb[164].mxu1 }
 0xa98   : > { %v6017_v28 = vadd.f32 %v5962_v43, %v12893_v7  ;;  %v5964_v60 = vpop.f32.mrb[165].mxu1 }
 0xa99   : > { %v6018_v59 = vadd.f32 %v5964_v60, %v12894_v54 }
 0xa9a   : > { %6049 = vst [vmem:[%s12134_s28 + $0xa0] sm:$0xff] %v6017_v28 }
 0xa9b   : > { %6050 = vst [vmem:[%s12134_s28 + $0xa8] sm:$0xff] %v6018_v59  ;;  %v5968_v58 = vpop.f32.mrb[166].mxu1 }
 0xa9c   : > { %v6019_v4 = vadd.f32 %v5968_v58, %v12895_v17  ;;  %v5970_v36 = vpop.f32.mrb[167].mxu1 }
 0xa9d   : > { %v6020_v5 = vadd.f32 %v5970_v36, %v12896_v12 }
 0xa9e   : > { %6051 = vst [vmem:[%s12134_s28 + $0xb0] sm:$0xff] %v6019_v4 }
 0xa9f   : > { %6052 = vst [vmem:[%s12134_s28 + $0xb8] sm:$0xff] %v6020_v5  ;;  %v5974_v46 = vpop.f32.mrb[168].mxu1 }
 0xaa0   : > { %v6021_v22 = vadd.f32 %v5974_v46, %v12897_v3  ;;  %v5976_v24 = vpop.f32.mrb[169].mxu1 }
 0xaa1   : > { %v6022_v62 = vadd.f32 %v5976_v24, %v12898_v44 }
 0xaa2   : > { %6053 = vst [vmem:[%s12134_s28 + $0xc0] sm:$0xff] %v6021_v22 }
 0xaa3   : > { %6054 = vst [vmem:[%s12134_s28 + $0xc8] sm:$0xff] %v6022_v62  ;;  %v5980_v14 = vpop.f32.mrb[170].mxu1 }
 0xaa4   : > { %v6023_v2 = vadd.f32 %v5980_v14, %v12899_v34  ;;  %v5982_v42 = vpop.f32.mrb[171].mxu1 }
 0xaa5   : > { %v6024_v35 = vadd.f32 %v5982_v42, %v12900_v38 }
 0xaa6   : > { %6055 = vst [vmem:[%s12134_s28 + $0xd0] sm:$0xff] %v6023_v2 }
 0xaa7   : > { %6056 = vst [vmem:[%s12134_s28 + $0xd8] sm:$0xff] %v6024_v35  ;;  %v5986_v61 = vpop.f32.mrb[172].mxu1 }
 0xaa8   : > { %v6025_v9 = vadd.f32 %v5986_v61, %v12901_v53  ;;  %v5988_v13 = vpop.f32.mrb[173].mxu1 }
 0xaa9   : > { %v6026_v33 = vadd.f32 %v5988_v13, %v12902_v11 }
 0xaaa   : > { %6057 = vst [vmem:[%s12134_s28 + $0xe0] sm:$0xff] %v6025_v9 }
 0xaab   : > { %6058 = vst [vmem:[%s12134_s28 + $0xe8] sm:$0xff] %v6026_v33  ;;  %v5992_v10 = vpop.f32.mrb[174].mxu1 }
 0xaac   : > { %v6027_v27 = vadd.f32 %v5992_v10, %v12903_v26  ;;  %v5994_v63 = vpop.f32.mrb[175].mxu1 }
 0xaad   : > { %v6028_v41 = vadd.f32 %v5994_v63, %v12905_v39 }
 0xaae   : > { %6059 = vst [vmem:[%s12134_s28 + $0xf0] sm:$0xff] %v6027_v27 }
 0xaaf   : > { %6060 = vst [vmem:[%s12134_s28 + $0xf8] sm:$0xff] %v6028_v41 }
 0xab0   : > { %8690 = shalt.err (!%p8687_p10)
}
 0xab1   : > { %s8691_s18 = scalar_lea.hbm %s12200_s20, 4096  ;;  %s8695_s10 = scalar_lea.hbm %s12904_s11, 8192 }
 0xab2   : > { %p8692_p11 = scmp.ne.s32.totalorder %s12200_s20, %s8691_s18  ;;  %p8696_p9 = scmp.lt.u32.totalorder %s12200_s20, %s12904_s11 }
 0xab3   : > { %p8697_p7 = scmp.lt.u32.totalorder %s8695_s10, %s8691_s18  ;;  %p8699_p12 = scmp.lt.u32.totalorder %s8691_s18, %s12200_s20 }
 0xab4   : > { %p8693_p3 = pnand %p8692_p11, %p12906_p1 }
 0xab5   : > { %p8698_p4 = por %p8697_p7, %p8696_p9 }
 0xab6   : > { %p8694_p5 = pneg %p8693_p3 }
 0xab7   : > { %p8700_p13 = por %p8699_p12, %p8698_p4 }
 0xab9   : > { %p8701_p0 = pnand %p8700_p13, %p8694_p5 }
 0xabb   : > { %8704 = shalt.err (!%p8701_p0)
}
 0xabc   : > { %s8777_s22 = smov 256   ;;  %s8778_s12 = smov 16  }
 0xabd   : > { %7747 = dma.vmem_to_hbm [thread:$0]  (%p12906_p1), %s12202_s27, 4096, %s12200_s20, %s6062_s19, %s8777_s22, %s8777_s22, %s8778_s12  }
 0xabe PF: > { %s6090_s24 = sand.u32 1, %s8747_s13   ;;  %p12907_p2 = scmp.ne.s32.totalorder %s12440_s21, 0 }
 0xabf   : > { %p12908_p8 = scmp.ge.s32.totalorder %s8759_s16, 2  ;;  %s6091_s18 = scalar_lea.sflag [#allocation5], %s6090_s24 }
 0xac1   : > { %p7776_p6 = pnand %p12908_p8, %p12907_p2 }
 0xac3   : > { %8742 = dma.done.wait (!%p7776_p6), %s6091_s18, 4096  }
 0xac4   : > { %8744 = vsyncadd (!%p7776_p6), %s6091_s18, 4294963200  ;;  %p27_p10 = scmp.ge.s32.totalorder %s9050_s23, 4   ;;  %s12909_s13 = smov %s8751_s14 }
 0xac5   : > { %s12910_s14 = smov %s8755_s15  ;;  %s12911_s15 = smov %s9062_s17 }
 0xac6   : > { %s12912_s16 = smov %s9050_s23  ;;  %29 = sbr.rel (!%p27_p10) target bundleno = 12 (0xc), region = 133 }
 0xacd   :  { %6096 = vsyncpa [#allocation4], 1 }
 0xace   :  { %6098 = vsyncpa [#allocation4 + $0x1], 1 }
 0xacf   :  { %6099 = vsyncpa [#allocation7], 1 }
 0xad0   :  { %6100 = vsyncpa [#allocation10], 1 }
 0xad1   :  { %6101 = vsyncpa [#allocation13], 1 }
 0xad2   :  { %6102 = vsyncpa [#allocation16], 1 }
 0xad3   :  { %6103 = vsyncpa [#allocation5], 1 }
 0xad4   :  { %6105 = vsyncpa [#allocation5 + $0x1], 1 }

</bundles_post_ra>
